<compile_context>
chip_gen: v7x
topology: tpu7x:2x2x1
jax: 0.10.0
libtpu: 0.0.40
codegen_flags: <defaults>
</compile_context>

<pallas_src>
import math
import functools

import jax
import jax.numpy as jnp
from jax.experimental import pallas as pl
from jax.experimental.pallas import tpu as pltpu

EPS = 1e-5
DTYPE = jnp.float32
MM_DTYPE = jnp.bfloat16      # MXU operand dtype; accumulation stays f32


def _pick_vmem_limit():
    # Generation-aware scoped-VMEM limit: stay well under v7x's 64 MiB physical
    # VMEM; allow more headroom on v5e/v6e (128 MiB).  Fallback 48 MiB is safe
    # on every generation.
    default = 48 * 1024 * 1024
    try:
        cap = getattr(pltpu.get_tpu_info(), "vmem_capacity_bytes", None)
        if cap:
            return int(min(cap - 16 * 1024 * 1024, 96 * 1024 * 1024))
    except Exception:
        pass
    return default


_VMEM_LIMIT = _pick_vmem_limit()


def _round_up(x, m):
    return ((x + m - 1) // m) * m


def _pad2d(a, rows, cols):
    return jnp.pad(a, ((0, rows - a.shape[0]), (0, cols - a.shape[1])))


def _full_spec(shape):
    # Whole-array block for the (tiny) head kernel.
    return pl.BlockSpec(shape, lambda i: (0,) * len(shape))


# ------------------------- Pallas kernels ---------------------------------

def _mm_bn_kernel(x_ref, w_ref, scale_ref, shift_ref, o_ref, acc_ref, *, relu):
    # Tiled matmul with f32 accumulator; BN (+ReLU) fused in the K-final step.
    @pl.when(pl.program_id(2) == 0)
    def _init():
        acc_ref[...] = jnp.zeros_like(acc_ref)

    acc_ref[...] += jnp.dot(x_ref[...], w_ref[...],
                            preferred_element_type=jnp.float32)

    @pl.when(pl.program_id(2) == pl.num_programs(2) - 1)
    def _finalize():
        out = acc_ref[...] * scale_ref[...] + shift_ref[...]
        if relu:
            out = jnp.maximum(out, 0.0)
        o_ref[...] = out.astype(o_ref.dtype)


def _mm_bn_add_relu_kernel(x_ref, w_ref, scale_ref, shift_ref, res_ref,
                           o_ref, acc_ref):
    # Same as above plus the residual add before the final ReLU.
    @pl.when(pl.program_id(2) == 0)
    def _init():
        acc_ref[...] = jnp.zeros_like(acc_ref)

    acc_ref[...] += jnp.dot(x_ref[...], w_ref[...],
                            preferred_element_type=jnp.float32)

    @pl.when(pl.program_id(2) == pl.num_programs(2) - 1)
    def _finalize():
        out = acc_ref[...] * scale_ref[...] + shift_ref[...] + res_ref[...]
        o_ref[...] = jnp.maximum(out, 0.0).astype(o_ref.dtype)


def _maxpool_kernel(p_ref, o_ref):
    # p_ref: (9, tm, C)  ->  max over the 3x3 window axis
    o_ref[...] = jnp.max(p_ref[...], axis=0)


def _head_kernel(x_ref, w_ref, b_ref, o_ref):
    # x_ref: (N, H*W, C) ; AdaptiveAvgPool2d((1,1)) == mean over the spatial axis
    pooled = jnp.mean(x_ref[...], axis=1)
    logits = jnp.dot(pooled, w_ref[...],
                     preferred_element_type=jnp.float32) + b_ref[...]
    # numerically-stable sigmoid via tanh (EUP path)
    o_ref[...] = (0.5 * (jnp.tanh(0.5 * logits) + 1.0)).astype(o_ref.dtype)


# ------------------------- pallas_call wrappers ----------------------------

def _conv_matmul(patches, w2d, scale, shift, res=None, relu=True):
    """Fused (im2col-matmul + BN [+res] [+ReLU]) with a tiled M/N/K grid."""
    M, K = patches.shape
    N = w2d.shape[1]

    # Tile sizes: aligned to (8,128) vregs / 128-256 MXU lanes, clamped to the
    # (small) problem size so the grid stays dense.
    tm = min(256, _round_up(M, 8))
    tn = min(256, _round_up(N, 128))
    Ka = _round_up(K, 128)
    tk = Ka if Ka <= 2048 else 512
    Mp, Np, Kp = _round_up(M, tm), _round_up(N, tn), _round_up(K, tk)

    # Zero-pad operands (e.g. stem K = 7*7*3 = 147 -> 256) and cast matmul
    # operands to bf16; BN epilogue + accumulation stay f32.
    x_p = _pad2d(patches, Mp, Kp).astype(MM_DTYPE)
    w_p = _pad2d(w2d, Kp, Np).astype(MM_DTYPE)
    sc_p = _pad2d(scale, 1, Np)
    sh_p = _pad2d(shift, 1, Np)

    grid = (Mp // tm, Np // tn, Kp // tk)      # reduction (K) axis last

    in_specs = [
        pl.BlockSpec((tm, tk), lambda i, j, k: (i, k)),
        pl.BlockSpec((tk, tn), lambda i, j, k: (k, j)),
        pl.BlockSpec((1, tn), lambda i, j, k: (0, j)),
        pl.BlockSpec((1, tn), lambda i, j, k: (0, j)),
    ]
    args = [x_p, w_p, sc_p, sh_p]
    if res is None:
        kernel = functools.partial(_mm_bn_kernel, relu=relu)
        res_bytes = 0
    else:
        in_specs.append(pl.BlockSpec((tm, tn), lambda i, j, k: (i, j)))
        args.append(_pad2d(res, Mp, Np))
        kernel = _mm_bn_add_relu_kernel
        res_bytes = Mp * Np * 4

    cost = pl.CostEstimate(
        flops=2 * Mp * Np * Kp,
        transcendentals=0,
        bytes_accessed=(Mp * Kp + Kp * Np) * 2 + Mp * Np * 4 + res_bytes)

    out = pl.pallas_call(
        kernel,
        grid=grid,
        in_specs=in_specs,
        out_specs=pl.BlockSpec((tm, tn), lambda i, j, k: (i, j)),
        out_shape=jax.ShapeDtypeStruct((Mp, Np), DTYPE),
        scratch_shapes=[pltpu.VMEM((tm, tn), jnp.float32)],
        compiler_params=pltpu.CompilerParams(
            dimension_semantics=("parallel", "parallel", "arbitrary"),
            vmem_limit_bytes=_VMEM_LIMIT),
        cost_estimate=cost,
    )(*args)
    return out[:M, :N]


# ------------------------- im2col glue (plain JAX) -------------------------

def _out_size(h, k, s, p):
    return (h + 2 * p - k) // s + 1


def _extract_patches(x, kh, kw, stride, pad):
    # x: (N, H, W, C) -> (N*OH*OW, kh*kw*C)   (stride/pad are static ints)
    N, H, W, C = x.shape
    OH = _out_size(H, kh, stride, pad)
    OW = _out_size(W, kw, stride, pad)
    xp = jnp.pad(x, ((0, 0), (pad, pad), (pad, pad), (0, 0)))
    pieces = []
    for i in range(kh):
        for j in range(kw):
            pieces.append(xp[:, i:i + stride * OH:stride,
                             j:j + stride * OW:stride, :])
    p = jnp.stack(pieces, axis=3)                # (N, OH, OW, kh*kw, C)
    return p.reshape(N * OH * OW, kh * kw * C), OH, OW


def _extract_pool_patches(x, k, stride, pad):
    # returns (k*k, M, C) with -inf padding for max-pool semantics
    N, H, W, C = x.shape
    OH = _out_size(H, k, stride, pad)
    OW = _out_size(W, k, stride, pad)
    xp = jnp.pad(x, ((0, 0), (pad, pad), (pad, pad), (0, 0)),
                 constant_values=-jnp.inf)
    pieces = []
    for i in range(k):
        for j in range(k):
            pieces.append(xp[:, i:i + stride * OH:stride,
                             j:j + stride * OW:stride, :].reshape(N * OH * OW, C))
    return jnp.stack(pieces, axis=0), OH, OW


# ------------------------- layer-level ops ---------------------------------

def conv_bn(x, p, stride, pad, relu):
    kh, kw, ic, oc = p['w'].shape
    patches, OH, OW = _extract_patches(x, kh, kw, stride, pad)
    out = _conv_matmul(patches, p['w'].reshape(kh * kw * ic, oc),
                       p['scale'], p['shift'], res=None, relu=relu)
    return out.reshape(x.shape[0], OH, OW, oc)


def conv_bn_add_relu(x, p, identity):
    kh, kw, ic, oc = p['w'].shape
    patches, OH, OW = _extract_patches(x, kh, kw, 1, 1)
    res = identity.reshape(x.shape[0] * OH * OW, oc)
    out = _conv_matmul(patches, p['w'].reshape(kh * kw * ic, oc),
                       p['scale'], p['shift'], res=res)
    return out.reshape(x.shape[0], OH, OW, oc)


def maxpool_3x3_s2(x):
    N, H, W, C = x.shape
    patches, OH, OW = _extract_pool_patches(x, 3, 2, 1)   # (9, M, C)
    M = N * OH * OW
    tm = min(512, _round_up(M, 8))
    Mp = _round_up(M, tm)
    patches = jnp.pad(patches, ((0, 0), (0, Mp - M), (0, 0)))
    out = pl.pallas_call(
        _maxpool_kernel,
        grid=(Mp // tm,),
        in_specs=[pl.BlockSpec((9, tm, C), lambda i: (0, i, 0))],
        out_specs=pl.BlockSpec((tm, C), lambda i: (i, 0)),
        out_shape=jax.ShapeDtypeStruct((Mp, C), DTYPE),
        compiler_params=pltpu.CompilerParams(
            dimension_semantics=("parallel",),
            vmem_limit_bytes=_VMEM_LIMIT),
    )(patches)
    return out[:M].reshape(N, OH, OW, C)


def head(x3d, w, b):
    # Fused adaptive-avg-pool + Linear + sigmoid (tiny shapes, single block).
    N, HW, C = x3d.shape
    nc = w.shape[1]
    return pl.pallas_call(
        _head_kernel,
        grid=(1,),
        in_specs=[_full_spec((N, HW, C)), _full_spec((C, nc)), _full_spec((1, nc))],
        out_specs=_full_spec((N, nc)),
        out_shape=jax.ShapeDtypeStruct((N, nc), DTYPE),
        compiler_params=pltpu.CompilerParams(vmem_limit_bytes=_VMEM_LIMIT),
    )(x3d, w, b)


def basic_block(x, bp, stride):
    # Standard 2-conv BasicBlock (expansion = 1):
    #   out = relu(bn2(conv2(relu(bn1(conv1(x))))) + downsample(x))
    identity = x
    out = conv_bn(x, bp['conv1'], stride=stride, pad=1, relu=True)
    if bp['down'] is not None:
        identity = conv_bn(x, bp['down'], stride=stride, pad=0, relu=False)
    return conv_bn_add_relu(out, bp['conv2'], identity)


def resnet_forward(params, x_nchw, *, strides):
    # `strides` is a static nested tuple of Python ints (kept OUT of the
    # traced pytree so slicing stays static under jit).
    x = jnp.transpose(x_nchw, (0, 2, 3, 1))                      # NCHW -> NHWC
    x = conv_bn(x, params['stem'], stride=2, pad=3, relu=True)   # conv1+bn1+relu
    x = maxpool_3x3_s2(x)                                        # max_pool
    for layer_params, layer_strides in zip(params['layers'], strides):
        for bp, s in zip(layer_params, layer_strides):
            x = basic_block(x, bp, s)
    N, H, W, C = x.shape
    return head(x.reshape(N, H * W, C), params['fc_w'], params['fc_b'])


# ------------------------- deterministic parameter init --------------------

def _init_bn(key, c, conv_bias=None):
    k1, k2, k3, k4 = jax.random.split(key, 4)
    gamma = 1.0 + 0.1 * jax.random.normal(k1, (c,), DTYPE)
    beta = 0.1 * jax.random.normal(k2, (c,), DTYPE)
    mean = 0.1 * jax.random.normal(k3, (c,), DTYPE)
    var = 0.9 + 0.2 * jax.random.uniform(k4, (c,), DTYPE)
    scale = gamma / jnp.sqrt(var + EPS)
    shift = beta - mean * scale
    if conv_bias is not None:
        shift = shift + conv_bias * scale        # fold conv bias into BN shift
    return scale.reshape(1, c), shift.reshape(1, c)


def _init_conv_bn(key, kh, kw, ic, oc, bias=False):
    kw_, kb, kbn = jax.random.split(key, 3)
    fan_in = kh * kw * ic
    w = jax.random.normal(kw_, (kh, kw, ic, oc), DTYPE) / math.sqrt(fan_in)
    b = (jax.random.normal(kb, (oc,), DTYPE) / math.sqrt(fan_in)) if bias else None
    scale, shift = _init_bn(kbn, oc, conv_bias=b)
    return {'w': w, 'scale': scale, 'shift': shift}


def init_resnet(key, layer_list, num_classes, num_channels=3):
    k_stem, k_blocks, k_fc = jax.random.split(key, 3)
    params = {'stem': _init_conv_bn(k_stem, 7, 7, num_channels, 64)}
    in_c = 64
    layers, strides = [], []
    plane_list = [64, 128, 256, 512]
    stride_list = [1, 2, 2, 2]
    for li, (planes, stride, nblocks) in enumerate(
            zip(plane_list, stride_list, layer_list)):
        blocks, block_strides = [], []
        for b in range(nblocks):
            s = stride if b == 0 else 1
            kblock = jax.random.fold_in(k_blocks, li * 16 + b)
            k1, k2, k3 = jax.random.split(kblock, 3)
            bp = {'conv1': _init_conv_bn(k1, 3, 3, in_c, planes),
                  'conv2': _init_conv_bn(k2, 3, 3, planes, planes),
                  'down': None}
            if s != 1 or in_c != planes:
                # downsample conv: spec uses nn.Conv2d default bias=True + BN
                bp['down'] = _init_conv_bn(k3, 1, 1, in_c, planes, bias=True)
            blocks.append(bp)
            block_strides.append(s)
            in_c = planes
        layers.append(blocks)
        strides.append(tuple(block_strides))
    params['layers'] = layers
    kfw, kfb = jax.random.split(k_fc)
    params['fc_w'] = jax.random.normal(kfw, (512, num_classes), DTYPE) / math.sqrt(512)
    params['fc_b'] = 0.01 * jax.random.normal(kfb, (1, num_classes), DTYPE)
    return params, tuple(strides)


# ------------------------- main ---------------------------------------------

if __name__ == "__main__":
    key = jax.random.PRNGKey(0)
    kx, kp = jax.random.split(key)
    # NCHW input, PyTorch convention: batch=2, channels=3, spatial=32x32
    x = jax.random.normal(kx, (2, 3, 32, 32), DTYPE)
    params, strides = init_resnet(kp, layer_list=[1, 1, 1, 1], num_classes=10,
                                  num_channels=3)
    fwd = jax.jit(functools.partial(resnet_forward, strides=strides))
    out = fwd(params, x)
    jax.block_until_ready(out)
    assert out.shape == (2, 10)
    assert bool(jnp.all((out >= 0.0) & (out <= 1.0)))
    print("KERNEL_OK")
</pallas_src>

<mosaic_0001>
module attributes {stable_mosaic.version = 11 : i64} {
  func.func @_mm_bn_kernel(%arg0: i32, %arg1: i32, %arg2: i32, %arg3: memref<256x256xbf16, #tpu.memory_space<vmem>>, %arg4: memref<256x128xbf16, #tpu.memory_space<vmem>>, %arg5: memref<1x128xf32, #tpu.memory_space<vmem>>, %arg6: memref<1x128xf32, #tpu.memory_space<vmem>>, %arg7: memref<256x128xf32, #tpu.memory_space<vmem>>, %arg8: memref<256x128xf32, #tpu.memory_space<vmem>>) attributes {dimension_semantics = [#tpu.dimension_semantics<parallel>, #tpu.dimension_semantics<parallel>, #tpu.dimension_semantics<arbitrary>], iteration_bounds = array<i64: 2, 1, 1>, scalar_prefetch = 0 : i64, scratch_operands = 1 : i64, tpu.core_type = #tpu.core_type<tc>, window_params = [{transform_indices = @transform_0, window_bounds = array<i64: 256, 256>}, {transform_indices = @transform_1, window_bounds = array<i64: 256, 128>}, {transform_indices = @transform_2, window_bounds = array<i64: 1, 128>}, {transform_indices = @transform_3, window_bounds = array<i64: 1, 128>}, {transform_indices = @transform_4, window_bounds = array<i64: 256, 128>}]} {
    %c0_i32 = arith.constant 0 : i32
    %0 = arith.cmpi eq, %arg2, %c0_i32 : i32
    %1 = arith.extui %0 : i1 to i32
    %c0_i32_0 = arith.constant 0 : i32
    %2 = arith.cmpi ne, %1, %c0_i32_0 : i32
    scf.if %2 {
      %cst_10 = arith.constant 0.000000e+00 : f32
      %12 = vector.broadcast %cst_10 : f32 to vector<256x128xf32>
      %c0_11 = arith.constant 0 : index
      %c0_12 = arith.constant 0 : index
      %13 = vector.load %arg8[%c0_11, %c0_12] : memref<256x128xf32, #tpu.memory_space<vmem>>, vector<256x128xf32>
      tpu.vector_store %arg8[%c0_11, %c0_12], %12 {strides = array<i32>} : memref<256x128xf32, #tpu.memory_space<vmem>>, vector<256x128xf32>,
    } else {
    }
    %c0 = arith.constant 0 : index
    %c0_1 = arith.constant 0 : index
    %3 = vector.load %arg8[%c0, %c0_1] : memref<256x128xf32, #tpu.memory_space<vmem>>, vector<256x128xf32>
    %c0_2 = arith.constant 0 : index
    %c0_3 = arith.constant 0 : index
    %4 = vector.load %arg3[%c0_2, %c0_3] : memref<256x256xbf16, #tpu.memory_space<vmem>>, vector<256x256xbf16>
    %c0_4 = arith.constant 0 : index
    %c0_5 = arith.constant 0 : index
    %5 = vector.load %arg4[%c0_4, %c0_5] : memref<256x128xbf16, #tpu.memory_space<vmem>>, vector<256x128xbf16>
    %cst = arith.constant dense<0.000000e+00> : vector<256x128xf32>
    %6 = tpu.matmul %4, %5, %cst {dimension_numbers = #tpu.dot_dimension_numbers<[1], [0], [0], [1], [0, 0, 1, 1], [], []>} : vector<256x256xbf16>, vector<256x128xbf16>, vector<256x128xf32> -> vector<256x128xf32>
    %7 = arith.addf %3, %6 : vector<256x128xf32>
    %c0_6 = arith.constant 0 : index
    %c0_7 = arith.constant 0 : index
    %8 = vector.load %arg8[%c0_6, %c0_7] : memref<256x128xf32, #tpu.memory_space<vmem>>, vector<256x128xf32>
    tpu.vector_store %arg8[%c0_6, %c0_7], %7 {strides = array<i32>} : memref<256x128xf32, #tpu.memory_space<vmem>>, vector<256x128xf32>,
    %c0_i32_8 = arith.constant 0 : i32
    %9 = arith.cmpi eq, %arg2, %c0_i32_8 : i32
    %10 = arith.extui %9 : i1 to i32
    %c0_i32_9 = arith.constant 0 : i32
    %11 = arith.cmpi ne, %10, %c0_i32_9 : i32
    scf.if %11 {
      %c0_10 = arith.constant 0 : index
      %c0_11 = arith.constant 0 : index
      %12 = vector.load %arg8[%c0_10, %c0_11] : memref<256x128xf32, #tpu.memory_space<vmem>>, vector<256x128xf32>
      %c0_12 = arith.constant 0 : index
      %c0_13 = arith.constant 0 : index
      %13 = vector.load %arg5[%c0_12, %c0_13] : memref<1x128xf32, #tpu.memory_space<vmem>>, vector<1x128xf32>
      %14 = vector.broadcast %13 : vector<1x128xf32> to vector<256x128xf32>
      %15 = arith.mulf %12, %14 : vector<256x128xf32>
      %c0_14 = arith.constant 0 : index
      %c0_15 = arith.constant 0 : index
      %16 = vector.load %arg6[%c0_14, %c0_15] : memref<1x128xf32, #tpu.memory_space<vmem>>, vector<1x128xf32>
      %17 = vector.broadcast %16 : vector<1x128xf32> to vector<256x128xf32>
      %18 = arith.addf %15, %17 : vector<256x128xf32>
      %cst_16 = arith.constant 0.000000e+00 : f32
      %19 = vector.broadcast %cst_16 : f32 to vector<256x128xf32>
      %20 = arith.maximumf %18, %19 : vector<256x128xf32>
      %c0_17 = arith.constant 0 : index
      %c0_18 = arith.constant 0 : index
      %21 = vector.load %arg7[%c0_17, %c0_18] : memref<256x128xf32, #tpu.memory_space<vmem>>, vector<256x128xf32>
      tpu.vector_store %arg7[%c0_17, %c0_18], %20 {strides = array<i32>} : memref<256x128xf32, #tpu.memory_space<vmem>>, vector<256x128xf32>,
    } else {
    }
    return
  }
  func.func @transform_0(%arg0: i32, %arg1: i32, %arg2: i32) -> (i32, i32) {
    %c0_i32 = arith.constant 0 : i32
    return %arg0, %arg2 : i32, i32
  }
  func.func @transform_1(%arg0: i32, %arg1: i32, %arg2: i32) -> (i32, i32) {
    %c0_i32 = arith.constant 0 : i32
    return %arg2, %arg1 : i32, i32
  }
  func.func @transform_2(%arg0: i32, %arg1: i32, %arg2: i32) -> (i32, i32) {
    %c0_i32 = arith.constant 0 : i32
    %c0_i32_0 = arith.constant 0 : i32
    return %c0_i32, %arg1 : i32, i32
  }
  func.func @transform_3(%arg0: i32, %arg1: i32, %arg2: i32) -> (i32, i32) {
    %c0_i32 = arith.constant 0 : i32
    %c0_i32_0 = arith.constant 0 : i32
    return %c0_i32, %arg1 : i32, i32
  }
  func.func @transform_4(%arg0: i32, %arg1: i32, %arg2: i32) -> (i32, i32) {
    %c0_i32 = arith.constant 0 : i32
    return %arg0, %arg1 : i32, i32
  }
}

module attributes {stable_mosaic.version = 11 : i64} {
  func.func @_maxpool_kernel(%arg0: i32, %arg1: memref<9x128x64xf32, #tpu.memory_space<vmem>>, %arg2: memref<128x64xf32, #tpu.memory_space<vmem>>) attributes {dimension_semantics = [#tpu.dimension_semantics<parallel>], iteration_bounds = array<i64: 1>, scalar_prefetch = 0 : i64, scratch_operands = 0 : i64, tpu.core_type = #tpu.core_type<tc>, window_params = [{transform_indices = @transform_0, window_bounds = array<i64: 9, 128, 64>}, {transform_indices = @transform_1, window_bounds = array<i64: 128, 64>}]} {
    %c0 = arith.constant 0 : index
    %c0_0 = arith.constant 0 : index
    %c0_1 = arith.constant 0 : index
    %0 = vector.load %arg1[%c0, %c0_0, %c0_1] : memref<9x128x64xf32, #tpu.memory_space<vmem>>, vector<9x128x64xf32>
    %cst = arith.constant dense<0xFF800000> : vector<128x64xf32>
    %1 = vector.multi_reduction <maximumf>, %0, %cst [0] : vector<9x128x64xf32> to vector<128x64xf32>
    %c0_2 = arith.constant 0 : index
    %c0_3 = arith.constant 0 : index
    %2 = vector.load %arg2[%c0_2, %c0_3] : memref<128x64xf32, #tpu.memory_space<vmem>>, vector<128x64xf32>
    tpu.vector_store %arg2[%c0_2, %c0_3], %1 {strides = array<i32>} : memref<128x64xf32, #tpu.memory_space<vmem>>, vector<128x64xf32>,
    return
  }
  func.func @transform_0(%arg0: i32) -> (i32, i32, i32) {
    %c0_i32 = arith.constant 0 : i32
    %c0_i32_0 = arith.constant 0 : i32
    %c0_i32_1 = arith.constant 0 : i32
    return %c0_i32, %arg0, %c0_i32_0 : i32, i32, i32
  }
  func.func @transform_1(%arg0: i32) -> (i32, i32) {
    %c0_i32 = arith.constant 0 : i32
    %c0_i32_0 = arith.constant 0 : i32
    return %arg0, %c0_i32 : i32, i32
  }
}

module attributes {stable_mosaic.version = 11 : i64} {
  func.func @_mm_bn_kernel(%arg0: i32, %arg1: i32, %arg2: i32, %arg3: memref<128x640xbf16, #tpu.memory_space<vmem>>, %arg4: memref<640x128xbf16, #tpu.memory_space<vmem>>, %arg5: memref<1x128xf32, #tpu.memory_space<vmem>>, %arg6: memref<1x128xf32, #tpu.memory_space<vmem>>, %arg7: memref<128x128xf32, #tpu.memory_space<vmem>>, %arg8: memref<128x128xf32, #tpu.memory_space<vmem>>) attributes {dimension_semantics = [#tpu.dimension_semantics<parallel>, #tpu.dimension_semantics<parallel>, #tpu.dimension_semantics<arbitrary>], iteration_bounds = array<i64: 1, 1, 1>, scalar_prefetch = 0 : i64, scratch_operands = 1 : i64, tpu.core_type = #tpu.core_type<tc>, window_params = [{transform_indices = @transform_0, window_bounds = array<i64: 128, 640>}, {transform_indices = @transform_1, window_bounds = array<i64: 640, 128>}, {transform_indices = @transform_2, window_bounds = array<i64: 1, 128>}, {transform_indices = @transform_3, window_bounds = array<i64: 1, 128>}, {transform_indices = @transform_4, window_bounds = array<i64: 128, 128>}]} {
    %c0_i32 = arith.constant 0 : i32
    %0 = arith.cmpi eq, %arg2, %c0_i32 : i32
    %1 = arith.extui %0 : i1 to i32
    %c0_i32_0 = arith.constant 0 : i32
    %2 = arith.cmpi ne, %1, %c0_i32_0 : i32
    scf.if %2 {
      %cst_10 = arith.constant 0.000000e+00 : f32
      %12 = vector.broadcast %cst_10 : f32 to vector<128x128xf32>
      %c0_11 = arith.constant 0 : index
      %c0_12 = arith.constant 0 : index
      %13 = vector.load %arg8[%c0_11, %c0_12] : memref<128x128xf32, #tpu.memory_space<vmem>>, vector<128x128xf32>
      tpu.vector_store %arg8[%c0_11, %c0_12], %12 {strides = array<i32>} : memref<128x128xf32, #tpu.memory_space<vmem>>, vector<128x128xf32>,
    } else {
    }
    %c0 = arith.constant 0 : index
    %c0_1 = arith.constant 0 : index
    %3 = vector.load %arg8[%c0, %c0_1] : memref<128x128xf32, #tpu.memory_space<vmem>>, vector<128x128xf32>
    %c0_2 = arith.constant 0 : index
    %c0_3 = arith.constant 0 : index
    %4 = vector.load %arg3[%c0_2, %c0_3] : memref<128x640xbf16, #tpu.memory_space<vmem>>, vector<128x640xbf16>
    %c0_4 = arith.constant 0 : index
    %c0_5 = arith.constant 0 : index
    %5 = vector.load %arg4[%c0_4, %c0_5] : memref<640x128xbf16, #tpu.memory_space<vmem>>, vector<640x128xbf16>
    %cst = arith.constant dense<0.000000e+00> : vector<128x128xf32>
    %6 = tpu.matmul %4, %5, %cst {dimension_numbers = #tpu.dot_dimension_numbers<[1], [0], [0], [1], [0, 0, 1, 1], [], []>} : vector<128x640xbf16>, vector<640x128xbf16>, vector<128x128xf32> -> vector<128x128xf32>
    %7 = arith.addf %3, %6 : vector<128x128xf32>
    %c0_6 = arith.constant 0 : index
    %c0_7 = arith.constant 0 : index
    %8 = vector.load %arg8[%c0_6, %c0_7] : memref<128x128xf32, #tpu.memory_space<vmem>>, vector<128x128xf32>
    tpu.vector_store %arg8[%c0_6, %c0_7], %7 {strides = array<i32>} : memref<128x128xf32, #tpu.memory_space<vmem>>, vector<128x128xf32>,
    %c0_i32_8 = arith.constant 0 : i32
    %9 = arith.cmpi eq, %arg2, %c0_i32_8 : i32
    %10 = arith.extui %9 : i1 to i32
    %c0_i32_9 = arith.constant 0 : i32
    %11 = arith.cmpi ne, %10, %c0_i32_9 : i32
    scf.if %11 {
      %c0_10 = arith.constant 0 : index
      %c0_11 = arith.constant 0 : index
      %12 = vector.load %arg8[%c0_10, %c0_11] : memref<128x128xf32, #tpu.memory_space<vmem>>, vector<128x128xf32>
      %c0_12 = arith.constant 0 : index
      %c0_13 = arith.constant 0 : index
      %13 = vector.load %arg5[%c0_12, %c0_13] : memref<1x128xf32, #tpu.memory_space<vmem>>, vector<1x128xf32>
      %14 = vector.broadcast %13 : vector<1x128xf32> to vector<128x128xf32>
      %15 = arith.mulf %12, %14 : vector<128x128xf32>
      %c0_14 = arith.constant 0 : index
      %c0_15 = arith.constant 0 : index
      %16 = vector.load %arg6[%c0_14, %c0_15] : memref<1x128xf32, #tpu.memory_space<vmem>>, vector<1x128xf32>
      %17 = vector.broadcast %16 : vector<1x128xf32> to vector<128x128xf32>
      %18 = arith.addf %15, %17 : vector<128x128xf32>
      %cst_16 = arith.constant 0.000000e+00 : f32
      %19 = vector.broadcast %cst_16 : f32 to vector<128x128xf32>
      %20 = arith.maximumf %18, %19 : vector<128x128xf32>
      %c0_17 = arith.constant 0 : index
      %c0_18 = arith.constant 0 : index
      %21 = vector.load %arg7[%c0_17, %c0_18] : memref<128x128xf32, #tpu.memory_space<vmem>>, vector<128x128xf32>
      tpu.vector_store %arg7[%c0_17, %c0_18], %20 {strides = array<i32>} : memref<128x128xf32, #tpu.memory_space<vmem>>, vector<128x128xf32>,
    } else {
    }
    return
  }
  func.func @transform_0(%arg0: i32, %arg1: i32, %arg2: i32) -> (i32, i32) {
    %c0_i32 = arith.constant 0 : i32
    return %arg0, %arg2 : i32, i32
  }
  func.func @transform_1(%arg0: i32, %arg1: i32, %arg2: i32) -> (i32, i32) {
    %c0_i32 = arith.constant 0 : i32
    return %arg2, %arg1 : i32, i32
  }
  func.func @transform_2(%arg0: i32, %arg1: i32, %arg2: i32) -> (i32, i32) {
    %c0_i32 = arith.constant 0 : i32
    %c0_i32_0 = arith.constant 0 : i32
    return %c0_i32, %arg1 : i32, i32
  }
  func.func @transform_3(%arg0: i32, %arg1: i32, %arg2: i32) -> (i32, i32) {
    %c0_i32 = arith.constant 0 : i32
    %c0_i32_0 = arith.constant 0 : i32
    return %c0_i32, %arg1 : i32, i32
  }
  func.func @transform_4(%arg0: i32, %arg1: i32, %arg2: i32) -> (i32, i32) {
    %c0_i32 = arith.constant 0 : i32
    return %arg0, %arg1 : i32, i32
  }
}

module attributes {stable_mosaic.version = 11 : i64} {
  func.func @_mm_bn_add_relu_kernel(%arg0: i32, %arg1: i32, %arg2: i32, %arg3: memref<128x640xbf16, #tpu.memory_space<vmem>>, %arg4: memref<640x128xbf16, #tpu.memory_space<vmem>>, %arg5: memref<1x128xf32, #tpu.memory_space<vmem>>, %arg6: memref<1x128xf32, #tpu.memory_space<vmem>>, %arg7: memref<128x128xf32, #tpu.memory_space<vmem>>, %arg8: memref<128x128xf32, #tpu.memory_space<vmem>>, %arg9: memref<128x128xf32, #tpu.memory_space<vmem>>) attributes {dimension_semantics = [#tpu.dimension_semantics<parallel>, #tpu.dimension_semantics<parallel>, #tpu.dimension_semantics<arbitrary>], iteration_bounds = array<i64: 1, 1, 1>, scalar_prefetch = 0 : i64, scratch_operands = 1 : i64, tpu.core_type = #tpu.core_type<tc>, window_params = [{transform_indices = @transform_0, window_bounds = array<i64: 128, 640>}, {transform_indices = @transform_1, window_bounds = array<i64: 640, 128>}, {transform_indices = @transform_2, window_bounds = array<i64: 1, 128>}, {transform_indices = @transform_3, window_bounds = array<i64: 1, 128>}, {transform_indices = @transform_4, window_bounds = array<i64: 128, 128>}, {transform_indices = @transform_5, window_bounds = array<i64: 128, 128>}]} {
    %c0_i32 = arith.constant 0 : i32
    %0 = arith.cmpi eq, %arg2, %c0_i32 : i32
    %1 = arith.extui %0 : i1 to i32
    %c0_i32_0 = arith.constant 0 : i32
    %2 = arith.cmpi ne, %1, %c0_i32_0 : i32
    scf.if %2 {
      %cst_10 = arith.constant 0.000000e+00 : f32
      %12 = vector.broadcast %cst_10 : f32 to vector<128x128xf32>
      %c0_11 = arith.constant 0 : index
      %c0_12 = arith.constant 0 : index
      %13 = vector.load %arg9[%c0_11, %c0_12] : memref<128x128xf32, #tpu.memory_space<vmem>>, vector<128x128xf32>
      tpu.vector_store %arg9[%c0_11, %c0_12], %12 {strides = array<i32>} : memref<128x128xf32, #tpu.memory_space<vmem>>, vector<128x128xf32>,
    } else {
    }
    %c0 = arith.constant 0 : index
    %c0_1 = arith.constant 0 : index
    %3 = vector.load %arg9[%c0, %c0_1] : memref<128x128xf32, #tpu.memory_space<vmem>>, vector<128x128xf32>
    %c0_2 = arith.constant 0 : index
    %c0_3 = arith.constant 0 : index
    %4 = vector.load %arg3[%c0_2, %c0_3] : memref<128x640xbf16, #tpu.memory_space<vmem>>, vector<128x640xbf16>
    %c0_4 = arith.constant 0 : index
    %c0_5 = arith.constant 0 : index
    %5 = vector.load %arg4[%c0_4, %c0_5] : memref<640x128xbf16, #tpu.memory_space<vmem>>, vector<640x128xbf16>
    %cst = arith.constant dense<0.000000e+00> : vector<128x128xf32>
    %6 = tpu.matmul %4, %5, %cst {dimension_numbers = #tpu.dot_dimension_numbers<[1], [0], [0], [1], [0, 0, 1, 1], [], []>} : vector<128x640xbf16>, vector<640x128xbf16>, vector<128x128xf32> -> vector<128x128xf32>
    %7 = arith.addf %3, %6 : vector<128x128xf32>
    %c0_6 = arith.constant 0 : index
    %c0_7 = arith.constant 0 : index
    %8 = vector.load %arg9[%c0_6, %c0_7] : memref<128x128xf32, #tpu.memory_space<vmem>>, vector<128x128xf32>
    tpu.vector_store %arg9[%c0_6, %c0_7], %7 {strides = array<i32>} : memref<128x128xf32, #tpu.memory_space<vmem>>, vector<128x128xf32>,
    %c0_i32_8 = arith.constant 0 : i32
    %9 = arith.cmpi eq, %arg2, %c0_i32_8 : i32
    %10 = arith.extui %9 : i1 to i32
    %c0_i32_9 = arith.constant 0 : i32
    %11 = arith.cmpi ne, %10, %c0_i32_9 : i32
    scf.if %11 {
      %c0_10 = arith.constant 0 : index
      %c0_11 = arith.constant 0 : index
      %12 = vector.load %arg9[%c0_10, %c0_11] : memref<128x128xf32, #tpu.memory_space<vmem>>, vector<128x128xf32>
      %c0_12 = arith.constant 0 : index
      %c0_13 = arith.constant 0 : index
      %13 = vector.load %arg5[%c0_12, %c0_13] : memref<1x128xf32, #tpu.memory_space<vmem>>, vector<1x128xf32>
      %14 = vector.broadcast %13 : vector<1x128xf32> to vector<128x128xf32>
      %15 = arith.mulf %12, %14 : vector<128x128xf32>
      %c0_14 = arith.constant 0 : index
      %c0_15 = arith.constant 0 : index
      %16 = vector.load %arg6[%c0_14, %c0_15] : memref<1x128xf32, #tpu.memory_space<vmem>>, vector<1x128xf32>
      %17 = vector.broadcast %16 : vector<1x128xf32> to vector<128x128xf32>
      %18 = arith.addf %15, %17 : vector<128x128xf32>
      %c0_16 = arith.constant 0 : index
      %c0_17 = arith.constant 0 : index
      %19 = vector.load %arg7[%c0_16, %c0_17] : memref<128x128xf32, #tpu.memory_space<vmem>>, vector<128x128xf32>
      %20 = arith.addf %18, %19 : vector<128x128xf32>
      %cst_18 = arith.constant 0.000000e+00 : f32
      %21 = vector.broadcast %cst_18 : f32 to vector<128x128xf32>
      %22 = arith.maximumf %20, %21 : vector<128x128xf32>
      %c0_19 = arith.constant 0 : index
      %c0_20 = arith.constant 0 : index
      %23 = vector.load %arg8[%c0_19, %c0_20] : memref<128x128xf32, #tpu.memory_space<vmem>>, vector<128x128xf32>
      tpu.vector_store %arg8[%c0_19, %c0_20], %22 {strides = array<i32>} : memref<128x128xf32, #tpu.memory_space<vmem>>, vector<128x128xf32>,
    } else {
    }
    return
  }
  func.func @transform_0(%arg0: i32, %arg1: i32, %arg2: i32) -> (i32, i32) {
    %c0_i32 = arith.constant 0 : i32
    return %arg0, %arg2 : i32, i32
  }
  func.func @transform_1(%arg0: i32, %arg1: i32, %arg2: i32) -> (i32, i32) {
    %c0_i32 = arith.constant 0 : i32
    return %arg2, %arg1 : i32, i32
  }
  func.func @transform_2(%arg0: i32, %arg1: i32, %arg2: i32) -> (i32, i32) {
    %c0_i32 = arith.constant 0 : i32
    %c0_i32_0 = arith.constant 0 : i32
    return %c0_i32, %arg1 : i32, i32
  }
  func.func @transform_3(%arg0: i32, %arg1: i32, %arg2: i32) -> (i32, i32) {
    %c0_i32 = arith.constant 0 : i32
    %c0_i32_0 = arith.constant 0 : i32
    return %c0_i32, %arg1 : i32, i32
  }
  func.func @transform_4(%arg0: i32, %arg1: i32, %arg2: i32) -> (i32, i32) {
    %c0_i32 = arith.constant 0 : i32
    return %arg0, %arg1 : i32, i32
  }
  func.func @transform_5(%arg0: i32, %arg1: i32, %arg2: i32) -> (i32, i32) {
    %c0_i32 = arith.constant 0 : i32
    return %arg0, %arg1 : i32, i32
  }
}

module attributes {stable_mosaic.version = 11 : i64} {
  func.func @_mm_bn_kernel(%arg0: i32, %arg1: i32, %arg2: i32, %arg3: memref<32x640xbf16, #tpu.memory_space<vmem>>, %arg4: memref<640x128xbf16, #tpu.memory_space<vmem>>, %arg5: memref<1x128xf32, #tpu.memory_space<vmem>>, %arg6: memref<1x128xf32, #tpu.memory_space<vmem>>, %arg7: memref<32x128xf32, #tpu.memory_space<vmem>>, %arg8: memref<32x128xf32, #tpu.memory_space<vmem>>) attributes {dimension_semantics = [#tpu.dimension_semantics<parallel>, #tpu.dimension_semantics<parallel>, #tpu.dimension_semantics<arbitrary>], iteration_bounds = array<i64: 1, 1, 1>, scalar_prefetch = 0 : i64, scratch_operands = 1 : i64, tpu.core_type = #tpu.core_type<tc>, window_params = [{transform_indices = @transform_0, window_bounds = array<i64: 32, 640>}, {transform_indices = @transform_1, window_bounds = array<i64: 640, 128>}, {transform_indices = @transform_2, window_bounds = array<i64: 1, 128>}, {transform_indices = @transform_3, window_bounds = array<i64: 1, 128>}, {transform_indices = @transform_4, window_bounds = array<i64: 32, 128>}]} {
    %c0_i32 = arith.constant 0 : i32
    %0 = arith.cmpi eq, %arg2, %c0_i32 : i32
    %1 = arith.extui %0 : i1 to i32
    %c0_i32_0 = arith.constant 0 : i32
    %2 = arith.cmpi ne, %1, %c0_i32_0 : i32
    scf.if %2 {
      %cst_10 = arith.constant 0.000000e+00 : f32
      %12 = vector.broadcast %cst_10 : f32 to vector<32x128xf32>
      %c0_11 = arith.constant 0 : index
      %c0_12 = arith.constant 0 : index
      %13 = vector.load %arg8[%c0_11, %c0_12] : memref<32x128xf32, #tpu.memory_space<vmem>>, vector<32x128xf32>
      tpu.vector_store %arg8[%c0_11, %c0_12], %12 {strides = array<i32>} : memref<32x128xf32, #tpu.memory_space<vmem>>, vector<32x128xf32>,
    } else {
    }
    %c0 = arith.constant 0 : index
    %c0_1 = arith.constant 0 : index
    %3 = vector.load %arg8[%c0, %c0_1] : memref<32x128xf32, #tpu.memory_space<vmem>>, vector<32x128xf32>
    %c0_2 = arith.constant 0 : index
    %c0_3 = arith.constant 0 : index
    %4 = vector.load %arg3[%c0_2, %c0_3] : memref<32x640xbf16, #tpu.memory_space<vmem>>, vector<32x640xbf16>
    %c0_4 = arith.constant 0 : index
    %c0_5 = arith.constant 0 : index
    %5 = vector.load %arg4[%c0_4, %c0_5] : memref<640x128xbf16, #tpu.memory_space<vmem>>, vector<640x128xbf16>
    %cst = arith.constant dense<0.000000e+00> : vector<32x128xf32>
    %6 = tpu.matmul %4, %5, %cst {dimension_numbers = #tpu.dot_dimension_numbers<[1], [0], [0], [1], [0, 0, 1, 1], [], []>} : vector<32x640xbf16>, vector<640x128xbf16>, vector<32x128xf32> -> vector<32x128xf32>
    %7 = arith.addf %3, %6 : vector<32x128xf32>
    %c0_6 = arith.constant 0 : index
    %c0_7 = arith.constant 0 : index
    %8 = vector.load %arg8[%c0_6, %c0_7] : memref<32x128xf32, #tpu.memory_space<vmem>>, vector<32x128xf32>
    tpu.vector_store %arg8[%c0_6, %c0_7], %7 {strides = array<i32>} : memref<32x128xf32, #tpu.memory_space<vmem>>, vector<32x128xf32>,
    %c0_i32_8 = arith.constant 0 : i32
    %9 = arith.cmpi eq, %arg2, %c0_i32_8 : i32
    %10 = arith.extui %9 : i1 to i32
    %c0_i32_9 = arith.constant 0 : i32
    %11 = arith.cmpi ne, %10, %c0_i32_9 : i32
    scf.if %11 {
      %c0_10 = arith.constant 0 : index
      %c0_11 = arith.constant 0 : index
      %12 = vector.load %arg8[%c0_10, %c0_11] : memref<32x128xf32, #tpu.memory_space<vmem>>, vector<32x128xf32>
      %c0_12 = arith.constant 0 : index
      %c0_13 = arith.constant 0 : index
      %13 = vector.load %arg5[%c0_12, %c0_13] : memref<1x128xf32, #tpu.memory_space<vmem>>, vector<1x128xf32>
      %14 = vector.broadcast %13 : vector<1x128xf32> to vector<32x128xf32>
      %15 = arith.mulf %12, %14 : vector<32x128xf32>
      %c0_14 = arith.constant 0 : index
      %c0_15 = arith.constant 0 : index
      %16 = vector.load %arg6[%c0_14, %c0_15] : memref<1x128xf32, #tpu.memory_space<vmem>>, vector<1x128xf32>
      %17 = vector.broadcast %16 : vector<1x128xf32> to vector<32x128xf32>
      %18 = arith.addf %15, %17 : vector<32x128xf32>
      %cst_16 = arith.constant 0.000000e+00 : f32
      %19 = vector.broadcast %cst_16 : f32 to vector<32x128xf32>
      %20 = arith.maximumf %18, %19 : vector<32x128xf32>
      %c0_17 = arith.constant 0 : index
      %c0_18 = arith.constant 0 : index
      %21 = vector.load %arg7[%c0_17, %c0_18] : memref<32x128xf32, #tpu.memory_space<vmem>>, vector<32x128xf32>
      tpu.vector_store %arg7[%c0_17, %c0_18], %20 {strides = array<i32>} : memref<32x128xf32, #tpu.memory_space<vmem>>, vector<32x128xf32>,
    } else {
    }
    return
  }
  func.func @transform_0(%arg0: i32, %arg1: i32, %arg2: i32) -> (i32, i32) {
    %c0_i32 = arith.constant 0 : i32
    return %arg0, %arg2 : i32, i32
  }
  func.func @transform_1(%arg0: i32, %arg1: i32, %arg2: i32) -> (i32, i32) {
    %c0_i32 = arith.constant 0 : i32
    return %arg2, %arg1 : i32, i32
  }
  func.func @transform_2(%arg0: i32, %arg1: i32, %arg2: i32) -> (i32, i32) {
    %c0_i32 = arith.constant 0 : i32
    %c0_i32_0 = arith.constant 0 : i32
    return %c0_i32, %arg1 : i32, i32
  }
  func.func @transform_3(%arg0: i32, %arg1: i32, %arg2: i32) -> (i32, i32) {
    %c0_i32 = arith.constant 0 : i32
    %c0_i32_0 = arith.constant 0 : i32
    return %c0_i32, %arg1 : i32, i32
  }
  func.func @transform_4(%arg0: i32, %arg1: i32, %arg2: i32) -> (i32, i32) {
    %c0_i32 = arith.constant 0 : i32
    return %arg0, %arg1 : i32, i32
  }
}

module attributes {stable_mosaic.version = 11 : i64} {
  func.func @_mm_bn_kernel(%arg0: i32, %arg1: i32, %arg2: i32, %arg3: memref<32x128xbf16, #tpu.memory_space<vmem>>, %arg4: memref<128x128xbf16, #tpu.memory_space<vmem>>, %arg5: memref<1x128xf32, #tpu.memory_space<vmem>>, %arg6: memref<1x128xf32, #tpu.memory_space<vmem>>, %arg7: memref<32x128xf32, #tpu.memory_space<vmem>>, %arg8: memref<32x128xf32, #tpu.memory_space<vmem>>) attributes {dimension_semantics = [#tpu.dimension_semantics<parallel>, #tpu.dimension_semantics<parallel>, #tpu.dimension_semantics<arbitrary>], iteration_bounds = array<i64: 1, 1, 1>, scalar_prefetch = 0 : i64, scratch_operands = 1 : i64, tpu.core_type = #tpu.core_type<tc>, window_params = [{transform_indices = @transform_0, window_bounds = array<i64: 32, 128>}, {transform_indices = @transform_1, window_bounds = array<i64: 128, 128>}, {transform_indices = @transform_2, window_bounds = array<i64: 1, 128>}, {transform_indices = @transform_3, window_bounds = array<i64: 1, 128>}, {transform_indices = @transform_4, window_bounds = array<i64: 32, 128>}]} {
    %c0_i32 = arith.constant 0 : i32
    %0 = arith.cmpi eq, %arg2, %c0_i32 : i32
    %1 = arith.extui %0 : i1 to i32
    %c0_i32_0 = arith.constant 0 : i32
    %2 = arith.cmpi ne, %1, %c0_i32_0 : i32
    scf.if %2 {
      %cst_10 = arith.constant 0.000000e+00 : f32
      %12 = vector.broadcast %cst_10 : f32 to vector<32x128xf32>
      %c0_11 = arith.constant 0 : index
      %c0_12 = arith.constant 0 : index
      %13 = vector.load %arg8[%c0_11, %c0_12] : memref<32x128xf32, #tpu.memory_space<vmem>>, vector<32x128xf32>
      tpu.vector_store %arg8[%c0_11, %c0_12], %12 {strides = array<i32>} : memref<32x128xf32, #tpu.memory_space<vmem>>, vector<32x128xf32>,
    } else {
    }
    %c0 = arith.constant 0 : index
    %c0_1 = arith.constant 0 : index
    %3 = vector.load %arg8[%c0, %c0_1] : memref<32x128xf32, #tpu.memory_space<vmem>>, vector<32x128xf32>
    %c0_2 = arith.constant 0 : index
    %c0_3 = arith.constant 0 : index
    %4 = vector.load %arg3[%c0_2, %c0_3] : memref<32x128xbf16, #tpu.memory_space<vmem>>, vector<32x128xbf16>
    %c0_4 = arith.constant 0 : index
    %c0_5 = arith.constant 0 : index
    %5 = vector.load %arg4[%c0_4, %c0_5] : memref<128x128xbf16, #tpu.memory_space<vmem>>, vector<128x128xbf16>
    %cst = arith.constant dense<0.000000e+00> : vector<32x128xf32>
    %6 = tpu.matmul %4, %5, %cst {dimension_numbers = #tpu.dot_dimension_numbers<[1], [0], [0], [1], [0, 0, 1, 1], [], []>} : vector<32x128xbf16>, vector<128x128xbf16>, vector<32x128xf32> -> vector<32x128xf32>
    %7 = arith.addf %3, %6 : vector<32x128xf32>
    %c0_6 = arith.constant 0 : index
    %c0_7 = arith.constant 0 : index
    %8 = vector.load %arg8[%c0_6, %c0_7] : memref<32x128xf32, #tpu.memory_space<vmem>>, vector<32x128xf32>
    tpu.vector_store %arg8[%c0_6, %c0_7], %7 {strides = array<i32>} : memref<32x128xf32, #tpu.memory_space<vmem>>, vector<32x128xf32>,
    %c0_i32_8 = arith.constant 0 : i32
    %9 = arith.cmpi eq, %arg2, %c0_i32_8 : i32
    %10 = arith.extui %9 : i1 to i32
    %c0_i32_9 = arith.constant 0 : i32
    %11 = arith.cmpi ne, %10, %c0_i32_9 : i32
    scf.if %11 {
      %c0_10 = arith.constant 0 : index
      %c0_11 = arith.constant 0 : index
      %12 = vector.load %arg8[%c0_10, %c0_11] : memref<32x128xf32, #tpu.memory_space<vmem>>, vector<32x128xf32>
      %c0_12 = arith.constant 0 : index
      %c0_13 = arith.constant 0 : index
      %13 = vector.load %arg5[%c0_12, %c0_13] : memref<1x128xf32, #tpu.memory_space<vmem>>, vector<1x128xf32>
      %14 = vector.broadcast %13 : vector<1x128xf32> to vector<32x128xf32>
      %15 = arith.mulf %12, %14 : vector<32x128xf32>
      %c0_14 = arith.constant 0 : index
      %c0_15 = arith.constant 0 : index
      %16 = vector.load %arg6[%c0_14, %c0_15] : memref<1x128xf32, #tpu.memory_space<vmem>>, vector<1x128xf32>
      %17 = vector.broadcast %16 : vector<1x128xf32> to vector<32x128xf32>
      %18 = arith.addf %15, %17 : vector<32x128xf32>
      %c0_16 = arith.constant 0 : index
      %c0_17 = arith.constant 0 : index
      %19 = vector.load %arg7[%c0_16, %c0_17] : memref<32x128xf32, #tpu.memory_space<vmem>>, vector<32x128xf32>
      tpu.vector_store %arg7[%c0_16, %c0_17], %18 {strides = array<i32>} : memref<32x128xf32, #tpu.memory_space<vmem>>, vector<32x128xf32>,
    } else {
    }
    return
  }
  func.func @transform_0(%arg0: i32, %arg1: i32, %arg2: i32) -> (i32, i32) {
    %c0_i32 = arith.constant 0 : i32
    return %arg0, %arg2 : i32, i32
  }
  func.func @transform_1(%arg0: i32, %arg1: i32, %arg2: i32) -> (i32, i32) {
    %c0_i32 = arith.constant 0 : i32
    return %arg2, %arg1 : i32, i32
  }
  func.func @transform_2(%arg0: i32, %arg1: i32, %arg2: i32) -> (i32, i32) {
    %c0_i32 = arith.constant 0 : i32
    %c0_i32_0 = arith.constant 0 : i32
    return %c0_i32, %arg1 : i32, i32
  }
  func.func @transform_3(%arg0: i32, %arg1: i32, %arg2: i32) -> (i32, i32) {
    %c0_i32 = arith.constant 0 : i32
    %c0_i32_0 = arith.constant 0 : i32
    return %c0_i32, %arg1 : i32, i32
  }
  func.func @transform_4(%arg0: i32, %arg1: i32, %arg2: i32) -> (i32, i32) {
    %c0_i32 = arith.constant 0 : i32
    return %arg0, %arg1 : i32, i32
  }
}

module attributes {stable_mosaic.version = 11 : i64} {
  func.func @_mm_bn_add_relu_kernel(%arg0: i32, %arg1: i32, %arg2: i32, %arg3: memref<32x1152xbf16, #tpu.memory_space<vmem>>, %arg4: memref<1152x128xbf16, #tpu.memory_space<vmem>>, %arg5: memref<1x128xf32, #tpu.memory_space<vmem>>, %arg6: memref<1x128xf32, #tpu.memory_space<vmem>>, %arg7: memref<32x128xf32, #tpu.memory_space<vmem>>, %arg8: memref<32x128xf32, #tpu.memory_space<vmem>>, %arg9: memref<32x128xf32, #tpu.memory_space<vmem>>) attributes {dimension_semantics = [#tpu.dimension_semantics<parallel>, #tpu.dimension_semantics<parallel>, #tpu.dimension_semantics<arbitrary>], iteration_bounds = array<i64: 1, 1, 1>, scalar_prefetch = 0 : i64, scratch_operands = 1 : i64, tpu.core_type = #tpu.core_type<tc>, window_params = [{transform_indices = @transform_0, window_bounds = array<i64: 32, 1152>}, {transform_indices = @transform_1, window_bounds = array<i64: 1152, 128>}, {transform_indices = @transform_2, window_bounds = array<i64: 1, 128>}, {transform_indices = @transform_3, window_bounds = array<i64: 1, 128>}, {transform_indices = @transform_4, window_bounds = array<i64: 32, 128>}, {transform_indices = @transform_5, window_bounds = array<i64: 32, 128>}]} {
    %c0_i32 = arith.constant 0 : i32
    %0 = arith.cmpi eq, %arg2, %c0_i32 : i32
    %1 = arith.extui %0 : i1 to i32
    %c0_i32_0 = arith.constant 0 : i32
    %2 = arith.cmpi ne, %1, %c0_i32_0 : i32
    scf.if %2 {
      %cst_10 = arith.constant 0.000000e+00 : f32
      %12 = vector.broadcast %cst_10 : f32 to vector<32x128xf32>
      %c0_11 = arith.constant 0 : index
      %c0_12 = arith.constant 0 : index
      %13 = vector.load %arg9[%c0_11, %c0_12] : memref<32x128xf32, #tpu.memory_space<vmem>>, vector<32x128xf32>
      tpu.vector_store %arg9[%c0_11, %c0_12], %12 {strides = array<i32>} : memref<32x128xf32, #tpu.memory_space<vmem>>, vector<32x128xf32>,
    } else {
    }
    %c0 = arith.constant 0 : index
    %c0_1 = arith.constant 0 : index
    %3 = vector.load %arg9[%c0, %c0_1] : memref<32x128xf32, #tpu.memory_space<vmem>>, vector<32x128xf32>
    %c0_2 = arith.constant 0 : index
    %c0_3 = arith.constant 0 : index
    %4 = vector.load %arg3[%c0_2, %c0_3] : memref<32x1152xbf16, #tpu.memory_space<vmem>>, vector<32x1152xbf16>
    %c0_4 = arith.constant 0 : index
    %c0_5 = arith.constant 0 : index
    %5 = vector.load %arg4[%c0_4, %c0_5] : memref<1152x128xbf16, #tpu.memory_space<vmem>>, vector<1152x128xbf16>
    %cst = arith.constant dense<0.000000e+00> : vector<32x128xf32>
    %6 = tpu.matmul %4, %5, %cst {dimension_numbers = #tpu.dot_dimension_numbers<[1], [0], [0], [1], [0, 0, 1, 1], [], []>} : vector<32x1152xbf16>, vector<1152x128xbf16>, vector<32x128xf32> -> vector<32x128xf32>
    %7 = arith.addf %3, %6 : vector<32x128xf32>
    %c0_6 = arith.constant 0 : index
    %c0_7 = arith.constant 0 : index
    %8 = vector.load %arg9[%c0_6, %c0_7] : memref<32x128xf32, #tpu.memory_space<vmem>>, vector<32x128xf32>
    tpu.vector_store %arg9[%c0_6, %c0_7], %7 {strides = array<i32>} : memref<32x128xf32, #tpu.memory_space<vmem>>, vector<32x128xf32>,
    %c0_i32_8 = arith.constant 0 : i32
    %9 = arith.cmpi eq, %arg2, %c0_i32_8 : i32
    %10 = arith.extui %9 : i1 to i32
    %c0_i32_9 = arith.constant 0 : i32
    %11 = arith.cmpi ne, %10, %c0_i32_9 : i32
    scf.if %11 {
      %c0_10 = arith.constant 0 : index
      %c0_11 = arith.constant 0 : index
      %12 = vector.load %arg9[%c0_10, %c0_11] : memref<32x128xf32, #tpu.memory_space<vmem>>, vector<32x128xf32>
      %c0_12 = arith.constant 0 : index
      %c0_13 = arith.constant 0 : index
      %13 = vector.load %arg5[%c0_12, %c0_13] : memref<1x128xf32, #tpu.memory_space<vmem>>, vector<1x128xf32>
      %14 = vector.broadcast %13 : vector<1x128xf32> to vector<32x128xf32>
      %15 = arith.mulf %12, %14 : vector<32x128xf32>
      %c0_14 = arith.constant 0 : index
      %c0_15 = arith.constant 0 : index
      %16 = vector.load %arg6[%c0_14, %c0_15] : memref<1x128xf32, #tpu.memory_space<vmem>>, vector<1x128xf32>
      %17 = vector.broadcast %16 : vector<1x128xf32> to vector<32x128xf32>
      %18 = arith.addf %15, %17 : vector<32x128xf32>
      %c0_16 = arith.constant 0 : index
      %c0_17 = arith.constant 0 : index
      %19 = vector.load %arg7[%c0_16, %c0_17] : memref<32x128xf32, #tpu.memory_space<vmem>>, vector<32x128xf32>
      %20 = arith.addf %18, %19 : vector<32x128xf32>
      %cst_18 = arith.constant 0.000000e+00 : f32
      %21 = vector.broadcast %cst_18 : f32 to vector<32x128xf32>
      %22 = arith.maximumf %20, %21 : vector<32x128xf32>
      %c0_19 = arith.constant 0 : index
      %c0_20 = arith.constant 0 : index
      %23 = vector.load %arg8[%c0_19, %c0_20] : memref<32x128xf32, #tpu.memory_space<vmem>>, vector<32x128xf32>
      tpu.vector_store %arg8[%c0_19, %c0_20], %22 {strides = array<i32>} : memref<32x128xf32, #tpu.memory_space<vmem>>, vector<32x128xf32>,
    } else {
    }
    return
  }
  func.func @transform_0(%arg0: i32, %arg1: i32, %arg2: i32) -> (i32, i32) {
    %c0_i32 = arith.constant 0 : i32
    return %arg0, %arg2 : i32, i32
  }
  func.func @transform_1(%arg0: i32, %arg1: i32, %arg2: i32) -> (i32, i32) {
    %c0_i32 = arith.constant 0 : i32
    return %arg2, %arg1 : i32, i32
  }
  func.func @transform_2(%arg0: i32, %arg1: i32, %arg2: i32) -> (i32, i32) {
    %c0_i32 = arith.constant 0 : i32
    %c0_i32_0 = arith.constant 0 : i32
    return %c0_i32, %arg1 : i32, i32
  }
  func.func @transform_3(%arg0: i32, %arg1: i32, %arg2: i32) -> (i32, i32) {
    %c0_i32 = arith.constant 0 : i32
    %c0_i32_0 = arith.constant 0 : i32
    return %c0_i32, %arg1 : i32, i32
  }
  func.func @transform_4(%arg0: i32, %arg1: i32, %arg2: i32) -> (i32, i32) {
    %c0_i32 = arith.constant 0 : i32
    return %arg0, %arg1 : i32, i32
  }
  func.func @transform_5(%arg0: i32, %arg1: i32, %arg2: i32) -> (i32, i32) {
    %c0_i32 = arith.constant 0 : i32
    return %arg0, %arg1 : i32, i32
  }
}

module attributes {stable_mosaic.version = 11 : i64} {
  func.func @_mm_bn_kernel(%arg0: i32, %arg1: i32, %arg2: i32, %arg3: memref<8x1152xbf16, #tpu.memory_space<vmem>>, %arg4: memref<1152x256xbf16, #tpu.memory_space<vmem>>, %arg5: memref<1x256xf32, #tpu.memory_space<vmem>>, %arg6: memref<1x256xf32, #tpu.memory_space<vmem>>, %arg7: memref<8x256xf32, #tpu.memory_space<vmem>>, %arg8: memref<8x256xf32, #tpu.memory_space<vmem>>) attributes {dimension_semantics = [#tpu.dimension_semantics<parallel>, #tpu.dimension_semantics<parallel>, #tpu.dimension_semantics<arbitrary>], iteration_bounds = array<i64: 1, 1, 1>, scalar_prefetch = 0 : i64, scratch_operands = 1 : i64, tpu.core_type = #tpu.core_type<tc>, window_params = [{transform_indices = @transform_0, window_bounds = array<i64: 8, 1152>}, {transform_indices = @transform_1, window_bounds = array<i64: 1152, 256>}, {transform_indices = @transform_2, window_bounds = array<i64: 1, 256>}, {transform_indices = @transform_3, window_bounds = array<i64: 1, 256>}, {transform_indices = @transform_4, window_bounds = array<i64: 8, 256>}]} {
    %c0_i32 = arith.constant 0 : i32
    %0 = arith.cmpi eq, %arg2, %c0_i32 : i32
    %1 = arith.extui %0 : i1 to i32
    %c0_i32_0 = arith.constant 0 : i32
    %2 = arith.cmpi ne, %1, %c0_i32_0 : i32
    scf.if %2 {
      %cst_10 = arith.constant 0.000000e+00 : f32
      %12 = vector.broadcast %cst_10 : f32 to vector<8x256xf32>
      %c0_11 = arith.constant 0 : index
      %c0_12 = arith.constant 0 : index
      %13 = vector.load %arg8[%c0_11, %c0_12] : memref<8x256xf32, #tpu.memory_space<vmem>>, vector<8x256xf32>
      tpu.vector_store %arg8[%c0_11, %c0_12], %12 {strides = array<i32>} : memref<8x256xf32, #tpu.memory_space<vmem>>, vector<8x256xf32>,
    } else {
    }
    %c0 = arith.constant 0 : index
    %c0_1 = arith.constant 0 : index
    %3 = vector.load %arg8[%c0, %c0_1] : memref<8x256xf32, #tpu.memory_space<vmem>>, vector<8x256xf32>
    %c0_2 = arith.constant 0 : index
    %c0_3 = arith.constant 0 : index
    %4 = vector.load %arg3[%c0_2, %c0_3] : memref<8x1152xbf16, #tpu.memory_space<vmem>>, vector<8x1152xbf16>
    %c0_4 = arith.constant 0 : index
    %c0_5 = arith.constant 0 : index
    %5 = vector.load %arg4[%c0_4, %c0_5] : memref<1152x256xbf16, #tpu.memory_space<vmem>>, vector<1152x256xbf16>
    %cst = arith.constant dense<0.000000e+00> : vector<8x256xf32>
    %6 = tpu.matmul %4, %5, %cst {dimension_numbers = #tpu.dot_dimension_numbers<[1], [0], [0], [1], [0, 0, 1, 1], [], []>} : vector<8x1152xbf16>, vector<1152x256xbf16>, vector<8x256xf32> -> vector<8x256xf32>
    %7 = arith.addf %3, %6 : vector<8x256xf32>
    %c0_6 = arith.constant 0 : index
    %c0_7 = arith.constant 0 : index
    %8 = vector.load %arg8[%c0_6, %c0_7] : memref<8x256xf32, #tpu.memory_space<vmem>>, vector<8x256xf32>
    tpu.vector_store %arg8[%c0_6, %c0_7], %7 {strides = array<i32>} : memref<8x256xf32, #tpu.memory_space<vmem>>, vector<8x256xf32>,
    %c0_i32_8 = arith.constant 0 : i32
    %9 = arith.cmpi eq, %arg2, %c0_i32_8 : i32
    %10 = arith.extui %9 : i1 to i32
    %c0_i32_9 = arith.constant 0 : i32
    %11 = arith.cmpi ne, %10, %c0_i32_9 : i32
    scf.if %11 {
      %c0_10 = arith.constant 0 : index
      %c0_11 = arith.constant 0 : index
      %12 = vector.load %arg8[%c0_10, %c0_11] : memref<8x256xf32, #tpu.memory_space<vmem>>, vector<8x256xf32>
      %c0_12 = arith.constant 0 : index
      %c0_13 = arith.constant 0 : index
      %13 = vector.load %arg5[%c0_12, %c0_13] : memref<1x256xf32, #tpu.memory_space<vmem>>, vector<1x256xf32>
      %14 = vector.broadcast %13 : vector<1x256xf32> to vector<8x256xf32>
      %15 = arith.mulf %12, %14 : vector<8x256xf32>
      %c0_14 = arith.constant 0 : index
      %c0_15 = arith.constant 0 : index
      %16 = vector.load %arg6[%c0_14, %c0_15] : memref<1x256xf32, #tpu.memory_space<vmem>>, vector<1x256xf32>
      %17 = vector.broadcast %16 : vector<1x256xf32> to vector<8x256xf32>
      %18 = arith.addf %15, %17 : vector<8x256xf32>
      %cst_16 = arith.constant 0.000000e+00 : f32
      %19 = vector.broadcast %cst_16 : f32 to vector<8x256xf32>
      %20 = arith.maximumf %18, %19 : vector<8x256xf32>
      %c0_17 = arith.constant 0 : index
      %c0_18 = arith.constant 0 : index
      %21 = vector.load %arg7[%c0_17, %c0_18] : memref<8x256xf32, #tpu.memory_space<vmem>>, vector<8x256xf32>
      tpu.vector_store %arg7[%c0_17, %c0_18], %20 {strides = array<i32>} : memref<8x256xf32, #tpu.memory_space<vmem>>, vector<8x256xf32>,
    } else {
    }
    return
  }
  func.func @transform_0(%arg0: i32, %arg1: i32, %arg2: i32) -> (i32, i32) {
    %c0_i32 = arith.constant 0 : i32
    return %arg0, %arg2 : i32, i32
  }
  func.func @transform_1(%arg0: i32, %arg1: i32, %arg2: i32) -> (i32, i32) {
    %c0_i32 = arith.constant 0 : i32
    return %arg2, %arg1 : i32, i32
  }
  func.func @transform_2(%arg0: i32, %arg1: i32, %arg2: i32) -> (i32, i32) {
    %c0_i32 = arith.constant 0 : i32
    %c0_i32_0 = arith.constant 0 : i32
    return %c0_i32, %arg1 : i32, i32
  }
  func.func @transform_3(%arg0: i32, %arg1: i32, %arg2: i32) -> (i32, i32) {
    %c0_i32 = arith.constant 0 : i32
    %c0_i32_0 = arith.constant 0 : i32
    return %c0_i32, %arg1 : i32, i32
  }
  func.func @transform_4(%arg0: i32, %arg1: i32, %arg2: i32) -> (i32, i32) {
    %c0_i32 = arith.constant 0 : i32
    return %arg0, %arg1 : i32, i32
  }
}

module attributes {stable_mosaic.version = 11 : i64} {
  func.func @_mm_bn_kernel(%arg0: i32, %arg1: i32, %arg2: i32, %arg3: memref<8x128xbf16, #tpu.memory_space<vmem>>, %arg4: memref<128x256xbf16, #tpu.memory_space<vmem>>, %arg5: memref<1x256xf32, #tpu.memory_space<vmem>>, %arg6: memref<1x256xf32, #tpu.memory_space<vmem>>, %arg7: memref<8x256xf32, #tpu.memory_space<vmem>>, %arg8: memref<8x256xf32, #tpu.memory_space<vmem>>) attributes {dimension_semantics = [#tpu.dimension_semantics<parallel>, #tpu.dimension_semantics<parallel>, #tpu.dimension_semantics<arbitrary>], iteration_bounds = array<i64: 1, 1, 1>, scalar_prefetch = 0 : i64, scratch_operands = 1 : i64, tpu.core_type = #tpu.core_type<tc>, window_params = [{transform_indices = @transform_0, window_bounds = array<i64: 8, 128>}, {transform_indices = @transform_1, window_bounds = array<i64: 128, 256>}, {transform_indices = @transform_2, window_bounds = array<i64: 1, 256>}, {transform_indices = @transform_3, window_bounds = array<i64: 1, 256>}, {transform_indices = @transform_4, window_bounds = array<i64: 8, 256>}]} {
    %c0_i32 = arith.constant 0 : i32
    %0 = arith.cmpi eq, %arg2, %c0_i32 : i32
    %1 = arith.extui %0 : i1 to i32
    %c0_i32_0 = arith.constant 0 : i32
    %2 = arith.cmpi ne, %1, %c0_i32_0 : i32
    scf.if %2 {
      %cst_10 = arith.constant 0.000000e+00 : f32
      %12 = vector.broadcast %cst_10 : f32 to vector<8x256xf32>
      %c0_11 = arith.constant 0 : index
      %c0_12 = arith.constant 0 : index
      %13 = vector.load %arg8[%c0_11, %c0_12] : memref<8x256xf32, #tpu.memory_space<vmem>>, vector<8x256xf32>
      tpu.vector_store %arg8[%c0_11, %c0_12], %12 {strides = array<i32>} : memref<8x256xf32, #tpu.memory_space<vmem>>, vector<8x256xf32>,
    } else {
    }
    %c0 = arith.constant 0 : index
    %c0_1 = arith.constant 0 : index
    %3 = vector.load %arg8[%c0, %c0_1] : memref<8x256xf32, #tpu.memory_space<vmem>>, vector<8x256xf32>
    %c0_2 = arith.constant 0 : index
    %c0_3 = arith.constant 0 : index
    %4 = vector.load %arg3[%c0_2, %c0_3] : memref<8x128xbf16, #tpu.memory_space<vmem>>, vector<8x128xbf16>
    %c0_4 = arith.constant 0 : index
    %c0_5 = arith.constant 0 : index
    %5 = vector.load %arg4[%c0_4, %c0_5] : memref<128x256xbf16, #tpu.memory_space<vmem>>, vector<128x256xbf16>
    %cst = arith.constant dense<0.000000e+00> : vector<8x256xf32>
    %6 = tpu.matmul %4, %5, %cst {dimension_numbers = #tpu.dot_dimension_numbers<[1], [0], [0], [1], [0, 0, 1, 1], [], []>} : vector<8x128xbf16>, vector<128x256xbf16>, vector<8x256xf32> -> vector<8x256xf32>
    %7 = arith.addf %3, %6 : vector<8x256xf32>
    %c0_6 = arith.constant 0 : index
    %c0_7 = arith.constant 0 : index
    %8 = vector.load %arg8[%c0_6, %c0_7] : memref<8x256xf32, #tpu.memory_space<vmem>>, vector<8x256xf32>
    tpu.vector_store %arg8[%c0_6, %c0_7], %7 {strides = array<i32>} : memref<8x256xf32, #tpu.memory_space<vmem>>, vector<8x256xf32>,
    %c0_i32_8 = arith.constant 0 : i32
    %9 = arith.cmpi eq, %arg2, %c0_i32_8 : i32
    %10 = arith.extui %9 : i1 to i32
    %c0_i32_9 = arith.constant 0 : i32
    %11 = arith.cmpi ne, %10, %c0_i32_9 : i32
    scf.if %11 {
      %c0_10 = arith.constant 0 : index
      %c0_11 = arith.constant 0 : index
      %12 = vector.load %arg8[%c0_10, %c0_11] : memref<8x256xf32, #tpu.memory_space<vmem>>, vector<8x256xf32>
      %c0_12 = arith.constant 0 : index
      %c0_13 = arith.constant 0 : index
      %13 = vector.load %arg5[%c0_12, %c0_13] : memref<1x256xf32, #tpu.memory_space<vmem>>, vector<1x256xf32>
      %14 = vector.broadcast %13 : vector<1x256xf32> to vector<8x256xf32>
      %15 = arith.mulf %12, %14 : vector<8x256xf32>
      %c0_14 = arith.constant 0 : index
      %c0_15 = arith.constant 0 : index
      %16 = vector.load %arg6[%c0_14, %c0_15] : memref<1x256xf32, #tpu.memory_space<vmem>>, vector<1x256xf32>
      %17 = vector.broadcast %16 : vector<1x256xf32> to vector<8x256xf32>
      %18 = arith.addf %15, %17 : vector<8x256xf32>
      %c0_16 = arith.constant 0 : index
      %c0_17 = arith.constant 0 : index
      %19 = vector.load %arg7[%c0_16, %c0_17] : memref<8x256xf32, #tpu.memory_space<vmem>>, vector<8x256xf32>
      tpu.vector_store %arg7[%c0_16, %c0_17], %18 {strides = array<i32>} : memref<8x256xf32, #tpu.memory_space<vmem>>, vector<8x256xf32>,
    } else {
    }
    return
  }
  func.func @transform_0(%arg0: i32, %arg1: i32, %arg2: i32) -> (i32, i32) {
    %c0_i32 = arith.constant 0 : i32
    return %arg0, %arg2 : i32, i32
  }
  func.func @transform_1(%arg0: i32, %arg1: i32, %arg2: i32) -> (i32, i32) {
    %c0_i32 = arith.constant 0 : i32
    return %arg2, %arg1 : i32, i32
  }
  func.func @transform_2(%arg0: i32, %arg1: i32, %arg2: i32) -> (i32, i32) {
    %c0_i32 = arith.constant 0 : i32
    %c0_i32_0 = arith.constant 0 : i32
    return %c0_i32, %arg1 : i32, i32
  }
  func.func @transform_3(%arg0: i32, %arg1: i32, %arg2: i32) -> (i32, i32) {
    %c0_i32 = arith.constant 0 : i32
    %c0_i32_0 = arith.constant 0 : i32
    return %c0_i32, %arg1 : i32, i32
  }
  func.func @transform_4(%arg0: i32, %arg1: i32, %arg2: i32) -> (i32, i32) {
    %c0_i32 = arith.constant 0 : i32
    return %arg0, %arg1 : i32, i32
  }
}

module attributes {stable_mosaic.version = 11 : i64} {
  func.func @_mm_bn_add_relu_kernel(%arg0: i32, %arg1: i32, %arg2: i32, %arg3: memref<8x512xbf16, #tpu.memory_space<vmem>>, %arg4: memref<512x256xbf16, #tpu.memory_space<vmem>>, %arg5: memref<1x256xf32, #tpu.memory_space<vmem>>, %arg6: memref<1x256xf32, #tpu.memory_space<vmem>>, %arg7: memref<8x256xf32, #tpu.memory_space<vmem>>, %arg8: memref<8x256xf32, #tpu.memory_space<vmem>>, %arg9: memref<8x256xf32, #tpu.memory_space<vmem>>) attributes {dimension_semantics = [#tpu.dimension_semantics<parallel>, #tpu.dimension_semantics<parallel>, #tpu.dimension_semantics<arbitrary>], iteration_bounds = array<i64: 1, 1, 5>, scalar_prefetch = 0 : i64, scratch_operands = 1 : i64, tpu.core_type = #tpu.core_type<tc>, window_params = [{transform_indices = @transform_0, window_bounds = array<i64: 8, 512>}, {transform_indices = @transform_1, window_bounds = array<i64: 512, 256>}, {transform_indices = @transform_2, window_bounds = array<i64: 1, 256>}, {transform_indices = @transform_3, window_bounds = array<i64: 1, 256>}, {transform_indices = @transform_4, window_bounds = array<i64: 8, 256>}, {transform_indices = @transform_5, window_bounds = array<i64: 8, 256>}]} {
    %c0_i32 = arith.constant 0 : i32
    %0 = arith.cmpi eq, %arg2, %c0_i32 : i32
    %1 = arith.extui %0 : i1 to i32
    %c0_i32_0 = arith.constant 0 : i32
    %2 = arith.cmpi ne, %1, %c0_i32_0 : i32
    scf.if %2 {
      %cst_9 = arith.constant 0.000000e+00 : f32
      %12 = vector.broadcast %cst_9 : f32 to vector<8x256xf32>
      %c0_10 = arith.constant 0 : index
      %c0_11 = arith.constant 0 : index
      %13 = vector.load %arg9[%c0_10, %c0_11] : memref<8x256xf32, #tpu.memory_space<vmem>>, vector<8x256xf32>
      tpu.vector_store %arg9[%c0_10, %c0_11], %12 {strides = array<i32>} : memref<8x256xf32, #tpu.memory_space<vmem>>, vector<8x256xf32>,
    } else {
    }
    %c0 = arith.constant 0 : index
    %c0_1 = arith.constant 0 : index
    %3 = vector.load %arg9[%c0, %c0_1] : memref<8x256xf32, #tpu.memory_space<vmem>>, vector<8x256xf32>
    %c0_2 = arith.constant 0 : index
    %c0_3 = arith.constant 0 : index
    %4 = vector.load %arg3[%c0_2, %c0_3] : memref<8x512xbf16, #tpu.memory_space<vmem>>, vector<8x512xbf16>
    %c0_4 = arith.constant 0 : index
    %c0_5 = arith.constant 0 : index
    %5 = vector.load %arg4[%c0_4, %c0_5] : memref<512x256xbf16, #tpu.memory_space<vmem>>, vector<512x256xbf16>
    %cst = arith.constant dense<0.000000e+00> : vector<8x256xf32>
    %6 = tpu.matmul %4, %5, %cst {dimension_numbers = #tpu.dot_dimension_numbers<[1], [0], [0], [1], [0, 0, 1, 1], [], []>} : vector<8x512xbf16>, vector<512x256xbf16>, vector<8x256xf32> -> vector<8x256xf32>
    %7 = arith.addf %3, %6 : vector<8x256xf32>
    %c0_6 = arith.constant 0 : index
    %c0_7 = arith.constant 0 : index
    %8 = vector.load %arg9[%c0_6, %c0_7] : memref<8x256xf32, #tpu.memory_space<vmem>>, vector<8x256xf32>
    tpu.vector_store %arg9[%c0_6, %c0_7], %7 {strides = array<i32>} : memref<8x256xf32, #tpu.memory_space<vmem>>, vector<8x256xf32>,
    %c4_i32 = arith.constant 4 : i32
    %9 = arith.cmpi eq, %arg2, %c4_i32 : i32
    %10 = arith.extui %9 : i1 to i32
    %c0_i32_8 = arith.constant 0 : i32
    %11 = arith.cmpi ne, %10, %c0_i32_8 : i32
    scf.if %11 {
      %c0_9 = arith.constant 0 : index
      %c0_10 = arith.constant 0 : index
      %12 = vector.load %arg9[%c0_9, %c0_10] : memref<8x256xf32, #tpu.memory_space<vmem>>, vector<8x256xf32>
      %c0_11 = arith.constant 0 : index
      %c0_12 = arith.constant 0 : index
      %13 = vector.load %arg5[%c0_11, %c0_12] : memref<1x256xf32, #tpu.memory_space<vmem>>, vector<1x256xf32>
      %14 = vector.broadcast %13 : vector<1x256xf32> to vector<8x256xf32>
      %15 = arith.mulf %12, %14 : vector<8x256xf32>
      %c0_13 = arith.constant 0 : index
      %c0_14 = arith.constant 0 : index
      %16 = vector.load %arg6[%c0_13, %c0_14] : memref<1x256xf32, #tpu.memory_space<vmem>>, vector<1x256xf32>
      %17 = vector.broadcast %16 : vector<1x256xf32> to vector<8x256xf32>
      %18 = arith.addf %15, %17 : vector<8x256xf32>
      %c0_15 = arith.constant 0 : index
      %c0_16 = arith.constant 0 : index
      %19 = vector.load %arg7[%c0_15, %c0_16] : memref<8x256xf32, #tpu.memory_space<vmem>>, vector<8x256xf32>
      %20 = arith.addf %18, %19 : vector<8x256xf32>
      %cst_17 = arith.constant 0.000000e+00 : f32
      %21 = vector.broadcast %cst_17 : f32 to vector<8x256xf32>
      %22 = arith.maximumf %20, %21 : vector<8x256xf32>
      %c0_18 = arith.constant 0 : index
      %c0_19 = arith.constant 0 : index
      %23 = vector.load %arg8[%c0_18, %c0_19] : memref<8x256xf32, #tpu.memory_space<vmem>>, vector<8x256xf32>
      tpu.vector_store %arg8[%c0_18, %c0_19], %22 {strides = array<i32>} : memref<8x256xf32, #tpu.memory_space<vmem>>, vector<8x256xf32>,
    } else {
    }
    return
  }
  func.func @transform_0(%arg0: i32, %arg1: i32, %arg2: i32) -> (i32, i32) {
    %c0_i32 = arith.constant 0 : i32
    return %arg0, %arg2 : i32, i32
  }
  func.func @transform_1(%arg0: i32, %arg1: i32, %arg2: i32) -> (i32, i32) {
    %c0_i32 = arith.constant 0 : i32
    return %arg2, %arg1 : i32, i32
  }
  func.func @transform_2(%arg0: i32, %arg1: i32, %arg2: i32) -> (i32, i32) {
    %c0_i32 = arith.constant 0 : i32
    %c0_i32_0 = arith.constant 0 : i32
    return %c0_i32, %arg1 : i32, i32
  }
  func.func @transform_3(%arg0: i32, %arg1: i32, %arg2: i32) -> (i32, i32) {
    %c0_i32 = arith.constant 0 : i32
    %c0_i32_0 = arith.constant 0 : i32
    return %c0_i32, %arg1 : i32, i32
  }
  func.func @transform_4(%arg0: i32, %arg1: i32, %arg2: i32) -> (i32, i32) {
    %c0_i32 = arith.constant 0 : i32
    return %arg0, %arg1 : i32, i32
  }
  func.func @transform_5(%arg0: i32, %arg1: i32, %arg2: i32) -> (i32, i32) {
    %c0_i32 = arith.constant 0 : i32
    return %arg0, %arg1 : i32, i32
  }
}

module attributes {stable_mosaic.version = 11 : i64} {
  func.func @_mm_bn_kernel(%arg0: i32, %arg1: i32, %arg2: i32, %arg3: memref<8x512xbf16, #tpu.memory_space<vmem>>, %arg4: memref<512x256xbf16, #tpu.memory_space<vmem>>, %arg5: memref<1x256xf32, #tpu.memory_space<vmem>>, %arg6: memref<1x256xf32, #tpu.memory_space<vmem>>, %arg7: memref<8x256xf32, #tpu.memory_space<vmem>>, %arg8: memref<8x256xf32, #tpu.memory_space<vmem>>) attributes {dimension_semantics = [#tpu.dimension_semantics<parallel>, #tpu.dimension_semantics<parallel>, #tpu.dimension_semantics<arbitrary>], iteration_bounds = array<i64: 1, 2, 5>, scalar_prefetch = 0 : i64, scratch_operands = 1 : i64, tpu.core_type = #tpu.core_type<tc>, window_params = [{transform_indices = @transform_0, window_bounds = array<i64: 8, 512>}, {transform_indices = @transform_1, window_bounds = array<i64: 512, 256>}, {transform_indices = @transform_2, window_bounds = array<i64: 1, 256>}, {transform_indices = @transform_3, window_bounds = array<i64: 1, 256>}, {transform_indices = @transform_4, window_bounds = array<i64: 8, 256>}]} {
    %c0_i32 = arith.constant 0 : i32
    %0 = arith.cmpi eq, %arg2, %c0_i32 : i32
    %1 = arith.extui %0 : i1 to i32
    %c0_i32_0 = arith.constant 0 : i32
    %2 = arith.cmpi ne, %1, %c0_i32_0 : i32
    scf.if %2 {
      %cst_9 = arith.constant 0.000000e+00 : f32
      %12 = vector.broadcast %cst_9 : f32 to vector<8x256xf32>
      %c0_10 = arith.constant 0 : index
      %c0_11 = arith.constant 0 : index
      %13 = vector.load %arg8[%c0_10, %c0_11] : memref<8x256xf32, #tpu.memory_space<vmem>>, vector<8x256xf32>
      tpu.vector_store %arg8[%c0_10, %c0_11], %12 {strides = array<i32>} : memref<8x256xf32, #tpu.memory_space<vmem>>, vector<8x256xf32>,
    } else {
    }
    %c0 = arith.constant 0 : index
    %c0_1 = arith.constant 0 : index
    %3 = vector.load %arg8[%c0, %c0_1] : memref<8x256xf32, #tpu.memory_space<vmem>>, vector<8x256xf32>
    %c0_2 = arith.constant 0 : index
    %c0_3 = arith.constant 0 : index
    %4 = vector.load %arg3[%c0_2, %c0_3] : memref<8x512xbf16, #tpu.memory_space<vmem>>, vector<8x512xbf16>
    %c0_4 = arith.constant 0 : index
    %c0_5 = arith.constant 0 : index
    %5 = vector.load %arg4[%c0_4, %c0_5] : memref<512x256xbf16, #tpu.memory_space<vmem>>, vector<512x256xbf16>
    %cst = arith.constant dense<0.000000e+00> : vector<8x256xf32>
    %6 = tpu.matmul %4, %5, %cst {dimension_numbers = #tpu.dot_dimension_numbers<[1], [0], [0], [1], [0, 0, 1, 1], [], []>} : vector<8x512xbf16>, vector<512x256xbf16>, vector<8x256xf32> -> vector<8x256xf32>
    %7 = arith.addf %3, %6 : vector<8x256xf32>
    %c0_6 = arith.constant 0 : index
    %c0_7 = arith.constant 0 : index
    %8 = vector.load %arg8[%c0_6, %c0_7] : memref<8x256xf32, #tpu.memory_space<vmem>>, vector<8x256xf32>
    tpu.vector_store %arg8[%c0_6, %c0_7], %7 {strides = array<i32>} : memref<8x256xf32, #tpu.memory_space<vmem>>, vector<8x256xf32>,
    %c4_i32 = arith.constant 4 : i32
    %9 = arith.cmpi eq, %arg2, %c4_i32 : i32
    %10 = arith.extui %9 : i1 to i32
    %c0_i32_8 = arith.constant 0 : i32
    %11 = arith.cmpi ne, %10, %c0_i32_8 : i32
    scf.if %11 {
      %c0_9 = arith.constant 0 : index
      %c0_10 = arith.constant 0 : index
      %12 = vector.load %arg8[%c0_9, %c0_10] : memref<8x256xf32, #tpu.memory_space<vmem>>, vector<8x256xf32>
      %c0_11 = arith.constant 0 : index
      %c0_12 = arith.constant 0 : index
      %13 = vector.load %arg5[%c0_11, %c0_12] : memref<1x256xf32, #tpu.memory_space<vmem>>, vector<1x256xf32>
      %14 = vector.broadcast %13 : vector<1x256xf32> to vector<8x256xf32>
      %15 = arith.mulf %12, %14 : vector<8x256xf32>
      %c0_13 = arith.constant 0 : index
      %c0_14 = arith.constant 0 : index
      %16 = vector.load %arg6[%c0_13, %c0_14] : memref<1x256xf32, #tpu.memory_space<vmem>>, vector<1x256xf32>
      %17 = vector.broadcast %16 : vector<1x256xf32> to vector<8x256xf32>
      %18 = arith.addf %15, %17 : vector<8x256xf32>
      %cst_15 = arith.constant 0.000000e+00 : f32
      %19 = vector.broadcast %cst_15 : f32 to vector<8x256xf32>
      %20 = arith.maximumf %18, %19 : vector<8x256xf32>
      %c0_16 = arith.constant 0 : index
      %c0_17 = arith.constant 0 : index
      %21 = vector.load %arg7[%c0_16, %c0_17] : memref<8x256xf32, #tpu.memory_space<vmem>>, vector<8x256xf32>
      tpu.vector_store %arg7[%c0_16, %c0_17], %20 {strides = array<i32>} : memref<8x256xf32, #tpu.memory_space<vmem>>, vector<8x256xf32>,
    } else {
    }
    return
  }
  func.func @transform_0(%arg0: i32, %arg1: i32, %arg2: i32) -> (i32, i32) {
    %c0_i32 = arith.constant 0 : i32
    return %arg0, %arg2 : i32, i32
  }
  func.func @transform_1(%arg0: i32, %arg1: i32, %arg2: i32) -> (i32, i32) {
    %c0_i32 = arith.constant 0 : i32
    return %arg2, %arg1 : i32, i32
  }
  func.func @transform_2(%arg0: i32, %arg1: i32, %arg2: i32) -> (i32, i32) {
    %c0_i32 = arith.constant 0 : i32
    %c0_i32_0 = arith.constant 0 : i32
    return %c0_i32, %arg1 : i32, i32
  }
  func.func @transform_3(%arg0: i32, %arg1: i32, %arg2: i32) -> (i32, i32) {
    %c0_i32 = arith.constant 0 : i32
    %c0_i32_0 = arith.constant 0 : i32
    return %c0_i32, %arg1 : i32, i32
  }
  func.func @transform_4(%arg0: i32, %arg1: i32, %arg2: i32) -> (i32, i32) {
    %c0_i32 = arith.constant 0 : i32
    return %arg0, %arg1 : i32, i32
  }
}

module attributes {stable_mosaic.version = 11 : i64} {
  func.func @_mm_bn_kernel(%arg0: i32, %arg1: i32, %arg2: i32, %arg3: memref<8x256xbf16, #tpu.memory_space<vmem>>, %arg4: memref<256x256xbf16, #tpu.memory_space<vmem>>, %arg5: memref<1x256xf32, #tpu.memory_space<vmem>>, %arg6: memref<1x256xf32, #tpu.memory_space<vmem>>, %arg7: memref<8x256xf32, #tpu.memory_space<vmem>>, %arg8: memref<8x256xf32, #tpu.memory_space<vmem>>) attributes {dimension_semantics = [#tpu.dimension_semantics<parallel>, #tpu.dimension_semantics<parallel>, #tpu.dimension_semantics<arbitrary>], iteration_bounds = array<i64: 1, 2, 1>, scalar_prefetch = 0 : i64, scratch_operands = 1 : i64, tpu.core_type = #tpu.core_type<tc>, window_params = [{transform_indices = @transform_0, window_bounds = array<i64: 8, 256>}, {transform_indices = @transform_1, window_bounds = array<i64: 256, 256>}, {transform_indices = @transform_2, window_bounds = array<i64: 1, 256>}, {transform_indices = @transform_3, window_bounds = array<i64: 1, 256>}, {transform_indices = @transform_4, window_bounds = array<i64: 8, 256>}]} {
    %c0_i32 = arith.constant 0 : i32
    %0 = arith.cmpi eq, %arg2, %c0_i32 : i32
    %1 = arith.extui %0 : i1 to i32
    %c0_i32_0 = arith.constant 0 : i32
    %2 = arith.cmpi ne, %1, %c0_i32_0 : i32
    scf.if %2 {
      %cst_10 = arith.constant 0.000000e+00 : f32
      %12 = vector.broadcast %cst_10 : f32 to vector<8x256xf32>
      %c0_11 = arith.constant 0 : index
      %c0_12 = arith.constant 0 : index
      %13 = vector.load %arg8[%c0_11, %c0_12] : memref<8x256xf32, #tpu.memory_space<vmem>>, vector<8x256xf32>
      tpu.vector_store %arg8[%c0_11, %c0_12], %12 {strides = array<i32>} : memref<8x256xf32, #tpu.memory_space<vmem>>, vector<8x256xf32>,
    } else {
    }
    %c0 = arith.constant 0 : index
    %c0_1 = arith.constant 0 : index
    %3 = vector.load %arg8[%c0, %c0_1] : memref<8x256xf32, #tpu.memory_space<vmem>>, vector<8x256xf32>
    %c0_2 = arith.constant 0 : index
    %c0_3 = arith.constant 0 : index
    %4 = vector.load %arg3[%c0_2, %c0_3] : memref<8x256xbf16, #tpu.memory_space<vmem>>, vector<8x256xbf16>
    %c0_4 = arith.constant 0 : index
    %c0_5 = arith.constant 0 : index
    %5 = vector.load %arg4[%c0_4, %c0_5] : memref<256x256xbf16, #tpu.memory_space<vmem>>, vector<256x256xbf16>
    %cst = arith.constant dense<0.000000e+00> : vector<8x256xf32>
    %6 = tpu.matmul %4, %5, %cst {dimension_numbers = #tpu.dot_dimension_numbers<[1], [0], [0], [1], [0, 0, 1, 1], [], []>} : vector<8x256xbf16>, vector<256x256xbf16>, vector<8x256xf32> -> vector<8x256xf32>
    %7 = arith.addf %3, %6 : vector<8x256xf32>
    %c0_6 = arith.constant 0 : index
    %c0_7 = arith.constant 0 : index
    %8 = vector.load %arg8[%c0_6, %c0_7] : memref<8x256xf32, #tpu.memory_space<vmem>>, vector<8x256xf32>
    tpu.vector_store %arg8[%c0_6, %c0_7], %7 {strides = array<i32>} : memref<8x256xf32, #tpu.memory_space<vmem>>, vector<8x256xf32>,
    %c0_i32_8 = arith.constant 0 : i32
    %9 = arith.cmpi eq, %arg2, %c0_i32_8 : i32
    %10 = arith.extui %9 : i1 to i32
    %c0_i32_9 = arith.constant 0 : i32
    %11 = arith.cmpi ne, %10, %c0_i32_9 : i32
    scf.if %11 {
      %c0_10 = arith.constant 0 : index
      %c0_11 = arith.constant 0 : index
      %12 = vector.load %arg8[%c0_10, %c0_11] : memref<8x256xf32, #tpu.memory_space<vmem>>, vector<8x256xf32>
      %c0_12 = arith.constant 0 : index
      %c0_13 = arith.constant 0 : index
      %13 = vector.load %arg5[%c0_12, %c0_13] : memref<1x256xf32, #tpu.memory_space<vmem>>, vector<1x256xf32>
      %14 = vector.broadcast %13 : vector<1x256xf32> to vector<8x256xf32>
      %15 = arith.mulf %12, %14 : vector<8x256xf32>
      %c0_14 = arith.constant 0 : index
      %c0_15 = arith.constant 0 : index
      %16 = vector.load %arg6[%c0_14, %c0_15] : memref<1x256xf32, #tpu.memory_space<vmem>>, vector<1x256xf32>
      %17 = vector.broadcast %16 : vector<1x256xf32> to vector<8x256xf32>
      %18 = arith.addf %15, %17 : vector<8x256xf32>
      %c0_16 = arith.constant 0 : index
      %c0_17 = arith.constant 0 : index
      %19 = vector.load %arg7[%c0_16, %c0_17] : memref<8x256xf32, #tpu.memory_space<vmem>>, vector<8x256xf32>
      tpu.vector_store %arg7[%c0_16, %c0_17], %18 {strides = array<i32>} : memref<8x256xf32, #tpu.memory_space<vmem>>, vector<8x256xf32>,
    } else {
    }
    return
  }
  func.func @transform_0(%arg0: i32, %arg1: i32, %arg2: i32) -> (i32, i32) {
    %c0_i32 = arith.constant 0 : i32
    return %arg0, %arg2 : i32, i32
  }
  func.func @transform_1(%arg0: i32, %arg1: i32, %arg2: i32) -> (i32, i32) {
    %c0_i32 = arith.constant 0 : i32
    return %arg2, %arg1 : i32, i32
  }
  func.func @transform_2(%arg0: i32, %arg1: i32, %arg2: i32) -> (i32, i32) {
    %c0_i32 = arith.constant 0 : i32
    %c0_i32_0 = arith.constant 0 : i32
    return %c0_i32, %arg1 : i32, i32
  }
  func.func @transform_3(%arg0: i32, %arg1: i32, %arg2: i32) -> (i32, i32) {
    %c0_i32 = arith.constant 0 : i32
    %c0_i32_0 = arith.constant 0 : i32
    return %c0_i32, %arg1 : i32, i32
  }
  func.func @transform_4(%arg0: i32, %arg1: i32, %arg2: i32) -> (i32, i32) {
    %c0_i32 = arith.constant 0 : i32
    return %arg0, %arg1 : i32, i32
  }
}

module attributes {stable_mosaic.version = 11 : i64} {
  func.func @_mm_bn_add_relu_kernel(%arg0: i32, %arg1: i32, %arg2: i32, %arg3: memref<8x512xbf16, #tpu.memory_space<vmem>>, %arg4: memref<512x256xbf16, #tpu.memory_space<vmem>>, %arg5: memref<1x256xf32, #tpu.memory_space<vmem>>, %arg6: memref<1x256xf32, #tpu.memory_space<vmem>>, %arg7: memref<8x256xf32, #tpu.memory_space<vmem>>, %arg8: memref<8x256xf32, #tpu.memory_space<vmem>>, %arg9: memref<8x256xf32, #tpu.memory_space<vmem>>) attributes {dimension_semantics = [#tpu.dimension_semantics<parallel>, #tpu.dimension_semantics<parallel>, #tpu.dimension_semantics<arbitrary>], iteration_bounds = array<i64: 1, 2, 9>, scalar_prefetch = 0 : i64, scratch_operands = 1 : i64, tpu.core_type = #tpu.core_type<tc>, window_params = [{transform_indices = @transform_0, window_bounds = array<i64: 8, 512>}, {transform_indices = @transform_1, window_bounds = array<i64: 512, 256>}, {transform_indices = @transform_2, window_bounds = array<i64: 1, 256>}, {transform_indices = @transform_3, window_bounds = array<i64: 1, 256>}, {transform_indices = @transform_4, window_bounds = array<i64: 8, 256>}, {transform_indices = @transform_5, window_bounds = array<i64: 8, 256>}]} {
    %c0_i32 = arith.constant 0 : i32
    %0 = arith.cmpi eq, %arg2, %c0_i32 : i32
    %1 = arith.extui %0 : i1 to i32
    %c0_i32_0 = arith.constant 0 : i32
    %2 = arith.cmpi ne, %1, %c0_i32_0 : i32
    scf.if %2 {
      %cst_9 = arith.constant 0.000000e+00 : f32
      %12 = vector.broadcast %cst_9 : f32 to vector<8x256xf32>
      %c0_10 = arith.constant 0 : index
      %c0_11 = arith.constant 0 : index
      %13 = vector.load %arg9[%c0_10, %c0_11] : memref<8x256xf32, #tpu.memory_space<vmem>>, vector<8x256xf32>
      tpu.vector_store %arg9[%c0_10, %c0_11], %12 {strides = array<i32>} : memref<8x256xf32, #tpu.memory_space<vmem>>, vector<8x256xf32>,
    } else {
    }
    %c0 = arith.constant 0 : index
    %c0_1 = arith.constant 0 : index
    %3 = vector.load %arg9[%c0, %c0_1] : memref<8x256xf32, #tpu.memory_space<vmem>>, vector<8x256xf32>
    %c0_2 = arith.constant 0 : index
    %c0_3 = arith.constant 0 : index
    %4 = vector.load %arg3[%c0_2, %c0_3] : memref<8x512xbf16, #tpu.memory_space<vmem>>, vector<8x512xbf16>
    %c0_4 = arith.constant 0 : index
    %c0_5 = arith.constant 0 : index
    %5 = vector.load %arg4[%c0_4, %c0_5] : memref<512x256xbf16, #tpu.memory_space<vmem>>, vector<512x256xbf16>
    %cst = arith.constant dense<0.000000e+00> : vector<8x256xf32>
    %6 = tpu.matmul %4, %5, %cst {dimension_numbers = #tpu.dot_dimension_numbers<[1], [0], [0], [1], [0, 0, 1, 1], [], []>} : vector<8x512xbf16>, vector<512x256xbf16>, vector<8x256xf32> -> vector<8x256xf32>
    %7 = arith.addf %3, %6 : vector<8x256xf32>
    %c0_6 = arith.constant 0 : index
    %c0_7 = arith.constant 0 : index
    %8 = vector.load %arg9[%c0_6, %c0_7] : memref<8x256xf32, #tpu.memory_space<vmem>>, vector<8x256xf32>
    tpu.vector_store %arg9[%c0_6, %c0_7], %7 {strides = array<i32>} : memref<8x256xf32, #tpu.memory_space<vmem>>, vector<8x256xf32>,
    %c8_i32 = arith.constant 8 : i32
    %9 = arith.cmpi eq, %arg2, %c8_i32 : i32
    %10 = arith.extui %9 : i1 to i32
    %c0_i32_8 = arith.constant 0 : i32
    %11 = arith.cmpi ne, %10, %c0_i32_8 : i32
    scf.if %11 {
      %c0_9 = arith.constant 0 : index
      %c0_10 = arith.constant 0 : index
      %12 = vector.load %arg9[%c0_9, %c0_10] : memref<8x256xf32, #tpu.memory_space<vmem>>, vector<8x256xf32>
      %c0_11 = arith.constant 0 : index
      %c0_12 = arith.constant 0 : index
      %13 = vector.load %arg5[%c0_11, %c0_12] : memref<1x256xf32, #tpu.memory_space<vmem>>, vector<1x256xf32>
      %14 = vector.broadcast %13 : vector<1x256xf32> to vector<8x256xf32>
      %15 = arith.mulf %12, %14 : vector<8x256xf32>
      %c0_13 = arith.constant 0 : index
      %c0_14 = arith.constant 0 : index
      %16 = vector.load %arg6[%c0_13, %c0_14] : memref<1x256xf32, #tpu.memory_space<vmem>>, vector<1x256xf32>
      %17 = vector.broadcast %16 : vector<1x256xf32> to vector<8x256xf32>
      %18 = arith.addf %15, %17 : vector<8x256xf32>
      %c0_15 = arith.constant 0 : index
      %c0_16 = arith.constant 0 : index
      %19 = vector.load %arg7[%c0_15, %c0_16] : memref<8x256xf32, #tpu.memory_space<vmem>>, vector<8x256xf32>
      %20 = arith.addf %18, %19 : vector<8x256xf32>
      %cst_17 = arith.constant 0.000000e+00 : f32
      %21 = vector.broadcast %cst_17 : f32 to vector<8x256xf32>
      %22 = arith.maximumf %20, %21 : vector<8x256xf32>
      %c0_18 = arith.constant 0 : index
      %c0_19 = arith.constant 0 : index
      %23 = vector.load %arg8[%c0_18, %c0_19] : memref<8x256xf32, #tpu.memory_space<vmem>>, vector<8x256xf32>
      tpu.vector_store %arg8[%c0_18, %c0_19], %22 {strides = array<i32>} : memref<8x256xf32, #tpu.memory_space<vmem>>, vector<8x256xf32>,
    } else {
    }
    return
  }
  func.func @transform_0(%arg0: i32, %arg1: i32, %arg2: i32) -> (i32, i32) {
    %c0_i32 = arith.constant 0 : i32
    return %arg0, %arg2 : i32, i32
  }
  func.func @transform_1(%arg0: i32, %arg1: i32, %arg2: i32) -> (i32, i32) {
    %c0_i32 = arith.constant 0 : i32
    return %arg2, %arg1 : i32, i32
  }
  func.func @transform_2(%arg0: i32, %arg1: i32, %arg2: i32) -> (i32, i32) {
    %c0_i32 = arith.constant 0 : i32
    %c0_i32_0 = arith.constant 0 : i32
    return %c0_i32, %arg1 : i32, i32
  }
  func.func @transform_3(%arg0: i32, %arg1: i32, %arg2: i32) -> (i32, i32) {
    %c0_i32 = arith.constant 0 : i32
    %c0_i32_0 = arith.constant 0 : i32
    return %c0_i32, %arg1 : i32, i32
  }
  func.func @transform_4(%arg0: i32, %arg1: i32, %arg2: i32) -> (i32, i32) {
    %c0_i32 = arith.constant 0 : i32
    return %arg0, %arg1 : i32, i32
  }
  func.func @transform_5(%arg0: i32, %arg1: i32, %arg2: i32) -> (i32, i32) {
    %c0_i32 = arith.constant 0 : i32
    return %arg0, %arg1 : i32, i32
  }
}

module attributes {stable_mosaic.version = 11 : i64} {
  func.func @_head_kernel(%arg0: i32, %arg1: memref<2x1x512xf32, #tpu.memory_space<vmem>>, %arg2: memref<512x10xf32, #tpu.memory_space<vmem>>, %arg3: memref<1x10xf32, #tpu.memory_space<vmem>>, %arg4: memref<2x10xf32, #tpu.memory_space<vmem>>) attributes {dimension_semantics = [#tpu.dimension_semantics<arbitrary>], iteration_bounds = array<i64: 1>, scalar_prefetch = 0 : i64, scratch_operands = 0 : i64, tpu.core_type = #tpu.core_type<tc>, window_params = [{pipeline_mode = #tpu.pipeline_mode<synchronous>, transform_indices = @transform_0, window_bounds = array<i64: 2, 1, 512>}, {pipeline_mode = #tpu.pipeline_mode<synchronous>, transform_indices = @transform_1, window_bounds = array<i64: 512, 10>}, {pipeline_mode = #tpu.pipeline_mode<synchronous>, transform_indices = @transform_2, window_bounds = array<i64: 1, 10>}, {pipeline_mode = #tpu.pipeline_mode<synchronous>, transform_indices = @transform_3, window_bounds = array<i64: 2, 10>}]} {
    %c0 = arith.constant 0 : index
    %c0_0 = arith.constant 0 : index
    %c0_1 = arith.constant 0 : index
    %0 = vector.load %arg1[%c0, %c0_0, %c0_1] : memref<2x1x512xf32, #tpu.memory_space<vmem>>, vector<2x1x512xf32>
    %cst = arith.constant dense<0.000000e+00> : vector<2x512xf32>
    %1 = vector.multi_reduction <add>, %0, %cst [1] : vector<2x1x512xf32> to vector<2x512xf32>
    %cst_2 = arith.constant 1.000000e+00 : f32
    %2 = vector.broadcast %cst_2 : f32 to vector<2x512xf32>
    %3 = arith.divf %1, %2 : vector<2x512xf32>
    %c0_3 = arith.constant 0 : index
    %c0_4 = arith.constant 0 : index
    %4 = vector.load %arg2[%c0_3, %c0_4] : memref<512x10xf32, #tpu.memory_space<vmem>>, vector<512x10xf32>
    %cst_5 = arith.constant dense<0.000000e+00> : vector<2x10xf32>
    %5 = tpu.matmul %3, %4, %cst_5 {dimension_numbers = #tpu.dot_dimension_numbers<[1], [0], [0], [1], [0, 0, 1, 1], [], []>} : vector<2x512xf32>, vector<512x10xf32>, vector<2x10xf32> -> vector<2x10xf32>
    %c0_6 = arith.constant 0 : index
    %c0_7 = arith.constant 0 : index
    %6 = vector.load %arg3[%c0_6, %c0_7] : memref<1x10xf32, #tpu.memory_space<vmem>>, vector<1x10xf32>
    %7 = vector.broadcast %6 : vector<1x10xf32> to vector<2x10xf32>
    %8 = arith.addf %5, %7 : vector<2x10xf32>
    %cst_8 = arith.constant 5.000000e-01 : f32
    %9 = vector.broadcast %cst_8 : f32 to vector<2x10xf32>
    %10 = arith.mulf %9, %8 : vector<2x10xf32>
    %11 = math.tanh %10 : vector<2x10xf32>
    %cst_9 = arith.constant 1.000000e+00 : f32
    %12 = vector.broadcast %cst_9 : f32 to vector<2x10xf32>
    %13 = arith.addf %11, %12 : vector<2x10xf32>
    %cst_10 = arith.constant 5.000000e-01 : f32
    %14 = vector.broadcast %cst_10 : f32 to vector<2x10xf32>
    %15 = arith.mulf %14, %13 : vector<2x10xf32>
    %c0_11 = arith.constant 0 : index
    %c0_12 = arith.constant 0 : index
    %16 = vector.load %arg4[%c0_11, %c0_12] : memref<2x10xf32, #tpu.memory_space<vmem>>, vector<2x10xf32>
    tpu.vector_store %arg4[%c0_11, %c0_12], %15 {strides = array<i32>} : memref<2x10xf32, #tpu.memory_space<vmem>>, vector<2x10xf32>,
    return
  }
  func.func @transform_0(%arg0: i32) -> (i32, i32, i32) {
    %c0_i32 = arith.constant 0 : i32
    %c0_i32_0 = arith.constant 0 : i32
    %c0_i32_1 = arith.constant 0 : i32
    %c0_i32_2 = arith.constant 0 : i32
    return %c0_i32, %c0_i32_0, %c0_i32_1 : i32, i32, i32
  }
  func.func @transform_1(%arg0: i32) -> (i32, i32) {
    %c0_i32 = arith.constant 0 : i32
    %c0_i32_0 = arith.constant 0 : i32
    %c0_i32_1 = arith.constant 0 : i32
    return %c0_i32, %c0_i32_0 : i32, i32
  }
  func.func @transform_2(%arg0: i32) -> (i32, i32) {
    %c0_i32 = arith.constant 0 : i32
    %c0_i32_0 = arith.constant 0 : i32
    %c0_i32_1 = arith.constant 0 : i32
    return %c0_i32, %c0_i32_0 : i32, i32
  }
  func.func @transform_3(%arg0: i32) -> (i32, i32) {
    %c0_i32 = arith.constant 0 : i32
    %c0_i32_0 = arith.constant 0 : i32
    %c0_i32_1 = arith.constant 0 : i32
    return %c0_i32, %c0_i32_0 : i32, i32
  }
}

</mosaic_0001>

<bundles_post_ra>
// kernel: resnet_forward.14
= control target key start
LH: loop header
LB: loop body
LE: loop exit
PB: predicated region body
PF: predicated region fallthrough
CT: control target
= control target key end

     0   :  { %s1556_s15 = smov 0   ;;  %s1558_s16 = smov 0   ;;  %s1786_s0 = inlined_call_operand.vmem [shape: bf16[512,256], index: 0, kind: input, shape index: {}]   ;;  %s1787_s1 = inlined_call_operand.vmem [shape: bf16[256,128], index: 1, kind: input, shape index: {}]   ;;  %s1788_s2 = inlined_call_operand.vmem [shape: f32[1,128], index: 2, kind: input, shape index: {}]   ;;  %s1789_s3 = inlined_call_operand.vmem [shape: f32[1,128], index: 3, kind: input, shape index: {}]   ;;  %s1790_s4 = inlined_call_operand.vmem [shape: f32[512,128], index: 4, kind: output, shape index: {}]  }
   0x1   :  { %s1560_s17 = smov 0  }
   0x2 LB: > { %s33_s18 = sadd.s32 1, %s1525_s16  ;;  %p1232_p0 = scmp.ge.s32.totalorder %s1529_s17, 1  ;;  %s1529_s17 = sphi %s1560_s17, %s14_s17   ;;  %s1525_s16 = sphi %s1558_s16, %s1792_s16   ;;  %s1521_s15 = sphi %s1556_s15, %s1791_s15  }
   0x3   : > { %p35_p1 = scmp.ge.s32.totalorder %s33_s18, 2  ;;  %p224_p2 = scmp.lt.s32.totalorder %s1529_s17, 3 }
   0x5   : > { %s1794_s18 = smov (%p35_p1, %s33_s18), 0  ;;  %p225_p3 = pnand %p1232_p0, %p224_p2 }
   0x6   : > { %v1443_v0 = vld [vmem:[%s1787_s1 + $0x40] sm:$0xff] (!%p225_p3)   ;;  %s1233_s21 = sshll.u32 (!%p225_p3), %s1521_s15, 5  ;;  %v1445_v2 = vld [vmem:[%s1787_s1 + $0x48] sm:$0xff] (!%p225_p3)   ;;  %v1447_v4 = vld [vmem:[%s1787_s1 + $0x50] sm:$0xff] (!%p225_p3)  }
   0x7   : > { %228 = sbr.rel (%p225_p3) target bundleno = 320 (0x140), region = 36  ;;  %v1444_v1 = vld [vmem:[%s1787_s1] sm:$0xff] (!%p225_p3)   ;;  %1291 = vmatprep.subr.bf16.mxu0 (!%p225_p3), %v1443_v0  ;;  %1403 = vmatprep.subr.bf16.mxu1 (!%p225_p3), %v1443_v0  ;;  %v1446_v3 = vld [vmem:[%s1787_s1 + $0x8] sm:$0xff] (!%p225_p3)   ;;  %p274_p4 = scmp.lt.s32.totalorder (!%p225_p3), %s1233_s21, 63  ;;  %v1448_v5 = vld [vmem:[%s1787_s1 + $0x10] sm:$0xff] (!%p225_p3)  }
   0x8   : > { %1292 = vmatpush3.bf16.msra.mxu0 (!%p225_p3), %v1444_v1  ;;  %1411 = vmatpush3.bf16.msra.mxu1 (!%p225_p3), %v1444_v1  ;;  %v1449_v6 = vld [vmem:[%s1787_s1 + $0x58] sm:$0xff] (!%p225_p3)   ;;  %v1451_v8 = vld [vmem:[%s1787_s1 + $0x60] sm:$0xff] (!%p225_p3)   ;;  %v1453_v10 = vld [vmem:[%s1787_s1 + $0x68] sm:$0xff] (!%p225_p3)  }
   0x9   : > { %1293 = vmatprep.subr.bf16.mxu0 (!%p225_p3), %v1445_v2  ;;  %1404 = vmatprep.subr.bf16.mxu1 (!%p225_p3), %v1445_v2  ;;  %v1450_v7 = vld [vmem:[%s1787_s1 + $0x18] sm:$0xff] (!%p225_p3)   ;;  %v1452_v9 = vld [vmem:[%s1787_s1 + $0x20] sm:$0xff] (!%p225_p3)   ;;  %v1454_v13 = vld [vmem:[%s1787_s1 + $0x28] sm:$0xff] (!%p225_p3)  }
   0xa   : > { %v1455_v14 = vld [vmem:[%s1787_s1 + $0x70] sm:$0xff] (!%p225_p3)   ;;  %v1457_v16 = vld [vmem:[%s1787_s1 + $0x78] sm:$0xff] (!%p225_p3)   ;;  %v1667_v51 = vld [vmem:[%s1788_s2] ss:$0 sm:$0xff] (!%p225_p3) }
   0xb   : > { %v1456_v15 = vld [vmem:[%s1787_s1 + $0x30] sm:$0xff] (!%p225_p3)   ;;  %v1458_v17 = vld [vmem:[%s1787_s1 + $0x38] sm:$0xff] (!%p225_p3)   ;;  %v1672_v57 = vld [vmem:[%s1789_s3] ss:$0 sm:$0xff] (!%p225_p3) }
   0xc   : > { %1294 = vmatpush3.bf16.msra.mxu0 (!%p225_p3), %v1446_v3  ;;  %1412 = vmatpush3.bf16.msra.mxu1 (!%p225_p3), %v1446_v3 }
   0xd   : > { %1295 = vmatprep.subr.bf16.mxu0 (!%p225_p3), %v1447_v4  ;;  %1405 = vmatprep.subr.bf16.mxu1 (!%p225_p3), %v1447_v4 }
   0xe   : > { %s1796_s21 = smov (!%p274_p4, %s1233_s21), 63 }
   0xf   : > { %s1290_s10 = sshll.u32 %s1796_s21, 3 }
  0x10   : > { %1296 = vmatpush3.bf16.msra.mxu0 %v1448_v5  ;;  %1413 = vmatpush3.bf16.msra.mxu1 %v1448_v5  ;;  %s1609_s15 = scalar_lea.vmem %s1786_s0, %s1290_s10 }
  0x11   : > { %1297 = vmatprep.subr.bf16.mxu0 %v1449_v6  ;;  %1406 = vmatprep.subr.bf16.mxu1 %v1449_v6  ;;  %v1461_v11 = vld [vmem:[%s1609_s15 + $0x4] ss:$8 sps:$4 sm:$0xff]   ;;  %v1459_v18 = vld [vmem:[%s1609_s15] ss:$8 sps:$4 sm:$0xff]   ;;  %v1465_v20 = vld [vmem:[%s1609_s15 + $0x14] ss:$8 sps:$4 sm:$0xff]  }
  0x12   : > { %v1464_v12 = vld [vmem:[%s1609_s15 + $0x84] ss:$8 sps:$4 sm:$0xff]   ;;  %729 = vmatprep.mubr.bf16.mxu0 %v1461_v11  ;;  %v1462_v19 = vld [vmem:[%s1609_s15 + $0x80] ss:$8 sps:$4 sm:$0xff]   ;;  %v1467_v21 = vld [vmem:[%s1609_s15 + $0x94] ss:$8 sps:$4 sm:$0xff]  }
  0x13   : > { %793 = vmatprep.mubr.bf16.mxu1 %v1464_v12  ;;  %v1469_v22 = vld [vmem:[%s1609_s15 + $0x10] ss:$8 sps:$4 sm:$0xff]   ;;  %v1471_v24 = vld [vmem:[%s1609_s15 + $0x24] ss:$8 sps:$4 sm:$0xff]   ;;  %v1475_v26 = vld [vmem:[%s1609_s15 + $0x20] ss:$8 sps:$4 sm:$0xff]  }
  0x14   : > { %1298 = vmatpush3.bf16.msra.mxu0 %v1450_v7  ;;  %1414 = vmatpush3.bf16.msra.mxu1 %v1450_v7  ;;  %v1470_v23 = vld [vmem:[%s1609_s15 + $0x90] ss:$8 sps:$4 sm:$0xff]   ;;  %v1473_v25 = vld [vmem:[%s1609_s15 + $0xa4] ss:$8 sps:$4 sm:$0xff]   ;;  %v1476_v27 = vld [vmem:[%s1609_s15 + $0xa0] ss:$8 sps:$4 sm:$0xff]  }
  0x15   : > { %1299 = vmatprep.subr.bf16.mxu0 %v1451_v8  ;;  %1407 = vmatprep.subr.bf16.mxu1 %v1451_v8  ;;  %v1477_v28 = vld [vmem:[%s1609_s15 + $0x34] ss:$8 sps:$4 sm:$0xff]   ;;  %v1481_v30 = vld [vmem:[%s1609_s15 + $0x30] ss:$8 sps:$4 sm:$0xff]   ;;  %v1483_v32 = vld [vmem:[%s1609_s15 + $0x44] ss:$8 sps:$4 sm:$0xff]  }
  0x16   : > { %v1479_v29 = vld [vmem:[%s1609_s15 + $0xb4] ss:$8 sps:$4 sm:$0xff]   ;;  %v1482_v31 = vld [vmem:[%s1609_s15 + $0xb0] ss:$8 sps:$4 sm:$0xff]   ;;  %v1485_v33 = vld [vmem:[%s1609_s15 + $0xc4] ss:$8 sps:$4 sm:$0xff]  }
  0x17   : > { %v1487_v34 = vld [vmem:[%s1609_s15 + $0x40] ss:$8 sps:$4 sm:$0xff]   ;;  %v1489_v36 = vld [vmem:[%s1609_s15 + $0x54] ss:$8 sps:$4 sm:$0xff]   ;;  %v1493_v38 = vld [vmem:[%s1609_s15 + $0x50] ss:$8 sps:$4 sm:$0xff]  }
  0x18   : > { %1300 = vmatpush3.bf16.msra.mxu0 %v1452_v9  ;;  %1415 = vmatpush3.bf16.msra.mxu1 %v1452_v9  ;;  %v1488_v35 = vld [vmem:[%s1609_s15 + $0xc0] ss:$8 sps:$4 sm:$0xff]   ;;  %v1491_v37 = vld [vmem:[%s1609_s15 + $0xd4] ss:$8 sps:$4 sm:$0xff]   ;;  %v1494_v39 = vld [vmem:[%s1609_s15 + $0xd0] ss:$8 sps:$4 sm:$0xff]  }
  0x19   : > { %1301 = vmatprep.subr.bf16.mxu0 %v1453_v10  ;;  %1408 = vmatprep.subr.bf16.mxu1 %v1453_v10  ;;  %v1495_v40 = vld [vmem:[%s1609_s15 + $0x64] ss:$8 sps:$4 sm:$0xff]   ;;  %v1499_v42 = vld [vmem:[%s1609_s15 + $0x60] ss:$8 sps:$4 sm:$0xff]   ;;  %v1501_v44 = vld [vmem:[%s1609_s15 + $0x74] ss:$8 sps:$4 sm:$0xff]  }
  0x1a   : > { %v1497_v41 = vld [vmem:[%s1609_s15 + $0xe4] ss:$8 sps:$4 sm:$0xff]   ;;  %v1500_v43 = vld [vmem:[%s1609_s15 + $0xe0] ss:$8 sps:$4 sm:$0xff]   ;;  %v1503_v45 = vld [vmem:[%s1609_s15 + $0xf4] ss:$8 sps:$4 sm:$0xff]  }
  0x1b   : > { %v1505_v46 = vld [vmem:[%s1609_s15 + $0x70] ss:$8 sps:$4 sm:$0xff]  }
  0x1c   : > { %1302 = vmatpush3.bf16.msra.mxu0 %v1454_v13  ;;  %1416 = vmatpush3.bf16.msra.mxu1 %v1454_v13  ;;  %v1506_v47 = vld [vmem:[%s1609_s15 + $0xf0] ss:$8 sps:$4 sm:$0xff]   ;;  %s1685_s15 = scalar_lea.vmem %s1790_s4, %s1290_s10 }
  0x1d   : > { %1303 = vmatprep.subr.bf16.mxu0 %v1455_v14  ;;  %1409 = vmatprep.subr.bf16.mxu1 %v1455_v14 }
  0x20   : > { %1304 = vmatpush3.bf16.msra.mxu0 %v1456_v15  ;;  %1417 = vmatpush3.bf16.msra.mxu1 %v1456_v15 }
  0x21   : > { %1305 = vmatprep.subr.bf16.mxu0 %v1457_v16  ;;  %1410 = vmatprep.subr.bf16.mxu1 %v1457_v16 }
  0x24   : > { %1306 = vmatpush3.bf16.msra.mxu0 %v1458_v17  ;;  %1418 = vmatpush3.bf16.msra.mxu1 %v1458_v17 }
  0x27   : > { %730 = vmatmul.mubr.bf16.vlgmr.msra.gmra.mrb[0].mxu0 %v1459_v18  ;;  %794 = vmatmul.mubr.bf16.vlgmr.msra.gmra.mrb[0].mxu1 %v1462_v19 }
  0x28   : > { %737 = vmatprep.mubr.bf16.mxu0 %v1465_v20  ;;  %801 = vmatprep.mubr.bf16.mxu1 %v1467_v21 }
  0x2f   : > { %738 = vmatmul.mubr.bf16.gmra.mrb[4].mxu0 %v1469_v22  ;;  %802 = vmatmul.mubr.bf16.gmra.mrb[4].mxu1 %v1470_v23 }
  0x30   : > { %745 = vmatprep.mubr.bf16.mxu0 %v1471_v24  ;;  %809 = vmatprep.mubr.bf16.mxu1 %v1473_v25 }
  0x37   : > { %746 = vmatmul.mubr.bf16.gmra.mrb[8].mxu0 %v1475_v26  ;;  %810 = vmatmul.mubr.bf16.gmra.mrb[8].mxu1 %v1476_v27 }
  0x38   : > { %753 = vmatprep.mubr.bf16.mxu0 %v1477_v28  ;;  %817 = vmatprep.mubr.bf16.mxu1 %v1479_v29 }
  0x3f   : > { %754 = vmatmul.mubr.bf16.gmra.mrb[12].mxu0 %v1481_v30  ;;  %818 = vmatmul.mubr.bf16.gmra.mrb[12].mxu1 %v1482_v31 }
  0x40   : > { %761 = vmatprep.mubr.bf16.mxu0 %v1483_v32  ;;  %825 = vmatprep.mubr.bf16.mxu1 %v1485_v33 }
  0x47   : > { %762 = vmatmul.mubr.bf16.gmra.mrb[16].mxu0 %v1487_v34  ;;  %826 = vmatmul.mubr.bf16.gmra.mrb[16].mxu1 %v1488_v35 }
  0x48   : > { %769 = vmatprep.mubr.bf16.mxu0 %v1489_v36  ;;  %833 = vmatprep.mubr.bf16.mxu1 %v1491_v37 }
  0x4f   : > { %770 = vmatmul.mubr.bf16.gmra.mrb[20].mxu0 %v1493_v38  ;;  %834 = vmatmul.mubr.bf16.gmra.mrb[20].mxu1 %v1494_v39 }
  0x50   : > { %777 = vmatprep.mubr.bf16.mxu0 %v1495_v40  ;;  %841 = vmatprep.mubr.bf16.mxu1 %v1497_v41 }
  0x57   : > { %778 = vmatmul.mubr.bf16.gmra.mrb[24].mxu0 %v1499_v42  ;;  %842 = vmatmul.mubr.bf16.gmra.mrb[24].mxu1 %v1500_v43 }
  0x58   : > { %785 = vmatprep.mubr.bf16.mxu0 %v1501_v44  ;;  %849 = vmatprep.mubr.bf16.mxu1 %v1503_v45 }
  0x5f   : > { %786 = vmatmul.mubr.bf16.gmra.mrb[28].mxu0 %v1505_v46  ;;  %850 = vmatmul.mubr.bf16.gmra.mrb[28].mxu1 %v1506_v47 }
  0xfa   : > { %v1307_v48 = vpop.f32.mrb[0].mxu0  ;;  %v1355_v49 = vpop.f32.mrb[0].mxu1 }
  0xfb   : > { %v1308_v50 = vpop.f32.mrb[1].mxu0  ;;  %v1356_v52 = vpop.f32.mrb[1].mxu1 }
  0xfc   : > { %v1309_v53 = vadd.f32 %v1308_v50, %v1307_v48  ;;  %v1357_v54 = vadd.f32 %v1356_v52, %v1355_v49  ;;  %v1310_v55 = vpop.f32.mrb[2].mxu0  ;;  %v1358_v56 = vpop.f32.mrb[2].mxu1 }
  0xfd   : > { %v1311_v58 = vpop.f32.mrb[3].mxu0  ;;  %v1359_v59 = vpop.f32.mrb[3].mxu1 }
  0xfe   : > { %v964_v60 = vmul.f32 %v1309_v53, %v1667_v51  ;;  %v980_v61 = vmul.f32 %v1357_v54, %v1667_v51  ;;  %v1312_v62 = vadd.f32 %v1311_v58, %v1310_v55  ;;  %v1360_v63 = vadd.f32 %v1359_v59, %v1358_v56 }
 0x100   : > { %v1003_v0 = vadd.f32 %v1672_v57, %v964_v60  ;;  %v1019_v1 = vadd.f32 %v1672_v57, %v980_v61  ;;  %v965_v2 = vmul.f32 %v1312_v62, %v1667_v51  ;;  %v981_v3 = vmul.f32 %v1360_v63, %v1667_v51 }
 0x102   : > { %v1035_v4 = vmax.f32 %v1003_v0, 0.0  ;;  %v1051_v5 = vmax.f32 %v1019_v1, 0.0  ;;  %v1004_v6 = vadd.f32 %v1672_v57, %v965_v2  ;;  %v1020_v7 = vadd.f32 %v1672_v57, %v981_v3  ;;  %v1313_v8 = vpop.f32.mrb[4].mxu0  ;;  %v1361_v9 = vpop.f32.mrb[4].mxu1 }
 0x103   : > { %v1314_v10 = vpop.f32.mrb[5].mxu0  ;;  %v1362_v11 = vpop.f32.mrb[5].mxu1 }
 0x104   : > { %1067 = vst [vmem:[%s1685_s15] sm:$0xff] %v1035_v4  ;;  %1083 = vst [vmem:[%s1685_s15 + $0x80] sm:$0xff] %v1051_v5  ;;  %v1036_v12 = vmax.f32 %v1004_v6, 0.0  ;;  %v1052_v13 = vmax.f32 %v1020_v7, 0.0  ;;  %v1315_v14 = vadd.f32 %v1314_v10, %v1313_v8  ;;  %v1363_v15 = vadd.f32 %v1362_v11, %v1361_v9  ;;  %v1316_v16 = vpop.f32.mrb[6].mxu0  ;;  %v1364_v17 = vpop.f32.mrb[6].mxu1 }
 0x105   : > { %v1317_v18 = vpop.f32.mrb[7].mxu0  ;;  %v1365_v19 = vpop.f32.mrb[7].mxu1 }
 0x106   : > { %1068 = vst [vmem:[%s1685_s15 + $0x8] sm:$0xff] %v1036_v12  ;;  %1084 = vst [vmem:[%s1685_s15 + $0x88] sm:$0xff] %v1052_v13  ;;  %v966_v20 = vmul.f32 %v1315_v14, %v1667_v51  ;;  %v982_v21 = vmul.f32 %v1363_v15, %v1667_v51  ;;  %v1318_v22 = vadd.f32 %v1317_v18, %v1316_v16 }
 0x107   : > { %v1366_v23 = vadd.f32 %v1365_v19, %v1364_v17 }
 0x108   : > { %v1005_v24 = vadd.f32 %v1672_v57, %v966_v20  ;;  %v1021_v25 = vadd.f32 %v1672_v57, %v982_v21  ;;  %v967_v26 = vmul.f32 %v1318_v22, %v1667_v51 }
 0x109   : > { %v983_v27 = vmul.f32 %v1366_v23, %v1667_v51 }
 0x10a   : > { %v1037_v28 = vmax.f32 %v1005_v24, 0.0  ;;  %v1053_v29 = vmax.f32 %v1021_v25, 0.0  ;;  %v1006_v30 = vadd.f32 %v1672_v57, %v967_v26  ;;  %v1319_v32 = vpop.f32.mrb[8].mxu0  ;;  %v1367_v33 = vpop.f32.mrb[8].mxu1 }
 0x10b   : > { %v1022_v31 = vadd.f32 %v1672_v57, %v983_v27  ;;  %v1320_v34 = vpop.f32.mrb[9].mxu0  ;;  %v1368_v35 = vpop.f32.mrb[9].mxu1 }
 0x10c   : > { %1069 = vst [vmem:[%s1685_s15 + $0x10] sm:$0xff] %v1037_v28  ;;  %1085 = vst [vmem:[%s1685_s15 + $0x90] sm:$0xff] %v1053_v29  ;;  %v1038_v36 = vmax.f32 %v1006_v30, 0.0  ;;  %v1321_v38 = vadd.f32 %v1320_v34, %v1319_v32  ;;  %v1369_v39 = vadd.f32 %v1368_v35, %v1367_v33  ;;  %v1322_v40 = vpop.f32.mrb[10].mxu0  ;;  %v1370_v41 = vpop.f32.mrb[10].mxu1 }
 0x10d   : > { %v1054_v37 = vmax.f32 %v1022_v31, 0.0  ;;  %v1323_v42 = vpop.f32.mrb[11].mxu0  ;;  %v1371_v43 = vpop.f32.mrb[11].mxu1 }
 0x10e   : > { %1070 = vst [vmem:[%s1685_s15 + $0x18] sm:$0xff] %v1038_v36  ;;  %v968_v44 = vmul.f32 %v1321_v38, %v1667_v51  ;;  %v984_v45 = vmul.f32 %v1369_v39, %v1667_v51  ;;  %v1324_v46 = vadd.f32 %v1323_v42, %v1322_v40  ;;  %v1372_v47 = vadd.f32 %v1371_v43, %v1370_v41 }
 0x10f   : > { %1086 = vst [vmem:[%s1685_s15 + $0x98] sm:$0xff] %v1054_v37 }
 0x110   : > { %v1007_v48 = vadd.f32 %v1672_v57, %v968_v44  ;;  %v1023_v49 = vadd.f32 %v1672_v57, %v984_v45  ;;  %v969_v50 = vmul.f32 %v1324_v46, %v1667_v51  ;;  %v985_v52 = vmul.f32 %v1372_v47, %v1667_v51 }
 0x112   : > { %v1039_v53 = vmax.f32 %v1007_v48, 0.0  ;;  %v1055_v54 = vmax.f32 %v1023_v49, 0.0  ;;  %v1008_v55 = vadd.f32 %v1672_v57, %v969_v50  ;;  %v1024_v56 = vadd.f32 %v1672_v57, %v985_v52  ;;  %v1325_v58 = vpop.f32.mrb[12].mxu0  ;;  %v1373_v59 = vpop.f32.mrb[12].mxu1 }
 0x113   : > { %v1326_v60 = vpop.f32.mrb[13].mxu0  ;;  %v1374_v61 = vpop.f32.mrb[13].mxu1 }
 0x114   : > { %1071 = vst [vmem:[%s1685_s15 + $0x20] sm:$0xff] %v1039_v53  ;;  %1087 = vst [vmem:[%s1685_s15 + $0xa0] sm:$0xff] %v1055_v54  ;;  %v1040_v62 = vmax.f32 %v1008_v55, 0.0  ;;  %v1056_v63 = vmax.f32 %v1024_v56, 0.0  ;;  %v1327_v0 = vadd.f32 %v1326_v60, %v1325_v58  ;;  %v1375_v1 = vadd.f32 %v1374_v61, %v1373_v59  ;;  %v1328_v2 = vpop.f32.mrb[14].mxu0  ;;  %v1376_v3 = vpop.f32.mrb[14].mxu1 }
 0x115   : > { %v1329_v4 = vpop.f32.mrb[15].mxu0  ;;  %v1377_v5 = vpop.f32.mrb[15].mxu1 }
 0x116   : > { %1072 = vst [vmem:[%s1685_s15 + $0x28] sm:$0xff] %v1040_v62  ;;  %1088 = vst [vmem:[%s1685_s15 + $0xa8] sm:$0xff] %v1056_v63  ;;  %v970_v6 = vmul.f32 %v1327_v0, %v1667_v51  ;;  %v986_v7 = vmul.f32 %v1375_v1, %v1667_v51  ;;  %v1330_v8 = vadd.f32 %v1329_v4, %v1328_v2 }
 0x117   : > { %v1378_v9 = vadd.f32 %v1377_v5, %v1376_v3 }
 0x118   : > { %v1009_v10 = vadd.f32 %v1672_v57, %v970_v6  ;;  %v1025_v11 = vadd.f32 %v1672_v57, %v986_v7  ;;  %v971_v12 = vmul.f32 %v1330_v8, %v1667_v51 }
 0x119   : > { %v987_v13 = vmul.f32 %v1378_v9, %v1667_v51 }
 0x11a   : > { %v1041_v14 = vmax.f32 %v1009_v10, 0.0  ;;  %v1057_v15 = vmax.f32 %v1025_v11, 0.0  ;;  %v1010_v16 = vadd.f32 %v1672_v57, %v971_v12  ;;  %v1331_v18 = vpop.f32.mrb[16].mxu0  ;;  %v1379_v19 = vpop.f32.mrb[16].mxu1 }
 0x11b   : > { %v1026_v17 = vadd.f32 %v1672_v57, %v987_v13  ;;  %v1332_v20 = vpop.f32.mrb[17].mxu0  ;;  %v1380_v21 = vpop.f32.mrb[17].mxu1 }
 0x11c   : > { %1073 = vst [vmem:[%s1685_s15 + $0x30] sm:$0xff] %v1041_v14  ;;  %1089 = vst [vmem:[%s1685_s15 + $0xb0] sm:$0xff] %v1057_v15  ;;  %v1042_v22 = vmax.f32 %v1010_v16, 0.0  ;;  %v1333_v24 = vadd.f32 %v1332_v20, %v1331_v18  ;;  %v1381_v25 = vadd.f32 %v1380_v21, %v1379_v19  ;;  %v1334_v26 = vpop.f32.mrb[18].mxu0  ;;  %v1382_v27 = vpop.f32.mrb[18].mxu1 }
 0x11d   : > { %v1058_v23 = vmax.f32 %v1026_v17, 0.0  ;;  %v1335_v28 = vpop.f32.mrb[19].mxu0  ;;  %v1383_v29 = vpop.f32.mrb[19].mxu1 }
 0x11e   : > { %1074 = vst [vmem:[%s1685_s15 + $0x38] sm:$0xff] %v1042_v22  ;;  %v972_v30 = vmul.f32 %v1333_v24, %v1667_v51  ;;  %v988_v31 = vmul.f32 %v1381_v25, %v1667_v51  ;;  %v1336_v32 = vadd.f32 %v1335_v28, %v1334_v26  ;;  %v1384_v33 = vadd.f32 %v1383_v29, %v1382_v27 }
 0x11f   : > { %1090 = vst [vmem:[%s1685_s15 + $0xb8] sm:$0xff] %v1058_v23 }
 0x120   : > { %v1011_v34 = vadd.f32 %v1672_v57, %v972_v30  ;;  %v1027_v35 = vadd.f32 %v1672_v57, %v988_v31  ;;  %v973_v36 = vmul.f32 %v1336_v32, %v1667_v51  ;;  %v989_v37 = vmul.f32 %v1384_v33, %v1667_v51 }
 0x122   : > { %v1043_v38 = vmax.f32 %v1011_v34, 0.0  ;;  %v1059_v39 = vmax.f32 %v1027_v35, 0.0  ;;  %v1012_v40 = vadd.f32 %v1672_v57, %v973_v36  ;;  %v1028_v41 = vadd.f32 %v1672_v57, %v989_v37  ;;  %v1337_v42 = vpop.f32.mrb[20].mxu0  ;;  %v1385_v43 = vpop.f32.mrb[20].mxu1 }
 0x123   : > { %v1338_v44 = vpop.f32.mrb[21].mxu0  ;;  %v1386_v45 = vpop.f32.mrb[21].mxu1 }
 0x124   : > { %1075 = vst [vmem:[%s1685_s15 + $0x40] sm:$0xff] %v1043_v38  ;;  %1091 = vst [vmem:[%s1685_s15 + $0xc0] sm:$0xff] %v1059_v39  ;;  %v1044_v46 = vmax.f32 %v1012_v40, 0.0  ;;  %v1060_v47 = vmax.f32 %v1028_v41, 0.0  ;;  %v1339_v48 = vadd.f32 %v1338_v44, %v1337_v42  ;;  %v1387_v49 = vadd.f32 %v1386_v45, %v1385_v43  ;;  %v1340_v50 = vpop.f32.mrb[22].mxu0  ;;  %v1388_v52 = vpop.f32.mrb[22].mxu1 }
 0x125   : > { %v1341_v53 = vpop.f32.mrb[23].mxu0  ;;  %v1389_v54 = vpop.f32.mrb[23].mxu1 }
 0x126   : > { %1076 = vst [vmem:[%s1685_s15 + $0x48] sm:$0xff] %v1044_v46  ;;  %1092 = vst [vmem:[%s1685_s15 + $0xc8] sm:$0xff] %v1060_v47  ;;  %v974_v55 = vmul.f32 %v1339_v48, %v1667_v51  ;;  %v990_v56 = vmul.f32 %v1387_v49, %v1667_v51  ;;  %v1342_v58 = vadd.f32 %v1341_v53, %v1340_v50 }
 0x127   : > { %v1390_v59 = vadd.f32 %v1389_v54, %v1388_v52 }
 0x128   : > { %v1013_v60 = vadd.f32 %v1672_v57, %v974_v55  ;;  %v1029_v61 = vadd.f32 %v1672_v57, %v990_v56  ;;  %v975_v62 = vmul.f32 %v1342_v58, %v1667_v51 }
 0x129   : > { %v991_v63 = vmul.f32 %v1390_v59, %v1667_v51 }
 0x12a   : > { %v1045_v0 = vmax.f32 %v1013_v60, 0.0  ;;  %v1061_v1 = vmax.f32 %v1029_v61, 0.0  ;;  %v1014_v2 = vadd.f32 %v1672_v57, %v975_v62  ;;  %v1343_v4 = vpop.f32.mrb[24].mxu0  ;;  %v1391_v5 = vpop.f32.mrb[24].mxu1 }
 0x12b   : > { %v1030_v3 = vadd.f32 %v1672_v57, %v991_v63  ;;  %v1344_v6 = vpop.f32.mrb[25].mxu0  ;;  %v1392_v7 = vpop.f32.mrb[25].mxu1 }
 0x12c   : > { %1077 = vst [vmem:[%s1685_s15 + $0x50] sm:$0xff] %v1045_v0  ;;  %1093 = vst [vmem:[%s1685_s15 + $0xd0] sm:$0xff] %v1061_v1  ;;  %v1046_v8 = vmax.f32 %v1014_v2, 0.0  ;;  %v1345_v10 = vadd.f32 %v1344_v6, %v1343_v4  ;;  %v1393_v11 = vadd.f32 %v1392_v7, %v1391_v5  ;;  %v1346_v12 = vpop.f32.mrb[26].mxu0  ;;  %v1394_v13 = vpop.f32.mrb[26].mxu1 }
 0x12d   : > { %v1062_v9 = vmax.f32 %v1030_v3, 0.0  ;;  %v1347_v14 = vpop.f32.mrb[27].mxu0  ;;  %v1395_v15 = vpop.f32.mrb[27].mxu1 }
 0x12e   : > { %1078 = vst [vmem:[%s1685_s15 + $0x58] sm:$0xff] %v1046_v8  ;;  %v976_v16 = vmul.f32 %v1345_v10, %v1667_v51  ;;  %v992_v17 = vmul.f32 %v1393_v11, %v1667_v51  ;;  %v1348_v18 = vadd.f32 %v1347_v14, %v1346_v12  ;;  %v1396_v19 = vadd.f32 %v1395_v15, %v1394_v13 }
 0x12f   : > { %1094 = vst [vmem:[%s1685_s15 + $0xd8] sm:$0xff] %v1062_v9 }
 0x130   : > { %v1015_v20 = vadd.f32 %v1672_v57, %v976_v16  ;;  %v1031_v21 = vadd.f32 %v1672_v57, %v992_v17  ;;  %v977_v22 = vmul.f32 %v1348_v18, %v1667_v51  ;;  %v993_v23 = vmul.f32 %v1396_v19, %v1667_v51 }
 0x132   : > { %v1047_v24 = vmax.f32 %v1015_v20, 0.0  ;;  %v1063_v25 = vmax.f32 %v1031_v21, 0.0  ;;  %v1016_v26 = vadd.f32 %v1672_v57, %v977_v22  ;;  %v1032_v27 = vadd.f32 %v1672_v57, %v993_v23  ;;  %v1349_v28 = vpop.f32.mrb[28].mxu0  ;;  %v1397_v29 = vpop.f32.mrb[28].mxu1 }
 0x133   : > { %v1350_v30 = vpop.f32.mrb[29].mxu0  ;;  %v1398_v31 = vpop.f32.mrb[29].mxu1 }
 0x134   : > { %1079 = vst [vmem:[%s1685_s15 + $0x60] sm:$0xff] %v1047_v24  ;;  %1095 = vst [vmem:[%s1685_s15 + $0xe0] sm:$0xff] %v1063_v25  ;;  %v1048_v32 = vmax.f32 %v1016_v26, 0.0  ;;  %v1064_v33 = vmax.f32 %v1032_v27, 0.0  ;;  %v1351_v34 = vadd.f32 %v1350_v30, %v1349_v28  ;;  %v1399_v35 = vadd.f32 %v1398_v31, %v1397_v29  ;;  %v1352_v36 = vpop.f32.mrb[30].mxu0  ;;  %v1400_v37 = vpop.f32.mrb[30].mxu1 }
 0x135   : > { %v1353_v38 = vpop.f32.mrb[31].mxu0  ;;  %v1401_v39 = vpop.f32.mrb[31].mxu1 }
 0x136   : > { %1080 = vst [vmem:[%s1685_s15 + $0x68] sm:$0xff] %v1048_v32  ;;  %1096 = vst [vmem:[%s1685_s15 + $0xe8] sm:$0xff] %v1064_v33  ;;  %v978_v40 = vmul.f32 %v1351_v34, %v1667_v51  ;;  %v994_v41 = vmul.f32 %v1399_v35, %v1667_v51  ;;  %v1354_v42 = vadd.f32 %v1353_v38, %v1352_v36 }
 0x137   : > { %v1402_v43 = vadd.f32 %v1401_v39, %v1400_v37 }
 0x138   : > { %v1017_v44 = vadd.f32 %v1672_v57, %v978_v40  ;;  %v1033_v45 = vadd.f32 %v1672_v57, %v994_v41  ;;  %v979_v46 = vmul.f32 %v1354_v42, %v1667_v51 }
 0x139   : > { %v995_v47 = vmul.f32 %v1402_v43, %v1667_v51 }
 0x13a   : > { %v1049_v48 = vmax.f32 %v1017_v44, 0.0  ;;  %v1065_v49 = vmax.f32 %v1033_v45, 0.0  ;;  %v1018_v50 = vadd.f32 %v1672_v57, %v979_v46 }
 0x13b   : > { %v1034_v52 = vadd.f32 %v1672_v57, %v995_v47 }
 0x13c   : > { %1081 = vst [vmem:[%s1685_s15 + $0x70] sm:$0xff] %v1049_v48  ;;  %1097 = vst [vmem:[%s1685_s15 + $0xf0] sm:$0xff] %v1065_v49  ;;  %v1050_v53 = vmax.f32 %v1018_v50, 0.0 }
 0x13d   : > { %v1066_v54 = vmax.f32 %v1034_v52, 0.0 }
 0x13e   : > { %1082 = vst [vmem:[%s1685_s15 + $0x78] sm:$0xff] %v1050_v53 }
 0x13f   : > { %1098 = vst [vmem:[%s1685_s15 + $0xf8] sm:$0xff] %v1066_v54 }
 0x140 PF: > { %s14_s17 = sadd.s32 1, %s1529_s17   ;;  %s1791_s15 = smov %s1525_s16 }
 0x141   : > { %p11_p5 = scmp.ge.s32.totalorder %s14_s17, 4   ;;  %s1792_s16 = smov %s1794_s18 }
 0x143   :  { %13 = sbr.rel (!%p11_p5) target bundleno = 2 (0x2), region = 83 }

// kernel: resnet_forward.15
= control target key start
LH: loop header
LB: loop body
LE: loop exit
PB: predicated region body
PF: predicated region fallthrough
CT: control target
= control target key end

     0   :  { %vm152_vm0 = vcmask 523264   ;;  %s1095_s0 = inlined_call_operand.vmem [shape: f32[9,128,64], index: 0, kind: input, shape index: {}]   ;;  %s1096_s1 = inlined_call_operand.vmem [shape: f32[128,64], index: 1, kind: output, shape index: {}]  }
   0x1   :  { %v8_v0 = vld [vmem:[%s1095_s0] sm:$0xff]  ;;  %v9_v13 = vld [vmem:[%s1095_s0 + $0x8] sm:$0xff]  ;;  %v10_v32 = vld [vmem:[%s1095_s0 + $0x10] sm:$0xff] }
   0x2   :  { %v24_v1 = vld [vmem:[%s1095_s0 + $0x80] sm:$0xff]  ;;  %v153_v5 = vsel %vm152_vm0, %v8_v0, -inf  ;;  %v25_v14 = vld [vmem:[%s1095_s0 + $0x88] sm:$0xff]  ;;  %v170_v19 = vsel %vm152_vm0, %v9_v13, -inf  ;;  %v26_v33 = vld [vmem:[%s1095_s0 + $0x90] sm:$0xff]  ;;  %v187_v38 = vsel %vm152_vm0, %v10_v32, -inf }
   0x3   :  { %v40_v2 = vld [vmem:[%s1095_s0 + $0x100] sm:$0xff]  ;;  %v154_v6 = vsel %vm152_vm0, %v24_v1, -inf  ;;  %v41_v15 = vld [vmem:[%s1095_s0 + $0x108] sm:$0xff]  ;;  %v171_v20 = vsel %vm152_vm0, %v25_v14, -inf  ;;  %v42_v34 = vld [vmem:[%s1095_s0 + $0x110] sm:$0xff]  ;;  %v188_v39 = vsel %vm152_vm0, %v26_v33, -inf }
   0x4   :  { %v56_v3 = vld [vmem:[%s1095_s0 + $0x180] sm:$0xff]  ;;  %v156_v7 = vsel %vm152_vm0, %v40_v2, -inf  ;;  %v155_v11 = vmax.f32 %v153_v5, %v154_v6  ;;  %v57_v18 = vld [vmem:[%s1095_s0 + $0x188] sm:$0xff]  ;;  %v173_v21 = vsel %vm152_vm0, %v41_v15, -inf  ;;  %v172_v27 = vmax.f32 %v170_v19, %v171_v20  ;;  %v58_v37 = vld [vmem:[%s1095_s0 + $0x190] sm:$0xff] }
   0x5   :  { %v72_v4 = vld [vmem:[%s1095_s0 + $0x200] sm:$0xff]  ;;  %v158_v12 = vsel %vm152_vm0, %v56_v3, -inf  ;;  %v73_v24 = vld [vmem:[%s1095_s0 + $0x208] sm:$0xff]  ;;  %v175_v31 = vsel %vm152_vm0, %v57_v18, -inf  ;;  %v190_v40 = vsel %vm152_vm0, %v42_v34, -inf  ;;  %v74_v45 = vld [vmem:[%s1095_s0 + $0x210] sm:$0xff]  ;;  %v189_v46 = vmax.f32 %v187_v38, %v188_v39 }
   0x6   :  { %v88_v8 = vld [vmem:[%s1095_s0 + $0x280] sm:$0xff]  ;;  %v157_v17 = vmax.f32 %v155_v11, %v156_v7  ;;  %v160_v22 = vsel %vm152_vm0, %v72_v4, -inf  ;;  %v89_v25 = vld [vmem:[%s1095_s0 + $0x288] sm:$0xff]  ;;  %v174_v36 = vmax.f32 %v172_v27, %v173_v21  ;;  %v177_v44 = vsel %vm152_vm0, %v73_v24, -inf  ;;  %v11_v51 = vld [vmem:[%s1095_s0 + $0x18] sm:$0xff] }
   0x7   :  { %v104_v9 = vld [vmem:[%s1095_s0 + $0x300] sm:$0xff]  ;;  %v162_v23 = vsel %vm152_vm0, %v88_v8, -inf  ;;  %v105_v26 = vld [vmem:[%s1095_s0 + $0x308] sm:$0xff]  ;;  %v179_v48 = vsel %vm152_vm0, %v89_v25, -inf  ;;  %v192_v50 = vsel %vm152_vm0, %v58_v37, -inf  ;;  %v27_v52 = vld [vmem:[%s1095_s0 + $0x98] sm:$0xff]  ;;  %v191_v58 = vmax.f32 %v189_v46, %v190_v40 }
   0x8   :  { %v120_v10 = vld [vmem:[%s1095_s0 + $0x380] sm:$0xff]  ;;  %v159_v28 = vmax.f32 %v157_v17, %v158_v12  ;;  %v164_v29 = vsel %vm152_vm0, %v104_v9, -inf  ;;  %v121_v35 = vld [vmem:[%s1095_s0 + $0x388] sm:$0xff]  ;;  %v176_v47 = vmax.f32 %v174_v36, %v175_v31  ;;  %v181_v49 = vsel %vm152_vm0, %v105_v26, -inf  ;;  %v43_v53 = vld [vmem:[%s1095_s0 + $0x118] sm:$0xff] }
   0x9   :  { %v136_v16 = vld [vmem:[%s1095_s0 + $0x400] sm:$0xff]  ;;  %v166_v30 = vsel %vm152_vm0, %v120_v10, -inf  ;;  %v137_v43 = vld [vmem:[%s1095_s0 + $0x408] sm:$0xff]  ;;  %v183_v55 = vsel %vm152_vm0, %v121_v35, -inf  ;;  %v90_v56 = vld [vmem:[%s1095_s0 + $0x290] sm:$0xff]  ;;  %v204_v60 = vsel %vm152_vm0, %v11_v51, -inf  ;;  %v193_v4 = vmax.f32 %v191_v58, %v192_v50 }
   0xa   :  { %v161_v41 = vmax.f32 %v159_v28, %v160_v22  ;;  %v168_v42 = vsel %vm152_vm0, %v136_v16, -inf  ;;  %v106_v57 = vld [vmem:[%s1095_s0 + $0x310] sm:$0xff]  ;;  %v59_v59 = vld [vmem:[%s1095_s0 + $0x198] sm:$0xff]  ;;  %v178_v61 = vmax.f32 %v176_v47, %v177_v44  ;;  %v194_v62 = vsel %vm152_vm0, %v74_v45, -inf  ;;  %v12_v6 = vld [vmem:[%s1095_s0 + $0x20] sm:$0xff] }
   0xb   :  { %v75_v63 = vld [vmem:[%s1095_s0 + $0x218] sm:$0xff]  ;;  %v205_v0 = vsel %vm152_vm0, %v27_v52, -inf  ;;  %v207_v1 = vsel %vm152_vm0, %v43_v53, -inf  ;;  %v185_v3 = vsel %vm152_vm0, %v137_v43, -inf  ;;  %v28_v7 = vld [vmem:[%s1095_s0 + $0xa0] sm:$0xff]  ;;  %v196_v10 = vsel %vm152_vm0, %v90_v56, -inf }
   0xc   :  { %v163_v54 = vmax.f32 %v161_v41, %v162_v23  ;;  %v206_v5 = vmax.f32 %v204_v60, %v205_v0  ;;  %v44_v8 = vld [vmem:[%s1095_s0 + $0x120] sm:$0xff]  ;;  %v180_v9 = vmax.f32 %v178_v61, %v179_v48  ;;  %v198_v11 = vsel %vm152_vm0, %v106_v57, -inf  ;;  %v122_v14 = vld [vmem:[%s1095_s0 + $0x390] sm:$0xff]  ;;  %v91_v16 = vld [vmem:[%s1095_s0 + $0x298] sm:$0xff] }
   0xd   :  { %v209_v12 = vsel %vm152_vm0, %v59_v59, -inf  ;;  %v195_v15 = vmax.f32 %v193_v4, %v194_v62  ;;  %v211_v18 = vsel %vm152_vm0, %v75_v63, -inf  ;;  %v60_v19 = vld [vmem:[%s1095_s0 + $0x1a0] sm:$0xff]  ;;  %v138_v21 = vld [vmem:[%s1095_s0 + $0x410] sm:$0xff]  ;;  %v221_v22 = vsel %vm152_vm0, %v12_v6, -inf  ;;  %v107_v27 = vld [vmem:[%s1095_s0 + $0x318] sm:$0xff] }
   0xe   :  { %v165_v2 = vmax.f32 %v163_v54, %v164_v29  ;;  %v208_v17 = vmax.f32 %v206_v5, %v207_v1  ;;  %v182_v20 = vmax.f32 %v180_v9, %v181_v49  ;;  %v222_v23 = vsel %vm152_vm0, %v28_v7, -inf  ;;  %v76_v29 = vld [vmem:[%s1095_s0 + $0x220] sm:$0xff]  ;;  %v13_v31 = vld [vmem:[%s1095_s0 + $0x28] sm:$0xff]  ;;  %v123_v39 = vld [vmem:[%s1095_s0 + $0x398] sm:$0xff] }
   0xf   :  { %v224_v24 = vsel %vm152_vm0, %v44_v8, -inf  ;;  %v197_v26 = vmax.f32 %v195_v15, %v196_v10  ;;  %v200_v33 = vsel %vm152_vm0, %v122_v14, -inf  ;;  %v213_v34 = vsel %vm152_vm0, %v91_v16, -inf  ;;  %v29_v36 = vld [vmem:[%s1095_s0 + $0xa8] sm:$0xff]  ;;  %v92_v41 = vld [vmem:[%s1095_s0 + $0x2a0] sm:$0xff]  ;;  %v139_v50 = vld [vmem:[%s1095_s0 + $0x418] sm:$0xff] }
  0x10   :  { %v167_v13 = vmax.f32 %v165_v2, %v166_v30  ;;  %v210_v28 = vmax.f32 %v208_v17, %v209_v12  ;;  %v223_v30 = vmax.f32 %v221_v22, %v222_v23  ;;  %v184_v32 = vmax.f32 %v182_v20, %v183_v55  ;;  %v45_v43 = vld [vmem:[%s1095_s0 + $0x128] sm:$0xff]  ;;  %v108_v52 = vld [vmem:[%s1095_s0 + $0x320] sm:$0xff]  ;;  %v14_v60 = vld [vmem:[%s1095_s0 + $0x30] sm:$0xff] }
  0x11   :  { %v226_v35 = vsel %vm152_vm0, %v60_v19, -inf  ;;  %v199_v37 = vmax.f32 %v197_v26, %v198_v11  ;;  %v202_v38 = vsel %vm152_vm0, %v138_v21, -inf  ;;  %v215_v45 = vsel %vm152_vm0, %v107_v27, -inf  ;;  %v61_v47 = vld [vmem:[%s1095_s0 + $0x1a8] sm:$0xff]  ;;  %v30_v61 = vld [vmem:[%s1095_s0 + $0xb0] sm:$0xff]  ;;  %v124_v0 = vld [vmem:[%s1095_s0 + $0x3a0] sm:$0xff] }
  0x12   :  { %v169_v25 = vmax.f32 %v167_v13, %v168_v42  ;;  %v212_v40 = vmax.f32 %v210_v28, %v211_v18  ;;  %v225_v42 = vmax.f32 %v223_v30, %v224_v24  ;;  %v186_v44 = vmax.f32 %v184_v32, %v185_v3  ;;  %v77_v54 = vld [vmem:[%s1095_s0 + $0x228] sm:$0xff]  ;;  %v46_v3 = vld [vmem:[%s1095_s0 + $0x130] sm:$0xff]  ;;  %v140_v11 = vld [vmem:[%s1095_s0 + $0x420] sm:$0xff] }
  0x13   :  { %v228_v46 = vsel %vm152_vm0, %v76_v29, -inf  ;;  %v238_v48 = vsel %vm152_vm0, %v13_v31, -inf  ;;  %v201_v49 = vmax.f32 %v199_v37, %v200_v33  ;;  %v239_v55 = vsel %vm152_vm0, %v29_v36, -inf  ;;  %v93_v6 = vld [vmem:[%s1095_s0 + $0x2a8] sm:$0xff]  ;;  %v62_v9 = vld [vmem:[%s1095_s0 + $0x1b0] sm:$0xff]  ;;  %v15_v21 = vld [vmem:[%s1095_s0 + $0x38] sm:$0xff] }
  0x14   :  { %425 = vst.msk [vmem:[%s1096_s1] sm:$0xff] %vm152_vm0, %v169_v25  ;;  %v214_v51 = vmax.f32 %v212_v40, %v213_v34  ;;  %v227_v53 = vmax.f32 %v225_v42, %v226_v35  ;;  %426 = vst.msk [vmem:[%s1096_s1 + $0x8] sm:$0xff] %vm152_vm0, %v186_v44  ;;  %v217_v56 = vsel %vm152_vm0, %v123_v39, -inf  ;;  %v230_v57 = vsel %vm152_vm0, %v92_v41, -inf  ;;  %v109_v13 = vld [vmem:[%s1095_s0 + $0x328] sm:$0xff]  ;;  %v78_v18 = vld [vmem:[%s1095_s0 + $0x230] sm:$0xff] }
  0x15   :  { %v240_v58 = vmax.f32 %v238_v48, %v239_v55  ;;  %v241_v59 = vsel %vm152_vm0, %v45_v43, -inf  ;;  %v203_v62 = vmax.f32 %v201_v49, %v202_v38  ;;  %v243_v2 = vsel %vm152_vm0, %v61_v47, -inf  ;;  %v31_v22 = vld [vmem:[%s1095_s0 + $0xb8] sm:$0xff]  ;;  %v125_v29 = vld [vmem:[%s1095_s0 + $0x3a8] sm:$0xff]  ;;  %v94_v32 = vld [vmem:[%s1095_s0 + $0x2b0] sm:$0xff] }
  0x16   :  { %v216_v63 = vmax.f32 %v214_v51, %v215_v45  ;;  %v229_v1 = vmax.f32 %v227_v53, %v228_v46  ;;  %v219_v4 = vsel %vm152_vm0, %v139_v50, -inf  ;;  %v232_v5 = vsel %vm152_vm0, %v108_v52, -inf  ;;  %v47_v27 = vld [vmem:[%s1095_s0 + $0x138] sm:$0xff]  ;;  %v141_v36 = vld [vmem:[%s1095_s0 + $0x428] sm:$0xff]  ;;  %v110_v37 = vld [vmem:[%s1095_s0 + $0x330] sm:$0xff] }
  0x17   :  { %v242_v7 = vmax.f32 %v240_v58, %v241_v59  ;;  %v245_v8 = vsel %vm152_vm0, %v77_v54, -inf  ;;  %427 = vst.msk [vmem:[%s1096_s1 + $0x10] sm:$0xff] %vm152_vm0, %v203_v62  ;;  %v255_v14 = vsel %vm152_vm0, %v14_v60, -inf  ;;  %v256_v15 = vsel %vm152_vm0, %v30_v61, -inf  ;;  %v63_v34 = vld [vmem:[%s1095_s0 + $0x1b8] sm:$0xff]  ;;  %v16_v46 = vld [vmem:[%s1095_s0 + $0x40] sm:$0xff] }
  0x18   :  { %v218_v10 = vmax.f32 %v216_v63, %v217_v56  ;;  %v231_v12 = vmax.f32 %v229_v1, %v230_v57  ;;  %v234_v16 = vsel %vm152_vm0, %v124_v0, -inf  ;;  %v257_v19 = vmax.f32 %v255_v14, %v256_v15  ;;  %v79_v43 = vld [vmem:[%s1095_s0 + $0x238] sm:$0xff]  ;;  %v32_v47 = vld [vmem:[%s1095_s0 + $0xc0] sm:$0xff]  ;;  %v126_v50 = vld [vmem:[%s1095_s0 + $0x3b0] sm:$0xff] }
  0x19   :  { %v244_v17 = vmax.f32 %v242_v7, %v243_v2  ;;  %v258_v20 = vsel %vm152_vm0, %v46_v3, -inf  ;;  %v247_v25 = vsel %vm152_vm0, %v93_v6, -inf  ;;  %v260_v26 = vsel %vm152_vm0, %v62_v9, -inf  ;;  %v95_v56 = vld [vmem:[%s1095_s0 + $0x2b8] sm:$0xff]  ;;  %v48_v58 = vld [vmem:[%s1095_s0 + $0x140] sm:$0xff]  ;;  %v142_v60 = vld [vmem:[%s1095_s0 + $0x430] sm:$0xff] }
  0x1a   :  { %v220_v23 = vmax.f32 %v218_v10, %v219_v4  ;;  %v233_v24 = vmax.f32 %v231_v12, %v232_v5  ;;  %v236_v28 = vsel %vm152_vm0, %v140_v11, -inf  ;;  %v249_v31 = vsel %vm152_vm0, %v109_v13, -inf  ;;  %v64_v59 = vld [vmem:[%s1095_s0 + $0x1c0] sm:$0xff]  ;;  %v111_v3 = vld [vmem:[%s1095_s0 + $0x338] sm:$0xff]  ;;  %v17_v7 = vld [vmem:[%s1095_s0 + $0x48] sm:$0xff] }
  0x1b   :  { %v246_v30 = vmax.f32 %v244_v17, %v245_v8  ;;  %v259_v33 = vmax.f32 %v257_v19, %v258_v20  ;;  %v262_v38 = vsel %vm152_vm0, %v78_v18, -inf  ;;  %v272_v39 = vsel %vm152_vm0, %v15_v21, -inf  ;;  %v80_v5 = vld [vmem:[%s1095_s0 + $0x240] sm:$0xff]  ;;  %v33_v12 = vld [vmem:[%s1095_s0 + $0xc8] sm:$0xff]  ;;  %v127_v15 = vld [vmem:[%s1095_s0 + $0x3b8] sm:$0xff] }
  0x1c   :  { %428 = vst.msk [vmem:[%s1096_s1 + $0x18] sm:$0xff] %vm152_vm0, %v220_v23  ;;  %v235_v35 = vmax.f32 %v233_v24, %v234_v16  ;;  %v273_v40 = vsel %vm152_vm0, %v31_v22, -inf  ;;  %v275_v45 = vsel %vm152_vm0, %v47_v27, -inf  ;;  %v251_v49 = vsel %vm152_vm0, %v125_v29, -inf  ;;  %v96_v17 = vld [vmem:[%s1095_s0 + $0x2c0] sm:$0xff]  ;;  %v49_v19 = vld [vmem:[%s1095_s0 + $0x148] sm:$0xff] }
  0x1d   :  { %v248_v41 = vmax.f32 %v246_v30, %v247_v25  ;;  %v261_v42 = vmax.f32 %v259_v33, %v260_v26  ;;  %v274_v44 = vmax.f32 %v272_v39, %v273_v40  ;;  %v264_v51 = vsel %vm152_vm0, %v94_v32, -inf  ;;  %v65_v23 = vld [vmem:[%s1095_s0 + $0x1c8] sm:$0xff]  ;;  %v143_v26 = vld [vmem:[%s1095_s0 + $0x438] sm:$0xff]  ;;  %v128_v40 = vld [vmem:[%s1095_s0 + $0x3c0] sm:$0xff] }
  0x1e   :  { %v237_v48 = vmax.f32 %v235_v35, %v236_v28  ;;  %v277_v52 = vsel %vm152_vm0, %v63_v34, -inf  ;;  %v253_v54 = vsel %vm152_vm0, %v141_v36, -inf  ;;  %v266_v61 = vsel %vm152_vm0, %v110_v37, -inf  ;;  %v112_v28 = vld [vmem:[%s1095_s0 + $0x340] sm:$0xff]  ;;  %v81_v30 = vld [vmem:[%s1095_s0 + $0x248] sm:$0xff]  ;;  %v18_v36 = vld [vmem:[%s1095_s0 + $0x50] sm:$0xff] }
  0x1f   :  { %v250_v53 = vmax.f32 %v248_v41, %v249_v31  ;;  %v263_v55 = vmax.f32 %v261_v42, %v262_v38  ;;  %v276_v57 = vmax.f32 %v274_v44, %v275_v45  ;;  %v279_v62 = vsel %vm152_vm0, %v79_v43, -inf  ;;  %v34_v37 = vld [vmem:[%s1095_s0 + $0xd0] sm:$0xff] }
  0x20   :  { %429 = vst.msk [vmem:[%s1096_s1 + $0x20] sm:$0xff] %vm152_vm0, %v237_v48  ;;  %v289_v63 = vsel %vm152_vm0, %v16_v46, -inf  ;;  %v290_v0 = vsel %vm152_vm0, %v32_v47, -inf  ;;  %v268_v8 = vsel %vm152_vm0, %v126_v50, -inf  ;;  %v281_v9 = vsel %vm152_vm0, %v95_v56, -inf  ;;  %v50_v43 = vld [vmem:[%s1095_s0 + $0x150] sm:$0xff] }
  0x21   :  { %v252_v1 = vmax.f32 %v250_v53, %v251_v49  ;;  %v265_v2 = vmax.f32 %v263_v55, %v264_v51  ;;  %v278_v4 = vmax.f32 %v276_v57, %v277_v52  ;;  %v291_v6 = vmax.f32 %v289_v63, %v290_v0  ;;  %v97_v46 = vld [vmem:[%s1095_s0 + $0x2c8] sm:$0xff]  ;;  %v66_v49 = vld [vmem:[%s1095_s0 + $0x1d0] sm:$0xff]  ;;  %v144_v51 = vld [vmem:[%s1095_s0 + $0x440] sm:$0xff] }
  0x22   :  { %v292_v10 = vsel %vm152_vm0, %v48_v58, -inf  ;;  %v294_v11 = vsel %vm152_vm0, %v64_v59, -inf  ;;  %v270_v20 = vsel %vm152_vm0, %v142_v60, -inf  ;;  %v283_v21 = vsel %vm152_vm0, %v111_v3, -inf  ;;  %v113_v53 = vld [vmem:[%s1095_s0 + $0x348] sm:$0xff]  ;;  %v82_v58 = vld [vmem:[%s1095_s0 + $0x250] sm:$0xff] }
  0x23   :  { %v254_v13 = vmax.f32 %v252_v1, %v253_v54  ;;  %v267_v14 = vmax.f32 %v265_v2, %v266_v61  ;;  %v280_v16 = vmax.f32 %v278_v4, %v279_v62  ;;  %v293_v18 = vmax.f32 %v291_v6, %v292_v10  ;;  %v19_v61 = vld [vmem:[%s1095_s0 + $0x58] sm:$0xff] }
  0x24   :  { %v296_v22 = vsel %vm152_vm0, %v80_v5, -inf  ;;  %v306_v24 = vsel %vm152_vm0, %v17_v7, -inf  ;;  %v307_v31 = vsel %vm152_vm0, %v33_v12, -inf  ;;  %v285_v32 = vsel %vm152_vm0, %v127_v15, -inf  ;;  %v35_v62 = vld [vmem:[%s1095_s0 + $0xd8] sm:$0xff]  ;;  %v129_v5 = vld [vmem:[%s1095_s0 + $0x3c8] sm:$0xff] }
  0x25   :  { %430 = vst.msk [vmem:[%s1096_s1 + $0x28] sm:$0xff] %vm152_vm0, %v254_v13  ;;  %v269_v25 = vmax.f32 %v267_v14, %v268_v8  ;;  %v282_v27 = vmax.f32 %v280_v16, %v281_v9  ;;  %v295_v29 = vmax.f32 %v293_v18, %v294_v11  ;;  %v298_v33 = vsel %vm152_vm0, %v96_v17, -inf  ;;  %v51_v3 = vld [vmem:[%s1095_s0 + $0x158] sm:$0xff]  ;;  %v98_v8 = vld [vmem:[%s1095_s0 + $0x2d0] sm:$0xff]  ;;  %v145_v12 = vld [vmem:[%s1095_s0 + $0x448] sm:$0xff] }
  0x26   :  { %v308_v34 = vmax.f32 %v306_v24, %v307_v31  ;;  %v309_v35 = vsel %vm152_vm0, %v49_v19, -inf  ;;  %v311_v42 = vsel %vm152_vm0, %v65_v23, -inf  ;;  %v287_v44 = vsel %vm152_vm0, %v143_v26, -inf  ;;  %v67_v10 = vld [vmem:[%s1095_s0 + $0x1d8] sm:$0xff]  ;;  %v114_v13 = vld [vmem:[%s1095_s0 + $0x350] sm:$0xff]  ;;  %v36_v23 = vld [vmem:[%s1095_s0 + $0xe0] sm:$0xff] }
  0x27   :  { %v271_v38 = vmax.f32 %v269_v25, %v270_v20  ;;  %v284_v39 = vmax.f32 %v282_v27, %v283_v21  ;;  %v297_v41 = vmax.f32 %v295_v29, %v296_v22  ;;  %v300_v45 = vsel %vm152_vm0, %v112_v28, -inf  ;;  %v83_v19 = vld [vmem:[%s1095_s0 + $0x258] sm:$0xff]  ;;  %v20_v22 = vld [vmem:[%s1095_s0 + $0x60] sm:$0xff]  ;;  %v130_v26 = vld [vmem:[%s1095_s0 + $0x3d0] sm:$0xff] }
  0x28   :  { %v310_v47 = vmax.f32 %v308_v34, %v309_v35  ;;  %v313_v48 = vsel %vm152_vm0, %v81_v30, -inf  ;;  %v323_v54 = vsel %vm152_vm0, %v18_v36, -inf  ;;  %v324_v55 = vsel %vm152_vm0, %v34_v37, -inf  ;;  %v52_v34 = vld [vmem:[%s1095_s0 + $0x160] sm:$0xff]  ;;  %v146_v36 = vld [vmem:[%s1095_s0 + $0x450] sm:$0xff] }
  0x29   :  { %431 = vst.msk [vmem:[%s1096_s1 + $0x30] sm:$0xff] %vm152_vm0, %v271_v38  ;;  %v286_v50 = vmax.f32 %v284_v39, %v285_v32  ;;  %v299_v52 = vmax.f32 %v297_v41, %v298_v33  ;;  %v302_v56 = vsel %vm152_vm0, %v128_v40, -inf  ;;  %v325_v59 = vmax.f32 %v323_v54, %v324_v55  ;;  %v99_v32 = vld [vmem:[%s1095_s0 + $0x2d8] sm:$0xff]  ;;  %v68_v35 = vld [vmem:[%s1095_s0 + $0x1e0] sm:$0xff] }
  0x2a   :  { %v312_v57 = vmax.f32 %v310_v47, %v311_v42  ;;  %v326_v60 = vsel %vm152_vm0, %v50_v43, -inf  ;;  %v315_v1 = vsel %vm152_vm0, %v97_v46, -inf  ;;  %v328_v2 = vsel %vm152_vm0, %v66_v49, -inf  ;;  %v115_v43 = vld [vmem:[%s1095_s0 + $0x358] sm:$0xff]  ;;  %v21_v47 = vld [vmem:[%s1095_s0 + $0x68] sm:$0xff] }
  0x2b   :  { %v288_v63 = vmax.f32 %v286_v50, %v287_v44  ;;  %v301_v0 = vmax.f32 %v299_v52, %v300_v45  ;;  %v304_v4 = vsel %vm152_vm0, %v144_v51, -inf  ;;  %v317_v7 = vsel %vm152_vm0, %v113_v53, -inf  ;;  %v84_v45 = vld [vmem:[%s1095_s0 + $0x260] sm:$0xff]  ;;  %v37_v52 = vld [vmem:[%s1095_s0 + $0xe8] sm:$0xff]  ;;  %v131_v55 = vld [vmem:[%s1095_s0 + $0x3d8] sm:$0xff] }
  0x2c   :  { %v314_v6 = vmax.f32 %v312_v57, %v313_v48  ;;  %v327_v9 = vmax.f32 %v325_v59, %v326_v60  ;;  %v330_v14 = vsel %vm152_vm0, %v82_v58, -inf  ;;  %v340_v15 = vsel %vm152_vm0, %v19_v61, -inf  ;;  %v100_v57 = vld [vmem:[%s1095_s0 + $0x2e0] sm:$0xff]  ;;  %v53_v59 = vld [vmem:[%s1095_s0 + $0x168] sm:$0xff] }
  0x2d   :  { %432 = vst.msk [vmem:[%s1096_s1 + $0x38] sm:$0xff] %vm152_vm0, %v288_v63  ;;  %v303_v11 = vmax.f32 %v301_v0, %v302_v56  ;;  %v341_v16 = vsel %vm152_vm0, %v35_v62, -inf  ;;  %v343_v21 = vsel %vm152_vm0, %v51_v3, -inf  ;;  %v319_v25 = vsel %vm152_vm0, %v129_v5, -inf  ;;  %v69_v63 = vld [vmem:[%s1095_s0 + $0x1e8] sm:$0xff] }
  0x2e   :  { %v316_v17 = vmax.f32 %v314_v6, %v315_v1  ;;  %v329_v18 = vmax.f32 %v327_v9, %v328_v2  ;;  %v342_v20 = vmax.f32 %v340_v15, %v341_v16  ;;  %v332_v27 = vsel %vm152_vm0, %v98_v8, -inf  ;;  %v147_v2 = vld [vmem:[%s1095_s0 + $0x458] sm:$0xff]  ;;  %v85_v6 = vld [vmem:[%s1095_s0 + $0x268] sm:$0xff]  ;;  %v132_v16 = vld [vmem:[%s1095_s0 + $0x3e0] sm:$0xff] }
  0x2f   :  { %v305_v24 = vmax.f32 %v303_v11, %v304_v4  ;;  %v345_v28 = vsel %vm152_vm0, %v67_v10, -inf  ;;  %v321_v30 = vsel %vm152_vm0, %v145_v12, -inf  ;;  %v334_v37 = vsel %vm152_vm0, %v114_v13, -inf  ;;  %v116_v4 = vld [vmem:[%s1095_s0 + $0x360] sm:$0xff]  ;;  %v22_v12 = vld [vmem:[%s1095_s0 + $0x70] sm:$0xff] }
  0x30   :  { %v318_v29 = vmax.f32 %v316_v17, %v317_v7  ;;  %v331_v31 = vmax.f32 %v329_v18, %v330_v14  ;;  %v344_v33 = vmax.f32 %v342_v20, %v343_v21  ;;  %v347_v38 = vsel %vm152_vm0, %v83_v19, -inf  ;;  %v38_v13 = vld [vmem:[%s1095_s0 + $0xf0] sm:$0xff] }
  0x31   :  { %433 = vst.msk [vmem:[%s1096_s1 + $0x40] sm:$0xff] %vm152_vm0, %v305_v24  ;;  %v357_v39 = vsel %vm152_vm0, %v20_v22, -inf  ;;  %v358_v40 = vsel %vm152_vm0, %v36_v23, -inf  ;;  %v336_v48 = vsel %vm152_vm0, %v130_v26, -inf  ;;  %v349_v49 = vsel %vm152_vm0, %v99_v32, -inf  ;;  %v54_v19 = vld [vmem:[%s1095_s0 + $0x170] sm:$0xff] }
  0x32   :  { %v320_v41 = vmax.f32 %v318_v29, %v319_v25  ;;  %v333_v42 = vmax.f32 %v331_v31, %v332_v27  ;;  %v346_v44 = vmax.f32 %v344_v33, %v345_v28  ;;  %v359_v46 = vmax.f32 %v357_v39, %v358_v40  ;;  %v101_v22 = vld [vmem:[%s1095_s0 + $0x2e8] sm:$0xff]  ;;  %v70_v25 = vld [vmem:[%s1095_s0 + $0x1f0] sm:$0xff]  ;;  %v148_v27 = vld [vmem:[%s1095_s0 + $0x460] sm:$0xff] }
  0x33   :  { %v360_v50 = vsel %vm152_vm0, %v52_v34, -inf  ;;  %v362_v51 = vsel %vm152_vm0, %v68_v35, -inf  ;;  %v338_v60 = vsel %vm152_vm0, %v146_v36, -inf  ;;  %v351_v61 = vsel %vm152_vm0, %v115_v43, -inf  ;;  %v117_v29 = vld [vmem:[%s1095_s0 + $0x368] sm:$0xff]  ;;  %v86_v34 = vld [vmem:[%s1095_s0 + $0x270] sm:$0xff] }
  0x34   :  { %v322_v53 = vmax.f32 %v320_v41, %v321_v30  ;;  %v335_v54 = vmax.f32 %v333_v42, %v334_v37  ;;  %v348_v56 = vmax.f32 %v346_v44, %v347_v38  ;;  %v361_v58 = vmax.f32 %v359_v46, %v360_v50  ;;  %v23_v37 = vld [vmem:[%s1095_s0 + $0x78] sm:$0xff] }
  0x35   :  { %v364_v62 = vsel %vm152_vm0, %v84_v45, -inf  ;;  %v374_v0 = vsel %vm152_vm0, %v21_v47, -inf  ;;  %v375_v7 = vsel %vm152_vm0, %v37_v52, -inf  ;;  %v353_v8 = vsel %vm152_vm0, %v131_v55, -inf  ;;  %v39_v38 = vld [vmem:[%s1095_s0 + $0xf8] sm:$0xff]  ;;  %v133_v45 = vld [vmem:[%s1095_s0 + $0x3e8] sm:$0xff] }
  0x36   :  { %434 = vst.msk [vmem:[%s1096_s1 + $0x48] sm:$0xff] %vm152_vm0, %v322_v53  ;;  %v337_v1 = vmax.f32 %v335_v54, %v336_v48  ;;  %v350_v3 = vmax.f32 %v348_v56, %v349_v49  ;;  %v363_v5 = vmax.f32 %v361_v58, %v362_v51  ;;  %v366_v9 = vsel %vm152_vm0, %v100_v57, -inf  ;;  %v55_v43 = vld [vmem:[%s1095_s0 + $0x178] sm:$0xff]  ;;  %v102_v48 = vld [vmem:[%s1095_s0 + $0x2f0] sm:$0xff]  ;;  %v149_v55 = vld [vmem:[%s1095_s0 + $0x468] sm:$0xff] }
  0x37   :  { %v376_v10 = vmax.f32 %v374_v0, %v375_v7  ;;  %v377_v11 = vsel %vm152_vm0, %v53_v59, -inf  ;;  %v379_v18 = vsel %vm152_vm0, %v69_v63, -inf  ;;  %v355_v20 = vsel %vm152_vm0, %v147_v2, -inf  ;;  %v71_v50 = vld [vmem:[%s1095_s0 + $0x1f8] sm:$0xff]  ;;  %v118_v57 = vld [vmem:[%s1095_s0 + $0x370] sm:$0xff] }
  0x38   :  { %v339_v14 = vmax.f32 %v337_v1, %v338_v60  ;;  %v352_v15 = vmax.f32 %v350_v3, %v351_v61  ;;  %v365_v17 = vmax.f32 %v363_v5, %v364_v62  ;;  %v368_v21 = vsel %vm152_vm0, %v116_v4, -inf  ;;  %v87_v59 = vld [vmem:[%s1095_s0 + $0x278] sm:$0xff]  ;;  %v134_v3 = vld [vmem:[%s1095_s0 + $0x3f0] sm:$0xff] }
  0x39   :  { %v378_v23 = vmax.f32 %v376_v10, %v377_v11  ;;  %v381_v24 = vsel %vm152_vm0, %v85_v6, -inf  ;;  %v391_v30 = vsel %vm152_vm0, %v22_v12, -inf  ;;  %v392_v31 = vsel %vm152_vm0, %v38_v13, -inf  ;;  %v103_v5 = vld [vmem:[%s1095_s0 + $0x2f8] sm:$0xff]  ;;  %v150_v11 = vld [vmem:[%s1095_s0 + $0x470] sm:$0xff] }
  0x3a   :  { %435 = vst.msk [vmem:[%s1096_s1 + $0x50] sm:$0xff] %vm152_vm0, %v339_v14  ;;  %v354_v26 = vmax.f32 %v352_v15, %v353_v8  ;;  %v367_v28 = vmax.f32 %v365_v17, %v366_v9  ;;  %v370_v32 = vsel %vm152_vm0, %v132_v16, -inf  ;;  %v393_v35 = vmax.f32 %v391_v30, %v392_v31  ;;  %v119_v13 = vld [vmem:[%s1095_s0 + $0x378] sm:$0xff] }
  0x3b   :  { %v380_v33 = vmax.f32 %v378_v23, %v379_v18  ;;  %v394_v36 = vsel %vm152_vm0, %v54_v19, -inf  ;;  %v383_v41 = vsel %vm152_vm0, %v101_v22, -inf  ;;  %v396_v42 = vsel %vm152_vm0, %v70_v25, -inf  ;;  %v135_v19 = vld [vmem:[%s1095_s0 + $0x3f8] sm:$0xff] }
  0x3c   :  { %v356_v39 = vmax.f32 %v354_v26, %v355_v20  ;;  %v369_v40 = vmax.f32 %v367_v28, %v368_v21  ;;  %v372_v44 = vsel %vm152_vm0, %v148_v27, -inf  ;;  %v385_v47 = vsel %vm152_vm0, %v117_v29, -inf }
  0x3d   :  { %v382_v46 = vmax.f32 %v380_v33, %v381_v24  ;;  %v395_v49 = vmax.f32 %v393_v35, %v394_v36  ;;  %v398_v52 = vsel %vm152_vm0, %v86_v34, -inf  ;;  %v408_v53 = vsel %vm152_vm0, %v23_v37, -inf  ;;  %v151_v24 = vld [vmem:[%s1095_s0 + $0x478] sm:$0xff] }
  0x3e   :  { %436 = vst.msk [vmem:[%s1096_s1 + $0x58] sm:$0xff] %vm152_vm0, %v356_v39  ;;  %v371_v51 = vmax.f32 %v369_v40, %v370_v32  ;;  %v409_v54 = vsel %vm152_vm0, %v39_v38, -inf  ;;  %v411_v61 = vsel %vm152_vm0, %v55_v43, -inf  ;;  %v387_v63 = vsel %vm152_vm0, %v133_v45, -inf }
  0x3f   :  { %v384_v56 = vmax.f32 %v382_v46, %v383_v41  ;;  %v397_v58 = vmax.f32 %v395_v49, %v396_v42  ;;  %v410_v60 = vmax.f32 %v408_v53, %v409_v54  ;;  %v400_v0 = vsel %vm152_vm0, %v102_v48, -inf }
  0x40   :  { %v373_v62 = vmax.f32 %v371_v51, %v372_v44  ;;  %v413_v1 = vsel %vm152_vm0, %v71_v50, -inf  ;;  %v389_v7 = vsel %vm152_vm0, %v149_v55, -inf  ;;  %v402_v8 = vsel %vm152_vm0, %v118_v57, -inf }
  0x41   :  { %v386_v2 = vmax.f32 %v384_v56, %v385_v47  ;;  %v399_v4 = vmax.f32 %v397_v58, %v398_v52  ;;  %v412_v6 = vmax.f32 %v410_v60, %v411_v61  ;;  %v415_v9 = vsel %vm152_vm0, %v87_v59, -inf }
  0x42   :  { %437 = vst.msk [vmem:[%s1096_s1 + $0x60] sm:$0xff] %vm152_vm0, %v373_v62  ;;  %v404_v15 = vsel %vm152_vm0, %v134_v3, -inf  ;;  %v417_v16 = vsel %vm152_vm0, %v103_v5, -inf  ;;  %v406_v21 = vsel %vm152_vm0, %v150_v11, -inf  ;;  %v419_v22 = vsel %vm152_vm0, %v119_v13, -inf }
  0x43   :  { %v388_v10 = vmax.f32 %v386_v2, %v387_v63  ;;  %v401_v12 = vmax.f32 %v399_v4, %v400_v0  ;;  %v414_v14 = vmax.f32 %v412_v6, %v413_v1  ;;  %v421_v26 = vsel %vm152_vm0, %v135_v19, -inf }
  0x44   :  { %v423_v29 = vsel %vm152_vm0, %v151_v24, -inf }
  0x45   :  { %v390_v17 = vmax.f32 %v388_v10, %v389_v7  ;;  %v403_v18 = vmax.f32 %v401_v12, %v402_v8  ;;  %v416_v20 = vmax.f32 %v414_v14, %v415_v9 }
  0x47   :  { %438 = vst.msk [vmem:[%s1096_s1 + $0x68] sm:$0xff] %vm152_vm0, %v390_v17  ;;  %v405_v23 = vmax.f32 %v403_v18, %v404_v15  ;;  %v418_v25 = vmax.f32 %v416_v20, %v417_v16 }
  0x49   :  { %v407_v27 = vmax.f32 %v405_v23, %v406_v21  ;;  %v420_v28 = vmax.f32 %v418_v25, %v419_v22 }
  0x4b   :  { %439 = vst.msk [vmem:[%s1096_s1 + $0x70] sm:$0xff] %vm152_vm0, %v407_v27  ;;  %v422_v30 = vmax.f32 %v420_v28, %v421_v26 }
  0x4d   :  { %v424_v31 = vmax.f32 %v422_v30, %v423_v29 }
  0x4f   :  { %440 = vst.msk [vmem:[%s1096_s1 + $0x78] sm:$0xff] %vm152_vm0, %v424_v31 }

// kernel: resnet_forward.16
= control target key start
LH: loop header
LB: loop body
LE: loop exit
PB: predicated region body
PF: predicated region fallthrough
CT: control target
= control target key end

     0   :  { %s1815_s1 = inlined_call_operand.vmem [shape: bf16[640,128], index: 1, kind: input, shape index: {}]   ;;  %s1816_s0 = inlined_call_operand.vmem [shape: bf16[128,640], index: 0, kind: input, shape index: {}]   ;;  %s1817_s2 = inlined_call_operand.vmem [shape: f32[1,128], index: 2, kind: input, shape index: {}]   ;;  %s1818_s3 = inlined_call_operand.vmem [shape: f32[1,128], index: 3, kind: input, shape index: {}]   ;;  %s1819_s4 = inlined_call_operand.vmem [shape: f32[128,128], index: 4, kind: output, shape index: {}]  }
   0x1   :  { %v1328_v0 = vld [vmem:[%s1815_s1 + $0x40] sm:$0xff]   ;;  %v1332_v4 = vld [vmem:[%s1815_s1 + $0x48] sm:$0xff]   ;;  %v1336_v8 = vld [vmem:[%s1815_s1 + $0x50] sm:$0xff]  }
   0x2   :  { %v1329_v1 = vld [vmem:[%s1815_s1 + $0xc0] sm:$0xff]   ;;  %1136 = vmatprep.subr.bf16.mxu0 %v1328_v0  ;;  %v1333_v5 = vld [vmem:[%s1815_s1 + $0xc8] sm:$0xff]   ;;  %v1337_v9 = vld [vmem:[%s1815_s1 + $0xd0] sm:$0xff]  }
   0x3   :  { %v1330_v2 = vld [vmem:[%s1815_s1] sm:$0xff]   ;;  %1200 = vmatprep.subr.bf16.mxu1 %v1329_v1  ;;  %v1334_v6 = vld [vmem:[%s1815_s1 + $0x8] sm:$0xff]   ;;  %v1338_v10 = vld [vmem:[%s1815_s1 + $0x10] sm:$0xff]  }
   0x4   :  { %v1331_v3 = vld [vmem:[%s1815_s1 + $0x80] sm:$0xff]   ;;  %1137 = vmatpush3.bf16.msra.mxu0 %v1330_v2  ;;  %v1335_v7 = vld [vmem:[%s1815_s1 + $0x88] sm:$0xff]   ;;  %v1339_v11 = vld [vmem:[%s1815_s1 + $0x90] sm:$0xff]  }
   0x5   :  { %1201 = vmatpush3.bf16.msra.mxu1 %v1331_v3  ;;  %1138 = vmatprep.subr.bf16.mxu0 %v1332_v4  ;;  %v1340_v12 = vld [vmem:[%s1815_s1 + $0x58] sm:$0xff]   ;;  %v1344_v16 = vld [vmem:[%s1815_s1 + $0x60] sm:$0xff]   ;;  %v1348_v20 = vld [vmem:[%s1815_s1 + $0x68] sm:$0xff]  }
   0x6   :  { %1202 = vmatprep.subr.bf16.mxu1 %v1333_v5  ;;  %v1341_v13 = vld [vmem:[%s1815_s1 + $0xd8] sm:$0xff]   ;;  %v1345_v17 = vld [vmem:[%s1815_s1 + $0xe0] sm:$0xff]   ;;  %v1349_v21 = vld [vmem:[%s1815_s1 + $0xe8] sm:$0xff]  }
   0x7   :  { %v1342_v14 = vld [vmem:[%s1815_s1 + $0x18] sm:$0xff]   ;;  %v1346_v18 = vld [vmem:[%s1815_s1 + $0x20] sm:$0xff]   ;;  %v1350_v22 = vld [vmem:[%s1815_s1 + $0x28] sm:$0xff]  }
   0x8   :  { %1139 = vmatpush3.bf16.msra.mxu0 %v1334_v6  ;;  %v1343_v15 = vld [vmem:[%s1815_s1 + $0x98] sm:$0xff]   ;;  %v1347_v19 = vld [vmem:[%s1815_s1 + $0xa0] sm:$0xff]   ;;  %v1351_v23 = vld [vmem:[%s1815_s1 + $0xa8] sm:$0xff]  }
   0x9   :  { %1203 = vmatpush3.bf16.msra.mxu1 %v1335_v7  ;;  %1140 = vmatprep.subr.bf16.mxu0 %v1336_v8  ;;  %v1352_v24 = vld [vmem:[%s1815_s1 + $0x70] sm:$0xff]   ;;  %v1356_v28 = vld [vmem:[%s1815_s1 + $0x78] sm:$0xff]   ;;  %v1365_v35 = vld [vmem:[%s1816_s0 + $0xc] ss:$20 sps:$4 sm:$0xff]  }
   0xa   :  { %1204 = vmatprep.subr.bf16.mxu1 %v1337_v9  ;;  %v1353_v25 = vld [vmem:[%s1815_s1 + $0xf0] sm:$0xff]   ;;  %v1357_v29 = vld [vmem:[%s1815_s1 + $0xf8] sm:$0xff]   ;;  %v1366_v36 = vld [vmem:[%s1815_s1 + $0x100] sm:$0xff]   ;;  %759 = vmatprep.mubr.bf16.mxu1 %v1365_v35 }
   0xb   :  { %v1354_v26 = vld [vmem:[%s1815_s1 + $0x30] sm:$0xff]   ;;  %v1358_v30 = vld [vmem:[%s1815_s1 + $0x38] sm:$0xff]   ;;  %v1367_v37 = vld [vmem:[%s1816_s0 + $0x2c] ss:$20 sps:$4 sm:$0xff]  }
   0xc   :  { %1141 = vmatpush3.bf16.msra.mxu0 %v1338_v10  ;;  %v1355_v27 = vld [vmem:[%s1815_s1 + $0xb0] sm:$0xff]   ;;  %v1359_v31 = vld [vmem:[%s1815_s1 + $0xb8] sm:$0xff]   ;;  %v1373_v39 = vld [vmem:[%s1815_s1 + $0x108] sm:$0xff]  }
   0xd   :  { %1205 = vmatpush3.bf16.msra.mxu1 %v1339_v11  ;;  %1142 = vmatprep.subr.bf16.mxu0 %v1340_v12  ;;  %v1360_v32 = vld [vmem:[%s1816_s0] ss:$20 sps:$4 sm:$0xff]   ;;  %v1362_v33 = vld [vmem:[%s1816_s0 + $0x4] ss:$20 sps:$4 sm:$0xff]   ;;  %v1363_v34 = vld [vmem:[%s1816_s0 + $0x8] ss:$20 sps:$4 sm:$0xff]  }
   0xe   :  { %1206 = vmatprep.subr.bf16.mxu1 %v1341_v13  ;;  %662 = vmatprep.mubr.bf16.mxu0 %v1362_v33  ;;  %v1369_v38 = vld [vmem:[%s1816_s0 + $0x34] ss:$20 sps:$4 sm:$0xff]   ;;  %v1372_v41 = vld [vmem:[%s1816_s0 + $0x30] ss:$20 sps:$4 sm:$0xff]   ;;  %v1387_v45 = vld [vmem:[%s1815_s1 + $0x118] sm:$0xff]  }
   0xf   :  { %v1371_v40 = vld [vmem:[%s1816_s0 + $0x28] ss:$20 sps:$4 sm:$0xff]   ;;  %v1380_v44 = vld [vmem:[%s1815_s1 + $0x110] sm:$0xff]   ;;  %v1379_v47 = vld [vmem:[%s1816_s0 + $0x58] ss:$20 sps:$4 sm:$0xff]  }
  0x10   :  { %1143 = vmatpush3.bf16.msra.mxu0 %v1342_v14  ;;  %v1374_v42 = vld [vmem:[%s1816_s0 + $0x54] ss:$20 sps:$4 sm:$0xff]   ;;  %v1376_v43 = vld [vmem:[%s1816_s0 + $0x5c] ss:$20 sps:$4 sm:$0xff]   ;;  %v1383_v49 = vld [vmem:[%s1816_s0 + $0x84] ss:$20 sps:$4 sm:$0xff]  }
  0x11   :  { %1207 = vmatpush3.bf16.msra.mxu1 %v1343_v15  ;;  %1144 = vmatprep.subr.bf16.mxu0 %v1344_v16  ;;  %v1378_v46 = vld [vmem:[%s1816_s0 + $0x50] ss:$20 sps:$4 sm:$0xff]   ;;  %v1401_v51 = vld [vmem:[%s1815_s1 + $0x128] sm:$0xff]   ;;  %v1386_v53 = vld [vmem:[%s1816_s0 + $0x80] ss:$20 sps:$4 sm:$0xff]  }
  0x12   :  { %1208 = vmatprep.subr.bf16.mxu1 %v1345_v17  ;;  %v1381_v48 = vld [vmem:[%s1816_s0 + $0x7c] ss:$20 sps:$4 sm:$0xff]   ;;  %v1394_v50 = vld [vmem:[%s1815_s1 + $0x120] sm:$0xff]   ;;  %v1385_v52 = vld [vmem:[%s1816_s0 + $0x78] ss:$20 sps:$4 sm:$0xff]  }
  0x13   :  { %v1388_v54 = vld [vmem:[%s1816_s0 + $0xa4] ss:$20 sps:$4 sm:$0xff]   ;;  %v1408_v55 = vld [vmem:[%s1815_s1 + $0x130] sm:$0xff]   ;;  %v1390_v56 = vld [vmem:[%s1816_s0 + $0xac] ss:$20 sps:$4 sm:$0xff]  }
  0x14   :  { %1145 = vmatpush3.bf16.msra.mxu0 %v1346_v18  ;;  %v1415_v57 = vld [vmem:[%s1815_s1 + $0x138] sm:$0xff]   ;;  %v1392_v58 = vld [vmem:[%s1816_s0 + $0xa0] ss:$20 sps:$4 sm:$0xff]   ;;  %v1400_v63 = vld [vmem:[%s1816_s0 + $0xd0] ss:$20 sps:$4 sm:$0xff]  }
  0x15   :  { %1209 = vmatpush3.bf16.msra.mxu1 %v1347_v19  ;;  %1146 = vmatprep.subr.bf16.mxu0 %v1348_v20  ;;  %v1393_v59 = vld [vmem:[%s1816_s0 + $0xa8] ss:$20 sps:$4 sm:$0xff]   ;;  %v1395_v60 = vld [vmem:[%s1816_s0 + $0xcc] ss:$20 sps:$4 sm:$0xff]   ;;  %v1406_v2 = vld [vmem:[%s1816_s0 + $0xf0] ss:$20 sps:$4 sm:$0xff]  }
  0x16   :  { %1210 = vmatprep.subr.bf16.mxu1 %v1349_v21  ;;  %v1397_v61 = vld [vmem:[%s1816_s0 + $0xd4] ss:$20 sps:$4 sm:$0xff]   ;;  %v1404_v1 = vld [vmem:[%s1816_s0 + $0xfc] ss:$20 sps:$4 sm:$0xff]   ;;  %v1407_v3 = vld [vmem:[%s1816_s0 + $0xf8] ss:$20 sps:$4 sm:$0xff]  }
  0x17   :  { %v1399_v62 = vld [vmem:[%s1816_s0 + $0xc8] ss:$20 sps:$4 sm:$0xff]   ;;  %v1411_v5 = vld [vmem:[%s1816_s0 + $0x124] ss:$20 sps:$4 sm:$0xff]   ;;  %v1414_v7 = vld [vmem:[%s1816_s0 + $0x120] ss:$20 sps:$4 sm:$0xff]  }
  0x18   :  { %1147 = vmatpush3.bf16.msra.mxu0 %v1350_v22  ;;  %v1402_v0 = vld [vmem:[%s1816_s0 + $0xf4] ss:$20 sps:$4 sm:$0xff]   ;;  %v1409_v4 = vld [vmem:[%s1816_s0 + $0x11c] ss:$20 sps:$4 sm:$0xff]   ;;  %v1413_v6 = vld [vmem:[%s1816_s0 + $0x118] ss:$20 sps:$4 sm:$0xff]  }
  0x19   :  { %1211 = vmatpush3.bf16.msra.mxu1 %v1351_v23  ;;  %1148 = vmatprep.subr.bf16.mxu0 %v1352_v24  ;;  %v1416_v8 = vld [vmem:[%s1816_s0 + $0x10] ss:$20 sps:$4 sm:$0xff]   ;;  %v1418_v10 = vld [vmem:[%s1816_s0 + $0x38] ss:$20 sps:$4 sm:$0xff]   ;;  %v1420_v12 = vld [vmem:[%s1816_s0 + $0x60] ss:$20 sps:$4 sm:$0xff]  }
  0x1a   :  { %1212 = vmatprep.subr.bf16.mxu1 %v1353_v25  ;;  %v1417_v9 = vld [vmem:[%s1816_s0 + $0xb0] ss:$20 sps:$4 sm:$0xff]   ;;  %v1419_v11 = vld [vmem:[%s1816_s0 + $0xd8] ss:$20 sps:$4 sm:$0xff]   ;;  %v1421_v13 = vld [vmem:[%s1816_s0 + $0x100] ss:$20 sps:$4 sm:$0xff]  }
  0x1b   :  { %v1422_v14 = vld [vmem:[%s1816_s0 + $0x88] ss:$20 sps:$4 sm:$0xff]  }
  0x1c   :  { %1149 = vmatpush3.bf16.msra.mxu0 %v1354_v26  ;;  %v1423_v15 = vld [vmem:[%s1816_s0 + $0x128] ss:$20 sps:$4 sm:$0xff]  }
  0x1d   :  { %1213 = vmatpush3.bf16.msra.mxu1 %v1355_v27  ;;  %1150 = vmatprep.subr.bf16.mxu0 %v1356_v28 }
  0x1e   :  { %1214 = vmatprep.subr.bf16.mxu1 %v1357_v29 }
  0x20   :  { %1151 = vmatpush3.bf16.msra.mxu0 %v1358_v30 }
  0x21   :  { %1215 = vmatpush3.bf16.msra.mxu1 %v1359_v31  ;;  %1280 = vmatprep.subr.bf16.mxu0 %v1366_v36 }
  0x22   :  { %1312 = vmatprep.subr.bf16.mxu1 %v1366_v36 }
  0x23   :  { %663 = vmatmul.mubr.bf16.vlgmr.msra.gmra.mrb[0].mxu0 %v1360_v32 }
  0x24   :  { %760 = vmatmul.mubr.bf16.vlgmr.msra.gmra.mrb[0].mxu1 %v1363_v34  ;;  %1281 = vmatpush3.bf16.msra.mxu0 %v1366_v36 }
  0x25   :  { %1320 = vmatpush3.bf16.msra.mxu1 %v1366_v36  ;;  %670 = vmatprep.mubr.bf16.mxu0 %v1367_v37 }
  0x26   :  { %767 = vmatprep.mubr.bf16.mxu1 %v1369_v38  ;;  %1282 = vmatprep.subr.bf16.mxu0 %v1373_v39 }
  0x27   :  { %1313 = vmatprep.subr.bf16.mxu1 %v1373_v39 }
  0x28   :  { %1283 = vmatpush3.bf16.msra.mxu0 %v1373_v39 }
  0x29   :  { %1321 = vmatpush3.bf16.msra.mxu1 %v1373_v39  ;;  %1284 = vmatprep.subr.bf16.mxu0 %v1380_v44 }
  0x2a   :  { %1314 = vmatprep.subr.bf16.mxu1 %v1380_v44 }
  0x2b   :  { %671 = vmatmul.mubr.bf16.gmra.mrb[4].mxu0 %v1371_v40 }
  0x2c   :  { %768 = vmatmul.mubr.bf16.gmra.mrb[4].mxu1 %v1372_v41  ;;  %678 = vmatprep.mubr.bf16.mxu0 %v1374_v42 }
  0x2d   :  { %775 = vmatprep.mubr.bf16.mxu1 %v1376_v43  ;;  %1285 = vmatpush3.bf16.msra.mxu0 %v1380_v44 }
  0x2e   :  { %1322 = vmatpush3.bf16.msra.mxu1 %v1380_v44  ;;  %1286 = vmatprep.subr.bf16.mxu0 %v1387_v45 }
  0x2f   :  { %1315 = vmatprep.subr.bf16.mxu1 %v1387_v45 }
  0x31   :  { %1287 = vmatpush3.bf16.msra.mxu0 %v1387_v45 }
  0x32   :  { %1323 = vmatpush3.bf16.msra.mxu1 %v1387_v45  ;;  %1288 = vmatprep.subr.bf16.mxu0 %v1394_v50 }
  0x33   :  { %679 = vmatmul.mubr.bf16.gmra.mrb[8].mxu0 %v1378_v46  ;;  %1316 = vmatprep.subr.bf16.mxu1 %v1394_v50 }
  0x34   :  { %776 = vmatmul.mubr.bf16.gmra.mrb[8].mxu1 %v1379_v47  ;;  %686 = vmatprep.mubr.bf16.mxu0 %v1381_v48 }
  0x35   :  { %783 = vmatprep.mubr.bf16.mxu1 %v1383_v49  ;;  %1289 = vmatpush3.bf16.msra.mxu0 %v1394_v50 }
  0x36   :  { %1324 = vmatpush3.bf16.msra.mxu1 %v1394_v50  ;;  %1290 = vmatprep.subr.bf16.mxu0 %v1401_v51 }
  0x37   :  { %1317 = vmatprep.subr.bf16.mxu1 %v1401_v51 }
  0x39   :  { %1291 = vmatpush3.bf16.msra.mxu0 %v1401_v51 }
  0x3a   :  { %1325 = vmatpush3.bf16.msra.mxu1 %v1401_v51  ;;  %1292 = vmatprep.subr.bf16.mxu0 %v1408_v55 }
  0x3b   :  { %687 = vmatmul.mubr.bf16.gmra.mrb[12].mxu0 %v1385_v52  ;;  %1318 = vmatprep.subr.bf16.mxu1 %v1408_v55 }
  0x3c   :  { %784 = vmatmul.mubr.bf16.gmra.mrb[12].mxu1 %v1386_v53  ;;  %694 = vmatprep.mubr.bf16.mxu0 %v1388_v54 }
  0x3d   :  { %791 = vmatprep.mubr.bf16.mxu1 %v1390_v56  ;;  %1293 = vmatpush3.bf16.msra.mxu0 %v1408_v55 }
  0x3e   :  { %1326 = vmatpush3.bf16.msra.mxu1 %v1408_v55  ;;  %1294 = vmatprep.subr.bf16.mxu0 %v1415_v57 }
  0x3f   :  { %1319 = vmatprep.subr.bf16.mxu1 %v1415_v57 }
  0x41   :  { %1295 = vmatpush3.bf16.msra.mxu0 %v1415_v57 }
  0x42   :  { %1327 = vmatpush3.bf16.msra.mxu1 %v1415_v57 }
  0x43   :  { %695 = vmatmul.mubr.bf16.gmra.mrb[16].mxu0 %v1392_v58 }
  0x44   :  { %792 = vmatmul.mubr.bf16.gmra.mrb[16].mxu1 %v1393_v59  ;;  %702 = vmatprep.mubr.bf16.mxu0 %v1395_v60 }
  0x45   :  { %799 = vmatprep.mubr.bf16.mxu1 %v1397_v61 }
  0x4b   :  { %703 = vmatmul.mubr.bf16.gmra.mrb[20].mxu0 %v1399_v62 }
  0x4c   :  { %800 = vmatmul.mubr.bf16.gmra.mrb[20].mxu1 %v1400_v63  ;;  %710 = vmatprep.mubr.bf16.mxu0 %v1402_v0 }
  0x4d   :  { %807 = vmatprep.mubr.bf16.mxu1 %v1404_v1 }
  0x53   :  { %711 = vmatmul.mubr.bf16.gmra.mrb[24].mxu0 %v1406_v2 }
  0x54   :  { %808 = vmatmul.mubr.bf16.gmra.mrb[24].mxu1 %v1407_v3  ;;  %718 = vmatprep.mubr.bf16.mxu0 %v1409_v4 }
  0x55   :  { %815 = vmatprep.mubr.bf16.mxu1 %v1411_v5 }
  0x5b   :  { %719 = vmatmul.mubr.bf16.gmra.mrb[28].mxu0 %v1413_v6 }
  0x5c   :  { %816 = vmatmul.mubr.bf16.gmra.mrb[28].mxu1 %v1414_v7  ;;  %1296 = vmatprep.mubr.bf16.mxu0 %v1416_v8 }
  0x5d   :  { %1304 = vmatprep.mubr.bf16.mxu1 %v1417_v9 }
  0x63   :  { %1297 = vmatmul.mubr.bf16.vlgmr.msra.gmra.mrb[32].mxu0 %v1418_v10 }
  0x64   :  { %1305 = vmatmul.mubr.bf16.vlgmr.msra.gmra.mrb[32].mxu1 %v1419_v11  ;;  %1300 = vmatprep.mubr.bf16.mxu0 %v1420_v12 }
  0x65   :  { %1308 = vmatprep.mubr.bf16.mxu1 %v1421_v13 }
  0x6b   :  { %1301 = vmatmul.mubr.bf16.gmra.mrb[36].mxu0 %v1422_v14 }
  0x6c   :  { %1309 = vmatmul.mubr.bf16.gmra.mrb[36].mxu1 %v1423_v15 }
  0xf6   :  { %v1152_v16 = vpop.f32.mrb[0].mxu0 }
  0xf7   :  { %v1216_v17 = vpop.f32.mrb[0].mxu1  ;;  %v1153_v18 = vpop.f32.mrb[1].mxu0 }
  0xf8   :  { %v1154_v19 = vadd.f32 %v1153_v18, %v1152_v16  ;;  %v1217_v20 = vpop.f32.mrb[1].mxu1  ;;  %v1155_v21 = vpop.f32.mrb[2].mxu0 }
  0xf9   :  { %v1218_v22 = vadd.f32 %v1217_v20, %v1216_v17  ;;  %v1219_v23 = vpop.f32.mrb[2].mxu1  ;;  %v1156_v24 = vpop.f32.mrb[3].mxu0 }
  0xfa   :  { %v1157_v25 = vadd.f32 %v1156_v24, %v1155_v21  ;;  %v1220_v26 = vpop.f32.mrb[3].mxu1 }
  0xfb   :  { %v1221_v27 = vadd.f32 %v1220_v26, %v1219_v23  ;;  %v1689_v28 = vadd.f32 %v1218_v22, %v1154_v19 }
  0xfd   :  { %v1691_v29 = vadd.f32 %v1221_v27, %v1157_v25 }
  0xfe   :  { %v1158_v30 = vpop.f32.mrb[4].mxu0 }
  0xff   :  { %v1222_v31 = vpop.f32.mrb[4].mxu1  ;;  %v1159_v32 = vpop.f32.mrb[5].mxu0 }
 0x100   :  { %v1160_v33 = vadd.f32 %v1159_v32, %v1158_v30  ;;  %v1223_v34 = vpop.f32.mrb[5].mxu1  ;;  %v1161_v35 = vpop.f32.mrb[6].mxu0 }
 0x101   :  { %v1224_v36 = vadd.f32 %v1223_v34, %v1222_v31  ;;  %v1225_v37 = vpop.f32.mrb[6].mxu1  ;;  %v1162_v38 = vpop.f32.mrb[7].mxu0 }
 0x102   :  { %v1163_v39 = vadd.f32 %v1162_v38, %v1161_v35  ;;  %v1226_v40 = vpop.f32.mrb[7].mxu1 }
 0x103   :  { %v1227_v41 = vadd.f32 %v1226_v40, %v1225_v37  ;;  %v1693_v42 = vadd.f32 %v1224_v36, %v1160_v33 }
 0x105   :  { %v1695_v43 = vadd.f32 %v1227_v41, %v1163_v39 }
 0x106   :  { %v1164_v44 = vpop.f32.mrb[8].mxu0 }
 0x107   :  { %v1228_v45 = vpop.f32.mrb[8].mxu1  ;;  %v1165_v46 = vpop.f32.mrb[9].mxu0 }
 0x108   :  { %v1166_v47 = vadd.f32 %v1165_v46, %v1164_v44  ;;  %v1229_v48 = vpop.f32.mrb[9].mxu1  ;;  %v1167_v49 = vpop.f32.mrb[10].mxu0 }
 0x109   :  { %v1230_v50 = vadd.f32 %v1229_v48, %v1228_v45  ;;  %v1231_v51 = vpop.f32.mrb[10].mxu1  ;;  %v1168_v52 = vpop.f32.mrb[11].mxu0 }
 0x10a   :  { %v1169_v53 = vadd.f32 %v1168_v52, %v1167_v49  ;;  %v1232_v54 = vpop.f32.mrb[11].mxu1 }
 0x10b   :  { %v1233_v55 = vadd.f32 %v1232_v54, %v1231_v51  ;;  %v1697_v56 = vadd.f32 %v1230_v50, %v1166_v47 }
 0x10d   :  { %v1699_v57 = vadd.f32 %v1233_v55, %v1169_v53 }
 0x10e   :  { %v1170_v58 = vpop.f32.mrb[12].mxu0 }
 0x10f   :  { %v1234_v59 = vpop.f32.mrb[12].mxu1  ;;  %v1171_v60 = vpop.f32.mrb[13].mxu0 }
 0x110   :  { %v1172_v61 = vadd.f32 %v1171_v60, %v1170_v58  ;;  %v1235_v62 = vpop.f32.mrb[13].mxu1  ;;  %v1173_v63 = vpop.f32.mrb[14].mxu0 }
 0x111   :  { %v1236_v0 = vadd.f32 %v1235_v62, %v1234_v59  ;;  %v1237_v1 = vpop.f32.mrb[14].mxu1  ;;  %v1174_v2 = vpop.f32.mrb[15].mxu0 }
 0x112   :  { %v1175_v3 = vadd.f32 %v1174_v2, %v1173_v63  ;;  %v1238_v4 = vpop.f32.mrb[15].mxu1 }
 0x113   :  { %v1239_v5 = vadd.f32 %v1238_v4, %v1237_v1  ;;  %v1701_v6 = vadd.f32 %v1236_v0, %v1172_v61 }
 0x115   :  { %v1703_v7 = vadd.f32 %v1239_v5, %v1175_v3 }
 0x116   :  { %v1176_v8 = vpop.f32.mrb[16].mxu0 }
 0x117   :  { %v1240_v9 = vpop.f32.mrb[16].mxu1  ;;  %v1177_v10 = vpop.f32.mrb[17].mxu0 }
 0x118   :  { %v1178_v11 = vadd.f32 %v1177_v10, %v1176_v8  ;;  %v1241_v12 = vpop.f32.mrb[17].mxu1  ;;  %v1179_v13 = vpop.f32.mrb[18].mxu0 }
 0x119   :  { %v1242_v14 = vadd.f32 %v1241_v12, %v1240_v9  ;;  %v1243_v15 = vpop.f32.mrb[18].mxu1  ;;  %v1180_v16 = vpop.f32.mrb[19].mxu0  ;;  %v1716_v9 = vld [vmem:[%s1817_s2] ss:$0 sm:$0xff] }
 0x11a   :  { %v1181_v17 = vadd.f32 %v1180_v16, %v1179_v13  ;;  %v1244_v18 = vpop.f32.mrb[19].mxu1  ;;  %v1722_v13 = vld [vmem:[%s1818_s3] ss:$0 sm:$0xff] }
 0x11b   :  { %v1245_v19 = vadd.f32 %v1244_v18, %v1243_v15  ;;  %v794_v20 = vadd.f32 %v1242_v14, %v1178_v11 }
 0x11d   :  { %v1705_v21 = vadd.f32 %v1245_v19, %v1181_v17 }
 0x11e   :  { %v1182_v22 = vpop.f32.mrb[20].mxu0 }
 0x11f   :  { %v1246_v23 = vpop.f32.mrb[20].mxu1  ;;  %v1183_v24 = vpop.f32.mrb[21].mxu0 }
 0x120   :  { %v1184_v25 = vadd.f32 %v1183_v24, %v1182_v22  ;;  %v1247_v26 = vpop.f32.mrb[21].mxu1  ;;  %v1185_v27 = vpop.f32.mrb[22].mxu0 }
 0x121   :  { %v1248_v30 = vadd.f32 %v1247_v26, %v1246_v23  ;;  %v1249_v31 = vpop.f32.mrb[22].mxu1  ;;  %v1186_v32 = vpop.f32.mrb[23].mxu0 }
 0x122   :  { %v1187_v33 = vadd.f32 %v1186_v32, %v1185_v27  ;;  %v1250_v34 = vpop.f32.mrb[23].mxu1 }
 0x123   :  { %v1251_v35 = vadd.f32 %v1250_v34, %v1249_v31  ;;  %v802_v36 = vadd.f32 %v1248_v30, %v1184_v25 }
 0x125   :  { %v805_v37 = vadd.f32 %v1251_v35, %v1187_v33 }
 0x126   :  { %v1188_v38 = vpop.f32.mrb[24].mxu0 }
 0x127   :  { %v1252_v39 = vpop.f32.mrb[24].mxu1  ;;  %v1189_v40 = vpop.f32.mrb[25].mxu0 }
 0x128   :  { %v1190_v41 = vadd.f32 %v1189_v40, %v1188_v38  ;;  %v1253_v44 = vpop.f32.mrb[25].mxu1  ;;  %v1191_v45 = vpop.f32.mrb[26].mxu0 }
 0x129   :  { %v1254_v46 = vadd.f32 %v1253_v44, %v1252_v39  ;;  %v1255_v47 = vpop.f32.mrb[26].mxu1  ;;  %v1192_v48 = vpop.f32.mrb[27].mxu0 }
 0x12a   :  { %v1193_v49 = vadd.f32 %v1192_v48, %v1191_v45  ;;  %v1256_v50 = vpop.f32.mrb[27].mxu1 }
 0x12b   :  { %v1257_v51 = vadd.f32 %v1256_v50, %v1255_v47  ;;  %v1707_v52 = vadd.f32 %v1254_v46, %v1190_v41 }
 0x12d   :  { %v1709_v53 = vadd.f32 %v1257_v51, %v1193_v49 }
 0x12e   :  { %v1194_v54 = vpop.f32.mrb[28].mxu0 }
 0x12f   :  { %v1258_v55 = vpop.f32.mrb[28].mxu1  ;;  %v1195_v58 = vpop.f32.mrb[29].mxu0 }
 0x130   :  { %v1196_v59 = vadd.f32 %v1195_v58, %v1194_v54  ;;  %v1259_v60 = vpop.f32.mrb[29].mxu1  ;;  %v1197_v61 = vpop.f32.mrb[30].mxu0 }
 0x131   :  { %v1260_v62 = vadd.f32 %v1259_v60, %v1258_v55  ;;  %v1261_v63 = vpop.f32.mrb[30].mxu1  ;;  %v1198_v0 = vpop.f32.mrb[31].mxu0 }
 0x132   :  { %v1199_v1 = vadd.f32 %v1198_v0, %v1197_v61  ;;  %v1262_v2 = vpop.f32.mrb[31].mxu1 }
 0x133   :  { %v1263_v3 = vadd.f32 %v1262_v2, %v1261_v63  ;;  %v818_v4 = vadd.f32 %v1260_v62, %v1196_v59 }
 0x135   :  { %v1711_v5 = vadd.f32 %v1263_v3, %v1199_v1 }
 0x136   :  { %v1298_v8 = vpop.f32.mrb[32].mxu0 }
 0x137   :  { %v867_v10 = vadd.f32 %v1298_v8, %v1693_v42  ;;  %v1306_v11 = vpop.f32.mrb[32].mxu1  ;;  %v858_v12 = vpop.f32.mrb[33].mxu0 }
 0x138   :  { %v899_v14 = vadd.f32 %v1306_v11, %v802_v36  ;;  %v859_v15 = vadd.f32 %v858_v12, %v1689_v28  ;;  %v890_v16 = vpop.f32.mrb[33].mxu1  ;;  %v1299_v17 = vpop.f32.mrb[34].mxu0 }
 0x139   :  { %v981_v18 = vmul.f32 %v1716_v9, %v867_v10  ;;  %v891_v19 = vadd.f32 %v890_v16, %v794_v20  ;;  %v870_v22 = vadd.f32 %v1299_v17, %v1695_v43  ;;  %v1307_v23 = vpop.f32.mrb[34].mxu1  ;;  %v861_v24 = vpop.f32.mrb[35].mxu0 }
 0x13a   :  { %v989_v42 = vmul.f32 %v1716_v9, %v899_v14  ;;  %v979_v25 = vmul.f32 %v1716_v9, %v859_v15  ;;  %v902_v26 = vadd.f32 %v1307_v23, %v805_v37  ;;  %v862_v27 = vadd.f32 %v861_v24, %v1691_v29  ;;  %v893_v30 = vpop.f32.mrb[35].mxu1 }
 0x13b   :  { %v1004_v31 = vadd.f32 %v1722_v13, %v981_v18  ;;  %v987_v28 = vmul.f32 %v1716_v9, %v891_v19  ;;  %v982_v32 = vmul.f32 %v1716_v9, %v870_v22  ;;  %v894_v20 = vadd.f32 %v893_v30, %v1705_v21 }
 0x13c   :  { %v1012_v43 = vadd.f32 %v1722_v13, %v989_v42  ;;  %v1002_v33 = vadd.f32 %v1722_v13, %v979_v25  ;;  %v990_v34 = vmul.f32 %v1716_v9, %v902_v26  ;;  %v980_v35 = vmul.f32 %v1716_v9, %v862_v27 }
 0x13d   :  { %v1020_v36 = vmax.f32 %v1004_v31, 0.0  ;;  %v1010_v29 = vadd.f32 %v1722_v13, %v987_v28  ;;  %v1005_v37 = vadd.f32 %v1722_v13, %v982_v32  ;;  %v988_v38 = vmul.f32 %v1716_v9, %v894_v20 }
 0x13e   :  { %v1028_v39 = vmax.f32 %v1012_v43, 0.0  ;;  %v1018_v40 = vmax.f32 %v1002_v33, 0.0  ;;  %v1013_v41 = vadd.f32 %v1722_v13, %v990_v34  ;;  %v1003_v21 = vadd.f32 %v1722_v13, %v980_v35  ;;  %v1302_v44 = vpop.f32.mrb[36].mxu0 }
 0x13f   :  { %1036 = vst [vmem:[%s1819_s4 + $0x10] sm:$0xff] %v1020_v36  ;;  %v1026_v45 = vmax.f32 %v1010_v29, 0.0  ;;  %v1021_v46 = vmax.f32 %v1005_v37, 0.0  ;;  %v1011_v47 = vadd.f32 %v1722_v13, %v988_v38  ;;  %v883_v48 = vadd.f32 %v1302_v44, %v1701_v6  ;;  %v1310_v49 = vpop.f32.mrb[36].mxu1  ;;  %v874_v50 = vpop.f32.mrb[37].mxu0 }
 0x140   :  { %1044 = vst [vmem:[%s1819_s4 + $0x50] sm:$0xff] %v1028_v39  ;;  %1034 = vst [vmem:[%s1819_s4] sm:$0xff] %v1018_v40  ;;  %v1029_v51 = vmax.f32 %v1013_v41, 0.0  ;;  %v1019_v54 = vmax.f32 %v1003_v21, 0.0  ;;  %v915_v55 = vadd.f32 %v1310_v49, %v818_v4  ;;  %v875_v58 = vadd.f32 %v874_v50, %v1697_v56  ;;  %v906_v59 = vpop.f32.mrb[37].mxu1  ;;  %v1303_v60 = vpop.f32.mrb[38].mxu0 }
 0x141   :  { %1042 = vst [vmem:[%s1819_s4 + $0x40] sm:$0xff] %v1026_v45  ;;  %1037 = vst [vmem:[%s1819_s4 + $0x18] sm:$0xff] %v1021_v46  ;;  %v1027_v6 = vmax.f32 %v1011_v47, 0.0  ;;  %v985_v61 = vmul.f32 %v1716_v9, %v883_v48  ;;  %v907_v62 = vadd.f32 %v906_v59, %v1707_v52  ;;  %v886_v63 = vadd.f32 %v1303_v60, %v1703_v7  ;;  %v1311_v0 = vpop.f32.mrb[38].mxu1  ;;  %v877_v1 = vpop.f32.mrb[39].mxu0 }
 0x142   :  { %1045 = vst [vmem:[%s1819_s4 + $0x58] sm:$0xff] %v1029_v51  ;;  %1035 = vst [vmem:[%s1819_s4 + $0x8] sm:$0xff] %v1019_v54  ;;  %v993_v56 = vmul.f32 %v1716_v9, %v915_v55  ;;  %v983_v2 = vmul.f32 %v1716_v9, %v875_v58  ;;  %v918_v3 = vadd.f32 %v1311_v0, %v1711_v5  ;;  %v909_v4 = vpop.f32.mrb[39].mxu1 }
 0x143   :  { %v878_v52 = vadd.f32 %v877_v1, %v1699_v57  ;;  %1043 = vst [vmem:[%s1819_s4 + $0x48] sm:$0xff] %v1027_v6  ;;  %v1008_v7 = vadd.f32 %v1722_v13, %v985_v61  ;;  %v991_v8 = vmul.f32 %v1716_v9, %v907_v62  ;;  %v986_v10 = vmul.f32 %v1716_v9, %v886_v63 }
 0x144   :  { %v910_v11 = vadd.f32 %v909_v4, %v1709_v53  ;;  %v1016_v12 = vadd.f32 %v1722_v13, %v993_v56  ;;  %v1006_v14 = vadd.f32 %v1722_v13, %v983_v2  ;;  %v994_v5 = vmul.f32 %v1716_v9, %v918_v3 }
 0x145   :  { %v984_v57 = vmul.f32 %v1716_v9, %v878_v52  ;;  %v1024_v15 = vmax.f32 %v1008_v7, 0.0  ;;  %v1014_v16 = vadd.f32 %v1722_v13, %v991_v8  ;;  %v1009_v17 = vadd.f32 %v1722_v13, %v986_v10 }
 0x146   :  { %v992_v18 = vmul.f32 %v1716_v9, %v910_v11  ;;  %v1032_v19 = vmax.f32 %v1016_v12, 0.0  ;;  %v1022_v22 = vmax.f32 %v1006_v14, 0.0  ;;  %v1017_v23 = vadd.f32 %v1722_v13, %v994_v5 }
 0x147   :  { %v1007_v53 = vadd.f32 %v1722_v13, %v984_v57  ;;  %1040 = vst [vmem:[%s1819_s4 + $0x30] sm:$0xff] %v1024_v15  ;;  %v1030_v24 = vmax.f32 %v1014_v16, 0.0  ;;  %v1025_v42 = vmax.f32 %v1009_v17, 0.0 }
 0x148   :  { %v1015_v25 = vadd.f32 %v1722_v13, %v992_v18  ;;  %1048 = vst [vmem:[%s1819_s4 + $0x70] sm:$0xff] %v1032_v19  ;;  %1038 = vst [vmem:[%s1819_s4 + $0x20] sm:$0xff] %v1022_v22  ;;  %v1033_v9 = vmax.f32 %v1017_v23, 0.0 }
 0x149   :  { %v1023_v26 = vmax.f32 %v1007_v53, 0.0  ;;  %1046 = vst [vmem:[%s1819_s4 + $0x60] sm:$0xff] %v1030_v24  ;;  %1041 = vst [vmem:[%s1819_s4 + $0x38] sm:$0xff] %v1025_v42 }
 0x14a   :  { %v1031_v27 = vmax.f32 %v1015_v25, 0.0  ;;  %1049 = vst [vmem:[%s1819_s4 + $0x78] sm:$0xff] %v1033_v9 }
 0x14b   :  { %1039 = vst [vmem:[%s1819_s4 + $0x28] sm:$0xff] %v1023_v26 }
 0x14c   :  { %1047 = vst [vmem:[%s1819_s4 + $0x68] sm:$0xff] %v1031_v27 }

// kernel: resnet_forward.17
= control target key start
LH: loop header
LB: loop body
LE: loop exit
PB: predicated region body
PF: predicated region fallthrough
CT: control target
= control target key end

     0   :  { %s1906_s1 = inlined_call_operand.vmem [shape: bf16[640,128], index: 1, kind: input, shape index: {}]   ;;  %s1907_s0 = inlined_call_operand.vmem [shape: bf16[128,640], index: 0, kind: input, shape index: {}]   ;;  %s1908_s2 = inlined_call_operand.vmem [shape: f32[1,128], index: 2, kind: input, shape index: {}]   ;;  %s1909_s3 = inlined_call_operand.vmem [shape: f32[1,128], index: 3, kind: input, shape index: {}]   ;;  %s1910_s4 = inlined_call_operand.vmem [shape: f32[128,128], index: 4, kind: input, shape index: {}]   ;;  %s1911_s5 = inlined_call_operand.vmem [shape: f32[128,128], index: 5, kind: output, shape index: {}]  }
   0x1   :  { %v1363_v0 = vld [vmem:[%s1906_s1 + $0x40] sm:$0xff]   ;;  %v1367_v4 = vld [vmem:[%s1906_s1 + $0x48] sm:$0xff]   ;;  %v1371_v8 = vld [vmem:[%s1906_s1 + $0x50] sm:$0xff]  }
   0x2   :  { %v1364_v1 = vld [vmem:[%s1906_s1 + $0xc0] sm:$0xff]   ;;  %1171 = vmatprep.subr.bf16.mxu0 %v1363_v0  ;;  %v1368_v5 = vld [vmem:[%s1906_s1 + $0xc8] sm:$0xff]   ;;  %v1372_v9 = vld [vmem:[%s1906_s1 + $0xd0] sm:$0xff]  }
   0x3   :  { %v1365_v2 = vld [vmem:[%s1906_s1] sm:$0xff]   ;;  %1235 = vmatprep.subr.bf16.mxu1 %v1364_v1  ;;  %v1369_v6 = vld [vmem:[%s1906_s1 + $0x8] sm:$0xff]   ;;  %v1373_v10 = vld [vmem:[%s1906_s1 + $0x10] sm:$0xff]  }
   0x4   :  { %v1366_v3 = vld [vmem:[%s1906_s1 + $0x80] sm:$0xff]   ;;  %1172 = vmatpush3.bf16.msra.mxu0 %v1365_v2  ;;  %v1370_v7 = vld [vmem:[%s1906_s1 + $0x88] sm:$0xff]   ;;  %v1374_v11 = vld [vmem:[%s1906_s1 + $0x90] sm:$0xff]  }
   0x5   :  { %1236 = vmatpush3.bf16.msra.mxu1 %v1366_v3  ;;  %1173 = vmatprep.subr.bf16.mxu0 %v1367_v4  ;;  %v1375_v12 = vld [vmem:[%s1906_s1 + $0x58] sm:$0xff]   ;;  %v1379_v16 = vld [vmem:[%s1906_s1 + $0x60] sm:$0xff]   ;;  %v1383_v20 = vld [vmem:[%s1906_s1 + $0x68] sm:$0xff]  }
   0x6   :  { %1237 = vmatprep.subr.bf16.mxu1 %v1368_v5  ;;  %v1376_v13 = vld [vmem:[%s1906_s1 + $0xd8] sm:$0xff]   ;;  %v1380_v17 = vld [vmem:[%s1906_s1 + $0xe0] sm:$0xff]   ;;  %v1384_v21 = vld [vmem:[%s1906_s1 + $0xe8] sm:$0xff]  }
   0x7   :  { %v1377_v14 = vld [vmem:[%s1906_s1 + $0x18] sm:$0xff]   ;;  %v1381_v18 = vld [vmem:[%s1906_s1 + $0x20] sm:$0xff]   ;;  %v1385_v22 = vld [vmem:[%s1906_s1 + $0x28] sm:$0xff]  }
   0x8   :  { %1174 = vmatpush3.bf16.msra.mxu0 %v1369_v6  ;;  %v1378_v15 = vld [vmem:[%s1906_s1 + $0x98] sm:$0xff]   ;;  %v1382_v19 = vld [vmem:[%s1906_s1 + $0xa0] sm:$0xff]   ;;  %v1386_v23 = vld [vmem:[%s1906_s1 + $0xa8] sm:$0xff]  }
   0x9   :  { %1238 = vmatpush3.bf16.msra.mxu1 %v1370_v7  ;;  %1175 = vmatprep.subr.bf16.mxu0 %v1371_v8  ;;  %v1387_v24 = vld [vmem:[%s1906_s1 + $0x70] sm:$0xff]   ;;  %v1391_v28 = vld [vmem:[%s1906_s1 + $0x78] sm:$0xff]   ;;  %v1400_v35 = vld [vmem:[%s1907_s0 + $0xc] ss:$20 sps:$4 sm:$0xff]  }
   0xa   :  { %1239 = vmatprep.subr.bf16.mxu1 %v1372_v9  ;;  %v1388_v25 = vld [vmem:[%s1906_s1 + $0xf0] sm:$0xff]   ;;  %v1392_v29 = vld [vmem:[%s1906_s1 + $0xf8] sm:$0xff]   ;;  %v1401_v36 = vld [vmem:[%s1906_s1 + $0x100] sm:$0xff]   ;;  %762 = vmatprep.mubr.bf16.mxu1 %v1400_v35 }
   0xb   :  { %v1389_v26 = vld [vmem:[%s1906_s1 + $0x30] sm:$0xff]   ;;  %v1393_v30 = vld [vmem:[%s1906_s1 + $0x38] sm:$0xff]   ;;  %v1402_v37 = vld [vmem:[%s1907_s0 + $0x2c] ss:$20 sps:$4 sm:$0xff]  }
   0xc   :  { %1176 = vmatpush3.bf16.msra.mxu0 %v1373_v10  ;;  %v1390_v27 = vld [vmem:[%s1906_s1 + $0xb0] sm:$0xff]   ;;  %v1394_v31 = vld [vmem:[%s1906_s1 + $0xb8] sm:$0xff]   ;;  %v1408_v39 = vld [vmem:[%s1906_s1 + $0x108] sm:$0xff]  }
   0xd   :  { %1240 = vmatpush3.bf16.msra.mxu1 %v1374_v11  ;;  %1177 = vmatprep.subr.bf16.mxu0 %v1375_v12  ;;  %v1395_v32 = vld [vmem:[%s1907_s0] ss:$20 sps:$4 sm:$0xff]   ;;  %v1397_v33 = vld [vmem:[%s1907_s0 + $0x4] ss:$20 sps:$4 sm:$0xff]   ;;  %v1398_v34 = vld [vmem:[%s1907_s0 + $0x8] ss:$20 sps:$4 sm:$0xff]  }
   0xe   :  { %1241 = vmatprep.subr.bf16.mxu1 %v1376_v13  ;;  %665 = vmatprep.mubr.bf16.mxu0 %v1397_v33  ;;  %v1404_v38 = vld [vmem:[%s1907_s0 + $0x34] ss:$20 sps:$4 sm:$0xff]   ;;  %v1407_v41 = vld [vmem:[%s1907_s0 + $0x30] ss:$20 sps:$4 sm:$0xff]   ;;  %v1422_v45 = vld [vmem:[%s1906_s1 + $0x118] sm:$0xff]  }
   0xf   :  { %v1406_v40 = vld [vmem:[%s1907_s0 + $0x28] ss:$20 sps:$4 sm:$0xff]   ;;  %v1415_v44 = vld [vmem:[%s1906_s1 + $0x110] sm:$0xff]   ;;  %v1414_v47 = vld [vmem:[%s1907_s0 + $0x58] ss:$20 sps:$4 sm:$0xff]  }
  0x10   :  { %1178 = vmatpush3.bf16.msra.mxu0 %v1377_v14  ;;  %v1409_v42 = vld [vmem:[%s1907_s0 + $0x54] ss:$20 sps:$4 sm:$0xff]   ;;  %v1411_v43 = vld [vmem:[%s1907_s0 + $0x5c] ss:$20 sps:$4 sm:$0xff]   ;;  %v1418_v49 = vld [vmem:[%s1907_s0 + $0x84] ss:$20 sps:$4 sm:$0xff]  }
  0x11   :  { %1242 = vmatpush3.bf16.msra.mxu1 %v1378_v15  ;;  %1179 = vmatprep.subr.bf16.mxu0 %v1379_v16  ;;  %v1413_v46 = vld [vmem:[%s1907_s0 + $0x50] ss:$20 sps:$4 sm:$0xff]   ;;  %v1436_v51 = vld [vmem:[%s1906_s1 + $0x128] sm:$0xff]   ;;  %v1421_v53 = vld [vmem:[%s1907_s0 + $0x80] ss:$20 sps:$4 sm:$0xff]  }
  0x12   :  { %1243 = vmatprep.subr.bf16.mxu1 %v1380_v17  ;;  %v1416_v48 = vld [vmem:[%s1907_s0 + $0x7c] ss:$20 sps:$4 sm:$0xff]   ;;  %v1429_v50 = vld [vmem:[%s1906_s1 + $0x120] sm:$0xff]   ;;  %v1420_v52 = vld [vmem:[%s1907_s0 + $0x78] ss:$20 sps:$4 sm:$0xff]  }
  0x13   :  { %v1423_v54 = vld [vmem:[%s1907_s0 + $0xa4] ss:$20 sps:$4 sm:$0xff]   ;;  %v1443_v55 = vld [vmem:[%s1906_s1 + $0x130] sm:$0xff]   ;;  %v1425_v56 = vld [vmem:[%s1907_s0 + $0xac] ss:$20 sps:$4 sm:$0xff]  }
  0x14   :  { %1180 = vmatpush3.bf16.msra.mxu0 %v1381_v18  ;;  %v1450_v57 = vld [vmem:[%s1906_s1 + $0x138] sm:$0xff]   ;;  %v1427_v58 = vld [vmem:[%s1907_s0 + $0xa0] ss:$20 sps:$4 sm:$0xff]   ;;  %v1435_v63 = vld [vmem:[%s1907_s0 + $0xd0] ss:$20 sps:$4 sm:$0xff]  }
  0x15   :  { %1244 = vmatpush3.bf16.msra.mxu1 %v1382_v19  ;;  %1181 = vmatprep.subr.bf16.mxu0 %v1383_v20  ;;  %v1428_v59 = vld [vmem:[%s1907_s0 + $0xa8] ss:$20 sps:$4 sm:$0xff]   ;;  %v1430_v60 = vld [vmem:[%s1907_s0 + $0xcc] ss:$20 sps:$4 sm:$0xff]   ;;  %v1441_v2 = vld [vmem:[%s1907_s0 + $0xf0] ss:$20 sps:$4 sm:$0xff]  }
  0x16   :  { %1245 = vmatprep.subr.bf16.mxu1 %v1384_v21  ;;  %v1432_v61 = vld [vmem:[%s1907_s0 + $0xd4] ss:$20 sps:$4 sm:$0xff]   ;;  %v1439_v1 = vld [vmem:[%s1907_s0 + $0xfc] ss:$20 sps:$4 sm:$0xff]   ;;  %v1442_v3 = vld [vmem:[%s1907_s0 + $0xf8] ss:$20 sps:$4 sm:$0xff]  }
  0x17   :  { %v1434_v62 = vld [vmem:[%s1907_s0 + $0xc8] ss:$20 sps:$4 sm:$0xff]   ;;  %v1446_v5 = vld [vmem:[%s1907_s0 + $0x124] ss:$20 sps:$4 sm:$0xff]   ;;  %v1449_v7 = vld [vmem:[%s1907_s0 + $0x120] ss:$20 sps:$4 sm:$0xff]  }
  0x18   :  { %1182 = vmatpush3.bf16.msra.mxu0 %v1385_v22  ;;  %v1437_v0 = vld [vmem:[%s1907_s0 + $0xf4] ss:$20 sps:$4 sm:$0xff]   ;;  %v1444_v4 = vld [vmem:[%s1907_s0 + $0x11c] ss:$20 sps:$4 sm:$0xff]   ;;  %v1448_v6 = vld [vmem:[%s1907_s0 + $0x118] ss:$20 sps:$4 sm:$0xff]  }
  0x19   :  { %1246 = vmatpush3.bf16.msra.mxu1 %v1386_v23  ;;  %1183 = vmatprep.subr.bf16.mxu0 %v1387_v24  ;;  %v1451_v8 = vld [vmem:[%s1907_s0 + $0x10] ss:$20 sps:$4 sm:$0xff]   ;;  %v1453_v10 = vld [vmem:[%s1907_s0 + $0x38] ss:$20 sps:$4 sm:$0xff]   ;;  %v1455_v12 = vld [vmem:[%s1907_s0 + $0x60] ss:$20 sps:$4 sm:$0xff]  }
  0x1a   :  { %1247 = vmatprep.subr.bf16.mxu1 %v1388_v25  ;;  %v1452_v9 = vld [vmem:[%s1907_s0 + $0xb0] ss:$20 sps:$4 sm:$0xff]   ;;  %v1454_v11 = vld [vmem:[%s1907_s0 + $0xd8] ss:$20 sps:$4 sm:$0xff]   ;;  %v1456_v13 = vld [vmem:[%s1907_s0 + $0x100] ss:$20 sps:$4 sm:$0xff]  }
  0x1b   :  { %v1457_v14 = vld [vmem:[%s1907_s0 + $0x88] ss:$20 sps:$4 sm:$0xff]  }
  0x1c   :  { %1184 = vmatpush3.bf16.msra.mxu0 %v1389_v26  ;;  %v1458_v15 = vld [vmem:[%s1907_s0 + $0x128] ss:$20 sps:$4 sm:$0xff]  }
  0x1d   :  { %1248 = vmatpush3.bf16.msra.mxu1 %v1390_v27  ;;  %1185 = vmatprep.subr.bf16.mxu0 %v1391_v28 }
  0x1e   :  { %1249 = vmatprep.subr.bf16.mxu1 %v1392_v29 }
  0x20   :  { %1186 = vmatpush3.bf16.msra.mxu0 %v1393_v30 }
  0x21   :  { %1250 = vmatpush3.bf16.msra.mxu1 %v1394_v31  ;;  %1315 = vmatprep.subr.bf16.mxu0 %v1401_v36 }
  0x22   :  { %1347 = vmatprep.subr.bf16.mxu1 %v1401_v36 }
  0x23   :  { %666 = vmatmul.mubr.bf16.vlgmr.msra.gmra.mrb[0].mxu0 %v1395_v32 }
  0x24   :  { %763 = vmatmul.mubr.bf16.vlgmr.msra.gmra.mrb[0].mxu1 %v1398_v34  ;;  %1316 = vmatpush3.bf16.msra.mxu0 %v1401_v36 }
  0x25   :  { %1355 = vmatpush3.bf16.msra.mxu1 %v1401_v36  ;;  %673 = vmatprep.mubr.bf16.mxu0 %v1402_v37 }
  0x26   :  { %770 = vmatprep.mubr.bf16.mxu1 %v1404_v38  ;;  %1317 = vmatprep.subr.bf16.mxu0 %v1408_v39 }
  0x27   :  { %1348 = vmatprep.subr.bf16.mxu1 %v1408_v39 }
  0x28   :  { %1318 = vmatpush3.bf16.msra.mxu0 %v1408_v39 }
  0x29   :  { %1356 = vmatpush3.bf16.msra.mxu1 %v1408_v39  ;;  %1319 = vmatprep.subr.bf16.mxu0 %v1415_v44 }
  0x2a   :  { %1349 = vmatprep.subr.bf16.mxu1 %v1415_v44 }
  0x2b   :  { %674 = vmatmul.mubr.bf16.gmra.mrb[4].mxu0 %v1406_v40 }
  0x2c   :  { %771 = vmatmul.mubr.bf16.gmra.mrb[4].mxu1 %v1407_v41  ;;  %681 = vmatprep.mubr.bf16.mxu0 %v1409_v42 }
  0x2d   :  { %778 = vmatprep.mubr.bf16.mxu1 %v1411_v43  ;;  %1320 = vmatpush3.bf16.msra.mxu0 %v1415_v44 }
  0x2e   :  { %1357 = vmatpush3.bf16.msra.mxu1 %v1415_v44  ;;  %1321 = vmatprep.subr.bf16.mxu0 %v1422_v45 }
  0x2f   :  { %1350 = vmatprep.subr.bf16.mxu1 %v1422_v45 }
  0x31   :  { %1322 = vmatpush3.bf16.msra.mxu0 %v1422_v45 }
  0x32   :  { %1358 = vmatpush3.bf16.msra.mxu1 %v1422_v45  ;;  %1323 = vmatprep.subr.bf16.mxu0 %v1429_v50 }
  0x33   :  { %682 = vmatmul.mubr.bf16.gmra.mrb[8].mxu0 %v1413_v46  ;;  %1351 = vmatprep.subr.bf16.mxu1 %v1429_v50 }
  0x34   :  { %779 = vmatmul.mubr.bf16.gmra.mrb[8].mxu1 %v1414_v47  ;;  %689 = vmatprep.mubr.bf16.mxu0 %v1416_v48 }
  0x35   :  { %786 = vmatprep.mubr.bf16.mxu1 %v1418_v49  ;;  %1324 = vmatpush3.bf16.msra.mxu0 %v1429_v50 }
  0x36   :  { %1359 = vmatpush3.bf16.msra.mxu1 %v1429_v50  ;;  %1325 = vmatprep.subr.bf16.mxu0 %v1436_v51 }
  0x37   :  { %1352 = vmatprep.subr.bf16.mxu1 %v1436_v51 }
  0x39   :  { %1326 = vmatpush3.bf16.msra.mxu0 %v1436_v51 }
  0x3a   :  { %1360 = vmatpush3.bf16.msra.mxu1 %v1436_v51  ;;  %1327 = vmatprep.subr.bf16.mxu0 %v1443_v55 }
  0x3b   :  { %690 = vmatmul.mubr.bf16.gmra.mrb[12].mxu0 %v1420_v52  ;;  %1353 = vmatprep.subr.bf16.mxu1 %v1443_v55 }
  0x3c   :  { %787 = vmatmul.mubr.bf16.gmra.mrb[12].mxu1 %v1421_v53  ;;  %697 = vmatprep.mubr.bf16.mxu0 %v1423_v54 }
  0x3d   :  { %794 = vmatprep.mubr.bf16.mxu1 %v1425_v56  ;;  %1328 = vmatpush3.bf16.msra.mxu0 %v1443_v55 }
  0x3e   :  { %1361 = vmatpush3.bf16.msra.mxu1 %v1443_v55  ;;  %1329 = vmatprep.subr.bf16.mxu0 %v1450_v57 }
  0x3f   :  { %1354 = vmatprep.subr.bf16.mxu1 %v1450_v57 }
  0x41   :  { %1330 = vmatpush3.bf16.msra.mxu0 %v1450_v57 }
  0x42   :  { %1362 = vmatpush3.bf16.msra.mxu1 %v1450_v57 }
  0x43   :  { %698 = vmatmul.mubr.bf16.gmra.mrb[16].mxu0 %v1427_v58 }
  0x44   :  { %795 = vmatmul.mubr.bf16.gmra.mrb[16].mxu1 %v1428_v59  ;;  %705 = vmatprep.mubr.bf16.mxu0 %v1430_v60 }
  0x45   :  { %802 = vmatprep.mubr.bf16.mxu1 %v1432_v61 }
  0x4b   :  { %706 = vmatmul.mubr.bf16.gmra.mrb[20].mxu0 %v1434_v62 }
  0x4c   :  { %803 = vmatmul.mubr.bf16.gmra.mrb[20].mxu1 %v1435_v63  ;;  %713 = vmatprep.mubr.bf16.mxu0 %v1437_v0 }
  0x4d   :  { %810 = vmatprep.mubr.bf16.mxu1 %v1439_v1 }
  0x53   :  { %714 = vmatmul.mubr.bf16.gmra.mrb[24].mxu0 %v1441_v2 }
  0x54   :  { %811 = vmatmul.mubr.bf16.gmra.mrb[24].mxu1 %v1442_v3  ;;  %721 = vmatprep.mubr.bf16.mxu0 %v1444_v4 }
  0x55   :  { %818 = vmatprep.mubr.bf16.mxu1 %v1446_v5 }
  0x5b   :  { %722 = vmatmul.mubr.bf16.gmra.mrb[28].mxu0 %v1448_v6 }
  0x5c   :  { %819 = vmatmul.mubr.bf16.gmra.mrb[28].mxu1 %v1449_v7  ;;  %1331 = vmatprep.mubr.bf16.mxu0 %v1451_v8 }
  0x5d   :  { %1339 = vmatprep.mubr.bf16.mxu1 %v1452_v9 }
  0x63   :  { %1332 = vmatmul.mubr.bf16.vlgmr.msra.gmra.mrb[32].mxu0 %v1453_v10 }
  0x64   :  { %1340 = vmatmul.mubr.bf16.vlgmr.msra.gmra.mrb[32].mxu1 %v1454_v11  ;;  %1335 = vmatprep.mubr.bf16.mxu0 %v1455_v12 }
  0x65   :  { %1343 = vmatprep.mubr.bf16.mxu1 %v1456_v13 }
  0x6b   :  { %1336 = vmatmul.mubr.bf16.gmra.mrb[36].mxu0 %v1457_v14 }
  0x6c   :  { %1344 = vmatmul.mubr.bf16.gmra.mrb[36].mxu1 %v1458_v15 }
  0xf6   :  { %v1187_v16 = vpop.f32.mrb[0].mxu0 }
  0xf7   :  { %v1251_v17 = vpop.f32.mrb[0].mxu1  ;;  %v1188_v18 = vpop.f32.mrb[1].mxu0 }
  0xf8   :  { %v1189_v19 = vadd.f32 %v1188_v18, %v1187_v16  ;;  %v1252_v20 = vpop.f32.mrb[1].mxu1  ;;  %v1190_v21 = vpop.f32.mrb[2].mxu0 }
  0xf9   :  { %v1253_v22 = vadd.f32 %v1252_v20, %v1251_v17  ;;  %v1254_v23 = vpop.f32.mrb[2].mxu1  ;;  %v1191_v24 = vpop.f32.mrb[3].mxu0 }
  0xfa   :  { %v1192_v25 = vadd.f32 %v1191_v24, %v1190_v21  ;;  %v1255_v26 = vpop.f32.mrb[3].mxu1 }
  0xfb   :  { %v1256_v27 = vadd.f32 %v1255_v26, %v1254_v23  ;;  %v1729_v28 = vadd.f32 %v1253_v22, %v1189_v19 }
  0xfd   :  { %v1731_v29 = vadd.f32 %v1256_v27, %v1192_v25 }
  0xfe   :  { %v1193_v30 = vpop.f32.mrb[4].mxu0 }
  0xff   :  { %v1257_v31 = vpop.f32.mrb[4].mxu1  ;;  %v1194_v32 = vpop.f32.mrb[5].mxu0 }
 0x100   :  { %v1195_v33 = vadd.f32 %v1194_v32, %v1193_v30  ;;  %v1258_v34 = vpop.f32.mrb[5].mxu1  ;;  %v1196_v35 = vpop.f32.mrb[6].mxu0 }
 0x101   :  { %v1259_v36 = vadd.f32 %v1258_v34, %v1257_v31  ;;  %v1260_v37 = vpop.f32.mrb[6].mxu1  ;;  %v1197_v38 = vpop.f32.mrb[7].mxu0 }
 0x102   :  { %v1198_v39 = vadd.f32 %v1197_v38, %v1196_v35  ;;  %v1261_v40 = vpop.f32.mrb[7].mxu1 }
 0x103   :  { %v1262_v41 = vadd.f32 %v1261_v40, %v1260_v37  ;;  %v1733_v42 = vadd.f32 %v1259_v36, %v1195_v33 }
 0x105   :  { %v1735_v43 = vadd.f32 %v1262_v41, %v1198_v39 }
 0x106   :  { %v1199_v44 = vpop.f32.mrb[8].mxu0 }
 0x107   :  { %v1263_v45 = vpop.f32.mrb[8].mxu1  ;;  %v1200_v46 = vpop.f32.mrb[9].mxu0 }
 0x108   :  { %v1201_v47 = vadd.f32 %v1200_v46, %v1199_v44  ;;  %v1264_v48 = vpop.f32.mrb[9].mxu1  ;;  %v1202_v49 = vpop.f32.mrb[10].mxu0 }
 0x109   :  { %v1265_v50 = vadd.f32 %v1264_v48, %v1263_v45  ;;  %v1266_v51 = vpop.f32.mrb[10].mxu1  ;;  %v1203_v52 = vpop.f32.mrb[11].mxu0 }
 0x10a   :  { %v1204_v53 = vadd.f32 %v1203_v52, %v1202_v49  ;;  %v1267_v54 = vpop.f32.mrb[11].mxu1 }
 0x10b   :  { %v1268_v55 = vadd.f32 %v1267_v54, %v1266_v51  ;;  %v1737_v56 = vadd.f32 %v1265_v50, %v1201_v47 }
 0x10d   :  { %v1739_v57 = vadd.f32 %v1268_v55, %v1204_v53 }
 0x10e   :  { %v1205_v58 = vpop.f32.mrb[12].mxu0 }
 0x10f   :  { %v1269_v59 = vpop.f32.mrb[12].mxu1  ;;  %v1206_v60 = vpop.f32.mrb[13].mxu0 }
 0x110   :  { %v1207_v61 = vadd.f32 %v1206_v60, %v1205_v58  ;;  %v1270_v62 = vpop.f32.mrb[13].mxu1  ;;  %v1208_v63 = vpop.f32.mrb[14].mxu0 }
 0x111   :  { %v1271_v0 = vadd.f32 %v1270_v62, %v1269_v59  ;;  %v1272_v1 = vpop.f32.mrb[14].mxu1  ;;  %v1209_v2 = vpop.f32.mrb[15].mxu0 }
 0x112   :  { %v1210_v3 = vadd.f32 %v1209_v2, %v1208_v63  ;;  %v1273_v4 = vpop.f32.mrb[15].mxu1 }
 0x113   :  { %v1274_v5 = vadd.f32 %v1273_v4, %v1272_v1  ;;  %v1741_v6 = vadd.f32 %v1271_v0, %v1207_v61 }
 0x115   :  { %v1743_v7 = vadd.f32 %v1274_v5, %v1210_v3 }
 0x116   :  { %v1211_v8 = vpop.f32.mrb[16].mxu0 }
 0x117   :  { %v1275_v9 = vpop.f32.mrb[16].mxu1  ;;  %v1212_v10 = vpop.f32.mrb[17].mxu0 }
 0x118   :  { %v1213_v11 = vadd.f32 %v1212_v10, %v1211_v8  ;;  %v1276_v12 = vpop.f32.mrb[17].mxu1  ;;  %v1214_v13 = vpop.f32.mrb[18].mxu0 }
 0x119   :  { %v1277_v14 = vadd.f32 %v1276_v12, %v1275_v9  ;;  %v1278_v15 = vpop.f32.mrb[18].mxu1  ;;  %v1215_v16 = vpop.f32.mrb[19].mxu0  ;;  %v1758_v9 = vld [vmem:[%s1908_s2] ss:$0 sm:$0xff] }
 0x11a   :  { %v1216_v17 = vadd.f32 %v1215_v16, %v1214_v13  ;;  %v1279_v18 = vpop.f32.mrb[19].mxu1  ;;  %v1764_v13 = vld [vmem:[%s1909_s3] ss:$0 sm:$0xff] }
 0x11b   :  { %v1280_v19 = vadd.f32 %v1279_v18, %v1278_v15  ;;  %v797_v20 = vadd.f32 %v1277_v14, %v1213_v11 }
 0x11d   :  { %v1745_v21 = vadd.f32 %v1280_v19, %v1216_v17 }
 0x11e   :  { %v1217_v22 = vpop.f32.mrb[20].mxu0 }
 0x11f   :  { %v1281_v23 = vpop.f32.mrb[20].mxu1  ;;  %v1218_v24 = vpop.f32.mrb[21].mxu0 }
 0x120   :  { %v1219_v25 = vadd.f32 %v1218_v24, %v1217_v22  ;;  %v1282_v26 = vpop.f32.mrb[21].mxu1  ;;  %v1220_v27 = vpop.f32.mrb[22].mxu0 }
 0x121   :  { %v1283_v30 = vadd.f32 %v1282_v26, %v1281_v23  ;;  %v1284_v31 = vpop.f32.mrb[22].mxu1  ;;  %v1221_v32 = vpop.f32.mrb[23].mxu0 }
 0x122   :  { %v1222_v33 = vadd.f32 %v1221_v32, %v1220_v27  ;;  %v1285_v34 = vpop.f32.mrb[23].mxu1 }
 0x123   :  { %v1286_v35 = vadd.f32 %v1285_v34, %v1284_v31  ;;  %v805_v36 = vadd.f32 %v1283_v30, %v1219_v25 }
 0x125   :  { %v808_v37 = vadd.f32 %v1286_v35, %v1222_v33 }
 0x126   :  { %v1223_v38 = vpop.f32.mrb[24].mxu0 }
 0x127   :  { %v1287_v39 = vpop.f32.mrb[24].mxu1  ;;  %v1224_v40 = vpop.f32.mrb[25].mxu0 }
 0x128   :  { %v1225_v41 = vadd.f32 %v1224_v40, %v1223_v38  ;;  %v1288_v44 = vpop.f32.mrb[25].mxu1  ;;  %v1226_v45 = vpop.f32.mrb[26].mxu0 }
 0x129   :  { %v1289_v46 = vadd.f32 %v1288_v44, %v1287_v39  ;;  %v1290_v47 = vpop.f32.mrb[26].mxu1  ;;  %v1227_v48 = vpop.f32.mrb[27].mxu0  ;;  %v1032_v44 = vld [vmem:[%s1910_s4 + $0x58] sm:$0xff] }
 0x12a   :  { %v1228_v49 = vadd.f32 %v1227_v48, %v1226_v45  ;;  %v1291_v50 = vpop.f32.mrb[27].mxu1  ;;  %v1022_v45 = vld [vmem:[%s1910_s4 + $0x8] sm:$0xff] }
 0x12b   :  { %v1292_v51 = vadd.f32 %v1291_v50, %v1290_v47  ;;  %v1747_v52 = vadd.f32 %v1289_v46, %v1225_v41 }
 0x12d   :  { %v1749_v53 = vadd.f32 %v1292_v51, %v1228_v49  ;;  %v1030_v51 = vld [vmem:[%s1910_s4 + $0x48] sm:$0xff] }
 0x12e   :  { %v1229_v54 = vpop.f32.mrb[28].mxu0 }
 0x12f   :  { %v1293_v55 = vpop.f32.mrb[28].mxu1  ;;  %v1230_v58 = vpop.f32.mrb[29].mxu0 }
 0x130   :  { %v1231_v59 = vadd.f32 %v1230_v58, %v1229_v54  ;;  %v1294_v60 = vpop.f32.mrb[29].mxu1  ;;  %v1232_v61 = vpop.f32.mrb[30].mxu0 }
 0x131   :  { %v1295_v62 = vadd.f32 %v1294_v60, %v1293_v55  ;;  %v1296_v63 = vpop.f32.mrb[30].mxu1  ;;  %v1233_v0 = vpop.f32.mrb[31].mxu0 }
 0x132   :  { %v1234_v1 = vadd.f32 %v1233_v0, %v1232_v61  ;;  %v1297_v2 = vpop.f32.mrb[31].mxu1 }
 0x133   :  { %v1298_v3 = vadd.f32 %v1297_v2, %v1296_v63  ;;  %v1751_v4 = vadd.f32 %v1295_v62, %v1231_v59 }
 0x135   :  { %v1753_v5 = vadd.f32 %v1298_v3, %v1234_v1 }
 0x136   :  { %v1333_v8 = vpop.f32.mrb[32].mxu0 }
 0x137   :  { %v870_v10 = vadd.f32 %v1333_v8, %v1733_v42  ;;  %v1341_v11 = vpop.f32.mrb[32].mxu1  ;;  %v861_v12 = vpop.f32.mrb[33].mxu0  ;;  %v1023_v42 = vld [vmem:[%s1910_s4 + $0x10] sm:$0xff] }
 0x138   :  { %v902_v14 = vadd.f32 %v1341_v11, %v805_v36  ;;  %v862_v15 = vadd.f32 %v861_v12, %v1729_v28  ;;  %v893_v16 = vpop.f32.mrb[33].mxu1  ;;  %v1334_v17 = vpop.f32.mrb[34].mxu0  ;;  %v1029_v36 = vld [vmem:[%s1910_s4 + $0x40] sm:$0xff] }
 0x139   :  { %v984_v18 = vmul.f32 %v1758_v9, %v870_v10  ;;  %v894_v19 = vadd.f32 %v893_v16, %v797_v20  ;;  %v873_v22 = vadd.f32 %v1334_v17, %v1735_v43  ;;  %v1342_v23 = vpop.f32.mrb[34].mxu1  ;;  %v864_v24 = vpop.f32.mrb[35].mxu0  ;;  %v1031_v43 = vld [vmem:[%s1910_s4 + $0x50] sm:$0xff]  ;;  %v1021_v20 = vld [vmem:[%s1910_s4] sm:$0xff] }
 0x13a   :  { %v992_v25 = vmul.f32 %v1758_v9, %v902_v14  ;;  %v982_v26 = vmul.f32 %v1758_v9, %v862_v15  ;;  %v905_v27 = vadd.f32 %v1342_v23, %v808_v37  ;;  %v865_v28 = vadd.f32 %v864_v24, %v1731_v29  ;;  %v896_v30 = vpop.f32.mrb[35].mxu1  ;;  %v1024_v37 = vld [vmem:[%s1910_s4 + $0x18] sm:$0xff] }
 0x13b   :  { %v1007_v31 = vadd.f32 %v1764_v13, %v984_v18  ;;  %v990_v32 = vmul.f32 %v1758_v9, %v894_v19  ;;  %v985_v33 = vmul.f32 %v1758_v9, %v873_v22  ;;  %v897_v34 = vadd.f32 %v896_v30, %v1745_v21  ;;  %v1025_v30 = vld [vmem:[%s1910_s4 + $0x20] sm:$0xff] }
 0x13c   :  { %v1015_v35 = vadd.f32 %v1764_v13, %v992_v25  ;;  %v1005_v29 = vadd.f32 %v1764_v13, %v982_v26  ;;  %v993_v38 = vmul.f32 %v1758_v9, %v905_v27  ;;  %v983_v39 = vmul.f32 %v1758_v9, %v865_v28  ;;  %v1035_v28 = vld [vmem:[%s1910_s4 + $0x70] sm:$0xff] }
 0x13d   :  { %v1039_v40 = vadd.f32 %v1023_v42, %v1007_v31  ;;  %v1013_v41 = vadd.f32 %v1764_v13, %v990_v32  ;;  %v1008_v21 = vadd.f32 %v1764_v13, %v985_v33  ;;  %v991_v46 = vmul.f32 %v1758_v9, %v897_v34  ;;  %v1033_v32 = vld [vmem:[%s1910_s4 + $0x60] sm:$0xff]  ;;  %v1028_v33 = vld [vmem:[%s1910_s4 + $0x38] sm:$0xff] }
 0x13e   :  { %v1047_v47 = vadd.f32 %v1031_v43, %v1015_v35  ;;  %v1037_v48 = vadd.f32 %v1021_v20, %v1005_v29  ;;  %v1016_v49 = vadd.f32 %v1764_v13, %v993_v38  ;;  %v1006_v50 = vadd.f32 %v1764_v13, %v983_v39  ;;  %v1337_v54 = vpop.f32.mrb[36].mxu0  ;;  %v1026_v38 = vld [vmem:[%s1910_s4 + $0x28] sm:$0xff] }
 0x13f   :  { %v1055_v55 = vmax.f32 %v1039_v40, 0.0  ;;  %v1045_v58 = vadd.f32 %v1029_v36, %v1013_v41  ;;  %v1040_v59 = vadd.f32 %v1024_v37, %v1008_v21  ;;  %v1014_v60 = vadd.f32 %v1764_v13, %v991_v46  ;;  %v1345_v61 = vpop.f32.mrb[36].mxu1  ;;  %v877_v62 = vpop.f32.mrb[37].mxu0  ;;  %v1036_v37 = vld [vmem:[%s1910_s4 + $0x78] sm:$0xff] }
 0x140   :  { %v1063_v63 = vmax.f32 %v1047_v47, 0.0  ;;  %v1053_v0 = vmax.f32 %v1037_v48, 0.0  ;;  %v1048_v1 = vadd.f32 %v1032_v44, %v1016_v49  ;;  %v1038_v2 = vadd.f32 %v1022_v45, %v1006_v50  ;;  %v909_v3 = vpop.f32.mrb[37].mxu1  ;;  %v1338_v8 = vpop.f32.mrb[38].mxu0  ;;  %v1034_v45 = vld [vmem:[%s1910_s4 + $0x68] sm:$0xff] }
 0x141   :  { %1071 = vst [vmem:[%s1911_s5 + $0x10] sm:$0xff] %v1055_v55  ;;  %v1061_v10 = vmax.f32 %v1045_v58, 0.0  ;;  %v1056_v11 = vmax.f32 %v1040_v59, 0.0  ;;  %v1046_v12 = vadd.f32 %v1030_v51, %v1014_v60  ;;  %v886_v14 = vadd.f32 %v1337_v54, %v1741_v6  ;;  %v1346_v15 = vpop.f32.mrb[38].mxu1  ;;  %v880_v16 = vpop.f32.mrb[39].mxu0 }
 0x142   :  { %1079 = vst [vmem:[%s1911_s5 + $0x50] sm:$0xff] %v1063_v63  ;;  %1069 = vst [vmem:[%s1911_s5] sm:$0xff] %v1053_v0  ;;  %v1064_v17 = vmax.f32 %v1048_v1, 0.0  ;;  %v1054_v18 = vmax.f32 %v1038_v2, 0.0  ;;  %v918_v19 = vadd.f32 %v1345_v61, %v1751_v4  ;;  %v878_v22 = vadd.f32 %v877_v62, %v1737_v56  ;;  %v912_v23 = vpop.f32.mrb[39].mxu1  ;;  %v1027_v56 = vld [vmem:[%s1910_s4 + $0x30] sm:$0xff] }
 0x143   :  { %1077 = vst [vmem:[%s1911_s5 + $0x40] sm:$0xff] %v1061_v10  ;;  %1072 = vst [vmem:[%s1911_s5 + $0x18] sm:$0xff] %v1056_v11  ;;  %v1062_v6 = vmax.f32 %v1046_v12, 0.0  ;;  %v988_v24 = vmul.f32 %v1758_v9, %v886_v14  ;;  %v910_v42 = vadd.f32 %v909_v3, %v1747_v52  ;;  %v889_v25 = vadd.f32 %v1338_v8, %v1743_v7 }
 0x144   :  { %1080 = vst [vmem:[%s1911_s5 + $0x58] sm:$0xff] %v1064_v17  ;;  %1070 = vst [vmem:[%s1911_s5 + $0x8] sm:$0xff] %v1054_v18  ;;  %v996_v4 = vmul.f32 %v1758_v9, %v918_v19  ;;  %v986_v26 = vmul.f32 %v1758_v9, %v878_v22  ;;  %v921_v52 = vadd.f32 %v1346_v15, %v1753_v5 }
 0x145   :  { %v881_v7 = vadd.f32 %v880_v16, %v1739_v57  ;;  %1078 = vst [vmem:[%s1911_s5 + $0x48] sm:$0xff] %v1062_v6  ;;  %v1011_v27 = vadd.f32 %v1764_v13, %v988_v24  ;;  %v994_v31 = vmul.f32 %v1758_v9, %v910_v42  ;;  %v989_v5 = vmul.f32 %v1758_v9, %v889_v25 }
 0x146   :  { %v913_v57 = vadd.f32 %v912_v23, %v1749_v53  ;;  %v1019_v43 = vadd.f32 %v1764_v13, %v996_v4  ;;  %v1009_v20 = vadd.f32 %v1764_v13, %v986_v26  ;;  %v997_v34 = vmul.f32 %v1758_v9, %v921_v52 }
 0x147   :  { %v987_v35 = vmul.f32 %v1758_v9, %v881_v7  ;;  %v1043_v29 = vadd.f32 %v1027_v56, %v1011_v27  ;;  %v1017_v36 = vadd.f32 %v1764_v13, %v994_v31  ;;  %v1012_v53 = vadd.f32 %v1764_v13, %v989_v5 }
 0x148   :  { %v995_v39 = vmul.f32 %v1758_v9, %v913_v57  ;;  %v1051_v40 = vadd.f32 %v1035_v28, %v1019_v43  ;;  %v1041_v41 = vadd.f32 %v1025_v30, %v1009_v20  ;;  %v1020_v21 = vadd.f32 %v1764_v13, %v997_v34 }
 0x149   :  { %v1010_v44 = vadd.f32 %v1764_v13, %v987_v35  ;;  %v1059_v46 = vmax.f32 %v1043_v29, 0.0  ;;  %v1049_v47 = vadd.f32 %v1033_v32, %v1017_v36  ;;  %v1044_v48 = vadd.f32 %v1028_v33, %v1012_v53 }
 0x14a   :  { %v1018_v49 = vadd.f32 %v1764_v13, %v995_v39  ;;  %v1067_v50 = vmax.f32 %v1051_v40, 0.0  ;;  %v1057_v51 = vmax.f32 %v1041_v41, 0.0  ;;  %v1052_v54 = vadd.f32 %v1036_v37, %v1020_v21 }
 0x14b   :  { %v1042_v55 = vadd.f32 %v1026_v38, %v1010_v44  ;;  %1075 = vst [vmem:[%s1911_s5 + $0x30] sm:$0xff] %v1059_v46  ;;  %v1065_v9 = vmax.f32 %v1049_v47, 0.0  ;;  %v1060_v58 = vmax.f32 %v1044_v48, 0.0 }
 0x14c   :  { %v1050_v59 = vadd.f32 %v1034_v45, %v1018_v49  ;;  %1083 = vst [vmem:[%s1911_s5 + $0x70] sm:$0xff] %v1067_v50  ;;  %1073 = vst [vmem:[%s1911_s5 + $0x20] sm:$0xff] %v1057_v51  ;;  %v1068_v13 = vmax.f32 %v1052_v54, 0.0 }
 0x14d   :  { %v1058_v60 = vmax.f32 %v1042_v55, 0.0  ;;  %1081 = vst [vmem:[%s1911_s5 + $0x60] sm:$0xff] %v1065_v9  ;;  %1076 = vst [vmem:[%s1911_s5 + $0x38] sm:$0xff] %v1060_v58 }
 0x14e   :  { %v1066_v61 = vmax.f32 %v1050_v59, 0.0  ;;  %1084 = vst [vmem:[%s1911_s5 + $0x78] sm:$0xff] %v1068_v13 }
 0x14f   :  { %1074 = vst [vmem:[%s1911_s5 + $0x28] sm:$0xff] %v1058_v60 }
 0x150   :  { %1082 = vst [vmem:[%s1911_s5 + $0x68] sm:$0xff] %v1066_v61 }

// kernel: resnet_forward.18
= control target key start
LH: loop header
LB: loop body
LE: loop exit
PB: predicated region body
PF: predicated region fallthrough
CT: control target
= control target key end

     0   :  { %s995_s1 = inlined_call_operand.vmem [shape: bf16[640,128], index: 1, kind: input, shape index: {}]   ;;  %s996_s0 = inlined_call_operand.vmem [shape: bf16[32,640], index: 0, kind: input, shape index: {}]   ;;  %s997_s2 = inlined_call_operand.vmem [shape: f32[1,128], index: 2, kind: input, shape index: {}]   ;;  %s998_s3 = inlined_call_operand.vmem [shape: f32[1,128], index: 3, kind: input, shape index: {}]   ;;  %s999_s4 = inlined_call_operand.vmem [shape: f32[32,128], index: 4, kind: output, shape index: {}]  }
   0x1   :  { %v748_v0 = vld [vmem:[%s995_s1 + $0x40] sm:$0xff]   ;;  %v752_v4 = vld [vmem:[%s995_s1 + $0x48] sm:$0xff]   ;;  %v756_v8 = vld [vmem:[%s995_s1 + $0x50] sm:$0xff]  }
   0x2   :  { %v749_v1 = vld [vmem:[%s995_s1 + $0xc0] sm:$0xff]   ;;  %662 = vmatprep.subr.bf16.mxu0 %v748_v0  ;;  %v753_v5 = vld [vmem:[%s995_s1 + $0xc8] sm:$0xff]   ;;  %v757_v9 = vld [vmem:[%s995_s1 + $0xd0] sm:$0xff]  }
   0x3   :  { %v750_v2 = vld [vmem:[%s995_s1] sm:$0xff]   ;;  %690 = vmatprep.subr.bf16.mxu1 %v749_v1  ;;  %v754_v6 = vld [vmem:[%s995_s1 + $0x8] sm:$0xff]   ;;  %v758_v10 = vld [vmem:[%s995_s1 + $0x10] sm:$0xff]  }
   0x4   :  { %v751_v3 = vld [vmem:[%s995_s1 + $0x80] sm:$0xff]   ;;  %663 = vmatpush3.bf16.msra.mxu0 %v750_v2  ;;  %v755_v7 = vld [vmem:[%s995_s1 + $0x88] sm:$0xff]   ;;  %v759_v11 = vld [vmem:[%s995_s1 + $0x90] sm:$0xff]  }
   0x5   :  { %691 = vmatpush3.bf16.msra.mxu1 %v751_v3  ;;  %664 = vmatprep.subr.bf16.mxu0 %v752_v4  ;;  %v760_v12 = vld [vmem:[%s995_s1 + $0x58] sm:$0xff]   ;;  %v764_v16 = vld [vmem:[%s995_s1 + $0x60] sm:$0xff]   ;;  %v768_v20 = vld [vmem:[%s995_s1 + $0x68] sm:$0xff]  }
   0x6   :  { %692 = vmatprep.subr.bf16.mxu1 %v753_v5  ;;  %v761_v13 = vld [vmem:[%s995_s1 + $0xd8] sm:$0xff]   ;;  %v765_v17 = vld [vmem:[%s995_s1 + $0xe0] sm:$0xff]   ;;  %v769_v21 = vld [vmem:[%s995_s1 + $0xe8] sm:$0xff]  }
   0x7   :  { %v762_v14 = vld [vmem:[%s995_s1 + $0x18] sm:$0xff]   ;;  %v766_v18 = vld [vmem:[%s995_s1 + $0x20] sm:$0xff]   ;;  %v770_v22 = vld [vmem:[%s995_s1 + $0x28] sm:$0xff]  }
   0x8   :  { %665 = vmatpush3.bf16.msra.mxu0 %v754_v6  ;;  %v763_v15 = vld [vmem:[%s995_s1 + $0x98] sm:$0xff]   ;;  %v767_v19 = vld [vmem:[%s995_s1 + $0xa0] sm:$0xff]   ;;  %v771_v23 = vld [vmem:[%s995_s1 + $0xa8] sm:$0xff]  }
   0x9   :  { %693 = vmatpush3.bf16.msra.mxu1 %v755_v7  ;;  %666 = vmatprep.subr.bf16.mxu0 %v756_v8  ;;  %v772_v24 = vld [vmem:[%s995_s1 + $0x70] sm:$0xff]   ;;  %v776_v28 = vld [vmem:[%s995_s1 + $0x78] sm:$0xff]   ;;  %v785_v35 = vld [vmem:[%s996_s0 + $0xc] ss:$20 sps:$4 sm:$0xff]  }
   0xa   :  { %694 = vmatprep.subr.bf16.mxu1 %v757_v9  ;;  %v773_v25 = vld [vmem:[%s995_s1 + $0xf0] sm:$0xff]   ;;  %v777_v29 = vld [vmem:[%s995_s1 + $0xf8] sm:$0xff]   ;;  %v786_v36 = vld [vmem:[%s995_s1 + $0x100] sm:$0xff]   ;;  %495 = vmatprep.mubr.bf16.mxu1 %v785_v35 }
   0xb   :  { %v774_v26 = vld [vmem:[%s995_s1 + $0x30] sm:$0xff]   ;;  %v778_v30 = vld [vmem:[%s995_s1 + $0x38] sm:$0xff]   ;;  %v787_v37 = vld [vmem:[%s995_s1 + $0x108] sm:$0xff]  }
   0xc   :  { %667 = vmatpush3.bf16.msra.mxu0 %v758_v10  ;;  %v775_v27 = vld [vmem:[%s995_s1 + $0xb0] sm:$0xff]   ;;  %v779_v31 = vld [vmem:[%s995_s1 + $0xb8] sm:$0xff]   ;;  %v791_v39 = vld [vmem:[%s996_s0 + $0x2c] ss:$20 sps:$4 sm:$0xff]  }
   0xd   :  { %695 = vmatpush3.bf16.msra.mxu1 %v759_v11  ;;  %668 = vmatprep.subr.bf16.mxu0 %v760_v12  ;;  %v780_v32 = vld [vmem:[%s996_s0] ss:$20 sps:$4 sm:$0xff]   ;;  %v782_v33 = vld [vmem:[%s996_s0 + $0x4] ss:$20 sps:$4 sm:$0xff]   ;;  %v783_v34 = vld [vmem:[%s996_s0 + $0x8] ss:$20 sps:$4 sm:$0xff]  }
   0xe   :  { %696 = vmatprep.subr.bf16.mxu1 %v761_v13  ;;  %446 = vmatprep.mubr.bf16.mxu0 %v782_v33  ;;  %v788_v38 = vld [vmem:[%s995_s1 + $0x110] sm:$0xff]   ;;  %v789_v41 = vld [vmem:[%s995_s1 + $0x118] sm:$0xff]   ;;  %v790_v45 = vld [vmem:[%s995_s1 + $0x120] sm:$0xff]  }
   0xf   :  { %v793_v40 = vld [vmem:[%s996_s0 + $0x34] ss:$20 sps:$4 sm:$0xff]   ;;  %v797_v43 = vld [vmem:[%s996_s0 + $0x30] ss:$20 sps:$4 sm:$0xff]   ;;  %v799_v48 = vld [vmem:[%s995_s1 + $0x138] sm:$0xff]  }
  0x10   :  { %669 = vmatpush3.bf16.msra.mxu0 %v762_v14  ;;  %v796_v42 = vld [vmem:[%s996_s0 + $0x28] ss:$20 sps:$4 sm:$0xff]   ;;  %v800_v44 = vld [vmem:[%s996_s0 + $0x10] ss:$20 sps:$4 sm:$0xff]   ;;  %v801_v49 = vld [vmem:[%s996_s0 + $0x38] ss:$20 sps:$4 sm:$0xff]  }
  0x11   :  { %697 = vmatpush3.bf16.msra.mxu1 %v763_v15  ;;  %670 = vmatprep.subr.bf16.mxu0 %v764_v16  ;;  %v795_v46 = vld [vmem:[%s995_s1 + $0x128] sm:$0xff]   ;;  %v798_v47 = vld [vmem:[%s995_s1 + $0x130] sm:$0xff]   ;;  %v660_v15 = vld [vmem:[%s997_s2] ss:$0 sm:$0xff] }
  0x12   :  { %698 = vmatprep.subr.bf16.mxu1 %v765_v17 }
  0x14   :  { %671 = vmatpush3.bf16.msra.mxu0 %v766_v18  ;;  %v661_v18 = vld [vmem:[%s998_s3] ss:$0 sm:$0xff] }
  0x15   :  { %699 = vmatpush3.bf16.msra.mxu1 %v767_v19  ;;  %672 = vmatprep.subr.bf16.mxu0 %v768_v20 }
  0x16   :  { %700 = vmatprep.subr.bf16.mxu1 %v769_v21 }
  0x18   :  { %673 = vmatpush3.bf16.msra.mxu0 %v770_v22 }
  0x19   :  { %701 = vmatpush3.bf16.msra.mxu1 %v771_v23  ;;  %674 = vmatprep.subr.bf16.mxu0 %v772_v24 }
  0x1a   :  { %702 = vmatprep.subr.bf16.mxu1 %v773_v25 }
  0x1c   :  { %675 = vmatpush3.bf16.msra.mxu0 %v774_v26 }
  0x1d   :  { %703 = vmatpush3.bf16.msra.mxu1 %v775_v27  ;;  %676 = vmatprep.subr.bf16.mxu0 %v776_v28 }
  0x1e   :  { %704 = vmatprep.subr.bf16.mxu1 %v777_v29 }
  0x20   :  { %677 = vmatpush3.bf16.msra.mxu0 %v778_v30 }
  0x21   :  { %705 = vmatpush3.bf16.msra.mxu1 %v779_v31  ;;  %728 = vmatprep.subr.bf16.mxu0 %v786_v36 }
  0x23   :  { %447 = vmatmul.mubr.bf16.vlgmr.msra.gmra.mrb[0].mxu0 %v780_v32 }
  0x24   :  { %496 = vmatmul.mubr.bf16.vlgmr.msra.gmra.mrb[0].mxu1 %v783_v34  ;;  %729 = vmatpush3.bf16.msra.mxu0 %v786_v36 }
  0x25   :  { %730 = vmatprep.subr.bf16.mxu0 %v787_v37  ;;  %454 = vmatprep.mubr.bf16.mxu0 %v791_v39 }
  0x26   :  { %503 = vmatprep.mubr.bf16.mxu1 %v793_v40 }
  0x28   :  { %731 = vmatpush3.bf16.msra.mxu0 %v787_v37 }
  0x29   :  { %732 = vmatprep.subr.bf16.mxu0 %v788_v38 }
  0x2b   :  { %455 = vmatmul.mubr.bf16.gmra.mrb[4].mxu0 %v796_v42 }
  0x2c   :  { %504 = vmatmul.mubr.bf16.gmra.mrb[4].mxu1 %v797_v43  ;;  %733 = vmatpush3.bf16.msra.mxu0 %v788_v38 }
  0x2d   :  { %734 = vmatprep.subr.bf16.mxu0 %v789_v41  ;;  %744 = vmatprep.mubr.bf16.mxu0 %v800_v44 }
  0x30   :  { %735 = vmatpush3.bf16.msra.mxu0 %v789_v41 }
  0x31   :  { %736 = vmatprep.subr.bf16.mxu0 %v790_v45 }
  0x34   :  { %737 = vmatpush3.bf16.msra.mxu0 %v790_v45 }
  0x35   :  { %738 = vmatprep.subr.bf16.mxu0 %v795_v46 }
  0x38   :  { %739 = vmatpush3.bf16.msra.mxu0 %v795_v46 }
  0x39   :  { %740 = vmatprep.subr.bf16.mxu0 %v798_v47 }
  0x3c   :  { %741 = vmatpush3.bf16.msra.mxu0 %v798_v47 }
  0x3d   :  { %742 = vmatprep.subr.bf16.mxu0 %v799_v48 }
  0x40   :  { %743 = vmatpush3.bf16.msra.mxu0 %v799_v48 }
  0x43   :  { %745 = vmatmul.mubr.bf16.vlgmr.msra.gmra.mrb[8].mxu0 %v801_v49 }
  0xf6   :  { %v678_v50 = vpop.f32.mrb[0].mxu0 }
  0xf7   :  { %v706_v51 = vpop.f32.mrb[0].mxu1  ;;  %v679_v52 = vpop.f32.mrb[1].mxu0 }
  0xf8   :  { %v680_v53 = vadd.f32 %v679_v52, %v678_v50  ;;  %v707_v54 = vpop.f32.mrb[1].mxu1  ;;  %v681_v55 = vpop.f32.mrb[2].mxu0 }
  0xf9   :  { %v708_v56 = vadd.f32 %v707_v54, %v706_v51  ;;  %v709_v57 = vpop.f32.mrb[2].mxu1  ;;  %v682_v58 = vpop.f32.mrb[3].mxu0 }
  0xfa   :  { %v683_v59 = vadd.f32 %v682_v58, %v681_v55  ;;  %v710_v60 = vpop.f32.mrb[3].mxu1 }
  0xfb   :  { %v711_v61 = vadd.f32 %v710_v60, %v709_v57  ;;  %v498_v62 = vadd.f32 %v708_v56, %v680_v53 }
  0xfd   :  { %v501_v63 = vadd.f32 %v711_v61, %v683_v59 }
  0xfe   :  { %v684_v0 = vpop.f32.mrb[4].mxu0 }
  0xff   :  { %v712_v1 = vpop.f32.mrb[4].mxu1  ;;  %v685_v2 = vpop.f32.mrb[5].mxu0 }
 0x100   :  { %v686_v3 = vadd.f32 %v685_v2, %v684_v0  ;;  %v713_v4 = vpop.f32.mrb[5].mxu1  ;;  %v687_v5 = vpop.f32.mrb[6].mxu0 }
 0x101   :  { %v714_v6 = vadd.f32 %v713_v4, %v712_v1  ;;  %v715_v7 = vpop.f32.mrb[6].mxu1  ;;  %v688_v8 = vpop.f32.mrb[7].mxu0 }
 0x102   :  { %v689_v9 = vadd.f32 %v688_v8, %v687_v5  ;;  %v716_v10 = vpop.f32.mrb[7].mxu1 }
 0x103   :  { %v717_v11 = vadd.f32 %v716_v10, %v715_v7  ;;  %v506_v12 = vadd.f32 %v714_v6, %v686_v3 }
 0x105   :  { %v509_v13 = vadd.f32 %v717_v11, %v689_v9 }
 0x116   :  { %v746_v14 = vpop.f32.mrb[8].mxu0 }
 0x117   :  { %v555_v16 = vadd.f32 %v746_v14, %v506_v12  ;;  %v546_v17 = vpop.f32.mrb[9].mxu0 }
 0x118   :  { %v547_v19 = vadd.f32 %v546_v17, %v498_v62  ;;  %v747_v20 = vpop.f32.mrb[10].mxu0 }
 0x119   :  { %v585_v21 = vmul.f32 %v660_v15, %v555_v16  ;;  %v558_v22 = vadd.f32 %v747_v20, %v509_v13  ;;  %v549_v23 = vpop.f32.mrb[11].mxu0 }
 0x11a   :  { %v583_v24 = vmul.f32 %v660_v15, %v547_v19  ;;  %v550_v25 = vadd.f32 %v549_v23, %v501_v63 }
 0x11b   :  { %v596_v26 = vadd.f32 %v661_v18, %v585_v21  ;;  %v586_v27 = vmul.f32 %v660_v15, %v558_v22 }
 0x11c   :  { %v594_v28 = vadd.f32 %v661_v18, %v583_v24  ;;  %v584_v29 = vmul.f32 %v660_v15, %v550_v25 }
 0x11d   :  { %v600_v30 = vmax.f32 %v596_v26, 0.0  ;;  %v597_v31 = vadd.f32 %v661_v18, %v586_v27 }
 0x11e   :  { %v598_v32 = vmax.f32 %v594_v28, 0.0  ;;  %v595_v33 = vadd.f32 %v661_v18, %v584_v29 }
 0x11f   :  { %604 = vst [vmem:[%s999_s4 + $0x10] sm:$0xff] %v600_v30  ;;  %v601_v34 = vmax.f32 %v597_v31, 0.0 }
 0x120   :  { %602 = vst [vmem:[%s999_s4] sm:$0xff] %v598_v32  ;;  %v599_v35 = vmax.f32 %v595_v33, 0.0 }
 0x121   :  { %605 = vst [vmem:[%s999_s4 + $0x18] sm:$0xff] %v601_v34 }
 0x122   :  { %603 = vst [vmem:[%s999_s4 + $0x8] sm:$0xff] %v599_v35 }

// kernel: resnet_forward.19
= control target key start
LH: loop header
LB: loop body
LE: loop exit
PB: predicated region body
PF: predicated region fallthrough
CT: control target
= control target key end

     0   :  { %s329_s1 = inlined_call_operand.vmem [shape: bf16[128,128], index: 1, kind: input, shape index: {}]   ;;  %s330_s0 = inlined_call_operand.vmem [shape: bf16[32,128], index: 0, kind: input, shape index: {}]   ;;  %s331_s2 = inlined_call_operand.vmem [shape: f32[1,128], index: 2, kind: input, shape index: {}]   ;;  %s332_s3 = inlined_call_operand.vmem [shape: f32[1,128], index: 3, kind: input, shape index: {}]   ;;  %s333_s4 = inlined_call_operand.vmem [shape: f32[32,128], index: 4, kind: output, shape index: {}]  }
   0x1   :  { %v246_v0 = vld [vmem:[%s329_s1] sm:$0xff]   ;;  %v247_v1 = vld [vmem:[%s329_s1 + $0x8] sm:$0xff]   ;;  %v248_v2 = vld [vmem:[%s329_s1 + $0x10] sm:$0xff]  }
   0x2   :  { %226 = vmatprep.subr.bf16.mxu0 %v246_v0  ;;  %v249_v3 = vld [vmem:[%s329_s1 + $0x18] sm:$0xff]   ;;  %v254_v4 = vld [vmem:[%s330_s0] sm:$0xff]   ;;  %v251_v6 = vld [vmem:[%s329_s1 + $0x28] sm:$0xff]  }
   0x3   :  { %227 = vmatpush3.bf16.msra.mxu0 %v246_v0  ;;  %242 = vmatprep.mubr.bf16.mxu0 %v254_v4  ;;  %v250_v5 = vld [vmem:[%s329_s1 + $0x20] sm:$0xff]   ;;  %v252_v7 = vld [vmem:[%s329_s1 + $0x30] sm:$0xff]   ;;  %v253_v8 = vld [vmem:[%s329_s1 + $0x38] sm:$0xff]  }
   0x4   :  { %228 = vmatprep.subr.bf16.mxu0 %v247_v1  ;;  %v255_v9 = vld [vmem:[%s330_s0 + $0x8] sm:$0xff]   ;;  %v214_v10 = vld [vmem:[%s331_s2] ss:$0 sm:$0xff] }
   0x5   :  { %v215_v12 = vld [vmem:[%s332_s3] ss:$0 sm:$0xff] }
   0x7   :  { %229 = vmatpush3.bf16.msra.mxu0 %v247_v1 }
   0x8   :  { %230 = vmatprep.subr.bf16.mxu0 %v248_v2 }
   0xb   :  { %231 = vmatpush3.bf16.msra.mxu0 %v248_v2 }
   0xc   :  { %232 = vmatprep.subr.bf16.mxu0 %v249_v3 }
   0xf   :  { %233 = vmatpush3.bf16.msra.mxu0 %v249_v3 }
  0x10   :  { %234 = vmatprep.subr.bf16.mxu0 %v250_v5 }
  0x13   :  { %235 = vmatpush3.bf16.msra.mxu0 %v250_v5 }
  0x14   :  { %236 = vmatprep.subr.bf16.mxu0 %v251_v6 }
  0x17   :  { %237 = vmatpush3.bf16.msra.mxu0 %v251_v6 }
  0x18   :  { %238 = vmatprep.subr.bf16.mxu0 %v252_v7 }
  0x1b   :  { %239 = vmatpush3.bf16.msra.mxu0 %v252_v7 }
  0x1c   :  { %240 = vmatprep.subr.bf16.mxu0 %v253_v8 }
  0x1f   :  { %241 = vmatpush3.bf16.msra.mxu0 %v253_v8 }
  0x22   :  { %243 = vmatmul.mubr.bf16.vlgmr.msra.gmra.mrb[0].mxu0 %v255_v9 }
  0xf5   :  { %v244_v11 = vpop.f32.mrb[0].mxu0 }
  0xf6   :  { %v183_v13 = vmul.f32 %v244_v11, %v214_v10  ;;  %v144_v14 = vpop.f32.mrb[1].mxu0 }
  0xf7   :  { %v181_v15 = vmul.f32 %v214_v10, %v144_v14  ;;  %v245_v16 = vpop.f32.mrb[2].mxu0 }
  0xf8   :  { %v194_v17 = vadd.f32 %v215_v12, %v183_v13  ;;  %v184_v18 = vmul.f32 %v245_v16, %v214_v10  ;;  %v147_v19 = vpop.f32.mrb[3].mxu0 }
  0xf9   :  { %v192_v20 = vadd.f32 %v215_v12, %v181_v15  ;;  %v182_v21 = vmul.f32 %v214_v10, %v147_v19 }
  0xfa   :  { %198 = vst [vmem:[%s333_s4 + $0x10] sm:$0xff] %v194_v17  ;;  %v195_v22 = vadd.f32 %v215_v12, %v184_v18 }
  0xfb   :  { %196 = vst [vmem:[%s333_s4] sm:$0xff] %v192_v20  ;;  %v193_v23 = vadd.f32 %v215_v12, %v182_v21 }
  0xfc   :  { %199 = vst [vmem:[%s333_s4 + $0x18] sm:$0xff] %v195_v22 }
  0xfd   :  { %197 = vst [vmem:[%s333_s4 + $0x8] sm:$0xff] %v193_v23 }

// kernel: resnet_forward.20
= control target key start
LH: loop header
LB: loop body
LE: loop exit
PB: predicated region body
PF: predicated region fallthrough
CT: control target
= control target key end

     0   :  { %s1685_s1 = inlined_call_operand.vmem [shape: bf16[1152,128], index: 1, kind: input, shape index: {}]   ;;  %s1686_s0 = inlined_call_operand.vmem [shape: bf16[32,1152], index: 0, kind: input, shape index: {}]   ;;  %s1687_s2 = inlined_call_operand.vmem [shape: f32[1,128], index: 2, kind: input, shape index: {}]   ;;  %s1688_s3 = inlined_call_operand.vmem [shape: f32[1,128], index: 3, kind: input, shape index: {}]   ;;  %s1689_s4 = inlined_call_operand.vmem [shape: f32[32,128], index: 4, kind: input, shape index: {}]   ;;  %s1690_s5 = inlined_call_operand.vmem [shape: f32[32,128], index: 5, kind: output, shape index: {}]  }
   0x1   :  { %v1257_v0 = vld [vmem:[%s1685_s1 + $0x40] sm:$0xff]   ;;  %v1261_v4 = vld [vmem:[%s1685_s1 + $0x48] sm:$0xff]   ;;  %v1265_v8 = vld [vmem:[%s1685_s1 + $0x50] sm:$0xff]  }
   0x2   :  { %v1258_v1 = vld [vmem:[%s1685_s1 + $0xc0] sm:$0xff]   ;;  %1115 = vmatprep.subr.bf16.mxu0 %v1257_v0  ;;  %v1262_v5 = vld [vmem:[%s1685_s1 + $0xc8] sm:$0xff]   ;;  %v1266_v9 = vld [vmem:[%s1685_s1 + $0xd0] sm:$0xff]  }
   0x3   :  { %v1259_v2 = vld [vmem:[%s1685_s1] sm:$0xff]   ;;  %1143 = vmatprep.subr.bf16.mxu1 %v1258_v1  ;;  %v1263_v6 = vld [vmem:[%s1685_s1 + $0x8] sm:$0xff]   ;;  %v1267_v10 = vld [vmem:[%s1685_s1 + $0x10] sm:$0xff]  }
   0x4   :  { %v1260_v3 = vld [vmem:[%s1685_s1 + $0x80] sm:$0xff]   ;;  %1116 = vmatpush3.bf16.msra.mxu0 %v1259_v2  ;;  %v1264_v7 = vld [vmem:[%s1685_s1 + $0x88] sm:$0xff]   ;;  %v1268_v11 = vld [vmem:[%s1685_s1 + $0x90] sm:$0xff]  }
   0x5   :  { %1144 = vmatpush3.bf16.msra.mxu1 %v1260_v3  ;;  %1117 = vmatprep.subr.bf16.mxu0 %v1261_v4  ;;  %v1269_v12 = vld [vmem:[%s1685_s1 + $0x58] sm:$0xff]   ;;  %v1273_v16 = vld [vmem:[%s1685_s1 + $0x60] sm:$0xff]   ;;  %v1277_v20 = vld [vmem:[%s1685_s1 + $0x68] sm:$0xff]  }
   0x6   :  { %1145 = vmatprep.subr.bf16.mxu1 %v1262_v5  ;;  %v1270_v13 = vld [vmem:[%s1685_s1 + $0xd8] sm:$0xff]   ;;  %v1274_v17 = vld [vmem:[%s1685_s1 + $0xe0] sm:$0xff]   ;;  %v1278_v21 = vld [vmem:[%s1685_s1 + $0xe8] sm:$0xff]  }
   0x7   :  { %v1271_v14 = vld [vmem:[%s1685_s1 + $0x18] sm:$0xff]   ;;  %v1275_v18 = vld [vmem:[%s1685_s1 + $0x20] sm:$0xff]   ;;  %v1279_v22 = vld [vmem:[%s1685_s1 + $0x28] sm:$0xff]  }
   0x8   :  { %1118 = vmatpush3.bf16.msra.mxu0 %v1263_v6  ;;  %v1272_v15 = vld [vmem:[%s1685_s1 + $0x98] sm:$0xff]   ;;  %v1276_v19 = vld [vmem:[%s1685_s1 + $0xa0] sm:$0xff]   ;;  %v1280_v23 = vld [vmem:[%s1685_s1 + $0xa8] sm:$0xff]  }
   0x9   :  { %1146 = vmatpush3.bf16.msra.mxu1 %v1264_v7  ;;  %1119 = vmatprep.subr.bf16.mxu0 %v1265_v8  ;;  %v1281_v24 = vld [vmem:[%s1685_s1 + $0x70] sm:$0xff]   ;;  %v1285_v28 = vld [vmem:[%s1685_s1 + $0x78] sm:$0xff]   ;;  %v1289_v32 = vld [vmem:[%s1686_s0] ss:$36 sps:$4 sm:$0xff]  }
   0xa   :  { %1147 = vmatprep.subr.bf16.mxu1 %v1266_v9  ;;  %v1282_v25 = vld [vmem:[%s1685_s1 + $0xf0] sm:$0xff]   ;;  %v1286_v29 = vld [vmem:[%s1685_s1 + $0xf8] sm:$0xff]   ;;  %v1291_v33 = vld [vmem:[%s1686_s0 + $0x4] ss:$36 sps:$4 sm:$0xff]  }
   0xb   :  { %v1283_v26 = vld [vmem:[%s1685_s1 + $0x30] sm:$0xff]   ;;  %v1287_v30 = vld [vmem:[%s1685_s1 + $0x38] sm:$0xff]   ;;  %v1292_v34 = vld [vmem:[%s1686_s0 + $0x8] ss:$36 sps:$4 sm:$0xff]   ;;  %753 = vmatprep.mubr.bf16.mxu0 %v1291_v33 }
   0xc   :  { %1120 = vmatpush3.bf16.msra.mxu0 %v1267_v10  ;;  %v1284_v27 = vld [vmem:[%s1685_s1 + $0xb0] sm:$0xff]   ;;  %v1288_v31 = vld [vmem:[%s1685_s1 + $0xb8] sm:$0xff]   ;;  %v1295_v36 = vld [vmem:[%s1685_s1 + $0x140] sm:$0xff]  }
   0xd   :  { %1148 = vmatpush3.bf16.msra.mxu1 %v1268_v11  ;;  %1121 = vmatprep.subr.bf16.mxu0 %v1269_v12  ;;  %v1294_v35 = vld [vmem:[%s1686_s0 + $0xc] ss:$36 sps:$4 sm:$0xff]   ;;  %v1296_v37 = vld [vmem:[%s1685_s1 + $0x100] sm:$0xff]   ;;  %v1307_v48 = vld [vmem:[%s1685_s1 + $0x158] sm:$0xff]  }
   0xe   :  { %1149 = vmatprep.subr.bf16.mxu1 %v1270_v13  ;;  %802 = vmatprep.mubr.bf16.mxu1 %v1294_v35  ;;  %v1297_v38 = vld [vmem:[%s1685_s1 + $0x1c0] sm:$0xff]   ;;  %v1299_v40 = vld [vmem:[%s1685_s1 + $0x148] sm:$0xff]   ;;  %v1303_v44 = vld [vmem:[%s1685_s1 + $0x150] sm:$0xff]  }
   0xf   :  { %v1298_v39 = vld [vmem:[%s1685_s1 + $0x180] sm:$0xff]   ;;  %v1300_v41 = vld [vmem:[%s1685_s1 + $0x108] sm:$0xff]   ;;  %v1304_v45 = vld [vmem:[%s1685_s1 + $0x110] sm:$0xff]  }
  0x10   :  { %1122 = vmatpush3.bf16.msra.mxu0 %v1271_v14  ;;  %v1301_v42 = vld [vmem:[%s1685_s1 + $0x1c8] sm:$0xff]   ;;  %v1305_v46 = vld [vmem:[%s1685_s1 + $0x1d0] sm:$0xff]   ;;  %v1308_v49 = vld [vmem:[%s1685_s1 + $0x118] sm:$0xff]  }
  0x11   :  { %1150 = vmatpush3.bf16.msra.mxu1 %v1272_v15  ;;  %1123 = vmatprep.subr.bf16.mxu0 %v1273_v16  ;;  %v1302_v43 = vld [vmem:[%s1685_s1 + $0x188] sm:$0xff]   ;;  %v1306_v47 = vld [vmem:[%s1685_s1 + $0x190] sm:$0xff]   ;;  %v1309_v50 = vld [vmem:[%s1685_s1 + $0x1d8] sm:$0xff]  }
  0x12   :  { %1151 = vmatprep.subr.bf16.mxu1 %v1274_v17  ;;  %v1310_v51 = vld [vmem:[%s1685_s1 + $0x198] sm:$0xff]   ;;  %v1311_v52 = vld [vmem:[%s1685_s1 + $0x160] sm:$0xff]   ;;  %v1315_v56 = vld [vmem:[%s1685_s1 + $0x168] sm:$0xff]  }
  0x13   :  { %v1312_v53 = vld [vmem:[%s1685_s1 + $0x120] sm:$0xff]   ;;  %v1316_v57 = vld [vmem:[%s1686_s0 + $0x4c] ss:$36 sps:$4 sm:$0xff]   ;;  %v1318_v58 = vld [vmem:[%s1686_s0 + $0x54] ss:$36 sps:$4 sm:$0xff]  }
  0x14   :  { %1124 = vmatpush3.bf16.msra.mxu0 %v1275_v18  ;;  %v1313_v54 = vld [vmem:[%s1685_s1 + $0x1e0] sm:$0xff]   ;;  %v1320_v59 = vld [vmem:[%s1685_s1 + $0x128] sm:$0xff]   ;;  %v1322_v61 = vld [vmem:[%s1686_s0 + $0x50] ss:$36 sps:$4 sm:$0xff]  }
  0x15   :  { %1152 = vmatpush3.bf16.msra.mxu1 %v1276_v19  ;;  %1125 = vmatprep.subr.bf16.mxu0 %v1277_v20  ;;  %v1314_v55 = vld [vmem:[%s1685_s1 + $0x1a0] sm:$0xff]   ;;  %v1321_v60 = vld [vmem:[%s1686_s0 + $0x48] ss:$36 sps:$4 sm:$0xff]   ;;  %v1325_v0 = vld [vmem:[%s1685_s1 + $0x170] sm:$0xff]  }
  0x16   :  { %1153 = vmatprep.subr.bf16.mxu1 %v1278_v21  ;;  %v1323_v62 = vld [vmem:[%s1685_s1 + $0x1e8] sm:$0xff]   ;;  %v1326_v1 = vld [vmem:[%s1685_s1 + $0x130] sm:$0xff]   ;;  %v1329_v4 = vld [vmem:[%s1685_s1 + $0x178] sm:$0xff]  }
  0x17   :  { %v1324_v63 = vld [vmem:[%s1685_s1 + $0x1a8] sm:$0xff]   ;;  %v1327_v2 = vld [vmem:[%s1685_s1 + $0x1f0] sm:$0xff]   ;;  %v1330_v5 = vld [vmem:[%s1685_s1 + $0x138] sm:$0xff]  }
  0x18   :  { %1126 = vmatpush3.bf16.msra.mxu0 %v1279_v22  ;;  %v1328_v3 = vld [vmem:[%s1685_s1 + $0x1b0] sm:$0xff]   ;;  %v1331_v6 = vld [vmem:[%s1685_s1 + $0x1f8] sm:$0xff]   ;;  %v1336_v10 = vld [vmem:[%s1685_s1 + $0x200] sm:$0xff]  }
  0x19   :  { %1154 = vmatpush3.bf16.msra.mxu1 %v1280_v23  ;;  %1127 = vmatprep.subr.bf16.mxu0 %v1281_v24  ;;  %v1332_v7 = vld [vmem:[%s1686_s0 + $0x10] ss:$36 sps:$4 sm:$0xff]   ;;  %v1335_v9 = vld [vmem:[%s1685_s1 + $0x1b8] sm:$0xff]   ;;  %v1340_v13 = vld [vmem:[%s1685_s1 + $0x208] sm:$0xff]  }
  0x1a   :  { %1155 = vmatprep.subr.bf16.mxu1 %v1282_v25  ;;  %v1334_v8 = vld [vmem:[%s1686_s0 + $0x14] ss:$36 sps:$4 sm:$0xff]   ;;  %v1339_v12 = vld [vmem:[%s1686_s0 + $0x1c] ss:$36 sps:$4 sm:$0xff]   ;;  %v1345_v17 = vld [vmem:[%s1686_s0 + $0x64] ss:$36 sps:$4 sm:$0xff]  }
  0x1b   :  { %v1337_v11 = vld [vmem:[%s1686_s0 + $0x18] ss:$36 sps:$4 sm:$0xff]   ;;  %v1344_v16 = vld [vmem:[%s1685_s1 + $0x210] sm:$0xff]   ;;  %v1347_v18 = vld [vmem:[%s1686_s0 + $0x60] ss:$36 sps:$4 sm:$0xff]  }
  0x1c   :  { %1128 = vmatpush3.bf16.msra.mxu0 %v1283_v26  ;;  %v1341_v14 = vld [vmem:[%s1686_s0 + $0x5c] ss:$36 sps:$4 sm:$0xff]   ;;  %v1350_v22 = vld [vmem:[%s1685_s1 + $0x228] sm:$0xff]   ;;  %v1351_v23 = vld [vmem:[%s1685_s1 + $0x230] sm:$0xff]  }
  0x1d   :  { %1156 = vmatpush3.bf16.msra.mxu1 %v1284_v27  ;;  %1129 = vmatprep.subr.bf16.mxu0 %v1285_v28  ;;  %v1343_v15 = vld [vmem:[%s1686_s0 + $0x58] ss:$36 sps:$4 sm:$0xff]   ;;  %v1349_v20 = vld [vmem:[%s1685_s1 + $0x220] sm:$0xff]   ;;  %v1354_v25 = vld [vmem:[%s1686_s0 + $0x68] ss:$36 sps:$4 sm:$0xff]  }
  0x1e   :  { %1157 = vmatprep.subr.bf16.mxu1 %v1286_v29  ;;  %v1348_v19 = vld [vmem:[%s1685_s1 + $0x218] sm:$0xff]   ;;  %v1353_v21 = vld [vmem:[%s1686_s0 + $0x20] ss:$36 sps:$4 sm:$0xff]  }
  0x1f   :  { %v1352_v24 = vld [vmem:[%s1685_s1 + $0x238] sm:$0xff]  }
  0x20   :  { %1130 = vmatpush3.bf16.msra.mxu0 %v1287_v30 }
  0x21   :  { %1158 = vmatpush3.bf16.msra.mxu1 %v1288_v31  ;;  %1171 = vmatprep.subr.bf16.mxu0 %v1295_v36 }
  0x22   :  { %1199 = vmatprep.subr.bf16.mxu1 %v1297_v38 }
  0x23   :  { %754 = vmatmul.mubr.bf16.vlgmr.msra.gmra.mrb[0].mxu0 %v1289_v32 }
  0x24   :  { %803 = vmatmul.mubr.bf16.vlgmr.msra.gmra.mrb[0].mxu1 %v1292_v34  ;;  %1172 = vmatpush3.bf16.msra.mxu0 %v1296_v37 }
  0x25   :  { %1200 = vmatpush3.bf16.msra.mxu1 %v1298_v39  ;;  %1173 = vmatprep.subr.bf16.mxu0 %v1299_v40 }
  0x26   :  { %1201 = vmatprep.subr.bf16.mxu1 %v1301_v42  ;;  %761 = vmatprep.mubr.bf16.mxu0 %v1316_v57 }
  0x27   :  { %810 = vmatprep.mubr.bf16.mxu1 %v1318_v58 }
  0x28   :  { %1174 = vmatpush3.bf16.msra.mxu0 %v1300_v41 }
  0x29   :  { %1202 = vmatpush3.bf16.msra.mxu1 %v1302_v43  ;;  %1175 = vmatprep.subr.bf16.mxu0 %v1303_v44 }
  0x2a   :  { %1203 = vmatprep.subr.bf16.mxu1 %v1305_v46 }
  0x2b   :  { %762 = vmatmul.mubr.bf16.gmra.mrb[4].mxu0 %v1321_v60 }
  0x2c   :  { %1176 = vmatpush3.bf16.msra.mxu0 %v1304_v45  ;;  %811 = vmatmul.mubr.bf16.gmra.mrb[4].mxu1 %v1322_v61 }
  0x2d   :  { %1204 = vmatpush3.bf16.msra.mxu1 %v1306_v47  ;;  %1177 = vmatprep.subr.bf16.mxu0 %v1307_v48 }
  0x2e   :  { %1205 = vmatprep.subr.bf16.mxu1 %v1309_v50  ;;  %851 = vmatprep.mubr.bf16.mxu0 %v1334_v8 }
  0x2f   :  { %900 = vmatprep.mubr.bf16.mxu1 %v1339_v12 }
  0x30   :  { %1178 = vmatpush3.bf16.msra.mxu0 %v1308_v49 }
  0x31   :  { %1206 = vmatpush3.bf16.msra.mxu1 %v1310_v51  ;;  %1179 = vmatprep.subr.bf16.mxu0 %v1311_v52 }
  0x32   :  { %1207 = vmatprep.subr.bf16.mxu1 %v1313_v54 }
  0x34   :  { %1180 = vmatpush3.bf16.msra.mxu0 %v1312_v53 }
  0x35   :  { %1208 = vmatpush3.bf16.msra.mxu1 %v1314_v55  ;;  %1181 = vmatprep.subr.bf16.mxu0 %v1315_v56 }
  0x36   :  { %1209 = vmatprep.subr.bf16.mxu1 %v1323_v62 }
  0x38   :  { %1182 = vmatpush3.bf16.msra.mxu0 %v1320_v59 }
  0x39   :  { %1210 = vmatpush3.bf16.msra.mxu1 %v1324_v63  ;;  %1183 = vmatprep.subr.bf16.mxu0 %v1325_v0 }
  0x3a   :  { %1211 = vmatprep.subr.bf16.mxu1 %v1327_v2 }
  0x3c   :  { %1184 = vmatpush3.bf16.msra.mxu0 %v1326_v1 }
  0x3d   :  { %1212 = vmatpush3.bf16.msra.mxu1 %v1328_v3  ;;  %1185 = vmatprep.subr.bf16.mxu0 %v1329_v4 }
  0x3e   :  { %1213 = vmatprep.subr.bf16.mxu1 %v1331_v6 }
  0x40   :  { %1186 = vmatpush3.bf16.msra.mxu0 %v1330_v5 }
  0x41   :  { %1214 = vmatpush3.bf16.msra.mxu1 %v1335_v9  ;;  %1237 = vmatprep.subr.bf16.mxu0 %v1336_v10 }
  0x43   :  { %852 = vmatmul.mubr.bf16.vlgmr.msra.gmra.mrb[8].mxu0 %v1332_v7 }
  0x44   :  { %1238 = vmatpush3.bf16.msra.mxu0 %v1336_v10  ;;  %901 = vmatmul.mubr.bf16.vlgmr.msra.gmra.mrb[8].mxu1 %v1337_v11 }
  0x45   :  { %1239 = vmatprep.subr.bf16.mxu0 %v1340_v13  ;;  %859 = vmatprep.mubr.bf16.mxu0 %v1341_v14 }
  0x46   :  { %908 = vmatprep.mubr.bf16.mxu1 %v1345_v17 }
  0x48   :  { %1240 = vmatpush3.bf16.msra.mxu0 %v1340_v13 }
  0x49   :  { %1241 = vmatprep.subr.bf16.mxu0 %v1344_v16 }
  0x4b   :  { %860 = vmatmul.mubr.bf16.gmra.mrb[12].mxu0 %v1343_v15 }
  0x4c   :  { %1242 = vmatpush3.bf16.msra.mxu0 %v1344_v16  ;;  %909 = vmatmul.mubr.bf16.gmra.mrb[12].mxu1 %v1347_v18 }
  0x4d   :  { %1243 = vmatprep.subr.bf16.mxu0 %v1348_v19  ;;  %1253 = vmatprep.mubr.bf16.mxu0 %v1353_v21 }
  0x50   :  { %1244 = vmatpush3.bf16.msra.mxu0 %v1348_v19 }
  0x51   :  { %1245 = vmatprep.subr.bf16.mxu0 %v1349_v20 }
  0x54   :  { %1246 = vmatpush3.bf16.msra.mxu0 %v1349_v20 }
  0x55   :  { %1247 = vmatprep.subr.bf16.mxu0 %v1350_v22 }
  0x58   :  { %1248 = vmatpush3.bf16.msra.mxu0 %v1350_v22 }
  0x59   :  { %1249 = vmatprep.subr.bf16.mxu0 %v1351_v23 }
  0x5c   :  { %1250 = vmatpush3.bf16.msra.mxu0 %v1351_v23  ;;  %v1113_v23 = vld [vmem:[%s1687_s2] ss:$0 sm:$0xff] }
  0x5d   :  { %1251 = vmatprep.subr.bf16.mxu0 %v1352_v24 }
  0x60   :  { %1252 = vmatpush3.bf16.msra.mxu0 %v1352_v24 }
  0x63   :  { %1254 = vmatmul.mubr.bf16.vlgmr.msra.gmra.mrb[16].mxu0 %v1354_v25 }
  0xf6   :  { %v1131_v26 = vpop.f32.mrb[0].mxu0 }
  0xf7   :  { %v1159_v27 = vpop.f32.mrb[0].mxu1  ;;  %v1132_v28 = vpop.f32.mrb[1].mxu0 }
  0xf8   :  { %v1133_v29 = vadd.f32 %v1132_v28, %v1131_v26  ;;  %v1160_v30 = vpop.f32.mrb[1].mxu1  ;;  %v1134_v31 = vpop.f32.mrb[2].mxu0  ;;  %v1114_v26 = vld [vmem:[%s1688_s3] ss:$0 sm:$0xff] }
  0xf9   :  { %v1161_v32 = vadd.f32 %v1160_v30, %v1159_v27  ;;  %v1162_v33 = vpop.f32.mrb[2].mxu1  ;;  %v1135_v34 = vpop.f32.mrb[3].mxu0 }
  0xfa   :  { %v1136_v35 = vadd.f32 %v1135_v34, %v1134_v31  ;;  %v1163_v36 = vpop.f32.mrb[3].mxu1 }
  0xfb   :  { %v805_v37 = vadd.f32 %v1161_v32, %v1133_v29  ;;  %v1164_v38 = vadd.f32 %v1163_v36, %v1162_v33  ;;  %v1005_v32 = vld [vmem:[%s1689_s4 + $0x10] sm:$0xff]  ;;  %v1003_v36 = vld [vmem:[%s1689_s4] sm:$0xff] }
  0xfd   :  { %v808_v39 = vadd.f32 %v1164_v38, %v1136_v35 }
  0xfe   :  { %v1137_v40 = vpop.f32.mrb[4].mxu0 }
  0xff   :  { %v1165_v41 = vpop.f32.mrb[4].mxu1  ;;  %v1138_v42 = vpop.f32.mrb[5].mxu0 }
 0x100   :  { %v1166_v43 = vpop.f32.mrb[5].mxu1  ;;  %v1139_v44 = vadd.f32 %v1138_v42, %v1137_v40  ;;  %v1140_v46 = vpop.f32.mrb[6].mxu0 }
 0x101   :  { %v1167_v45 = vadd.f32 %v1166_v43, %v1165_v41  ;;  %v1168_v47 = vpop.f32.mrb[6].mxu1  ;;  %v1141_v48 = vpop.f32.mrb[7].mxu0  ;;  %v1004_v43 = vld [vmem:[%s1689_s4 + $0x8] sm:$0xff] }
 0x102   :  { %v1169_v49 = vpop.f32.mrb[7].mxu1  ;;  %v1142_v51 = vadd.f32 %v1141_v48, %v1140_v46 }
 0x103   :  { %v813_v50 = vadd.f32 %v1167_v45, %v1139_v44  ;;  %v1170_v52 = vadd.f32 %v1169_v49, %v1168_v47 }
 0x105   :  { %v816_v53 = vadd.f32 %v1170_v52, %v1142_v51 }
 0x116   :  { %v1187_v54 = vpop.f32.mrb[8].mxu0 }
 0x117   :  { %v1188_v55 = vpop.f32.mrb[9].mxu0  ;;  %v1215_v58 = vpop.f32.mrb[8].mxu1 }
 0x118   :  { %v1189_v56 = vadd.f32 %v1188_v55, %v1187_v54  ;;  %v1190_v57 = vpop.f32.mrb[10].mxu0  ;;  %v1216_v62 = vpop.f32.mrb[9].mxu1 }
 0x119   :  { %v1191_v59 = vpop.f32.mrb[11].mxu0  ;;  %v1217_v63 = vadd.f32 %v1216_v62, %v1215_v58  ;;  %v1218_v0 = vpop.f32.mrb[10].mxu1 }
 0x11a   :  { %v854_v60 = vadd.f32 %v1189_v56, %v805_v37  ;;  %v1192_v61 = vadd.f32 %v1191_v59, %v1190_v57  ;;  %v1219_v2 = vpop.f32.mrb[11].mxu1 }
 0x11b   :  { %v1220_v3 = vadd.f32 %v1219_v2, %v1218_v0 }
 0x11c   :  { %v857_v1 = vadd.f32 %v1192_v61, %v808_v39  ;;  %v903_v4 = vadd.f32 %v1217_v63, %v854_v60  ;;  %v1006_v39 = vld [vmem:[%s1689_s4 + $0x18] sm:$0xff] }
 0x11e   :  { %v1193_v5 = vpop.f32.mrb[12].mxu0  ;;  %v906_v7 = vadd.f32 %v1220_v3, %v857_v1 }
 0x11f   :  { %v1194_v6 = vpop.f32.mrb[13].mxu0  ;;  %v1221_v10 = vpop.f32.mrb[12].mxu1 }
 0x120   :  { %v1195_v8 = vadd.f32 %v1194_v6, %v1193_v5  ;;  %v1196_v9 = vpop.f32.mrb[14].mxu0  ;;  %v1222_v14 = vpop.f32.mrb[13].mxu1 }
 0x121   :  { %v1197_v11 = vpop.f32.mrb[15].mxu0  ;;  %v1223_v15 = vadd.f32 %v1222_v14, %v1221_v10  ;;  %v1224_v16 = vpop.f32.mrb[14].mxu1 }
 0x122   :  { %v862_v12 = vadd.f32 %v1195_v8, %v813_v50  ;;  %v1198_v13 = vadd.f32 %v1197_v11, %v1196_v9  ;;  %v1225_v18 = vpop.f32.mrb[15].mxu1 }
 0x123   :  { %v1226_v19 = vadd.f32 %v1225_v18, %v1224_v16 }
 0x124   :  { %v865_v17 = vadd.f32 %v1198_v13, %v816_v53  ;;  %v911_v20 = vadd.f32 %v1223_v15, %v862_v12 }
 0x126   :  { %v914_v21 = vadd.f32 %v1226_v19, %v865_v17 }
 0x136   :  { %v1255_v22 = vpop.f32.mrb[16].mxu0 }
 0x137   :  { %v960_v24 = vadd.f32 %v1255_v22, %v911_v20  ;;  %v951_v25 = vpop.f32.mrb[17].mxu0 }
 0x138   :  { %v952_v27 = vadd.f32 %v951_v25, %v903_v4  ;;  %v1256_v28 = vpop.f32.mrb[18].mxu0 }
 0x139   :  { %v990_v29 = vmul.f32 %v1113_v23, %v960_v24  ;;  %v963_v30 = vadd.f32 %v1256_v28, %v914_v21  ;;  %v954_v31 = vpop.f32.mrb[19].mxu0 }
 0x13a   :  { %v988_v33 = vmul.f32 %v1113_v23, %v952_v27  ;;  %v955_v34 = vadd.f32 %v954_v31, %v906_v7 }
 0x13b   :  { %v1001_v35 = vadd.f32 %v1114_v26, %v990_v29  ;;  %v991_v37 = vmul.f32 %v1113_v23, %v963_v30 }
 0x13c   :  { %v999_v38 = vadd.f32 %v1114_v26, %v988_v33  ;;  %v989_v40 = vmul.f32 %v1113_v23, %v955_v34 }
 0x13d   :  { %v1009_v41 = vadd.f32 %v1005_v32, %v1001_v35  ;;  %v1002_v42 = vadd.f32 %v1114_v26, %v991_v37 }
 0x13e   :  { %v1007_v44 = vadd.f32 %v1003_v36, %v999_v38  ;;  %v1000_v45 = vadd.f32 %v1114_v26, %v989_v40 }
 0x13f   :  { %v1013_v46 = vmax.f32 %v1009_v41, 0.0  ;;  %v1010_v47 = vadd.f32 %v1006_v39, %v1002_v42 }
 0x140   :  { %v1011_v48 = vmax.f32 %v1007_v44, 0.0  ;;  %v1008_v49 = vadd.f32 %v1004_v43, %v1000_v45 }
 0x141   :  { %1017 = vst [vmem:[%s1690_s5 + $0x10] sm:$0xff] %v1013_v46  ;;  %v1014_v50 = vmax.f32 %v1010_v47, 0.0 }
 0x142   :  { %1015 = vst [vmem:[%s1690_s5] sm:$0xff] %v1011_v48  ;;  %v1012_v51 = vmax.f32 %v1008_v49, 0.0 }
 0x143   :  { %1018 = vst [vmem:[%s1690_s5 + $0x18] sm:$0xff] %v1014_v50 }
 0x144   :  { %1016 = vst [vmem:[%s1690_s5 + $0x8] sm:$0xff] %v1012_v51 }

// kernel: resnet_forward.21
= control target key start
LH: loop header
LB: loop body
LE: loop exit
PB: predicated region body
PF: predicated region fallthrough
CT: control target
= control target key end

     0   :  { %s2067_s1 = inlined_call_operand.vmem [shape: bf16[1152,256], index: 1, kind: input, shape index: {}]   ;;  %s2068_s0 = inlined_call_operand.vmem [shape: bf16[8,1152], index: 0, kind: input, shape index: {}]   ;;  %s2069_s2 = inlined_call_operand.vmem [shape: f32[1,256], index: 2, kind: input, shape index: {}]   ;;  %s2070_s3 = inlined_call_operand.vmem [shape: f32[1,256], index: 3, kind: input, shape index: {}]   ;;  %s2071_s4 = inlined_call_operand.vmem [shape: f32[8,256], index: 4, kind: output, shape index: {}]  }
   0x1   :  { %v1345_v0 = vld [vmem:[%s2067_s1 + $0x4] ss:$8 sps:$4 sm:$0xff]   ;;  %v1349_v2 = vld [vmem:[%s2067_s1] ss:$8 sps:$4 sm:$0xff]   ;;  %v1351_v4 = vld [vmem:[%s2067_s1 + $0x14] ss:$8 sps:$4 sm:$0xff]  }
   0x2   :  { %v1347_v1 = vld [vmem:[%s2067_s1 + $0x204] ss:$8 sps:$4 sm:$0xff]   ;;  %927 = vmatprep.subr.bf16.mxu1 %v1345_v0  ;;  %v1350_v3 = vld [vmem:[%s2067_s1 + $0x200] ss:$8 sps:$4 sm:$0xff]   ;;  %v1353_v5 = vld [vmem:[%s2067_s1 + $0x214] ss:$8 sps:$4 sm:$0xff]  }
   0x3   :  { %1009 = vmatprep.subr.bf16.mxu0 %v1347_v1  ;;  %928 = vmatpush1.bf16.msra.mxu1 %v1349_v2  ;;  %v1355_v6 = vld [vmem:[%s2067_s1 + $0x10] ss:$8 sps:$4 sm:$0xff]   ;;  %v1357_v8 = vld [vmem:[%s2067_s1 + $0x24] ss:$8 sps:$4 sm:$0xff]   ;;  %v1361_v10 = vld [vmem:[%s2067_s1 + $0x20] ss:$8 sps:$4 sm:$0xff]  }
   0x4   :  { %1010 = vmatpush1.bf16.msra.mxu0 %v1350_v3  ;;  %929 = vmatprep.subr.bf16.mxu1 %v1351_v4  ;;  %v1356_v7 = vld [vmem:[%s2067_s1 + $0x210] ss:$8 sps:$4 sm:$0xff]   ;;  %v1359_v9 = vld [vmem:[%s2067_s1 + $0x224] ss:$8 sps:$4 sm:$0xff]   ;;  %v1362_v11 = vld [vmem:[%s2067_s1 + $0x220] ss:$8 sps:$4 sm:$0xff]  }
   0x5   :  { %1011 = vmatprep.subr.bf16.mxu0 %v1353_v5  ;;  %v1363_v12 = vld [vmem:[%s2067_s1 + $0x34] ss:$8 sps:$4 sm:$0xff]   ;;  %v1367_v14 = vld [vmem:[%s2067_s1 + $0x30] ss:$8 sps:$4 sm:$0xff]   ;;  %v1369_v16 = vld [vmem:[%s2067_s1 + $0x44] ss:$8 sps:$4 sm:$0xff]  }
   0x6   :  { %v1365_v13 = vld [vmem:[%s2067_s1 + $0x234] ss:$8 sps:$4 sm:$0xff]   ;;  %v1368_v15 = vld [vmem:[%s2067_s1 + $0x230] ss:$8 sps:$4 sm:$0xff]   ;;  %v1371_v17 = vld [vmem:[%s2067_s1 + $0x244] ss:$8 sps:$4 sm:$0xff]  }
   0x7   :  { %930 = vmatpush1.bf16.msra.mxu1 %v1355_v6  ;;  %v1373_v18 = vld [vmem:[%s2067_s1 + $0x40] ss:$8 sps:$4 sm:$0xff]   ;;  %v1375_v20 = vld [vmem:[%s2067_s1 + $0x54] ss:$8 sps:$4 sm:$0xff]   ;;  %v1379_v22 = vld [vmem:[%s2067_s1 + $0x50] ss:$8 sps:$4 sm:$0xff]  }
   0x8   :  { %1012 = vmatpush1.bf16.msra.mxu0 %v1356_v7  ;;  %931 = vmatprep.subr.bf16.mxu1 %v1357_v8  ;;  %v1374_v19 = vld [vmem:[%s2067_s1 + $0x240] ss:$8 sps:$4 sm:$0xff]   ;;  %v1377_v21 = vld [vmem:[%s2067_s1 + $0x254] ss:$8 sps:$4 sm:$0xff]   ;;  %v1380_v23 = vld [vmem:[%s2067_s1 + $0x250] ss:$8 sps:$4 sm:$0xff]  }
   0x9   :  { %1013 = vmatprep.subr.bf16.mxu0 %v1359_v9  ;;  %v1381_v24 = vld [vmem:[%s2067_s1 + $0x64] ss:$8 sps:$4 sm:$0xff]   ;;  %v1385_v26 = vld [vmem:[%s2067_s1 + $0x60] ss:$8 sps:$4 sm:$0xff]   ;;  %v1387_v28 = vld [vmem:[%s2067_s1 + $0x74] ss:$8 sps:$4 sm:$0xff]  }
   0xa   :  { %v1383_v25 = vld [vmem:[%s2067_s1 + $0x264] ss:$8 sps:$4 sm:$0xff]   ;;  %v1386_v27 = vld [vmem:[%s2067_s1 + $0x260] ss:$8 sps:$4 sm:$0xff]   ;;  %v1389_v29 = vld [vmem:[%s2067_s1 + $0x274] ss:$8 sps:$4 sm:$0xff]  }
   0xb   :  { %932 = vmatpush1.bf16.msra.mxu1 %v1361_v10  ;;  %v1391_v30 = vld [vmem:[%s2067_s1 + $0x70] ss:$8 sps:$4 sm:$0xff]   ;;  %v1393_v32 = vld [vmem:[%s2067_s1 + $0x84] ss:$8 sps:$4 sm:$0xff]   ;;  %v1397_v34 = vld [vmem:[%s2067_s1 + $0x80] ss:$8 sps:$4 sm:$0xff]  }
   0xc   :  { %1014 = vmatpush1.bf16.msra.mxu0 %v1362_v11  ;;  %933 = vmatprep.subr.bf16.mxu1 %v1363_v12  ;;  %v1392_v31 = vld [vmem:[%s2067_s1 + $0x270] ss:$8 sps:$4 sm:$0xff]   ;;  %v1395_v33 = vld [vmem:[%s2067_s1 + $0x284] ss:$8 sps:$4 sm:$0xff]   ;;  %v1398_v35 = vld [vmem:[%s2067_s1 + $0x280] ss:$8 sps:$4 sm:$0xff]  }
   0xd   :  { %1015 = vmatprep.subr.bf16.mxu0 %v1365_v13  ;;  %v1399_v36 = vld [vmem:[%s2067_s1 + $0x94] ss:$8 sps:$4 sm:$0xff]   ;;  %v1403_v38 = vld [vmem:[%s2067_s1 + $0x90] ss:$8 sps:$4 sm:$0xff]   ;;  %v1405_v40 = vld [vmem:[%s2067_s1 + $0xa4] ss:$8 sps:$4 sm:$0xff]  }
   0xe   :  { %v1401_v37 = vld [vmem:[%s2067_s1 + $0x294] ss:$8 sps:$4 sm:$0xff]   ;;  %v1404_v39 = vld [vmem:[%s2067_s1 + $0x290] ss:$8 sps:$4 sm:$0xff]   ;;  %v1407_v41 = vld [vmem:[%s2067_s1 + $0x2a4] ss:$8 sps:$4 sm:$0xff]  }
   0xf   :  { %934 = vmatpush1.bf16.msra.mxu1 %v1367_v14  ;;  %v1409_v42 = vld [vmem:[%s2067_s1 + $0xa0] ss:$8 sps:$4 sm:$0xff]   ;;  %v1411_v44 = vld [vmem:[%s2067_s1 + $0xb4] ss:$8 sps:$4 sm:$0xff]   ;;  %v1415_v47 = vld [vmem:[%s2067_s1 + $0xb0] ss:$8 sps:$4 sm:$0xff]  }
  0x10   :  { %1016 = vmatpush1.bf16.msra.mxu0 %v1368_v15  ;;  %935 = vmatprep.subr.bf16.mxu1 %v1369_v16  ;;  %v1410_v43 = vld [vmem:[%s2067_s1 + $0x2a0] ss:$8 sps:$4 sm:$0xff]   ;;  %v1413_v45 = vld [vmem:[%s2067_s1 + $0x2b4] ss:$8 sps:$4 sm:$0xff]   ;;  %v1416_v49 = vld [vmem:[%s2067_s1 + $0x2b0] ss:$8 sps:$4 sm:$0xff]  }
  0x11   :  { %1017 = vmatprep.subr.bf16.mxu0 %v1371_v17  ;;  %v26_v46 = vld [vmem:[%s2068_s0] sm:$0xff]  ;;  %v28_v50 = vld [vmem:[%s2068_s0 + $0x10] sm:$0xff] }
  0x12   :  { %v1178_v48 = vcombine.high %v26_v46, %v26_v46  ;;  %v1417_v51 = vld [vmem:[%s2067_s1 + $0xc4] ss:$8 sps:$4 sm:$0xff]   ;;  %v1182_v53 = vcombine.high %v28_v50, %v28_v50  ;;  %v1421_v54 = vld [vmem:[%s2067_s1 + $0xc0] ss:$8 sps:$4 sm:$0xff]   ;;  %v1423_v56 = vld [vmem:[%s2067_s1 + $0xd4] ss:$8 sps:$4 sm:$0xff]   ;;  %v1177_v6 = vcombine.low %v26_v46, %v26_v46  ;;  %v1181_v7 = vcombine.low %v28_v50, %v28_v50 }
  0x13   :  { %936 = vmatpush1.bf16.msra.mxu1 %v1373_v18  ;;  %v1419_v52 = vld [vmem:[%s2067_s1 + $0x2c4] ss:$8 sps:$4 sm:$0xff]   ;;  %v1422_v55 = vld [vmem:[%s2067_s1 + $0x2c0] ss:$8 sps:$4 sm:$0xff]   ;;  %v1425_v57 = vld [vmem:[%s2067_s1 + $0x2d4] ss:$8 sps:$4 sm:$0xff]  }
  0x14   :  { %1018 = vmatpush1.bf16.msra.mxu0 %v1374_v19  ;;  %937 = vmatprep.subr.bf16.mxu1 %v1375_v20  ;;  %v1427_v58 = vld [vmem:[%s2067_s1 + $0xd0] ss:$8 sps:$4 sm:$0xff]   ;;  %v1429_v60 = vld [vmem:[%s2067_s1 + $0xe4] ss:$8 sps:$4 sm:$0xff]   ;;  %v1433_v62 = vld [vmem:[%s2067_s1 + $0xe0] ss:$8 sps:$4 sm:$0xff]  }
  0x15   :  { %1019 = vmatprep.subr.bf16.mxu0 %v1377_v21  ;;  %959 = vmatprep.mubr.bf16.mxu1 %v1178_v48  ;;  %v1428_v59 = vld [vmem:[%s2067_s1 + $0x2d0] ss:$8 sps:$4 sm:$0xff]   ;;  %v1431_v61 = vld [vmem:[%s2067_s1 + $0x2e4] ss:$8 sps:$4 sm:$0xff]   ;;  %v1434_v63 = vld [vmem:[%s2067_s1 + $0x2e0] ss:$8 sps:$4 sm:$0xff]  }
  0x16   :  { %1041 = vmatprep.mubr.bf16.mxu0 %v1182_v53  ;;  %v1435_v0 = vld [vmem:[%s2067_s1 + $0xf4] ss:$8 sps:$4 sm:$0xff]   ;;  %v1439_v2 = vld [vmem:[%s2067_s1 + $0xf0] ss:$8 sps:$4 sm:$0xff]   ;;  %v1445_v4 = vld [vmem:[%s2067_s1 + $0x104] ss:$8 sps:$4 sm:$0xff]  }
  0x17   :  { %938 = vmatpush1.bf16.msra.mxu1 %v1379_v22  ;;  %v1437_v1 = vld [vmem:[%s2067_s1 + $0x2f4] ss:$8 sps:$4 sm:$0xff]   ;;  %v1440_v3 = vld [vmem:[%s2067_s1 + $0x2f0] ss:$8 sps:$4 sm:$0xff]   ;;  %v1450_v5 = vld [vmem:[%s2067_s1 + $0x304] ss:$8 sps:$4 sm:$0xff]  }
  0x18   :  { %1020 = vmatpush1.bf16.msra.mxu0 %v1380_v23  ;;  %939 = vmatprep.subr.bf16.mxu1 %v1381_v24  ;;  %v1443_v8 = vld [vmem:[%s2067_s1 + $0x100] ss:$8 sps:$4 sm:$0xff]   ;;  %v1453_v10 = vld [vmem:[%s2067_s1 + $0x114] ss:$8 sps:$4 sm:$0xff]   ;;  %v1451_v12 = vld [vmem:[%s2067_s1 + $0x110] ss:$8 sps:$4 sm:$0xff]  }
  0x19   :  { %1021 = vmatprep.subr.bf16.mxu0 %v1383_v25  ;;  %v1448_v9 = vld [vmem:[%s2067_s1 + $0x300] ss:$8 sps:$4 sm:$0xff]   ;;  %v1456_v11 = vld [vmem:[%s2067_s1 + $0x314] ss:$8 sps:$4 sm:$0xff]   ;;  %v1454_v13 = vld [vmem:[%s2067_s1 + $0x310] ss:$8 sps:$4 sm:$0xff]  }
  0x1a   :  { %v1459_v14 = vld [vmem:[%s2067_s1 + $0x124] ss:$8 sps:$4 sm:$0xff]   ;;  %v1457_v16 = vld [vmem:[%s2067_s1 + $0x120] ss:$8 sps:$4 sm:$0xff]   ;;  %v1465_v18 = vld [vmem:[%s2067_s1 + $0x134] ss:$8 sps:$4 sm:$0xff]  }
  0x1b   :  { %940 = vmatpush1.bf16.msra.mxu1 %v1385_v26  ;;  %v1462_v15 = vld [vmem:[%s2067_s1 + $0x324] ss:$8 sps:$4 sm:$0xff]   ;;  %v1460_v17 = vld [vmem:[%s2067_s1 + $0x320] ss:$8 sps:$4 sm:$0xff]   ;;  %v1468_v19 = vld [vmem:[%s2067_s1 + $0x334] ss:$8 sps:$4 sm:$0xff]  }
  0x1c   :  { %1022 = vmatpush1.bf16.msra.mxu0 %v1386_v27  ;;  %941 = vmatprep.subr.bf16.mxu1 %v1387_v28  ;;  %v1463_v20 = vld [vmem:[%s2067_s1 + $0x130] ss:$8 sps:$4 sm:$0xff]   ;;  %v1471_v22 = vld [vmem:[%s2067_s1 + $0x144] ss:$8 sps:$4 sm:$0xff]   ;;  %v1469_v24 = vld [vmem:[%s2067_s1 + $0x140] ss:$8 sps:$4 sm:$0xff]  }
  0x1d   :  { %1023 = vmatprep.subr.bf16.mxu0 %v1389_v29  ;;  %v1466_v21 = vld [vmem:[%s2067_s1 + $0x330] ss:$8 sps:$4 sm:$0xff]   ;;  %v1474_v23 = vld [vmem:[%s2067_s1 + $0x344] ss:$8 sps:$4 sm:$0xff]   ;;  %v1472_v25 = vld [vmem:[%s2067_s1 + $0x340] ss:$8 sps:$4 sm:$0xff]  }
  0x1e   :  { %v1477_v26 = vld [vmem:[%s2067_s1 + $0x154] ss:$8 sps:$4 sm:$0xff]   ;;  %v1475_v28 = vld [vmem:[%s2067_s1 + $0x150] ss:$8 sps:$4 sm:$0xff]   ;;  %v1507_v50 = vld [vmem:[%s2067_s1 + $0x1a4] ss:$8 sps:$4 sm:$0xff]  }
  0x1f   :  { %942 = vmatpush1.bf16.msra.mxu1 %v1391_v30  ;;  %v1480_v27 = vld [vmem:[%s2067_s1 + $0x354] ss:$8 sps:$4 sm:$0xff]   ;;  %v1478_v29 = vld [vmem:[%s2067_s1 + $0x350] ss:$8 sps:$4 sm:$0xff]   ;;  %v1483_v30 = vld [vmem:[%s2067_s1 + $0x164] ss:$8 sps:$4 sm:$0xff]  }
  0x20   :  { %1024 = vmatpush1.bf16.msra.mxu0 %v1392_v31  ;;  %943 = vmatprep.subr.bf16.mxu1 %v1393_v32  ;;  %v1486_v31 = vld [vmem:[%s2067_s1 + $0x364] ss:$8 sps:$4 sm:$0xff]   ;;  %v1501_v46 = vld [vmem:[%s2067_s1 + $0x194] ss:$8 sps:$4 sm:$0xff]   ;;  %v1499_v48 = vld [vmem:[%s2067_s1 + $0x190] ss:$8 sps:$4 sm:$0xff]  }
  0x21   :  { %1025 = vmatprep.subr.bf16.mxu0 %v1395_v33  ;;  %v1875_v32 = vld [vmem:[%s2068_s0 + $0x8] sm:$0xff]  ;;  %v1880_v33 = vld [vmem:[%s2068_s0 + $0x18] sm:$0xff] }
  0x22   :  { %v1508_v53 = vld [vmem:[%s2067_s1 + $0x3a0] ss:$8 sps:$4 sm:$0xff]  }
  0x23   :  { %944 = vmatpush1.bf16.msra.mxu1 %v1397_v34  ;;  %v1481_v34 = vld [vmem:[%s2067_s1 + $0x160] ss:$8 sps:$4 sm:$0xff]  }
  0x24   :  { %1026 = vmatpush1.bf16.msra.mxu0 %v1398_v35  ;;  %945 = vmatprep.subr.bf16.mxu1 %v1399_v36  ;;  %v1484_v35 = vld [vmem:[%s2067_s1 + $0x360] ss:$8 sps:$4 sm:$0xff]   ;;  %v1180_v36 = vcombine.high %v1875_v32, %v1875_v32 }
  0x25   :  { %1027 = vmatprep.subr.bf16.mxu0 %v1401_v37  ;;  %v1184_v37 = vcombine.high %v1880_v33, %v1880_v33 }
  0x27   :  { %946 = vmatpush1.bf16.msra.mxu1 %v1403_v38  ;;  %v1489_v38 = vld [vmem:[%s2067_s1 + $0x174] ss:$8 sps:$4 sm:$0xff]  }
  0x28   :  { %1028 = vmatpush1.bf16.msra.mxu0 %v1404_v39  ;;  %947 = vmatprep.subr.bf16.mxu1 %v1405_v40  ;;  %v1492_v39 = vld [vmem:[%s2067_s1 + $0x374] ss:$8 sps:$4 sm:$0xff]   ;;  %v1487_v40 = vld [vmem:[%s2067_s1 + $0x170] ss:$8 sps:$4 sm:$0xff]  }
  0x29   :  { %1029 = vmatprep.subr.bf16.mxu0 %v1407_v41  ;;  %v1490_v41 = vld [vmem:[%s2067_s1 + $0x370] ss:$8 sps:$4 sm:$0xff]  }
  0x2b   :  { %948 = vmatpush1.bf16.msra.mxu1 %v1409_v42  ;;  %v1495_v42 = vld [vmem:[%s2067_s1 + $0x184] ss:$8 sps:$4 sm:$0xff]  }
  0x2c   :  { %1030 = vmatpush1.bf16.msra.mxu0 %v1410_v43  ;;  %949 = vmatprep.subr.bf16.mxu1 %v1411_v44  ;;  %v1498_v43 = vld [vmem:[%s2067_s1 + $0x384] ss:$8 sps:$4 sm:$0xff]   ;;  %v1493_v44 = vld [vmem:[%s2067_s1 + $0x180] ss:$8 sps:$4 sm:$0xff]  }
  0x2d   :  { %1031 = vmatprep.subr.bf16.mxu0 %v1413_v45  ;;  %v1496_v45 = vld [vmem:[%s2067_s1 + $0x380] ss:$8 sps:$4 sm:$0xff]  }
  0x2f   :  { %950 = vmatpush1.bf16.msra.mxu1 %v1415_v47  ;;  %v1504_v47 = vld [vmem:[%s2067_s1 + $0x394] ss:$8 sps:$4 sm:$0xff]  }
  0x30   :  { %1032 = vmatpush1.bf16.msra.mxu0 %v1416_v49  ;;  %951 = vmatprep.subr.bf16.mxu1 %v1417_v51  ;;  %v1502_v49 = vld [vmem:[%s2067_s1 + $0x390] ss:$8 sps:$4 sm:$0xff]   ;;  %v1510_v51 = vld [vmem:[%s2067_s1 + $0x3a4] ss:$8 sps:$4 sm:$0xff]  }
  0x31   :  { %1033 = vmatprep.subr.bf16.mxu0 %v1419_v52  ;;  %v1505_v52 = vld [vmem:[%s2067_s1 + $0x1a0] ss:$8 sps:$4 sm:$0xff]  }
  0x33   :  { %952 = vmatpush1.bf16.msra.mxu1 %v1421_v54  ;;  %v1513_v54 = vld [vmem:[%s2067_s1 + $0x1b4] ss:$8 sps:$4 sm:$0xff]  }
  0x34   :  { %1034 = vmatpush1.bf16.msra.mxu0 %v1422_v55  ;;  %953 = vmatprep.subr.bf16.mxu1 %v1423_v56  ;;  %v1516_v55 = vld [vmem:[%s2067_s1 + $0x3b4] ss:$8 sps:$4 sm:$0xff]   ;;  %v1511_v56 = vld [vmem:[%s2067_s1 + $0x1b0] ss:$8 sps:$4 sm:$0xff]  }
  0x35   :  { %1035 = vmatprep.subr.bf16.mxu0 %v1425_v57  ;;  %v1514_v57 = vld [vmem:[%s2067_s1 + $0x3b0] ss:$8 sps:$4 sm:$0xff]  }
  0x37   :  { %954 = vmatpush1.bf16.msra.mxu1 %v1427_v58  ;;  %v1519_v58 = vld [vmem:[%s2067_s1 + $0x1c4] ss:$8 sps:$4 sm:$0xff]  }
  0x38   :  { %1036 = vmatpush1.bf16.msra.mxu0 %v1428_v59  ;;  %955 = vmatprep.subr.bf16.mxu1 %v1429_v60  ;;  %v1522_v59 = vld [vmem:[%s2067_s1 + $0x3c4] ss:$8 sps:$4 sm:$0xff]   ;;  %v1517_v60 = vld [vmem:[%s2067_s1 + $0x1c0] ss:$8 sps:$4 sm:$0xff]  }
  0x39   :  { %1037 = vmatprep.subr.bf16.mxu0 %v1431_v61  ;;  %v1520_v61 = vld [vmem:[%s2067_s1 + $0x3c0] ss:$8 sps:$4 sm:$0xff]  }
  0x3b   :  { %956 = vmatpush1.bf16.msra.mxu1 %v1433_v62  ;;  %v1525_v62 = vld [vmem:[%s2067_s1 + $0x1d4] ss:$8 sps:$4 sm:$0xff]  }
  0x3c   :  { %1038 = vmatpush1.bf16.msra.mxu0 %v1434_v63  ;;  %957 = vmatprep.subr.bf16.mxu1 %v1435_v0  ;;  %v1528_v63 = vld [vmem:[%s2067_s1 + $0x3d4] ss:$8 sps:$4 sm:$0xff]   ;;  %v1523_v0 = vld [vmem:[%s2067_s1 + $0x1d0] ss:$8 sps:$4 sm:$0xff]  }
  0x3d   :  { %1039 = vmatprep.subr.bf16.mxu0 %v1437_v1  ;;  %v1526_v1 = vld [vmem:[%s2067_s1 + $0x3d0] ss:$8 sps:$4 sm:$0xff]  }
  0x3f   :  { %958 = vmatpush1.bf16.msra.mxu1 %v1439_v2  ;;  %v1531_v2 = vld [vmem:[%s2067_s1 + $0x1e4] ss:$8 sps:$4 sm:$0xff]  }
  0x40   :  { %1040 = vmatpush1.bf16.msra.mxu0 %v1440_v3  ;;  %968 = vmatprep.subr.bf16.mxu1 %v1445_v4  ;;  %v1534_v3 = vld [vmem:[%s2067_s1 + $0x3e4] ss:$8 sps:$4 sm:$0xff]   ;;  %v1529_v4 = vld [vmem:[%s2067_s1 + $0x1e0] ss:$8 sps:$4 sm:$0xff]  }
  0x41   :  { %1050 = vmatprep.subr.bf16.mxu0 %v1450_v5  ;;  %v1532_v5 = vld [vmem:[%s2067_s1 + $0x3e0] ss:$8 sps:$4 sm:$0xff]  }
  0x42   :  { %960 = vmatmul.mubr.bf16.vlgmr.msra.gmra.mrb[0].mxu1 %v1177_v6  ;;  %v1537_v6 = vld [vmem:[%s2067_s1 + $0x1f4] ss:$8 sps:$4 sm:$0xff]  }
  0x43   :  { %1042 = vmatmul.mubr.bf16.vlgmr.msra.gmra.mrb[0].mxu0 %v1181_v7  ;;  %969 = vmatpush1.bf16.msra.mxu1 %v1443_v8  ;;  %v1540_v7 = vld [vmem:[%s2067_s1 + $0x3f4] ss:$8 sps:$4 sm:$0xff]   ;;  %v1535_v8 = vld [vmem:[%s2067_s1 + $0x1f0] ss:$8 sps:$4 sm:$0xff]  }
  0x44   :  { %1051 = vmatpush1.bf16.msra.mxu0 %v1448_v9  ;;  %970 = vmatprep.subr.bf16.mxu1 %v1453_v10  ;;  %v1538_v9 = vld [vmem:[%s2067_s1 + $0x3f0] ss:$8 sps:$4 sm:$0xff]   ;;  %v1547_v10 = vld [vmem:[%s2067_s1 + $0x404] ss:$8 sps:$4 sm:$0xff]  }
  0x45   :  { %1052 = vmatprep.subr.bf16.mxu0 %v1456_v11  ;;  %1000 = vmatprep.mubr.bf16.mxu1 %v1180_v36  ;;  %v1179_v11 = vcombine.low %v1875_v32, %v1875_v32 }
  0x46   :  { %1082 = vmatprep.mubr.bf16.mxu0 %v1184_v37  ;;  %v1141_v37 = vld [vmem:[%s2069_s2] sm:$0x3] }
  0x47   :  { %971 = vmatpush1.bf16.msra.mxu1 %v1451_v12  ;;  %v1183_v12 = vcombine.low %v1880_v33, %v1880_v33 }
  0x48   :  { %1053 = vmatpush1.bf16.msra.mxu0 %v1454_v13  ;;  %972 = vmatprep.subr.bf16.mxu1 %v1459_v14  ;;  %v1545_v13 = vld [vmem:[%s2067_s1 + $0x400] ss:$8 sps:$4 sm:$0xff]   ;;  %v1550_v14 = vld [vmem:[%s2067_s1 + $0x414] ss:$8 sps:$4 sm:$0xff]  }
  0x49   :  { %1054 = vmatprep.subr.bf16.mxu0 %v1462_v15  ;;  %v1548_v15 = vld [vmem:[%s2067_s1 + $0x410] ss:$8 sps:$4 sm:$0xff]  }
  0x4b   :  { %973 = vmatpush1.bf16.msra.mxu1 %v1457_v16  ;;  %v1570_v16 = vmov 0  }
  0x4c   :  { %1055 = vmatpush1.bf16.msra.mxu0 %v1460_v17  ;;  %974 = vmatprep.subr.bf16.mxu1 %v1465_v18  ;;  %v1553_v17 = vld [vmem:[%s2067_s1 + $0x424] ss:$8 sps:$4 sm:$0xff]   ;;  %v1551_v18 = vld [vmem:[%s2067_s1 + $0x420] ss:$8 sps:$4 sm:$0xff]  }
  0x4d   :  { %1056 = vmatprep.subr.bf16.mxu0 %v1468_v19  ;;  %v1556_v19 = vld [vmem:[%s2067_s1 + $0x434] ss:$8 sps:$4 sm:$0xff]  }
  0x4f   :  { %975 = vmatpush1.bf16.msra.mxu1 %v1463_v20  ;;  %v1554_v20 = vld [vmem:[%s2067_s1 + $0x430] ss:$8 sps:$4 sm:$0xff]  }
  0x50   :  { %1057 = vmatpush1.bf16.msra.mxu0 %v1466_v21  ;;  %976 = vmatprep.subr.bf16.mxu1 %v1471_v22  ;;  %v1559_v21 = vld [vmem:[%s2067_s1 + $0x444] ss:$8 sps:$4 sm:$0xff]   ;;  %v1557_v22 = vld [vmem:[%s2067_s1 + $0x440] ss:$8 sps:$4 sm:$0xff]  }
  0x51   :  { %1058 = vmatprep.subr.bf16.mxu0 %v1474_v23  ;;  %v1562_v23 = vld [vmem:[%s2067_s1 + $0x454] ss:$8 sps:$4 sm:$0xff]  }
  0x53   :  { %977 = vmatpush1.bf16.msra.mxu1 %v1469_v24  ;;  %v1560_v24 = vld [vmem:[%s2067_s1 + $0x450] ss:$8 sps:$4 sm:$0xff]  }
  0x54   :  { %1059 = vmatpush1.bf16.msra.mxu0 %v1472_v25  ;;  %978 = vmatprep.subr.bf16.mxu1 %v1477_v26  ;;  %v1565_v25 = vld [vmem:[%s2067_s1 + $0x464] ss:$8 sps:$4 sm:$0xff]   ;;  %v1563_v26 = vld [vmem:[%s2067_s1 + $0x460] ss:$8 sps:$4 sm:$0xff]  }
  0x55   :  { %1060 = vmatprep.subr.bf16.mxu0 %v1480_v27  ;;  %v1568_v27 = vld [vmem:[%s2067_s1 + $0x474] ss:$8 sps:$4 sm:$0xff]  }
  0x57   :  { %979 = vmatpush1.bf16.msra.mxu1 %v1475_v28  ;;  %v1566_v28 = vld [vmem:[%s2067_s1 + $0x470] ss:$8 sps:$4 sm:$0xff]  }
  0x58   :  { %1061 = vmatpush1.bf16.msra.mxu0 %v1478_v29  ;;  %980 = vmatprep.subr.bf16.mxu1 %v1483_v30  ;;  %v1569_v29 = vld [vmem:[%s2068_s0 + $0x20] ss:$0 sps:$4 sm:$0xff]  }
  0x59   :  { %1062 = vmatprep.subr.bf16.mxu0 %v1486_v31 }
  0x5b   :  { %981 = vmatpush1.bf16.msra.mxu1 %v1481_v34  ;;  %v1143_v34 = vlaneseq }
  0x5c   :  { %1063 = vmatpush1.bf16.msra.mxu0 %v1484_v35  ;;  %982 = vmatprep.subr.bf16.mxu1 %v1489_v38 }
  0x5d   :  { %1064 = vmatprep.subr.bf16.mxu0 %v1492_v39  ;;  %v1144_v35 = vshrl.u32 %v1143_v34, 7  ;;  %v1155_v39 = vld [vmem:[%s2070_s3] sm:$0x3] }
  0x5f   :  { %983 = vmatpush1.bf16.msra.mxu1 %v1487_v40  ;;  %v1145_v36 = vsub.s32 0, %v1144_v35  ;;  %v1149_v38 = vsub.s32 1, %v1144_v35 }
  0x60   :  { %1065 = vmatpush1.bf16.msra.mxu0 %v1490_v41  ;;  %984 = vmatprep.subr.bf16.mxu1 %v1495_v42 }
  0x61   :  { %1066 = vmatprep.subr.bf16.mxu0 %v1498_v43  ;;  %v1146_v40 = vrot.slane %v1141_v37, %v1145_v36  ;;  %v1150_v42 = vrot.slane %v1141_v37, %v1149_v38 }
  0x63   :  { %985 = vmatpush1.bf16.msra.mxu1 %v1493_v44  ;;  %v1160_v44 = vrot.slane %v1155_v39, %v1145_v36 }
  0x64   :  { %1067 = vmatpush1.bf16.msra.mxu0 %v1496_v45  ;;  %986 = vmatprep.subr.bf16.mxu1 %v1501_v46 }
  0x65   :  { %1068 = vmatprep.subr.bf16.mxu0 %v1504_v47  ;;  %v1164_v47 = vrot.slane %v1155_v39, %v1149_v38 }
  0x67   :  { %987 = vmatpush1.bf16.msra.mxu1 %v1499_v48 }
  0x68   :  { %1069 = vmatpush1.bf16.msra.mxu0 %v1502_v49  ;;  %988 = vmatprep.subr.bf16.mxu1 %v1507_v50 }
  0x69   :  { %1070 = vmatprep.subr.bf16.mxu0 %v1510_v51 }
  0x6b   :  { %989 = vmatpush1.bf16.msra.mxu1 %v1505_v52 }
  0x6c   :  { %1071 = vmatpush1.bf16.msra.mxu0 %v1508_v53  ;;  %990 = vmatprep.subr.bf16.mxu1 %v1513_v54 }
  0x6d   :  { %1072 = vmatprep.subr.bf16.mxu0 %v1516_v55 }
  0x6f   :  { %991 = vmatpush1.bf16.msra.mxu1 %v1511_v56 }
  0x70   :  { %1073 = vmatpush1.bf16.msra.mxu0 %v1514_v57  ;;  %992 = vmatprep.subr.bf16.mxu1 %v1519_v58 }
  0x71   :  { %1074 = vmatprep.subr.bf16.mxu0 %v1522_v59 }
  0x73   :  { %993 = vmatpush1.bf16.msra.mxu1 %v1517_v60 }
  0x74   :  { %1075 = vmatpush1.bf16.msra.mxu0 %v1520_v61  ;;  %994 = vmatprep.subr.bf16.mxu1 %v1525_v62 }
  0x75   :  { %1076 = vmatprep.subr.bf16.mxu0 %v1528_v63 }
  0x77   :  { %995 = vmatpush1.bf16.msra.mxu1 %v1523_v0 }
  0x78   :  { %1077 = vmatpush1.bf16.msra.mxu0 %v1526_v1  ;;  %996 = vmatprep.subr.bf16.mxu1 %v1531_v2 }
  0x79   :  { %1078 = vmatprep.subr.bf16.mxu0 %v1534_v3 }
  0x7b   :  { %997 = vmatpush1.bf16.msra.mxu1 %v1529_v4 }
  0x7c   :  { %1079 = vmatpush1.bf16.msra.mxu0 %v1532_v5  ;;  %998 = vmatprep.subr.bf16.mxu1 %v1537_v6 }
  0x7d   :  { %1080 = vmatprep.subr.bf16.mxu0 %v1540_v7 }
  0x7f   :  { %999 = vmatpush1.bf16.msra.mxu1 %v1535_v8 }
  0x80   :  { %1081 = vmatpush1.bf16.msra.mxu0 %v1538_v9 }
  0x81   :  { %1091 = vmatprep.subr.bf16.mxu0 %v1547_v10 }
  0x82   :  { %1001 = vmatmul.mubr.bf16.vlgmr.msra.gmra.mrb[0].mxu1 %v1179_v11 }
  0x83   :  { %1083 = vmatmul.mubr.bf16.vlgmr.msra.gmra.mrb[0].mxu0 %v1183_v12 }
  0x84   :  { %1092 = vmatpush1.bf16.msra.mxu0 %v1545_v13  ;;  %1123 = vmatprep.mubr.bf16.mxu0 %v1570_v16 }
  0x85   :  { %1093 = vmatprep.subr.bf16.mxu0 %v1550_v14 }
  0x88   :  { %1094 = vmatpush1.bf16.msra.mxu0 %v1548_v15 }
  0x89   :  { %1095 = vmatprep.subr.bf16.mxu0 %v1553_v17 }
  0x8c   :  { %1096 = vmatpush1.bf16.msra.mxu0 %v1551_v18 }
  0x8d   :  { %1097 = vmatprep.subr.bf16.mxu0 %v1556_v19 }
  0x90   :  { %1098 = vmatpush1.bf16.msra.mxu0 %v1554_v20 }
  0x91   :  { %1099 = vmatprep.subr.bf16.mxu0 %v1559_v21 }
  0x94   :  { %1100 = vmatpush1.bf16.msra.mxu0 %v1557_v22 }
  0x95   :  { %1101 = vmatprep.subr.bf16.mxu0 %v1562_v23 }
  0x98   :  { %1102 = vmatpush1.bf16.msra.mxu0 %v1560_v24 }
  0x99   :  { %1103 = vmatprep.subr.bf16.mxu0 %v1565_v25 }
  0x9c   :  { %1104 = vmatpush1.bf16.msra.mxu0 %v1563_v26 }
  0x9d   :  { %1105 = vmatprep.subr.bf16.mxu0 %v1568_v27 }
  0xa0   :  { %1106 = vmatpush1.bf16.msra.mxu0 %v1566_v28 }
  0xa3   :  { %1124 = vmatmul.mubr.bf16.vlgmr.msra.gmra.mrb[0].mxu0 %v1569_v29 }
 0x155   :  { %v1002_v30 = vpop.f32.mrb[0].mxu1 }
 0x156   :  { %v1004_v31 = vpop.f32.mrb[1].mxu1 }
 0x157   :  { %v1006_v32 = vpop.f32.mrb[2].mxu1 }
 0x158   :  { %v1007_v33 = vpop.f32.mrb[3].mxu1 }
 0x176   :  { %v1125_v41 = vpop.f32.mrb[0].mxu0 }
 0x177   :  { %v1330_v43 = vadd.f32 %v1125_v41, %v1002_v30  ;;  %v1127_v45 = vpop.f32.mrb[1].mxu0 }
 0x178   :  { %v1331_v46 = vadd.f32 %v1127_v45, %v1004_v31  ;;  %v1129_v48 = vpop.f32.mrb[2].mxu0 }
 0x179   :  { %v1153_v49 = vmul.f32 %v1330_v43, %v1146_v40  ;;  %v1130_v50 = vpop.f32.mrb[3].mxu0 }
 0x17a   :  { %v1154_v51 = vmul.f32 %v1331_v46, %v1150_v42 }
 0x17b   :  { %v1167_v52 = vadd.f32 %v1160_v44, %v1153_v49 }
 0x17c   :  { %v1168_v53 = vadd.f32 %v1164_v47, %v1154_v51 }
 0x17d   :  { %v1169_v54 = vmax.f32 %v1167_v52, 0.0 }
 0x17e   :  { %v1170_v55 = vmax.f32 %v1168_v53, 0.0 }
 0x17f   :  { %1171 = vst [vmem:[%s2071_s4] sm:$0xff] %v1169_v54 }
 0x180   :  { %1172 = vst [vmem:[%s2071_s4 + $0x8] sm:$0xff] %v1170_v55 }

// kernel: resnet_forward.22
= control target key start
LH: loop header
LB: loop body
LE: loop exit
PB: predicated region body
PF: predicated region fallthrough
CT: control target
= control target key end

     0   :  { %v248_v1 = vmov 0   ;;  %v175_v18 = vlaneseq  ;;  %s337_s1 = inlined_call_operand.vmem [shape: bf16[128,256], index: 1, kind: input, shape index: {}]   ;;  %s338_s0 = inlined_call_operand.vmem [shape: bf16[8,128], index: 0, kind: input, shape index: {}]   ;;  %s339_s2 = inlined_call_operand.vmem [shape: f32[1,256], index: 2, kind: input, shape index: {}]   ;;  %s340_s3 = inlined_call_operand.vmem [shape: f32[1,256], index: 3, kind: input, shape index: {}]   ;;  %s341_s4 = inlined_call_operand.vmem [shape: f32[8,256], index: 4, kind: output, shape index: {}]  }
   0x1   :  { %v224_v0 = vld [vmem:[%s337_s1 + $0x4] ss:$8 sps:$4 sm:$0xff]   ;;  %155 = vmatprep.mubr.bf16.mxu0 %v248_v1  ;;  %v226_v2 = vld [vmem:[%s337_s1] ss:$8 sps:$4 sm:$0xff]   ;;  %v227_v3 = vld [vmem:[%s337_s1 + $0x14] ss:$8 sps:$4 sm:$0xff]  }
   0x2   :  { %123 = vmatprep.subr.bf16.mxu0 %v224_v0  ;;  %v229_v4 = vld [vmem:[%s337_s1 + $0x10] ss:$8 sps:$4 sm:$0xff]   ;;  %v230_v5 = vld [vmem:[%s337_s1 + $0x24] ss:$8 sps:$4 sm:$0xff]   ;;  %v232_v6 = vld [vmem:[%s337_s1 + $0x20] ss:$8 sps:$4 sm:$0xff]  }
   0x3   :  { %124 = vmatpush1.bf16.msra.mxu0 %v226_v2  ;;  %v233_v7 = vld [vmem:[%s337_s1 + $0x34] ss:$8 sps:$4 sm:$0xff]   ;;  %v235_v8 = vld [vmem:[%s337_s1 + $0x30] ss:$8 sps:$4 sm:$0xff]   ;;  %v236_v9 = vld [vmem:[%s337_s1 + $0x44] ss:$8 sps:$4 sm:$0xff]  }
   0x4   :  { %125 = vmatprep.subr.bf16.mxu0 %v227_v3  ;;  %v238_v10 = vld [vmem:[%s337_s1 + $0x40] ss:$8 sps:$4 sm:$0xff]   ;;  %v239_v11 = vld [vmem:[%s337_s1 + $0x54] ss:$8 sps:$4 sm:$0xff]   ;;  %v241_v12 = vld [vmem:[%s337_s1 + $0x50] ss:$8 sps:$4 sm:$0xff]  }
   0x5   :  { %v242_v13 = vld [vmem:[%s337_s1 + $0x64] ss:$8 sps:$4 sm:$0xff]   ;;  %v244_v14 = vld [vmem:[%s337_s1 + $0x60] ss:$8 sps:$4 sm:$0xff]   ;;  %v245_v15 = vld [vmem:[%s337_s1 + $0x74] ss:$8 sps:$4 sm:$0xff]  }
   0x6   :  { %v247_v16 = vld [vmem:[%s337_s1 + $0x70] ss:$8 sps:$4 sm:$0xff]   ;;  %v26_v17 = vld [vmem:[%s338_s0] sm:$0xf]  ;;  %v176_v19 = vshrl.u32 %v175_v18, 7 }
   0x7   :  { %126 = vmatpush1.bf16.msra.mxu0 %v229_v4  ;;  %v173_v21 = vld [vmem:[%s339_s2] sm:$0x3] }
   0x8   :  { %127 = vmatprep.subr.bf16.mxu0 %v230_v5  ;;  %v177_v20 = vsub.s32 0, %v176_v19  ;;  %v181_v22 = vsub.s32 1, %v176_v19  ;;  %v187_v23 = vld [vmem:[%s340_s3] sm:$0x3] }
   0xa   :  { %v178_v24 = vrot.slane %v173_v21, %v177_v20  ;;  %v182_v25 = vrot.slane %v173_v21, %v181_v22  ;;  %v192_v26 = vrot.slane %v187_v23, %v177_v20  ;;  %v196_v28 = vrot.slane %v187_v23, %v181_v22 }
   0xb   :  { %128 = vmatpush1.bf16.msra.mxu0 %v232_v6 }
   0xc   :  { %129 = vmatprep.subr.bf16.mxu0 %v233_v7 }
   0xf   :  { %130 = vmatpush1.bf16.msra.mxu0 %v235_v8 }
  0x10   :  { %131 = vmatprep.subr.bf16.mxu0 %v236_v9 }
  0x13   :  { %132 = vmatpush1.bf16.msra.mxu0 %v238_v10 }
  0x14   :  { %133 = vmatprep.subr.bf16.mxu0 %v239_v11 }
  0x17   :  { %134 = vmatpush1.bf16.msra.mxu0 %v241_v12 }
  0x18   :  { %135 = vmatprep.subr.bf16.mxu0 %v242_v13 }
  0x1b   :  { %136 = vmatpush1.bf16.msra.mxu0 %v244_v14 }
  0x1c   :  { %137 = vmatprep.subr.bf16.mxu0 %v245_v15 }
  0x1f   :  { %138 = vmatpush1.bf16.msra.mxu0 %v247_v16 }
  0x22   :  { %156 = vmatmul.mubr.bf16.vlgmr.msra.gmra.mrb[0].mxu0 %v26_v17 }
  0xf5   :  { %v157_v27 = vpop.f32.mrb[0].mxu0 }
  0xf6   :  { %v185_v29 = vmul.f32 %v178_v24, %v157_v27  ;;  %v159_v30 = vpop.f32.mrb[1].mxu0 }
  0xf7   :  { %v186_v31 = vmul.f32 %v182_v25, %v159_v30  ;;  %v161_v32 = vpop.f32.mrb[2].mxu0 }
  0xf8   :  { %v199_v33 = vadd.f32 %v192_v26, %v185_v29  ;;  %v162_v34 = vpop.f32.mrb[3].mxu0 }
  0xf9   :  { %v200_v35 = vadd.f32 %v196_v28, %v186_v31 }
  0xfa   :  { %201 = vst [vmem:[%s341_s4] sm:$0xff] %v199_v33 }
  0xfb   :  { %202 = vst [vmem:[%s341_s4 + $0x8] sm:$0xff] %v200_v35 }

// kernel: resnet_forward.23
= control target key start
LH: loop header
LB: loop body
LE: loop exit
PB: predicated region body
PF: predicated region fallthrough
CT: control target
= control target key end

     0   :  { %s1339_s18 = smov 0   ;;  %s1341_s19 = smov 0   ;;  %s1466_s0 = inlined_call_operand.vmem [shape: bf16[8,2560], index: 0, kind: input, shape index: {}]   ;;  %s1467_s1 = inlined_call_operand.vmem [shape: bf16[2560,256], index: 1, kind: input, shape index: {}]   ;;  %s1468_s2 = inlined_call_operand.vmem [shape: f32[1,256], index: 2, kind: input, shape index: {}]   ;;  %s1469_s3 = inlined_call_operand.vmem [shape: f32[1,256], index: 3, kind: input, shape index: {}]   ;;  %s1470_s4 = inlined_call_operand.vmem [shape: f32[8,256], index: 4, kind: input, shape index: {}]   ;;  %s1471_s5 = inlined_call_operand.vmem [shape: f32[8,256], index: 5, kind: output, shape index: {}]  }
   0x1   :  { %s1343_s20 = smov 0  }
   0x2 LB: > { %s27_s21 = sadd.s32 1, %s1302_s19  ;;  %p1078_p0 = scmp.ge.s32.totalorder %s1306_s20, 1  ;;  %s1306_s20 = sphi %s1343_s20, %s15_s20   ;;  %s1302_s19 = sphi %s1341_s19, %s1473_s19   ;;  %s1298_s18 = sphi %s1339_s18, %s1472_s18  }
   0x3   : > { %p28_p1 = scmp.ge.s32.totalorder %s27_s21, 5  ;;  %p271_p2 = scmp.lt.s32.totalorder %s1306_s20, 6 }
   0x5   : > { %s1475_s21 = smov (%p28_p1, %s27_s21), 0  ;;  %p272_p3 = pnand %p1078_p0, %p271_p2 }
   0x6   : > { %s1079_s22 = sshll.u32 (!%p272_p3), %s1298_s18, 2  ;;  %s1081_s23 = sshll.u32 (!%p272_p3), %s1298_s18, 6 }
   0x7   : > { %275 = sbr.rel (%p272_p3) target bundleno = 324 (0x144), region = 40  ;;  %p337_p4 = scmp.lt.s32.totalorder (!%p272_p3), %s1079_s22, 19 }
   0x8   : > { %p346_p5 = scmp.lt.s32.totalorder (!%p272_p3), %s1081_s23, 319  ;;  %p1084_p6 = scmp.ne.s32.totalorder (!%p272_p3), %s1298_s18, 0 }
   0xe   : > { %s1477_s22 = smov (!%p337_p4, %s1079_s22), 19  ;;  %s1479_s23 = smov (!%p346_p5, %s1081_s23), 319 }
   0xf   : > { %s1080_s24 = sshll.u32 %s1477_s22, 2  ;;  %s1158_s28 = sshll.u32 %s1479_s23, 3  ;;  %v1308_v0 = vmov (!%p1084_p6), 0.0  }
  0x10   : > { %s1364_s27 = scalar_lea.vmem %s1466_s0, %s1080_s24  ;;  %s1369_s6 = scalar_lea.vmem %s1467_s1, %s1158_s28  ;;  %390 = vst [vmem:[#allocation2] sm:$0xff] (!%p1084_p6), %v1308_v0  ;;  %391 = vst [vmem:[#allocation2 + $0x8] sm:$0xff] (!%p1084_p6), %v1308_v0 }
  0x11   : > { %389 = sbr.rel (%p1084_p6) target bundleno = 24 (0x18), region = 44 }
  0x18 PF: > { %v1184_v1 = vld [vmem:[%s1369_s6 + $0x4] ss:$8 sps:$4 sm:$0xff]   ;;  %v1188_v3 = vld [vmem:[%s1369_s6] ss:$8 sps:$4 sm:$0xff]   ;;  %v1190_v5 = vld [vmem:[%s1369_s6 + $0x14] ss:$8 sps:$4 sm:$0xff]  }
  0x19   : > { %v1186_v2 = vld [vmem:[%s1369_s6 + $0x104] ss:$8 sps:$4 sm:$0xff]   ;;  %794 = vmatprep.subr.bf16.mxu0 %v1184_v1  ;;  %v1189_v4 = vld [vmem:[%s1369_s6 + $0x100] ss:$8 sps:$4 sm:$0xff]   ;;  %v1192_v6 = vld [vmem:[%s1369_s6 + $0x114] ss:$8 sps:$4 sm:$0xff]  }
  0x1a   : > { %835 = vmatprep.subr.bf16.mxu1 %v1186_v2  ;;  %795 = vmatpush1.bf16.msra.mxu0 %v1188_v3  ;;  %v1194_v7 = vld [vmem:[%s1369_s6 + $0x10] ss:$8 sps:$4 sm:$0xff]   ;;  %v1196_v9 = vld [vmem:[%s1369_s6 + $0x24] ss:$8 sps:$4 sm:$0xff]   ;;  %v1200_v11 = vld [vmem:[%s1369_s6 + $0x20] ss:$8 sps:$4 sm:$0xff]  }
  0x1b   : > { %836 = vmatpush1.bf16.msra.mxu1 %v1189_v4  ;;  %796 = vmatprep.subr.bf16.mxu0 %v1190_v5  ;;  %v1195_v8 = vld [vmem:[%s1369_s6 + $0x110] ss:$8 sps:$4 sm:$0xff]   ;;  %v1198_v10 = vld [vmem:[%s1369_s6 + $0x124] ss:$8 sps:$4 sm:$0xff]   ;;  %v1201_v12 = vld [vmem:[%s1369_s6 + $0x120] ss:$8 sps:$4 sm:$0xff]  }
  0x1c   : > { %837 = vmatprep.subr.bf16.mxu1 %v1192_v6  ;;  %v1202_v13 = vld [vmem:[%s1369_s6 + $0x34] ss:$8 sps:$4 sm:$0xff]   ;;  %v1206_v15 = vld [vmem:[%s1369_s6 + $0x30] ss:$8 sps:$4 sm:$0xff]   ;;  %v1208_v17 = vld [vmem:[%s1369_s6 + $0x44] ss:$8 sps:$4 sm:$0xff]  }
  0x1d   : > { %v1204_v14 = vld [vmem:[%s1369_s6 + $0x134] ss:$8 sps:$4 sm:$0xff]   ;;  %v1207_v16 = vld [vmem:[%s1369_s6 + $0x130] ss:$8 sps:$4 sm:$0xff]   ;;  %v1210_v18 = vld [vmem:[%s1369_s6 + $0x144] ss:$8 sps:$4 sm:$0xff]  }
  0x1e   : > { %797 = vmatpush1.bf16.msra.mxu0 %v1194_v7  ;;  %v1212_v19 = vld [vmem:[%s1369_s6 + $0x40] ss:$8 sps:$4 sm:$0xff]   ;;  %v1214_v21 = vld [vmem:[%s1369_s6 + $0x54] ss:$8 sps:$4 sm:$0xff]   ;;  %v1218_v23 = vld [vmem:[%s1369_s6 + $0x50] ss:$8 sps:$4 sm:$0xff]  }
  0x1f   : > { %838 = vmatpush1.bf16.msra.mxu1 %v1195_v8  ;;  %798 = vmatprep.subr.bf16.mxu0 %v1196_v9  ;;  %v1213_v20 = vld [vmem:[%s1369_s6 + $0x140] ss:$8 sps:$4 sm:$0xff]   ;;  %v1216_v22 = vld [vmem:[%s1369_s6 + $0x154] ss:$8 sps:$4 sm:$0xff]   ;;  %v1219_v24 = vld [vmem:[%s1369_s6 + $0x150] ss:$8 sps:$4 sm:$0xff]  }
  0x20   : > { %839 = vmatprep.subr.bf16.mxu1 %v1198_v10  ;;  %v1220_v25 = vld [vmem:[%s1369_s6 + $0x64] ss:$8 sps:$4 sm:$0xff]   ;;  %v1224_v27 = vld [vmem:[%s1369_s6 + $0x60] ss:$8 sps:$4 sm:$0xff]   ;;  %v1226_v29 = vld [vmem:[%s1369_s6 + $0x74] ss:$8 sps:$4 sm:$0xff]  }
  0x21   : > { %v1222_v26 = vld [vmem:[%s1369_s6 + $0x164] ss:$8 sps:$4 sm:$0xff]   ;;  %v1225_v28 = vld [vmem:[%s1369_s6 + $0x160] ss:$8 sps:$4 sm:$0xff]   ;;  %v1228_v30 = vld [vmem:[%s1369_s6 + $0x174] ss:$8 sps:$4 sm:$0xff]  }
  0x22   : > { %799 = vmatpush1.bf16.msra.mxu0 %v1200_v11  ;;  %v1230_v31 = vld [vmem:[%s1369_s6 + $0x70] ss:$8 sps:$4 sm:$0xff]   ;;  %v1232_v33 = vld [vmem:[%s1369_s6 + $0x84] ss:$8 sps:$4 sm:$0xff]   ;;  %v1236_v35 = vld [vmem:[%s1369_s6 + $0x80] ss:$8 sps:$4 sm:$0xff]  }
  0x23   : > { %840 = vmatpush1.bf16.msra.mxu1 %v1201_v12  ;;  %800 = vmatprep.subr.bf16.mxu0 %v1202_v13  ;;  %v1231_v32 = vld [vmem:[%s1369_s6 + $0x170] ss:$8 sps:$4 sm:$0xff]   ;;  %v1234_v34 = vld [vmem:[%s1369_s6 + $0x184] ss:$8 sps:$4 sm:$0xff]   ;;  %v1237_v36 = vld [vmem:[%s1369_s6 + $0x180] ss:$8 sps:$4 sm:$0xff]  }
  0x24   : > { %841 = vmatprep.subr.bf16.mxu1 %v1204_v14  ;;  %v1238_v37 = vld [vmem:[%s1369_s6 + $0x94] ss:$8 sps:$4 sm:$0xff]   ;;  %v1242_v39 = vld [vmem:[%s1369_s6 + $0x90] ss:$8 sps:$4 sm:$0xff]   ;;  %v1244_v41 = vld [vmem:[%s1369_s6 + $0xa4] ss:$8 sps:$4 sm:$0xff]  }
  0x25   : > { %v1240_v38 = vld [vmem:[%s1369_s6 + $0x194] ss:$8 sps:$4 sm:$0xff]   ;;  %v1243_v40 = vld [vmem:[%s1369_s6 + $0x190] ss:$8 sps:$4 sm:$0xff]   ;;  %v1246_v42 = vld [vmem:[%s1369_s6 + $0x1a4] ss:$8 sps:$4 sm:$0xff]  }
  0x26   : > { %801 = vmatpush1.bf16.msra.mxu0 %v1206_v15  ;;  %v1248_v43 = vld [vmem:[%s1369_s6 + $0xa0] ss:$8 sps:$4 sm:$0xff]   ;;  %v1250_v45 = vld [vmem:[%s1369_s6 + $0xb4] ss:$8 sps:$4 sm:$0xff]   ;;  %v1254_v50 = vld [vmem:[%s1369_s6 + $0xb0] ss:$8 sps:$4 sm:$0xff]  }
  0x27   : > { %842 = vmatpush1.bf16.msra.mxu1 %v1207_v16  ;;  %802 = vmatprep.subr.bf16.mxu0 %v1208_v17  ;;  %v1249_v44 = vld [vmem:[%s1369_s6 + $0x1a0] ss:$8 sps:$4 sm:$0xff]   ;;  %v1252_v46 = vld [vmem:[%s1369_s6 + $0x1b4] ss:$8 sps:$4 sm:$0xff]   ;;  %v1255_v51 = vld [vmem:[%s1369_s6 + $0x1b0] ss:$8 sps:$4 sm:$0xff]  }
  0x28   : > { %843 = vmatprep.subr.bf16.mxu1 %v1210_v18  ;;  %v394_v47 = vld [vmem:[%s1364_s27] sm:$0xff]  ;;  %v395_v49 = vld [vmem:[%s1364_s27 + $0x8] sm:$0xff]  ;;  %v1262_v57 = vld [vmem:[%s1369_s6 + $0xd4] ss:$8 sps:$4 sm:$0xff]   ;;  %p1153_p7 = scmp.ne.s32.totalorder %s1298_s18, 4 }
  0x29   : > { %v1086_v48 = vcombine.high %v394_v47, %v394_v47  ;;  %v1088_v52 = vcombine.high %v395_v49, %v395_v49  ;;  %v1256_v53 = vld [vmem:[%s1369_s6 + $0xc4] ss:$8 sps:$4 sm:$0xff]   ;;  %v1260_v55 = vld [vmem:[%s1369_s6 + $0xc0] ss:$8 sps:$4 sm:$0xff]   ;;  %v1264_v58 = vld [vmem:[%s1369_s6 + $0x1d4] ss:$8 sps:$4 sm:$0xff]   ;;  %v1085_v5 = vcombine.low %v394_v47, %v394_v47  ;;  %v1087_v6 = vcombine.low %v395_v49, %v395_v49 }
  0x2a   : > { %803 = vmatpush1.bf16.msra.mxu0 %v1212_v19  ;;  %v1258_v54 = vld [vmem:[%s1369_s6 + $0x1c4] ss:$8 sps:$4 sm:$0xff]   ;;  %v1261_v56 = vld [vmem:[%s1369_s6 + $0x1c0] ss:$8 sps:$4 sm:$0xff]   ;;  %v1266_v59 = vld [vmem:[%s1369_s6 + $0xd0] ss:$8 sps:$4 sm:$0xff]  }
  0x2b   : > { %844 = vmatpush1.bf16.msra.mxu1 %v1213_v20  ;;  %804 = vmatprep.subr.bf16.mxu0 %v1214_v21  ;;  %v1267_v60 = vld [vmem:[%s1369_s6 + $0x1d0] ss:$8 sps:$4 sm:$0xff]   ;;  %v1268_v61 = vld [vmem:[%s1369_s6 + $0xe4] ss:$8 sps:$4 sm:$0xff]   ;;  %v1272_v63 = vld [vmem:[%s1369_s6 + $0xe0] ss:$8 sps:$4 sm:$0xff]   ;;  %v888_v21 = vlaneseq (!%p1153_p7) }
  0x2c   : > { %845 = vmatprep.subr.bf16.mxu1 %v1216_v22  ;;  %826 = vmatprep.mubr.bf16.mxu0 %v1086_v48  ;;  %v1270_v62 = vld [vmem:[%s1369_s6 + $0x1e4] ss:$8 sps:$4 sm:$0xff]   ;;  %v1273_v0 = vld [vmem:[%s1369_s6 + $0x1e0] ss:$8 sps:$4 sm:$0xff]   ;;  %v1274_v1 = vld [vmem:[%s1369_s6 + $0xf4] ss:$8 sps:$4 sm:$0xff]  }
  0x2d   : > { %867 = vmatprep.mubr.bf16.mxu1 %v1088_v52  ;;  %v1276_v2 = vld [vmem:[%s1369_s6 + $0x1f4] ss:$8 sps:$4 sm:$0xff]   ;;  %v1278_v3 = vld [vmem:[%s1369_s6 + $0xf0] ss:$8 sps:$4 sm:$0xff]   ;;  %v392_v8 = vld [vmem:[#allocation2] sm:$0xff]  ;;  %v889_v22 = vshrl.u32 (!%p1153_p7), %v888_v21, 7 }
  0x2e   : > { %805 = vmatpush1.bf16.msra.mxu0 %v1218_v23  ;;  %v1279_v4 = vld [vmem:[%s1369_s6 + $0x1f0] ss:$8 sps:$4 sm:$0xff]   ;;  %v393_v12 = vld [vmem:[#allocation2 + $0x8] sm:$0xff]  ;;  %v886_v23 = vld [vmem:[%s1468_s2] sm:$0x3] (!%p1153_p7) }
  0x2f   : > { %846 = vmatpush1.bf16.msra.mxu1 %v1219_v24  ;;  %806 = vmatprep.subr.bf16.mxu0 %v1220_v25  ;;  %v900_v24 = vld [vmem:[%s1469_s3] sm:$0x3] (!%p1153_p7)  ;;  %v890_v25 = vsub.s32 (!%p1153_p7), 0, %v889_v22 }
  0x30   : > { %847 = vmatprep.subr.bf16.mxu1 %v1222_v26  ;;  %v894_v26 = vsub.s32 (!%p1153_p7), 1, %v889_v22 }
  0x32   : > { %807 = vmatpush1.bf16.msra.mxu0 %v1224_v27 }
  0x33   : > { %848 = vmatpush1.bf16.msra.mxu1 %v1225_v28  ;;  %808 = vmatprep.subr.bf16.mxu0 %v1226_v29  ;;  %v891_v29 = vrot.slane (!%p1153_p7), %v886_v23, %v890_v25 }
  0x34   : > { %849 = vmatprep.subr.bf16.mxu1 %v1228_v30  ;;  %v905_v30 = vrot.slane (!%p1153_p7), %v900_v24, %v890_v25 }
  0x36   : > { %809 = vmatpush1.bf16.msra.mxu0 %v1230_v31  ;;  %v895_v31 = vrot.slane (!%p1153_p7), %v886_v23, %v894_v26 }
  0x37   : > { %850 = vmatpush1.bf16.msra.mxu1 %v1231_v32  ;;  %810 = vmatprep.subr.bf16.mxu0 %v1232_v33  ;;  %v909_v32 = vrot.slane (!%p1153_p7), %v900_v24, %v894_v26 }
  0x38   : > { %851 = vmatprep.subr.bf16.mxu1 %v1234_v34 }
  0x3a   : > { %811 = vmatpush1.bf16.msra.mxu0 %v1236_v35  ;;  %v914_v35 = vld [vmem:[%s1470_s4] sm:$0xff] (!%p1153_p7) }
  0x3b   : > { %852 = vmatpush1.bf16.msra.mxu1 %v1237_v36  ;;  %812 = vmatprep.subr.bf16.mxu0 %v1238_v37  ;;  %v915_v36 = vld [vmem:[%s1470_s4 + $0x8] sm:$0xff] (!%p1153_p7) }
  0x3c   : > { %853 = vmatprep.subr.bf16.mxu1 %v1240_v38 }
  0x3e   : > { %813 = vmatpush1.bf16.msra.mxu0 %v1242_v39 }
  0x3f   : > { %854 = vmatpush1.bf16.msra.mxu1 %v1243_v40  ;;  %814 = vmatprep.subr.bf16.mxu0 %v1244_v41 }
  0x40   : > { %855 = vmatprep.subr.bf16.mxu1 %v1246_v42 }
  0x42   : > { %815 = vmatpush1.bf16.msra.mxu0 %v1248_v43 }
  0x43   : > { %856 = vmatpush1.bf16.msra.mxu1 %v1249_v44  ;;  %816 = vmatprep.subr.bf16.mxu0 %v1250_v45 }
  0x44   : > { %857 = vmatprep.subr.bf16.mxu1 %v1252_v46 }
  0x46   : > { %817 = vmatpush1.bf16.msra.mxu0 %v1254_v50 }
  0x47   : > { %858 = vmatpush1.bf16.msra.mxu1 %v1255_v51  ;;  %818 = vmatprep.subr.bf16.mxu0 %v1256_v53 }
  0x48   : > { %859 = vmatprep.subr.bf16.mxu1 %v1258_v54 }
  0x4a   : > { %819 = vmatpush1.bf16.msra.mxu0 %v1260_v55 }
  0x4b   : > { %860 = vmatpush1.bf16.msra.mxu1 %v1261_v56  ;;  %820 = vmatprep.subr.bf16.mxu0 %v1262_v57 }
  0x4c   : > { %861 = vmatprep.subr.bf16.mxu1 %v1264_v58 }
  0x4e   : > { %821 = vmatpush1.bf16.msra.mxu0 %v1266_v59 }
  0x4f   : > { %862 = vmatpush1.bf16.msra.mxu1 %v1267_v60  ;;  %822 = vmatprep.subr.bf16.mxu0 %v1268_v61 }
  0x50   : > { %863 = vmatprep.subr.bf16.mxu1 %v1270_v62 }
  0x52   : > { %823 = vmatpush1.bf16.msra.mxu0 %v1272_v63 }
  0x53   : > { %864 = vmatpush1.bf16.msra.mxu1 %v1273_v0  ;;  %824 = vmatprep.subr.bf16.mxu0 %v1274_v1 }
  0x54   : > { %865 = vmatprep.subr.bf16.mxu1 %v1276_v2 }
  0x56   : > { %825 = vmatpush1.bf16.msra.mxu0 %v1278_v3 }
  0x57   : > { %866 = vmatpush1.bf16.msra.mxu1 %v1279_v4 }
  0x59   : > { %827 = vmatmul.mubr.bf16.vlgmr.msra.gmra.mrb[0].mxu0 %v1085_v5 }
  0x5a   : > { %868 = vmatmul.mubr.bf16.vlgmr.msra.gmra.mrb[0].mxu1 %v1087_v6 }
 0x12c   : > { %v828_v7 = vpop.f32.mrb[0].mxu0 }
 0x12d   : > { %v869_v9 = vpop.f32.mrb[0].mxu1  ;;  %v830_v11 = vpop.f32.mrb[1].mxu0  ;;  %883 = sbr.rel (%p1153_p7) target bundleno = 324 (0x144), region = 48 }
 0x12e   : > { %v870_v10 = vadd.f32 %v869_v9, %v828_v7  ;;  %v871_v13 = vpop.f32.mrb[1].mxu1  ;;  %v832_v15 = vpop.f32.mrb[2].mxu0 }
 0x12f   : > { %v872_v14 = vadd.f32 %v871_v13, %v830_v11  ;;  %v873_v16 = vpop.f32.mrb[2].mxu1  ;;  %v833_v18 = vpop.f32.mrb[3].mxu0 }
 0x130   : > { %v876_v17 = vadd.f32 %v870_v10, %v392_v8  ;;  %v874_v19 = vpop.f32.mrb[3].mxu1 }
 0x131   : > { %v877_v20 = vadd.f32 %v872_v14, %v393_v12 }
 0x132   : > { %878 = vst [vmem:[#allocation2] sm:$0xff] %v876_v17 }
 0x133   : > { %879 = vst [vmem:[#allocation2 + $0x8] sm:$0xff] %v877_v20 }
 0x139   : > { %v884_v27 = vld [vmem:[#allocation2] sm:$0xff] }
 0x13a   : > { %v885_v28 = vld [vmem:[#allocation2 + $0x8] sm:$0xff]  ;;  %v898_v33 = vmul.f32 %v891_v29, %v884_v27 }
 0x13b   : > { %v899_v34 = vmul.f32 %v895_v31, %v885_v28 }
 0x13c   : > { %v912_v37 = vadd.f32 %v905_v30, %v898_v33 }
 0x13d   : > { %v913_v38 = vadd.f32 %v909_v32, %v899_v34 }
 0x13e   : > { %v916_v39 = vadd.f32 %v914_v35, %v912_v37 }
 0x13f   : > { %v917_v40 = vadd.f32 %v915_v36, %v913_v38 }
 0x140   : > { %v918_v41 = vmax.f32 %v916_v39, 0.0 }
 0x141   : > { %v919_v42 = vmax.f32 %v917_v40, 0.0 }
 0x142   : > { %920 = vst [vmem:[%s1471_s5] sm:$0xff] %v918_v41 }
 0x143   : > { %921 = vst [vmem:[%s1471_s5 + $0x8] sm:$0xff] %v919_v42 }
 0x144 PF: > { %s15_s20 = sadd.s32 1, %s1306_s20   ;;  %s1472_s18 = smov %s1302_s19 }
 0x145   : > { %p12_p8 = scmp.ge.s32.totalorder %s15_s20, 7   ;;  %s1473_s19 = smov %s1475_s21 }
 0x147   :  { %14 = sbr.rel (!%p12_p8) target bundleno = 2 (0x2), region = 90 }

// kernel: resnet_forward.24
= control target key start
LH: loop header
LB: loop body
LE: loop exit
PB: predicated region body
PF: predicated region fallthrough
CT: control target
= control target key end

     0   :  { %s1589_s15 = smov 0   ;;  %s1591_s16 = smov 0   ;;  %s1910_s0 = inlined_call_operand.vmem [shape: bf16[8,2560], index: 0, kind: input, shape index: {}]   ;;  %s1911_s1 = inlined_call_operand.vmem [shape: bf16[2560,512], index: 1, kind: input, shape index: {}]   ;;  %s1912_s2 = inlined_call_operand.vmem [shape: f32[1,512], index: 2, kind: input, shape index: {}]   ;;  %s1913_s3 = inlined_call_operand.vmem [shape: f32[1,512], index: 3, kind: input, shape index: {}]   ;;  %s1914_s4 = inlined_call_operand.vmem [shape: f32[8,512], index: 4, kind: output, shape index: {}]  }
   0x1   :  { %s1593_s17 = smov 0   ;;  %s1595_s18 = smov 0  }
   0x2   :  { %s1597_s19 = smov 0   ;;  %s1599_s20 = smov 0  }
   0x3   :  { %s1601_s21 = smov 0  }
   0x4 LB: > { %s26_s22 = sadd.s32 1, %s1553_s19  ;;  %s29_s23 = sadd.s32 1, %s1557_s20  ;;  %s1561_s21 = sphi %s1601_s21, %s14_s21   ;;  %s1557_s20 = sphi %s1599_s20, %s1920_s20   ;;  %s1553_s19 = sphi %s1597_s19, %s1919_s19   ;;  %s1549_s18 = sphi %s1595_s18, %s1918_s18   ;;  %s1545_s17 = sphi %s1593_s17, %s1917_s17   ;;  %s1541_s16 = sphi %s1591_s16, %s1916_s16   ;;  %s1537_s15 = sphi %s1589_s15, %s1915_s15  }
   0x5   : > { %p27_p0 = scmp.ge.s32.totalorder %s26_s22, 5  ;;  %p77_p1 = scmp.ne.s32.totalorder %s1541_s16, %s1537_s15 }
   0x6   : > { %p78_p2 = scmp.eq.s32.totalorder %s1561_s21, 0  ;;  %s70_s27 = sadd.s32 1, %s1541_s16 }
   0x7   : > { %s1922_s22 = smov (%p27_p0, %s26_s22), 0  ;;  %s1924_s23 = smov (!%p27_p0, %s29_s23), %s1557_s20 }
   0x8   : > { %p79_p3 = por %p78_p2, %p77_p1  ;;  %p31_p4 = scmp.ge.s32.totalorder %s1924_s23, 2 }
   0x9   : > { %s65_s24 = ssub.s32 %s1553_s19, %s1922_s22  ;;  %p1263_p6 = scmp.ge.s32.totalorder %s1561_s21, 10 }
   0xa   : > { %s1926_s23 = smov (%p31_p4, %s1924_s23), 0 }
   0xb   : > { %s66_s25 = ssub.s32 %s1557_s20, %s1926_s23  ;;  %183 = sbr.rel (%p1263_p6) target bundleno = 57 (0x39), region = 16 }
   0xc   : > { %s67_s26 = sor.u32 %s66_s25, %s65_s24 }
   0xd   : > { %p68_p5 = scmp.eq.s32.totalorder %s67_s26, 0 }
   0xf   : > { %s1640_s28 = scalar_select %p68_p5, %s1541_s16, %s70_s27  }
  0x12   : > { %199 = sbr.rel (!%p79_p3) target bundleno = 57 (0x39), region = 24  ;;  %s201_s29 = sand.u32 (%p79_p3), 1, %s1541_s16  }
  0x13   : > { %s1266_s30 = sshll.u32 (%p79_p3), %s1557_s20, 1  ;;  %s1264_s5 = sshll.u32 (%p79_p3), %s201_s29, 9 }
  0x14   : > { %s1349_s6 = sshll.u32 (%p79_p3), %s1553_s19, 8  ;;  %s1654_s12 = scalar_lea.vmem (%p79_p3), [#allocation3], %s1264_s5 }
  0x15   : > { %s207_s7 = sadd.s32 (%p79_p3), %s1349_s6, %s1266_s30 }
  0x16   : > { %s1268_s8 = sshll.u32 (%p79_p3), %s207_s7, 2 }
  0x17   : > { %s1649_s11 = scalar_lea.vmem (%p79_p3), %s1911_s1, %s1268_s8 }
  0x18   : > { %v363_v0 = vld [vmem:[%s1649_s11] sm:$0xff] (%p79_p3)  ;;  %v365_v1 = vld [vmem:[%s1649_s11 + $0x10] sm:$0xff] (%p79_p3) }
  0x19   : > { %v367_v2 = vld [vmem:[%s1649_s11 + $0x20] sm:$0xff]  ;;  %364 = vst [vmem:[%s1654_s12] sm:$0xff] %v363_v0  ;;  %366 = vst [vmem:[%s1654_s12 + $0x8] sm:$0xff] %v365_v1  ;;  %v369_v3 = vld [vmem:[%s1649_s11 + $0x30] sm:$0xff] }
  0x1a   : > { %368 = vst [vmem:[%s1654_s12 + $0x10] sm:$0xff] %v367_v2  ;;  %v371_v4 = vld [vmem:[%s1649_s11 + $0x40] sm:$0xff]  ;;  %v373_v5 = vld [vmem:[%s1649_s11 + $0x50] sm:$0xff]  ;;  %370 = vst [vmem:[%s1654_s12 + $0x18] sm:$0xff] %v369_v3 }
  0x1b   : > { %372 = vst [vmem:[%s1654_s12 + $0x20] sm:$0xff] %v371_v4  ;;  %374 = vst [vmem:[%s1654_s12 + $0x28] sm:$0xff] %v373_v5  ;;  %v375_v6 = vld [vmem:[%s1649_s11 + $0x60] sm:$0xff]  ;;  %v377_v7 = vld [vmem:[%s1649_s11 + $0x70] sm:$0xff] }
  0x1c   : > { %v379_v8 = vld [vmem:[%s1649_s11 + $0x80] sm:$0xff]  ;;  %376 = vst [vmem:[%s1654_s12 + $0x30] sm:$0xff] %v375_v6  ;;  %378 = vst [vmem:[%s1654_s12 + $0x38] sm:$0xff] %v377_v7  ;;  %v381_v9 = vld [vmem:[%s1649_s11 + $0x90] sm:$0xff] }
  0x1d   : > { %380 = vst [vmem:[%s1654_s12 + $0x40] sm:$0xff] %v379_v8  ;;  %v383_v10 = vld [vmem:[%s1649_s11 + $0xa0] sm:$0xff]  ;;  %v385_v11 = vld [vmem:[%s1649_s11 + $0xb0] sm:$0xff]  ;;  %382 = vst [vmem:[%s1654_s12 + $0x48] sm:$0xff] %v381_v9 }
  0x1e   : > { %384 = vst [vmem:[%s1654_s12 + $0x50] sm:$0xff] %v383_v10  ;;  %386 = vst [vmem:[%s1654_s12 + $0x58] sm:$0xff] %v385_v11  ;;  %v387_v12 = vld [vmem:[%s1649_s11 + $0xc0] sm:$0xff]  ;;  %v389_v13 = vld [vmem:[%s1649_s11 + $0xd0] sm:$0xff] }
  0x1f   : > { %v391_v14 = vld [vmem:[%s1649_s11 + $0xe0] sm:$0xff]  ;;  %388 = vst [vmem:[%s1654_s12 + $0x60] sm:$0xff] %v387_v12  ;;  %390 = vst [vmem:[%s1654_s12 + $0x68] sm:$0xff] %v389_v13  ;;  %v393_v15 = vld [vmem:[%s1649_s11 + $0xf0] sm:$0xff] }
  0x20   : > { %392 = vst [vmem:[%s1654_s12 + $0x70] sm:$0xff] %v391_v14  ;;  %v395_v16 = vld [vmem:[%s1649_s11 + $0x100] sm:$0xff]  ;;  %v397_v17 = vld [vmem:[%s1649_s11 + $0x110] sm:$0xff]  ;;  %394 = vst [vmem:[%s1654_s12 + $0x78] sm:$0xff] %v393_v15 }
  0x21   : > { %396 = vst [vmem:[%s1654_s12 + $0x80] sm:$0xff] %v395_v16  ;;  %398 = vst [vmem:[%s1654_s12 + $0x88] sm:$0xff] %v397_v17  ;;  %v399_v18 = vld [vmem:[%s1649_s11 + $0x120] sm:$0xff]  ;;  %v401_v19 = vld [vmem:[%s1649_s11 + $0x130] sm:$0xff] }
  0x22   : > { %v403_v20 = vld [vmem:[%s1649_s11 + $0x140] sm:$0xff]  ;;  %400 = vst [vmem:[%s1654_s12 + $0x90] sm:$0xff] %v399_v18  ;;  %402 = vst [vmem:[%s1654_s12 + $0x98] sm:$0xff] %v401_v19  ;;  %v405_v21 = vld [vmem:[%s1649_s11 + $0x150] sm:$0xff] }
  0x23   : > { %404 = vst [vmem:[%s1654_s12 + $0xa0] sm:$0xff] %v403_v20  ;;  %v407_v22 = vld [vmem:[%s1649_s11 + $0x160] sm:$0xff]  ;;  %v409_v23 = vld [vmem:[%s1649_s11 + $0x170] sm:$0xff]  ;;  %406 = vst [vmem:[%s1654_s12 + $0xa8] sm:$0xff] %v405_v21 }
  0x24   : > { %408 = vst [vmem:[%s1654_s12 + $0xb0] sm:$0xff] %v407_v22  ;;  %410 = vst [vmem:[%s1654_s12 + $0xb8] sm:$0xff] %v409_v23  ;;  %v411_v24 = vld [vmem:[%s1649_s11 + $0x180] sm:$0xff]  ;;  %v413_v25 = vld [vmem:[%s1649_s11 + $0x190] sm:$0xff] }
  0x25   : > { %v415_v26 = vld [vmem:[%s1649_s11 + $0x1a0] sm:$0xff]  ;;  %412 = vst [vmem:[%s1654_s12 + $0xc0] sm:$0xff] %v411_v24  ;;  %414 = vst [vmem:[%s1654_s12 + $0xc8] sm:$0xff] %v413_v25  ;;  %v417_v27 = vld [vmem:[%s1649_s11 + $0x1b0] sm:$0xff] }
  0x26   : > { %416 = vst [vmem:[%s1654_s12 + $0xd0] sm:$0xff] %v415_v26  ;;  %v419_v28 = vld [vmem:[%s1649_s11 + $0x1c0] sm:$0xff]  ;;  %v421_v29 = vld [vmem:[%s1649_s11 + $0x1d0] sm:$0xff]  ;;  %418 = vst [vmem:[%s1654_s12 + $0xd8] sm:$0xff] %v417_v27 }
  0x27   : > { %420 = vst [vmem:[%s1654_s12 + $0xe0] sm:$0xff] %v419_v28  ;;  %422 = vst [vmem:[%s1654_s12 + $0xe8] sm:$0xff] %v421_v29  ;;  %v423_v30 = vld [vmem:[%s1649_s11 + $0x1e0] sm:$0xff]  ;;  %v425_v31 = vld [vmem:[%s1649_s11 + $0x1f0] sm:$0xff] }
  0x28   : > { %v427_v32 = vld [vmem:[%s1649_s11 + $0x200] sm:$0xff]  ;;  %424 = vst [vmem:[%s1654_s12 + $0xf0] sm:$0xff] %v423_v30  ;;  %426 = vst [vmem:[%s1654_s12 + $0xf8] sm:$0xff] %v425_v31  ;;  %v429_v33 = vld [vmem:[%s1649_s11 + $0x210] sm:$0xff] }
  0x29   : > { %428 = vst [vmem:[%s1654_s12 + $0x100] sm:$0xff] %v427_v32  ;;  %v431_v34 = vld [vmem:[%s1649_s11 + $0x220] sm:$0xff]  ;;  %v433_v35 = vld [vmem:[%s1649_s11 + $0x230] sm:$0xff]  ;;  %430 = vst [vmem:[%s1654_s12 + $0x108] sm:$0xff] %v429_v33 }
  0x2a   : > { %432 = vst [vmem:[%s1654_s12 + $0x110] sm:$0xff] %v431_v34  ;;  %434 = vst [vmem:[%s1654_s12 + $0x118] sm:$0xff] %v433_v35  ;;  %v435_v36 = vld [vmem:[%s1649_s11 + $0x240] sm:$0xff]  ;;  %v437_v37 = vld [vmem:[%s1649_s11 + $0x250] sm:$0xff] }
  0x2b   : > { %v439_v38 = vld [vmem:[%s1649_s11 + $0x260] sm:$0xff]  ;;  %436 = vst [vmem:[%s1654_s12 + $0x120] sm:$0xff] %v435_v36  ;;  %438 = vst [vmem:[%s1654_s12 + $0x128] sm:$0xff] %v437_v37  ;;  %v441_v39 = vld [vmem:[%s1649_s11 + $0x270] sm:$0xff] }
  0x2c   : > { %440 = vst [vmem:[%s1654_s12 + $0x130] sm:$0xff] %v439_v38  ;;  %v443_v40 = vld [vmem:[%s1649_s11 + $0x280] sm:$0xff]  ;;  %v445_v41 = vld [vmem:[%s1649_s11 + $0x290] sm:$0xff]  ;;  %442 = vst [vmem:[%s1654_s12 + $0x138] sm:$0xff] %v441_v39 }
  0x2d   : > { %444 = vst [vmem:[%s1654_s12 + $0x140] sm:$0xff] %v443_v40  ;;  %446 = vst [vmem:[%s1654_s12 + $0x148] sm:$0xff] %v445_v41  ;;  %v447_v42 = vld [vmem:[%s1649_s11 + $0x2a0] sm:$0xff]  ;;  %v449_v43 = vld [vmem:[%s1649_s11 + $0x2b0] sm:$0xff] }
  0x2e   : > { %v451_v44 = vld [vmem:[%s1649_s11 + $0x2c0] sm:$0xff]  ;;  %448 = vst [vmem:[%s1654_s12 + $0x150] sm:$0xff] %v447_v42  ;;  %450 = vst [vmem:[%s1654_s12 + $0x158] sm:$0xff] %v449_v43  ;;  %v453_v45 = vld [vmem:[%s1649_s11 + $0x2d0] sm:$0xff] }
  0x2f   : > { %452 = vst [vmem:[%s1654_s12 + $0x160] sm:$0xff] %v451_v44  ;;  %v455_v46 = vld [vmem:[%s1649_s11 + $0x2e0] sm:$0xff]  ;;  %v457_v47 = vld [vmem:[%s1649_s11 + $0x2f0] sm:$0xff]  ;;  %454 = vst [vmem:[%s1654_s12 + $0x168] sm:$0xff] %v453_v45 }
  0x30   : > { %456 = vst [vmem:[%s1654_s12 + $0x170] sm:$0xff] %v455_v46  ;;  %458 = vst [vmem:[%s1654_s12 + $0x178] sm:$0xff] %v457_v47  ;;  %v459_v48 = vld [vmem:[%s1649_s11 + $0x300] sm:$0xff]  ;;  %v461_v49 = vld [vmem:[%s1649_s11 + $0x310] sm:$0xff] }
  0x31   : > { %v463_v50 = vld [vmem:[%s1649_s11 + $0x320] sm:$0xff]  ;;  %460 = vst [vmem:[%s1654_s12 + $0x180] sm:$0xff] %v459_v48  ;;  %462 = vst [vmem:[%s1654_s12 + $0x188] sm:$0xff] %v461_v49  ;;  %v465_v51 = vld [vmem:[%s1649_s11 + $0x330] sm:$0xff] }
  0x32   : > { %464 = vst [vmem:[%s1654_s12 + $0x190] sm:$0xff] %v463_v50  ;;  %v467_v52 = vld [vmem:[%s1649_s11 + $0x340] sm:$0xff]  ;;  %v469_v53 = vld [vmem:[%s1649_s11 + $0x350] sm:$0xff]  ;;  %466 = vst [vmem:[%s1654_s12 + $0x198] sm:$0xff] %v465_v51 }
  0x33   : > { %468 = vst [vmem:[%s1654_s12 + $0x1a0] sm:$0xff] %v467_v52  ;;  %470 = vst [vmem:[%s1654_s12 + $0x1a8] sm:$0xff] %v469_v53  ;;  %v471_v54 = vld [vmem:[%s1649_s11 + $0x360] sm:$0xff]  ;;  %v473_v55 = vld [vmem:[%s1649_s11 + $0x370] sm:$0xff] }
  0x34   : > { %v475_v56 = vld [vmem:[%s1649_s11 + $0x380] sm:$0xff]  ;;  %472 = vst [vmem:[%s1654_s12 + $0x1b0] sm:$0xff] %v471_v54  ;;  %474 = vst [vmem:[%s1654_s12 + $0x1b8] sm:$0xff] %v473_v55  ;;  %v477_v57 = vld [vmem:[%s1649_s11 + $0x390] sm:$0xff] }
  0x35   : > { %476 = vst [vmem:[%s1654_s12 + $0x1c0] sm:$0xff] %v475_v56  ;;  %v479_v58 = vld [vmem:[%s1649_s11 + $0x3a0] sm:$0xff]  ;;  %v481_v59 = vld [vmem:[%s1649_s11 + $0x3b0] sm:$0xff]  ;;  %478 = vst [vmem:[%s1654_s12 + $0x1c8] sm:$0xff] %v477_v57 }
  0x36   : > { %480 = vst [vmem:[%s1654_s12 + $0x1d0] sm:$0xff] %v479_v58  ;;  %482 = vst [vmem:[%s1654_s12 + $0x1d8] sm:$0xff] %v481_v59  ;;  %v483_v60 = vld [vmem:[%s1649_s11 + $0x3c0] sm:$0xff]  ;;  %v485_v61 = vld [vmem:[%s1649_s11 + $0x3d0] sm:$0xff] }
  0x37   : > { %v487_v62 = vld [vmem:[%s1649_s11 + $0x3e0] sm:$0xff]  ;;  %484 = vst [vmem:[%s1654_s12 + $0x1e0] sm:$0xff] %v483_v60  ;;  %486 = vst [vmem:[%s1654_s12 + $0x1e8] sm:$0xff] %v485_v61  ;;  %v489_v63 = vld [vmem:[%s1649_s11 + $0x3f0] sm:$0xff] }
  0x38   : > { %488 = vst [vmem:[%s1654_s12 + $0x1f0] sm:$0xff] %v487_v62  ;;  %490 = vst [vmem:[%s1654_s12 + $0x1f8] sm:$0xff] %v489_v63 }
  0x39 PF: > { %p1269_p7 = scmp.ge.s32.totalorder %s1561_s21, 1  ;;  %p511_p8 = scmp.lt.s32.totalorder %s1561_s21, 11 }
  0x3b   : > { %p512_p9 = pnand %p1269_p7, %p511_p8 }
  0x3c   : > { %s518_s13 = sand.u32 (!%p512_p9), 1, %s1537_s15   ;;  %s1271_s14 = sshll.u32 (!%p512_p9), %s1545_s17, 2 }
  0x3d   : > { %515 = sbr.rel (%p512_p9) target bundleno = 376 (0x178), region = 70  ;;  %s1270_s24 = sshll.u32 (!%p512_p9), %s518_s13, 9 }
  0x3e   : > { %p567_p10 = scmp.lt.s32.totalorder (!%p512_p9), %s1271_s14, 19  ;;  %s1273_s25 = sshll.u32 (!%p512_p9), %s1549_s18, 1 }
  0x3f   : > { %p577_p11 = scmp.lt.s32.totalorder (!%p512_p9), %s1273_s25, 3  ;;  %s1807_s13 = scalar_lea.vmem (!%p512_p9), [#allocation3], %s1270_s24 }
  0x40   : > { %p1277_p12 = scmp.ne.s32.totalorder (!%p512_p9), %s1545_s17, 0 }
  0x44   : > { %s1928_s14 = smov (!%p567_p10, %s1271_s14), 19  ;;  %s1930_s25 = smov (!%p577_p11, %s1273_s25), 3 }
  0x45   : > { %s1272_s26 = sshll.u32 %s1928_s14, 2  ;;  %s579_s15 = scalar_lea.vmem %s1912_s2, %s1930_s25  ;;  %v1563_v0 = vmov (!%p1277_p12), 0.0  }
  0x46   : > { %s1789_s30 = scalar_lea.vmem %s1910_s0, %s1272_s26  ;;  %s584_s18 = scalar_lea.vmem %s1913_s3, %s1930_s25  ;;  %600 = vst [vmem:[#allocation2] sm:$0xff] (!%p1277_p12), %v1563_v0  ;;  %601 = vst [vmem:[#allocation2 + $0x8] sm:$0xff] (!%p1277_p12), %v1563_v0 }
  0x47   : > { %s1276_s9 = sshll.u32 %s1930_s25, 3  ;;  %599 = sbr.rel (%p1277_p12) target bundleno = 78 (0x4e), region = 78 }
  0x48   : > { %s1805_s12 = scalar_lea.vmem %s1914_s4, %s1276_s9 }
  0x4e PF: > { %v1407_v1 = vld [vmem:[%s1807_s13 + $0x4] ss:$8 sps:$4 sm:$0xff]   ;;  %v1411_v3 = vld [vmem:[%s1807_s13] ss:$8 sps:$4 sm:$0xff]   ;;  %v1413_v5 = vld [vmem:[%s1807_s13 + $0x14] ss:$8 sps:$4 sm:$0xff]  }
  0x4f   : > { %v1409_v2 = vld [vmem:[%s1807_s13 + $0x104] ss:$8 sps:$4 sm:$0xff]   ;;  %1004 = vmatprep.subr.bf16.mxu0 %v1407_v1  ;;  %v1412_v4 = vld [vmem:[%s1807_s13 + $0x100] ss:$8 sps:$4 sm:$0xff]   ;;  %v1415_v6 = vld [vmem:[%s1807_s13 + $0x114] ss:$8 sps:$4 sm:$0xff]  }
  0x50   : > { %1045 = vmatprep.subr.bf16.mxu1 %v1409_v2  ;;  %1005 = vmatpush1.bf16.msra.mxu0 %v1411_v3  ;;  %v1417_v7 = vld [vmem:[%s1807_s13 + $0x10] ss:$8 sps:$4 sm:$0xff]   ;;  %v1419_v9 = vld [vmem:[%s1807_s13 + $0x24] ss:$8 sps:$4 sm:$0xff]   ;;  %v1423_v11 = vld [vmem:[%s1807_s13 + $0x20] ss:$8 sps:$4 sm:$0xff]  }
  0x51   : > { %1046 = vmatpush1.bf16.msra.mxu1 %v1412_v4  ;;  %1006 = vmatprep.subr.bf16.mxu0 %v1413_v5  ;;  %v1418_v8 = vld [vmem:[%s1807_s13 + $0x110] ss:$8 sps:$4 sm:$0xff]   ;;  %v1421_v10 = vld [vmem:[%s1807_s13 + $0x124] ss:$8 sps:$4 sm:$0xff]   ;;  %v1424_v12 = vld [vmem:[%s1807_s13 + $0x120] ss:$8 sps:$4 sm:$0xff]  }
  0x52   : > { %1047 = vmatprep.subr.bf16.mxu1 %v1415_v6  ;;  %v1425_v13 = vld [vmem:[%s1807_s13 + $0x34] ss:$8 sps:$4 sm:$0xff]   ;;  %v1429_v15 = vld [vmem:[%s1807_s13 + $0x30] ss:$8 sps:$4 sm:$0xff]   ;;  %v1431_v17 = vld [vmem:[%s1807_s13 + $0x44] ss:$8 sps:$4 sm:$0xff]  }
  0x53   : > { %v1427_v14 = vld [vmem:[%s1807_s13 + $0x134] ss:$8 sps:$4 sm:$0xff]   ;;  %v1430_v16 = vld [vmem:[%s1807_s13 + $0x130] ss:$8 sps:$4 sm:$0xff]   ;;  %v1433_v18 = vld [vmem:[%s1807_s13 + $0x144] ss:$8 sps:$4 sm:$0xff]  }
  0x54   : > { %1007 = vmatpush1.bf16.msra.mxu0 %v1417_v7  ;;  %v1435_v19 = vld [vmem:[%s1807_s13 + $0x40] ss:$8 sps:$4 sm:$0xff]   ;;  %v1437_v21 = vld [vmem:[%s1807_s13 + $0x54] ss:$8 sps:$4 sm:$0xff]   ;;  %v1441_v23 = vld [vmem:[%s1807_s13 + $0x50] ss:$8 sps:$4 sm:$0xff]  }
  0x55   : > { %1048 = vmatpush1.bf16.msra.mxu1 %v1418_v8  ;;  %1008 = vmatprep.subr.bf16.mxu0 %v1419_v9  ;;  %v1436_v20 = vld [vmem:[%s1807_s13 + $0x140] ss:$8 sps:$4 sm:$0xff]   ;;  %v1439_v22 = vld [vmem:[%s1807_s13 + $0x154] ss:$8 sps:$4 sm:$0xff]   ;;  %v1442_v24 = vld [vmem:[%s1807_s13 + $0x150] ss:$8 sps:$4 sm:$0xff]  }
  0x56   : > { %1049 = vmatprep.subr.bf16.mxu1 %v1421_v10  ;;  %v1443_v25 = vld [vmem:[%s1807_s13 + $0x64] ss:$8 sps:$4 sm:$0xff]   ;;  %v1447_v27 = vld [vmem:[%s1807_s13 + $0x60] ss:$8 sps:$4 sm:$0xff]   ;;  %v1449_v29 = vld [vmem:[%s1807_s13 + $0x74] ss:$8 sps:$4 sm:$0xff]  }
  0x57   : > { %v1445_v26 = vld [vmem:[%s1807_s13 + $0x164] ss:$8 sps:$4 sm:$0xff]   ;;  %v1448_v28 = vld [vmem:[%s1807_s13 + $0x160] ss:$8 sps:$4 sm:$0xff]   ;;  %v1451_v30 = vld [vmem:[%s1807_s13 + $0x174] ss:$8 sps:$4 sm:$0xff]  }
  0x58   : > { %1009 = vmatpush1.bf16.msra.mxu0 %v1423_v11  ;;  %v1453_v31 = vld [vmem:[%s1807_s13 + $0x70] ss:$8 sps:$4 sm:$0xff]   ;;  %v1455_v33 = vld [vmem:[%s1807_s13 + $0x84] ss:$8 sps:$4 sm:$0xff]   ;;  %v1459_v35 = vld [vmem:[%s1807_s13 + $0x80] ss:$8 sps:$4 sm:$0xff]  }
  0x59   : > { %1050 = vmatpush1.bf16.msra.mxu1 %v1424_v12  ;;  %1010 = vmatprep.subr.bf16.mxu0 %v1425_v13  ;;  %v1454_v32 = vld [vmem:[%s1807_s13 + $0x170] ss:$8 sps:$4 sm:$0xff]   ;;  %v1457_v34 = vld [vmem:[%s1807_s13 + $0x184] ss:$8 sps:$4 sm:$0xff]   ;;  %v1460_v36 = vld [vmem:[%s1807_s13 + $0x180] ss:$8 sps:$4 sm:$0xff]  }
  0x5a   : > { %1051 = vmatprep.subr.bf16.mxu1 %v1427_v14  ;;  %v1461_v37 = vld [vmem:[%s1807_s13 + $0x94] ss:$8 sps:$4 sm:$0xff]   ;;  %v1465_v39 = vld [vmem:[%s1807_s13 + $0x90] ss:$8 sps:$4 sm:$0xff]   ;;  %v1467_v41 = vld [vmem:[%s1807_s13 + $0xa4] ss:$8 sps:$4 sm:$0xff]  }
  0x5b   : > { %v1463_v38 = vld [vmem:[%s1807_s13 + $0x194] ss:$8 sps:$4 sm:$0xff]   ;;  %v1466_v40 = vld [vmem:[%s1807_s13 + $0x190] ss:$8 sps:$4 sm:$0xff]   ;;  %v1469_v42 = vld [vmem:[%s1807_s13 + $0x1a4] ss:$8 sps:$4 sm:$0xff]  }
  0x5c   : > { %1011 = vmatpush1.bf16.msra.mxu0 %v1429_v15  ;;  %v1471_v43 = vld [vmem:[%s1807_s13 + $0xa0] ss:$8 sps:$4 sm:$0xff]   ;;  %v1473_v45 = vld [vmem:[%s1807_s13 + $0xb4] ss:$8 sps:$4 sm:$0xff]   ;;  %v1477_v50 = vld [vmem:[%s1807_s13 + $0xb0] ss:$8 sps:$4 sm:$0xff]  }
  0x5d   : > { %1052 = vmatpush1.bf16.msra.mxu1 %v1430_v16  ;;  %1012 = vmatprep.subr.bf16.mxu0 %v1431_v17  ;;  %v1472_v44 = vld [vmem:[%s1807_s13 + $0x1a0] ss:$8 sps:$4 sm:$0xff]   ;;  %v1475_v46 = vld [vmem:[%s1807_s13 + $0x1b4] ss:$8 sps:$4 sm:$0xff]   ;;  %v1478_v51 = vld [vmem:[%s1807_s13 + $0x1b0] ss:$8 sps:$4 sm:$0xff]  }
  0x5e   : > { %1053 = vmatprep.subr.bf16.mxu1 %v1433_v18  ;;  %v604_v47 = vld [vmem:[%s1789_s30] sm:$0xff]  ;;  %v605_v49 = vld [vmem:[%s1789_s30 + $0x8] sm:$0xff]  ;;  %v1479_v53 = vld [vmem:[%s1807_s13 + $0xc4] ss:$8 sps:$4 sm:$0xff]   ;;  %p1346_p13 = scmp.ne.s32.totalorder %s1545_s17, 4 }
  0x5f   : > { %v1279_v48 = vcombine.high %v604_v47, %v604_v47  ;;  %v1281_v52 = vcombine.high %v605_v49, %v605_v49  ;;  %v1481_v54 = vld [vmem:[%s1807_s13 + $0x1c4] ss:$8 sps:$4 sm:$0xff]   ;;  %v1483_v55 = vld [vmem:[%s1807_s13 + $0xc0] ss:$8 sps:$4 sm:$0xff]   ;;  %v1485_v57 = vld [vmem:[%s1807_s13 + $0xd4] ss:$8 sps:$4 sm:$0xff]   ;;  %v1278_v5 = vcombine.low %v604_v47, %v604_v47  ;;  %v1280_v6 = vcombine.low %v605_v49, %v605_v49 }
  0x60   : > { %1013 = vmatpush1.bf16.msra.mxu0 %v1435_v19  ;;  %v1484_v56 = vld [vmem:[%s1807_s13 + $0x1c0] ss:$8 sps:$4 sm:$0xff]   ;;  %v1487_v58 = vld [vmem:[%s1807_s13 + $0x1d4] ss:$8 sps:$4 sm:$0xff]   ;;  %v1489_v59 = vld [vmem:[%s1807_s13 + $0xd0] ss:$8 sps:$4 sm:$0xff]  }
  0x61   : > { %1054 = vmatpush1.bf16.msra.mxu1 %v1436_v20  ;;  %1014 = vmatprep.subr.bf16.mxu0 %v1437_v21  ;;  %v1490_v60 = vld [vmem:[%s1807_s13 + $0x1d0] ss:$8 sps:$4 sm:$0xff]   ;;  %v1491_v61 = vld [vmem:[%s1807_s13 + $0xe4] ss:$8 sps:$4 sm:$0xff]   ;;  %v1495_v63 = vld [vmem:[%s1807_s13 + $0xe0] ss:$8 sps:$4 sm:$0xff]   ;;  %v1098_v21 = vlaneseq (!%p1346_p13) }
  0x62   : > { %1055 = vmatprep.subr.bf16.mxu1 %v1439_v22  ;;  %1036 = vmatprep.mubr.bf16.mxu0 %v1279_v48  ;;  %v1493_v62 = vld [vmem:[%s1807_s13 + $0x1e4] ss:$8 sps:$4 sm:$0xff]   ;;  %v1496_v0 = vld [vmem:[%s1807_s13 + $0x1e0] ss:$8 sps:$4 sm:$0xff]   ;;  %v1497_v1 = vld [vmem:[%s1807_s13 + $0xf4] ss:$8 sps:$4 sm:$0xff]  }
  0x63   : > { %1077 = vmatprep.mubr.bf16.mxu1 %v1281_v52  ;;  %v1499_v2 = vld [vmem:[%s1807_s13 + $0x1f4] ss:$8 sps:$4 sm:$0xff]   ;;  %v1501_v3 = vld [vmem:[%s1807_s13 + $0xf0] ss:$8 sps:$4 sm:$0xff]   ;;  %v1099_v22 = vshrl.u32 (!%p1346_p13), %v1098_v21, 7 }
  0x64   : > { %1015 = vmatpush1.bf16.msra.mxu0 %v1441_v23  ;;  %v1502_v4 = vld [vmem:[%s1807_s13 + $0x1f0] ss:$8 sps:$4 sm:$0xff]  }
  0x65   : > { %1056 = vmatpush1.bf16.msra.mxu1 %v1442_v24  ;;  %1016 = vmatprep.subr.bf16.mxu0 %v1443_v25  ;;  %v602_v8 = vld [vmem:[#allocation2] sm:$0xff]  ;;  %v603_v12 = vld [vmem:[#allocation2 + $0x8] sm:$0xff]  ;;  %v1100_v25 = vsub.s32 (!%p1346_p13), 0, %v1099_v22 }
  0x66   : > { %1057 = vmatprep.subr.bf16.mxu1 %v1445_v26  ;;  %v1096_v23 = vld [vmem:[%s579_s15] sm:$0x3] (!%p1346_p13)  ;;  %v1104_v26 = vsub.s32 (!%p1346_p13), 1, %v1099_v22 }
  0x67   : > { %v1110_v24 = vld [vmem:[%s584_s18] sm:$0x3] (!%p1346_p13) }
  0x68   : > { %1017 = vmatpush1.bf16.msra.mxu0 %v1447_v27 }
  0x69   : > { %1058 = vmatpush1.bf16.msra.mxu1 %v1448_v28  ;;  %1018 = vmatprep.subr.bf16.mxu0 %v1449_v29  ;;  %v1101_v29 = vrot.slane (!%p1346_p13), %v1096_v23, %v1100_v25 }
  0x6a   : > { %1059 = vmatprep.subr.bf16.mxu1 %v1451_v30  ;;  %v1115_v30 = vrot.slane (!%p1346_p13), %v1110_v24, %v1100_v25 }
  0x6c   : > { %1019 = vmatpush1.bf16.msra.mxu0 %v1453_v31  ;;  %v1105_v31 = vrot.slane (!%p1346_p13), %v1096_v23, %v1104_v26 }
  0x6d   : > { %1060 = vmatpush1.bf16.msra.mxu1 %v1454_v32  ;;  %1020 = vmatprep.subr.bf16.mxu0 %v1455_v33  ;;  %v1119_v32 = vrot.slane (!%p1346_p13), %v1110_v24, %v1104_v26 }
  0x6e   : > { %1061 = vmatprep.subr.bf16.mxu1 %v1457_v34 }
  0x70   : > { %1021 = vmatpush1.bf16.msra.mxu0 %v1459_v35 }
  0x71   : > { %1062 = vmatpush1.bf16.msra.mxu1 %v1460_v36  ;;  %1022 = vmatprep.subr.bf16.mxu0 %v1461_v37 }
  0x72   : > { %1063 = vmatprep.subr.bf16.mxu1 %v1463_v38 }
  0x74   : > { %1023 = vmatpush1.bf16.msra.mxu0 %v1465_v39 }
  0x75   : > { %1064 = vmatpush1.bf16.msra.mxu1 %v1466_v40  ;;  %1024 = vmatprep.subr.bf16.mxu0 %v1467_v41 }
  0x76   : > { %1065 = vmatprep.subr.bf16.mxu1 %v1469_v42 }
  0x78   : > { %1025 = vmatpush1.bf16.msra.mxu0 %v1471_v43 }
  0x79   : > { %1066 = vmatpush1.bf16.msra.mxu1 %v1472_v44  ;;  %1026 = vmatprep.subr.bf16.mxu0 %v1473_v45 }
  0x7a   : > { %1067 = vmatprep.subr.bf16.mxu1 %v1475_v46 }
  0x7c   : > { %1027 = vmatpush1.bf16.msra.mxu0 %v1477_v50 }
  0x7d   : > { %1068 = vmatpush1.bf16.msra.mxu1 %v1478_v51  ;;  %1028 = vmatprep.subr.bf16.mxu0 %v1479_v53 }
  0x7e   : > { %1069 = vmatprep.subr.bf16.mxu1 %v1481_v54 }
  0x80   : > { %1029 = vmatpush1.bf16.msra.mxu0 %v1483_v55 }
  0x81   : > { %1070 = vmatpush1.bf16.msra.mxu1 %v1484_v56  ;;  %1030 = vmatprep.subr.bf16.mxu0 %v1485_v57 }
  0x82   : > { %1071 = vmatprep.subr.bf16.mxu1 %v1487_v58 }
  0x84   : > { %1031 = vmatpush1.bf16.msra.mxu0 %v1489_v59 }
  0x85   : > { %1072 = vmatpush1.bf16.msra.mxu1 %v1490_v60  ;;  %1032 = vmatprep.subr.bf16.mxu0 %v1491_v61 }
  0x86   : > { %1073 = vmatprep.subr.bf16.mxu1 %v1493_v62 }
  0x88   : > { %1033 = vmatpush1.bf16.msra.mxu0 %v1495_v63 }
  0x89   : > { %1074 = vmatpush1.bf16.msra.mxu1 %v1496_v0  ;;  %1034 = vmatprep.subr.bf16.mxu0 %v1497_v1 }
  0x8a   : > { %1075 = vmatprep.subr.bf16.mxu1 %v1499_v2 }
  0x8c   : > { %1035 = vmatpush1.bf16.msra.mxu0 %v1501_v3 }
  0x8d   : > { %1076 = vmatpush1.bf16.msra.mxu1 %v1502_v4 }
  0x8f   : > { %1037 = vmatmul.mubr.bf16.vlgmr.msra.gmra.mrb[0].mxu0 %v1278_v5 }
  0x90   : > { %1078 = vmatmul.mubr.bf16.vlgmr.msra.gmra.mrb[0].mxu1 %v1280_v6 }
 0x162   : > { %v1038_v7 = vpop.f32.mrb[0].mxu0 }
 0x163   : > { %v1079_v9 = vpop.f32.mrb[0].mxu1  ;;  %v1040_v11 = vpop.f32.mrb[1].mxu0  ;;  %1093 = sbr.rel (%p1346_p13) target bundleno = 376 (0x178), region = 82 }
 0x164   : > { %v1080_v10 = vadd.f32 %v1079_v9, %v1038_v7  ;;  %v1081_v13 = vpop.f32.mrb[1].mxu1  ;;  %v1042_v15 = vpop.f32.mrb[2].mxu0 }
 0x165   : > { %v1082_v14 = vadd.f32 %v1081_v13, %v1040_v11  ;;  %v1083_v16 = vpop.f32.mrb[2].mxu1  ;;  %v1043_v18 = vpop.f32.mrb[3].mxu0 }
 0x166   : > { %v1086_v17 = vadd.f32 %v1080_v10, %v602_v8  ;;  %v1084_v19 = vpop.f32.mrb[3].mxu1 }
 0x167   : > { %v1087_v20 = vadd.f32 %v1082_v14, %v603_v12 }
 0x168   : > { %1088 = vst [vmem:[#allocation2] sm:$0xff] %v1086_v17 }
 0x169   : > { %1089 = vst [vmem:[#allocation2 + $0x8] sm:$0xff] %v1087_v20 }
 0x16f   : > { %v1094_v27 = vld [vmem:[#allocation2] sm:$0xff] }
 0x170   : > { %v1095_v28 = vld [vmem:[#allocation2 + $0x8] sm:$0xff]  ;;  %v1108_v33 = vmul.f32 %v1101_v29, %v1094_v27 }
 0x171   : > { %v1109_v34 = vmul.f32 %v1105_v31, %v1095_v28 }
 0x172   : > { %v1122_v35 = vadd.f32 %v1115_v30, %v1108_v33 }
 0x173   : > { %v1123_v36 = vadd.f32 %v1119_v32, %v1109_v34 }
 0x174   : > { %v1124_v37 = vmax.f32 %v1122_v35, 0.0 }
 0x175   : > { %v1125_v38 = vmax.f32 %v1123_v36, 0.0 }
 0x176   : > { %1126 = vst [vmem:[%s1805_s12] sm:$0xff] %v1124_v37 }
 0x177   : > { %1127 = vst [vmem:[%s1805_s12 + $0x8] sm:$0xff] %v1125_v38 }
 0x178 PF: > { %s14_s21 = sadd.s32 1, %s1561_s21   ;;  %s1915_s15 = smov %s1541_s16 }
 0x179   : > { %p11_p0 = scmp.ge.s32.totalorder %s14_s21, 12   ;;  %s1916_s16 = smov %s1640_s28 }
 0x17a   : > { %s1917_s17 = smov %s1553_s19  ;;  %s1918_s18 = smov %s1557_s20 }
 0x17b   : > { %s1919_s19 = smov %s1922_s22  ;;  %s1920_s20 = smov %s1926_s23 }
 0x17c   :  { %13 = sbr.rel (!%p11_p0) target bundleno = 4 (0x4), region = 126 }

// kernel: resnet_forward.25
= control target key start
LH: loop header
LB: loop body
LE: loop exit
PB: predicated region body
PF: predicated region fallthrough
CT: control target
= control target key end

     0   :  { %s1094_s15 = smov 0   ;;  %s1096_s16 = smov 0   ;;  %s1276_s0 = inlined_call_operand.vmem [shape: bf16[8,256], index: 0, kind: input, shape index: {}]   ;;  %s1277_s1 = inlined_call_operand.vmem [shape: bf16[256,512], index: 1, kind: input, shape index: {}]   ;;  %s1278_s2 = inlined_call_operand.vmem [shape: f32[1,512], index: 2, kind: input, shape index: {}]   ;;  %s1279_s3 = inlined_call_operand.vmem [shape: f32[1,512], index: 3, kind: input, shape index: {}]   ;;  %s1280_s4 = inlined_call_operand.vmem [shape: f32[8,512], index: 4, kind: output, shape index: {}]  }
   0x1   :  { %s1098_s17 = smov 0   ;;  %s1100_s18 = smov 0  }
   0x2   :  { %s1102_s19 = smov 0  }
   0x3 LB: > { %s29_s20 = sadd.s32 1, %s1063_s18  ;;  %p77_p1 = scmp.ne.s32.totalorder %s1055_s16, %s1051_s15  ;;  %s1067_s19 = sphi %s1102_s19, %s14_s19   ;;  %s1063_s18 = sphi %s1100_s18, %s1284_s18   ;;  %s1059_s17 = sphi %s1098_s17, %s1283_s17   ;;  %s1055_s16 = sphi %s1096_s16, %s1282_s16   ;;  %s1051_s15 = sphi %s1094_s15, %s1281_s15  }
   0x4   : > { %p31_p0 = scmp.ge.s32.totalorder %s29_s20, 2  ;;  %p78_p2 = scmp.eq.s32.totalorder %s1067_s19, 0 }
   0x5   : > { %s70_s22 = sadd.s32 1, %s1055_s16  ;;  %p892_p5 = scmp.ge.s32.totalorder %s1067_s19, 2 }
   0x6   : > { %s1286_s20 = smov (%p31_p0, %s29_s20), 0  ;;  %p79_p3 = por %p78_p2, %p77_p1 }
   0x7   : > { %s66_s21 = ssub.s32 %s1063_s18, %s1286_s20  ;;  %196 = sbr.rel (%p892_p5) target bundleno = 34 (0x22), region = 20 }
   0x8   : > { %p68_p4 = scmp.eq.s32.totalorder %s66_s21, 0 }
   0xa   : > { %s1129_s23 = scalar_select %p68_p4, %s1055_s16, %s70_s22  }
   0xe   : > { %199 = sbr.rel (!%p79_p3) target bundleno = 34 (0x22), region = 24  ;;  %s201_s24 = sand.u32 (%p79_p3), 1, %s1055_s16  }
   0xf   : > { %s938_s25 = sshll.u32 (%p79_p3), %s1063_s18, 3  ;;  %s893_s26 = sshll.u32 (%p79_p3), %s201_s24, 8 }
  0x10   : > { %s1137_s29 = scalar_lea.vmem (%p79_p3), %s1277_s1, %s938_s25  ;;  %s1142_s30 = scalar_lea.vmem (%p79_p3), [#allocation3], %s893_s26 }
  0x11   : > { %v299_v0 = vld [vmem:[%s1137_s29] sm:$0xff] (%p79_p3)  ;;  %v301_v1 = vld [vmem:[%s1137_s29 + $0x10] sm:$0xff] (%p79_p3) }
  0x12   : > { %v303_v2 = vld [vmem:[%s1137_s29 + $0x20] sm:$0xff] (%p79_p3)  ;;  %300 = vst [vmem:[%s1142_s30] sm:$0xff] (%p79_p3), %v299_v0  ;;  %302 = vst [vmem:[%s1142_s30 + $0x8] sm:$0xff] (%p79_p3), %v301_v1  ;;  %v305_v3 = vld [vmem:[%s1137_s29 + $0x30] sm:$0xff] (%p79_p3) }
  0x13   : > { %304 = vst [vmem:[%s1142_s30 + $0x10] sm:$0xff] (%p79_p3), %v303_v2  ;;  %v307_v4 = vld [vmem:[%s1137_s29 + $0x40] sm:$0xff] (%p79_p3)  ;;  %v309_v5 = vld [vmem:[%s1137_s29 + $0x50] sm:$0xff] (%p79_p3)  ;;  %306 = vst [vmem:[%s1142_s30 + $0x18] sm:$0xff] (%p79_p3), %v305_v3 }
  0x14   : > { %308 = vst [vmem:[%s1142_s30 + $0x20] sm:$0xff] (%p79_p3), %v307_v4  ;;  %310 = vst [vmem:[%s1142_s30 + $0x28] sm:$0xff] (%p79_p3), %v309_v5  ;;  %v311_v6 = vld [vmem:[%s1137_s29 + $0x60] sm:$0xff] (%p79_p3)  ;;  %v313_v7 = vld [vmem:[%s1137_s29 + $0x70] sm:$0xff] (%p79_p3) }
  0x15   : > { %v315_v8 = vld [vmem:[%s1137_s29 + $0x80] sm:$0xff]  ;;  %312 = vst [vmem:[%s1142_s30 + $0x30] sm:$0xff] %v311_v6  ;;  %314 = vst [vmem:[%s1142_s30 + $0x38] sm:$0xff] %v313_v7  ;;  %v317_v9 = vld [vmem:[%s1137_s29 + $0x90] sm:$0xff] }
  0x16   : > { %316 = vst [vmem:[%s1142_s30 + $0x40] sm:$0xff] %v315_v8  ;;  %v319_v10 = vld [vmem:[%s1137_s29 + $0xa0] sm:$0xff]  ;;  %v321_v11 = vld [vmem:[%s1137_s29 + $0xb0] sm:$0xff]  ;;  %318 = vst [vmem:[%s1142_s30 + $0x48] sm:$0xff] %v317_v9 }
  0x17   : > { %320 = vst [vmem:[%s1142_s30 + $0x50] sm:$0xff] %v319_v10  ;;  %322 = vst [vmem:[%s1142_s30 + $0x58] sm:$0xff] %v321_v11  ;;  %v323_v12 = vld [vmem:[%s1137_s29 + $0xc0] sm:$0xff]  ;;  %v325_v13 = vld [vmem:[%s1137_s29 + $0xd0] sm:$0xff] }
  0x18   : > { %v327_v14 = vld [vmem:[%s1137_s29 + $0xe0] sm:$0xff]  ;;  %324 = vst [vmem:[%s1142_s30 + $0x60] sm:$0xff] %v323_v12  ;;  %326 = vst [vmem:[%s1142_s30 + $0x68] sm:$0xff] %v325_v13  ;;  %v329_v15 = vld [vmem:[%s1137_s29 + $0xf0] sm:$0xff] }
  0x19   : > { %328 = vst [vmem:[%s1142_s30 + $0x70] sm:$0xff] %v327_v14  ;;  %v331_v16 = vld [vmem:[%s1137_s29 + $0x100] sm:$0xff]  ;;  %v333_v17 = vld [vmem:[%s1137_s29 + $0x110] sm:$0xff]  ;;  %330 = vst [vmem:[%s1142_s30 + $0x78] sm:$0xff] %v329_v15 }
  0x1a   : > { %332 = vst [vmem:[%s1142_s30 + $0x80] sm:$0xff] %v331_v16  ;;  %334 = vst [vmem:[%s1142_s30 + $0x88] sm:$0xff] %v333_v17  ;;  %v335_v18 = vld [vmem:[%s1137_s29 + $0x120] sm:$0xff]  ;;  %v337_v19 = vld [vmem:[%s1137_s29 + $0x130] sm:$0xff] }
  0x1b   : > { %v339_v20 = vld [vmem:[%s1137_s29 + $0x140] sm:$0xff]  ;;  %336 = vst [vmem:[%s1142_s30 + $0x90] sm:$0xff] %v335_v18  ;;  %338 = vst [vmem:[%s1142_s30 + $0x98] sm:$0xff] %v337_v19  ;;  %v341_v21 = vld [vmem:[%s1137_s29 + $0x150] sm:$0xff] }
  0x1c   : > { %340 = vst [vmem:[%s1142_s30 + $0xa0] sm:$0xff] %v339_v20  ;;  %v343_v22 = vld [vmem:[%s1137_s29 + $0x160] sm:$0xff]  ;;  %v345_v23 = vld [vmem:[%s1137_s29 + $0x170] sm:$0xff]  ;;  %342 = vst [vmem:[%s1142_s30 + $0xa8] sm:$0xff] %v341_v21 }
  0x1d   : > { %344 = vst [vmem:[%s1142_s30 + $0xb0] sm:$0xff] %v343_v22  ;;  %346 = vst [vmem:[%s1142_s30 + $0xb8] sm:$0xff] %v345_v23  ;;  %v347_v24 = vld [vmem:[%s1137_s29 + $0x180] sm:$0xff]  ;;  %v349_v25 = vld [vmem:[%s1137_s29 + $0x190] sm:$0xff] }
  0x1e   : > { %v351_v26 = vld [vmem:[%s1137_s29 + $0x1a0] sm:$0xff]  ;;  %348 = vst [vmem:[%s1142_s30 + $0xc0] sm:$0xff] %v347_v24  ;;  %350 = vst [vmem:[%s1142_s30 + $0xc8] sm:$0xff] %v349_v25  ;;  %v353_v27 = vld [vmem:[%s1137_s29 + $0x1b0] sm:$0xff] }
  0x1f   : > { %352 = vst [vmem:[%s1142_s30 + $0xd0] sm:$0xff] %v351_v26  ;;  %v355_v28 = vld [vmem:[%s1137_s29 + $0x1c0] sm:$0xff]  ;;  %v357_v29 = vld [vmem:[%s1137_s29 + $0x1d0] sm:$0xff]  ;;  %354 = vst [vmem:[%s1142_s30 + $0xd8] sm:$0xff] %v353_v27 }
  0x20   : > { %356 = vst [vmem:[%s1142_s30 + $0xe0] sm:$0xff] %v355_v28  ;;  %358 = vst [vmem:[%s1142_s30 + $0xe8] sm:$0xff] %v357_v29  ;;  %v359_v30 = vld [vmem:[%s1137_s29 + $0x1e0] sm:$0xff]  ;;  %v361_v31 = vld [vmem:[%s1137_s29 + $0x1f0] sm:$0xff] }
  0x21   : > { %360 = vst [vmem:[%s1142_s30 + $0xf0] sm:$0xff] %v359_v30  ;;  %362 = vst [vmem:[%s1142_s30 + $0xf8] sm:$0xff] %v361_v31 }
  0x22 PF: > { %p896_p6 = scmp.ge.s32.totalorder %s1067_s19, 1  ;;  %p383_p7 = scmp.lt.s32.totalorder %s1067_s19, 3 }
  0x24   : > { %p384_p8 = pnand %p896_p6, %p383_p7 }
  0x25   : > { %s390_s5 = sand.u32 (!%p384_p8), 1, %s1051_s15   ;;  %v1211_v32 = vld [vmem:[%s1276_s0] sm:$0xff] (!%p384_p8)  ;;  %s898_s10 = sshll.u32 (!%p384_p8), %s1059_s17, 1  ;;  %v728_v3 = vlaneseq (!%p384_p8) }
  0x26   : > { %387 = sbr.rel (%p384_p8) target bundleno = 323 (0x143), region = 70  ;;  %s897_s8 = sshll.u32 (!%p384_p8), %s390_s5, 8  ;;  %v903_v33 = vcombine.high (!%p384_p8), %v1211_v32, %v1211_v32  ;;  %v902_v2 = vcombine.low (!%p384_p8), %v1211_v32, %v1211_v32 }
  0x27   : > { %s1215_s9 = scalar_lea.vmem (!%p384_p8), [#allocation3], %s897_s8  ;;  %p449_p9 = scmp.lt.s32.totalorder (!%p384_p8), %s898_s10, 3  ;;  %v729_v4 = vshrl.u32 (!%p384_p8), %v728_v3, 7 }
  0x28   : > { %v979_v34 = vld [vmem:[%s1215_s9 + $0x4] ss:$8 sps:$4 sm:$0xff] (!%p384_p8)   ;;  %708 = vmatprep.mubr.bf16.mxu0 (!%p384_p8), %v903_v33  ;;  %v981_v35 = vld [vmem:[%s1215_s9] ss:$8 sps:$4 sm:$0xff] (!%p384_p8)   ;;  %v982_v36 = vld [vmem:[%s1215_s9 + $0x14] ss:$8 sps:$4 sm:$0xff] (!%p384_p8)  }
  0x29   : > { %676 = vmatprep.subr.bf16.mxu0 (!%p384_p8), %v979_v34  ;;  %v984_v37 = vld [vmem:[%s1215_s9 + $0x10] ss:$8 sps:$4 sm:$0xff] (!%p384_p8)   ;;  %v985_v38 = vld [vmem:[%s1215_s9 + $0x24] ss:$8 sps:$4 sm:$0xff] (!%p384_p8)   ;;  %v987_v39 = vld [vmem:[%s1215_s9 + $0x20] ss:$8 sps:$4 sm:$0xff] (!%p384_p8)  }
  0x2a   : > { %677 = vmatpush1.bf16.msra.mxu0 (!%p384_p8), %v981_v35  ;;  %v988_v40 = vld [vmem:[%s1215_s9 + $0x34] ss:$8 sps:$4 sm:$0xff] (!%p384_p8)   ;;  %v990_v41 = vld [vmem:[%s1215_s9 + $0x30] ss:$8 sps:$4 sm:$0xff] (!%p384_p8)   ;;  %v991_v42 = vld [vmem:[%s1215_s9 + $0x44] ss:$8 sps:$4 sm:$0xff] (!%p384_p8)  }
  0x2b   : > { %678 = vmatprep.subr.bf16.mxu0 (!%p384_p8), %v982_v36  ;;  %v993_v43 = vld [vmem:[%s1215_s9 + $0x40] ss:$8 sps:$4 sm:$0xff] (!%p384_p8)   ;;  %v994_v44 = vld [vmem:[%s1215_s9 + $0x54] ss:$8 sps:$4 sm:$0xff] (!%p384_p8)   ;;  %v996_v45 = vld [vmem:[%s1215_s9 + $0x50] ss:$8 sps:$4 sm:$0xff] (!%p384_p8)  }
  0x2c   : > { %v997_v46 = vld [vmem:[%s1215_s9 + $0x64] ss:$8 sps:$4 sm:$0xff] (!%p384_p8)   ;;  %v999_v47 = vld [vmem:[%s1215_s9 + $0x60] ss:$8 sps:$4 sm:$0xff] (!%p384_p8)   ;;  %v1000_v48 = vld [vmem:[%s1215_s9 + $0x74] ss:$8 sps:$4 sm:$0xff] (!%p384_p8)  }
  0x2d   : > { %v1002_v49 = vld [vmem:[%s1215_s9 + $0x70] ss:$8 sps:$4 sm:$0xff]   ;;  %v1003_v50 = vld [vmem:[%s1215_s9 + $0x84] ss:$8 sps:$4 sm:$0xff]   ;;  %v1005_v51 = vld [vmem:[%s1215_s9 + $0x80] ss:$8 sps:$4 sm:$0xff]  }
  0x2e   : > { %679 = vmatpush1.bf16.msra.mxu0 %v984_v37  ;;  %v1006_v52 = vld [vmem:[%s1215_s9 + $0x94] ss:$8 sps:$4 sm:$0xff]   ;;  %v1008_v53 = vld [vmem:[%s1215_s9 + $0x90] ss:$8 sps:$4 sm:$0xff]   ;;  %v1009_v54 = vld [vmem:[%s1215_s9 + $0xa4] ss:$8 sps:$4 sm:$0xff]  }
  0x2f   : > { %680 = vmatprep.subr.bf16.mxu0 %v985_v38  ;;  %v1011_v55 = vld [vmem:[%s1215_s9 + $0xa0] ss:$8 sps:$4 sm:$0xff]   ;;  %v1012_v56 = vld [vmem:[%s1215_s9 + $0xb4] ss:$8 sps:$4 sm:$0xff]   ;;  %v1014_v57 = vld [vmem:[%s1215_s9 + $0xb0] ss:$8 sps:$4 sm:$0xff]  }
  0x30   : > { %v1015_v58 = vld [vmem:[%s1215_s9 + $0xc4] ss:$8 sps:$4 sm:$0xff]   ;;  %v1017_v59 = vld [vmem:[%s1215_s9 + $0xc0] ss:$8 sps:$4 sm:$0xff]   ;;  %v1018_v60 = vld [vmem:[%s1215_s9 + $0xd4] ss:$8 sps:$4 sm:$0xff]  }
  0x31   : > { %v1020_v61 = vld [vmem:[%s1215_s9 + $0xd0] ss:$8 sps:$4 sm:$0xff]   ;;  %v1021_v62 = vld [vmem:[%s1215_s9 + $0xe4] ss:$8 sps:$4 sm:$0xff]   ;;  %v1023_v63 = vld [vmem:[%s1215_s9 + $0xe0] ss:$8 sps:$4 sm:$0xff]  }
  0x32   : > { %681 = vmatpush1.bf16.msra.mxu0 %v987_v39  ;;  %v1024_v0 = vld [vmem:[%s1215_s9 + $0xf4] ss:$8 sps:$4 sm:$0xff]   ;;  %v1026_v1 = vld [vmem:[%s1215_s9 + $0xf0] ss:$8 sps:$4 sm:$0xff]   ;;  %s1288_s10 = smov (!%p449_p9, %s898_s10), 3  ;;  %v730_v5 = vsub.s32 0, %v729_v4 }
  0x33   : > { %682 = vmatprep.subr.bf16.mxu0 %v988_v40  ;;  %s451_s13 = scalar_lea.vmem %s1278_s2, %s1288_s10  ;;  %s456_s21 = scalar_lea.vmem %s1279_s3, %s1288_s10  ;;  %v734_v7 = vsub.s32 1, %v729_v4 }
  0x34   : > { %v726_v6 = vld [vmem:[%s451_s13] sm:$0x3]  ;;  %s901_s22 = sshll.u32 %s1288_s10, 3 }
  0x35   : > { %v740_v8 = vld [vmem:[%s456_s21] sm:$0x3]  ;;  %v731_v9 = vrot.slane %v726_v6, %v730_v5  ;;  %v735_v10 = vrot.slane %v726_v6, %v734_v7  ;;  %s466_s25 = scalar_lea.vmem %s1280_s4, %s901_s22 }
  0x36   : > { %683 = vmatpush1.bf16.msra.mxu0 %v990_v41  ;;  %v745_v11 = vrot.slane %v740_v8, %v730_v5  ;;  %v749_v13 = vrot.slane %v740_v8, %v734_v7 }
  0x37   : > { %684 = vmatprep.subr.bf16.mxu0 %v991_v42 }
  0x3a   : > { %685 = vmatpush1.bf16.msra.mxu0 %v993_v43 }
  0x3b   : > { %686 = vmatprep.subr.bf16.mxu0 %v994_v44 }
  0x3e   : > { %687 = vmatpush1.bf16.msra.mxu0 %v996_v45 }
  0x3f   : > { %688 = vmatprep.subr.bf16.mxu0 %v997_v46 }
  0x42   : > { %689 = vmatpush1.bf16.msra.mxu0 %v999_v47 }
  0x43   : > { %690 = vmatprep.subr.bf16.mxu0 %v1000_v48 }
  0x46   : > { %691 = vmatpush1.bf16.msra.mxu0 %v1002_v49 }
  0x47   : > { %692 = vmatprep.subr.bf16.mxu0 %v1003_v50 }
  0x4a   : > { %693 = vmatpush1.bf16.msra.mxu0 %v1005_v51 }
  0x4b   : > { %694 = vmatprep.subr.bf16.mxu0 %v1006_v52 }
  0x4e   : > { %695 = vmatpush1.bf16.msra.mxu0 %v1008_v53 }
  0x4f   : > { %696 = vmatprep.subr.bf16.mxu0 %v1009_v54 }
  0x52   : > { %697 = vmatpush1.bf16.msra.mxu0 %v1011_v55 }
  0x53   : > { %698 = vmatprep.subr.bf16.mxu0 %v1012_v56 }
  0x56   : > { %699 = vmatpush1.bf16.msra.mxu0 %v1014_v57 }
  0x57   : > { %700 = vmatprep.subr.bf16.mxu0 %v1015_v58 }
  0x5a   : > { %701 = vmatpush1.bf16.msra.mxu0 %v1017_v59 }
  0x5b   : > { %702 = vmatprep.subr.bf16.mxu0 %v1018_v60 }
  0x5e   : > { %703 = vmatpush1.bf16.msra.mxu0 %v1020_v61 }
  0x5f   : > { %704 = vmatprep.subr.bf16.mxu0 %v1021_v62 }
  0x62   : > { %705 = vmatpush1.bf16.msra.mxu0 %v1023_v63 }
  0x63   : > { %706 = vmatprep.subr.bf16.mxu0 %v1024_v0 }
  0x66   : > { %707 = vmatpush1.bf16.msra.mxu0 %v1026_v1 }
  0x69   : > { %709 = vmatmul.mubr.bf16.vlgmr.msra.gmra.mrb[0].mxu0 %v902_v2 }
 0x13c   : > { %v710_v12 = vpop.f32.mrb[0].mxu0 }
 0x13d   : > { %v738_v14 = vmul.f32 %v731_v9, %v710_v12  ;;  %v712_v15 = vpop.f32.mrb[1].mxu0 }
 0x13e   : > { %v739_v16 = vmul.f32 %v735_v10, %v712_v15  ;;  %v714_v17 = vpop.f32.mrb[2].mxu0 }
 0x13f   : > { %v752_v18 = vadd.f32 %v745_v11, %v738_v14  ;;  %v715_v19 = vpop.f32.mrb[3].mxu0 }
 0x140   : > { %v753_v20 = vadd.f32 %v749_v13, %v739_v16 }
 0x141   : > { %754 = vst [vmem:[%s466_s25] sm:$0xff] %v752_v18 }
 0x142   : > { %755 = vst [vmem:[%s466_s25 + $0x8] sm:$0xff] %v753_v20 }
 0x143 PF: > { %s14_s19 = sadd.s32 1, %s1067_s19   ;;  %s1281_s15 = smov %s1055_s16 }
 0x144   : > { %p11_p10 = scmp.ge.s32.totalorder %s14_s19, 4   ;;  %s1282_s16 = smov %s1129_s23 }
 0x145   : > { %s1283_s17 = smov %s1063_s18  ;;  %s1284_s18 = smov %s1286_s20 }
 0x146   :  { %13 = sbr.rel (!%p11_p10) target bundleno = 3 (0x3), region = 126 }

// kernel: resnet_forward.26
= control target key start
LH: loop header
LB: loop body
LE: loop exit
PB: predicated region body
PF: predicated region fallthrough
CT: control target
= control target key end

     0   :  { %s1681_s18 = smov 0   ;;  %s1683_s19 = smov 0   ;;  %s2009_s0 = inlined_call_operand.vmem [shape: bf16[8,4608], index: 0, kind: input, shape index: {}]   ;;  %s2010_s1 = inlined_call_operand.vmem [shape: bf16[4608,512], index: 1, kind: input, shape index: {}]   ;;  %s2011_s2 = inlined_call_operand.vmem [shape: f32[1,512], index: 2, kind: input, shape index: {}]   ;;  %s2012_s3 = inlined_call_operand.vmem [shape: f32[1,512], index: 3, kind: input, shape index: {}]   ;;  %s2013_s4 = inlined_call_operand.vmem [shape: f32[8,512], index: 4, kind: input, shape index: {}]   ;;  %s2014_s5 = inlined_call_operand.vmem [shape: f32[8,512], index: 5, kind: output, shape index: {}]  }
   0x1   :  { %s1685_s20 = smov 0   ;;  %s1687_s21 = smov 0  }
   0x2   :  { %s1689_s22 = smov 0   ;;  %s1691_s23 = smov 0  }
   0x3   :  { %s1693_s24 = smov 0  }
   0x4 LB: > { %s27_s25 = sadd.s32 1, %s1640_s22  ;;  %s30_s26 = sadd.s32 1, %s1644_s23  ;;  %s1648_s24 = sphi %s1693_s24, %s15_s24   ;;  %s1644_s23 = sphi %s1691_s23, %s2020_s23   ;;  %s1640_s22 = sphi %s1689_s22, %s2019_s22   ;;  %s1636_s21 = sphi %s1687_s21, %s2018_s21   ;;  %s1632_s20 = sphi %s1685_s20, %s2017_s20   ;;  %s1628_s19 = sphi %s1683_s19, %s2016_s19   ;;  %s1624_s18 = sphi %s1681_s18, %s2015_s18  }
   0x5   : > { %p28_p0 = scmp.ge.s32.totalorder %s27_s25, 9  ;;  %p78_p1 = scmp.ne.s32.totalorder %s1628_s19, %s1624_s18 }
   0x6   : > { %p79_p2 = scmp.eq.s32.totalorder %s1648_s24, 0  ;;  %s71_s30 = sadd.s32 1, %s1628_s19 }
   0x7   : > { %s2022_s25 = smov (%p28_p0, %s27_s25), 0  ;;  %s2024_s26 = smov (!%p28_p0, %s30_s26), %s1644_s23 }
   0x8   : > { %p80_p3 = por %p79_p2, %p78_p1  ;;  %p32_p4 = scmp.ge.s32.totalorder %s2024_s26, 2 }
   0x9   : > { %s66_s27 = ssub.s32 %s1640_s22, %s2022_s25  ;;  %p1348_p6 = scmp.ge.s32.totalorder %s1648_s24, 18 }
   0xa   : > { %s2026_s26 = smov (%p32_p4, %s2024_s26), 0 }
   0xb   : > { %s67_s28 = ssub.s32 %s1644_s23, %s2026_s26  ;;  %212 = sbr.rel (%p1348_p6) target bundleno = 57 (0x39), region = 16 }
   0xc   : > { %s68_s29 = sor.u32 %s67_s28, %s66_s27 }
   0xd   : > { %p69_p5 = scmp.eq.s32.totalorder %s68_s29, 0 }
   0xf   : > { %s1732_s6 = scalar_select %p69_p5, %s1628_s19, %s71_s30  }
  0x12   : > { %228 = sbr.rel (!%p80_p3) target bundleno = 57 (0x39), region = 24  ;;  %s230_s7 = sand.u32 (%p80_p3), 1, %s1628_s19  }
  0x13   : > { %s1351_s8 = sshll.u32 (%p80_p3), %s1644_s23, 1  ;;  %s1349_s9 = sshll.u32 (%p80_p3), %s230_s7, 9 }
  0x14   : > { %s1436_s10 = sshll.u32 (%p80_p3), %s1640_s22, 8  ;;  %s1746_s16 = scalar_lea.vmem (%p80_p3), [#allocation3], %s1349_s9 }
  0x15   : > { %s236_s11 = sadd.s32 (%p80_p3), %s1436_s10, %s1351_s8 }
  0x16   : > { %s1353_s12 = sshll.u32 (%p80_p3), %s236_s11, 2 }
  0x17   : > { %s1741_s15 = scalar_lea.vmem (%p80_p3), %s2010_s1, %s1353_s12 }
  0x18   : > { %v392_v0 = vld [vmem:[%s1741_s15] sm:$0xff] (%p80_p3)  ;;  %v394_v1 = vld [vmem:[%s1741_s15 + $0x10] sm:$0xff] (%p80_p3) }
  0x19   : > { %v396_v2 = vld [vmem:[%s1741_s15 + $0x20] sm:$0xff]  ;;  %393 = vst [vmem:[%s1746_s16] sm:$0xff] %v392_v0  ;;  %395 = vst [vmem:[%s1746_s16 + $0x8] sm:$0xff] %v394_v1  ;;  %v398_v3 = vld [vmem:[%s1741_s15 + $0x30] sm:$0xff] }
  0x1a   : > { %397 = vst [vmem:[%s1746_s16 + $0x10] sm:$0xff] %v396_v2  ;;  %v400_v4 = vld [vmem:[%s1741_s15 + $0x40] sm:$0xff]  ;;  %v402_v5 = vld [vmem:[%s1741_s15 + $0x50] sm:$0xff]  ;;  %399 = vst [vmem:[%s1746_s16 + $0x18] sm:$0xff] %v398_v3 }
  0x1b   : > { %401 = vst [vmem:[%s1746_s16 + $0x20] sm:$0xff] %v400_v4  ;;  %403 = vst [vmem:[%s1746_s16 + $0x28] sm:$0xff] %v402_v5  ;;  %v404_v6 = vld [vmem:[%s1741_s15 + $0x60] sm:$0xff]  ;;  %v406_v7 = vld [vmem:[%s1741_s15 + $0x70] sm:$0xff] }
  0x1c   : > { %v408_v8 = vld [vmem:[%s1741_s15 + $0x80] sm:$0xff]  ;;  %405 = vst [vmem:[%s1746_s16 + $0x30] sm:$0xff] %v404_v6  ;;  %407 = vst [vmem:[%s1746_s16 + $0x38] sm:$0xff] %v406_v7  ;;  %v410_v9 = vld [vmem:[%s1741_s15 + $0x90] sm:$0xff] }
  0x1d   : > { %409 = vst [vmem:[%s1746_s16 + $0x40] sm:$0xff] %v408_v8  ;;  %v412_v10 = vld [vmem:[%s1741_s15 + $0xa0] sm:$0xff]  ;;  %v414_v11 = vld [vmem:[%s1741_s15 + $0xb0] sm:$0xff]  ;;  %411 = vst [vmem:[%s1746_s16 + $0x48] sm:$0xff] %v410_v9 }
  0x1e   : > { %413 = vst [vmem:[%s1746_s16 + $0x50] sm:$0xff] %v412_v10  ;;  %415 = vst [vmem:[%s1746_s16 + $0x58] sm:$0xff] %v414_v11  ;;  %v416_v12 = vld [vmem:[%s1741_s15 + $0xc0] sm:$0xff]  ;;  %v418_v13 = vld [vmem:[%s1741_s15 + $0xd0] sm:$0xff] }
  0x1f   : > { %v420_v14 = vld [vmem:[%s1741_s15 + $0xe0] sm:$0xff]  ;;  %417 = vst [vmem:[%s1746_s16 + $0x60] sm:$0xff] %v416_v12  ;;  %419 = vst [vmem:[%s1746_s16 + $0x68] sm:$0xff] %v418_v13  ;;  %v422_v15 = vld [vmem:[%s1741_s15 + $0xf0] sm:$0xff] }
  0x20   : > { %421 = vst [vmem:[%s1746_s16 + $0x70] sm:$0xff] %v420_v14  ;;  %v424_v16 = vld [vmem:[%s1741_s15 + $0x100] sm:$0xff]  ;;  %v426_v17 = vld [vmem:[%s1741_s15 + $0x110] sm:$0xff]  ;;  %423 = vst [vmem:[%s1746_s16 + $0x78] sm:$0xff] %v422_v15 }
  0x21   : > { %425 = vst [vmem:[%s1746_s16 + $0x80] sm:$0xff] %v424_v16  ;;  %427 = vst [vmem:[%s1746_s16 + $0x88] sm:$0xff] %v426_v17  ;;  %v428_v18 = vld [vmem:[%s1741_s15 + $0x120] sm:$0xff]  ;;  %v430_v19 = vld [vmem:[%s1741_s15 + $0x130] sm:$0xff] }
  0x22   : > { %v432_v20 = vld [vmem:[%s1741_s15 + $0x140] sm:$0xff]  ;;  %429 = vst [vmem:[%s1746_s16 + $0x90] sm:$0xff] %v428_v18  ;;  %431 = vst [vmem:[%s1746_s16 + $0x98] sm:$0xff] %v430_v19  ;;  %v434_v21 = vld [vmem:[%s1741_s15 + $0x150] sm:$0xff] }
  0x23   : > { %433 = vst [vmem:[%s1746_s16 + $0xa0] sm:$0xff] %v432_v20  ;;  %v436_v22 = vld [vmem:[%s1741_s15 + $0x160] sm:$0xff]  ;;  %v438_v23 = vld [vmem:[%s1741_s15 + $0x170] sm:$0xff]  ;;  %435 = vst [vmem:[%s1746_s16 + $0xa8] sm:$0xff] %v434_v21 }
  0x24   : > { %437 = vst [vmem:[%s1746_s16 + $0xb0] sm:$0xff] %v436_v22  ;;  %439 = vst [vmem:[%s1746_s16 + $0xb8] sm:$0xff] %v438_v23  ;;  %v440_v24 = vld [vmem:[%s1741_s15 + $0x180] sm:$0xff]  ;;  %v442_v25 = vld [vmem:[%s1741_s15 + $0x190] sm:$0xff] }
  0x25   : > { %v444_v26 = vld [vmem:[%s1741_s15 + $0x1a0] sm:$0xff]  ;;  %441 = vst [vmem:[%s1746_s16 + $0xc0] sm:$0xff] %v440_v24  ;;  %443 = vst [vmem:[%s1746_s16 + $0xc8] sm:$0xff] %v442_v25  ;;  %v446_v27 = vld [vmem:[%s1741_s15 + $0x1b0] sm:$0xff] }
  0x26   : > { %445 = vst [vmem:[%s1746_s16 + $0xd0] sm:$0xff] %v444_v26  ;;  %v448_v28 = vld [vmem:[%s1741_s15 + $0x1c0] sm:$0xff]  ;;  %v450_v29 = vld [vmem:[%s1741_s15 + $0x1d0] sm:$0xff]  ;;  %447 = vst [vmem:[%s1746_s16 + $0xd8] sm:$0xff] %v446_v27 }
  0x27   : > { %449 = vst [vmem:[%s1746_s16 + $0xe0] sm:$0xff] %v448_v28  ;;  %451 = vst [vmem:[%s1746_s16 + $0xe8] sm:$0xff] %v450_v29  ;;  %v452_v30 = vld [vmem:[%s1741_s15 + $0x1e0] sm:$0xff]  ;;  %v454_v31 = vld [vmem:[%s1741_s15 + $0x1f0] sm:$0xff] }
  0x28   : > { %v456_v32 = vld [vmem:[%s1741_s15 + $0x200] sm:$0xff]  ;;  %453 = vst [vmem:[%s1746_s16 + $0xf0] sm:$0xff] %v452_v30  ;;  %455 = vst [vmem:[%s1746_s16 + $0xf8] sm:$0xff] %v454_v31  ;;  %v458_v33 = vld [vmem:[%s1741_s15 + $0x210] sm:$0xff] }
  0x29   : > { %457 = vst [vmem:[%s1746_s16 + $0x100] sm:$0xff] %v456_v32  ;;  %v460_v34 = vld [vmem:[%s1741_s15 + $0x220] sm:$0xff]  ;;  %v462_v35 = vld [vmem:[%s1741_s15 + $0x230] sm:$0xff]  ;;  %459 = vst [vmem:[%s1746_s16 + $0x108] sm:$0xff] %v458_v33 }
  0x2a   : > { %461 = vst [vmem:[%s1746_s16 + $0x110] sm:$0xff] %v460_v34  ;;  %463 = vst [vmem:[%s1746_s16 + $0x118] sm:$0xff] %v462_v35  ;;  %v464_v36 = vld [vmem:[%s1741_s15 + $0x240] sm:$0xff]  ;;  %v466_v37 = vld [vmem:[%s1741_s15 + $0x250] sm:$0xff] }
  0x2b   : > { %v468_v38 = vld [vmem:[%s1741_s15 + $0x260] sm:$0xff]  ;;  %465 = vst [vmem:[%s1746_s16 + $0x120] sm:$0xff] %v464_v36  ;;  %467 = vst [vmem:[%s1746_s16 + $0x128] sm:$0xff] %v466_v37  ;;  %v470_v39 = vld [vmem:[%s1741_s15 + $0x270] sm:$0xff] }
  0x2c   : > { %469 = vst [vmem:[%s1746_s16 + $0x130] sm:$0xff] %v468_v38  ;;  %v472_v40 = vld [vmem:[%s1741_s15 + $0x280] sm:$0xff]  ;;  %v474_v41 = vld [vmem:[%s1741_s15 + $0x290] sm:$0xff]  ;;  %471 = vst [vmem:[%s1746_s16 + $0x138] sm:$0xff] %v470_v39 }
  0x2d   : > { %473 = vst [vmem:[%s1746_s16 + $0x140] sm:$0xff] %v472_v40  ;;  %475 = vst [vmem:[%s1746_s16 + $0x148] sm:$0xff] %v474_v41  ;;  %v476_v42 = vld [vmem:[%s1741_s15 + $0x2a0] sm:$0xff]  ;;  %v478_v43 = vld [vmem:[%s1741_s15 + $0x2b0] sm:$0xff] }
  0x2e   : > { %v480_v44 = vld [vmem:[%s1741_s15 + $0x2c0] sm:$0xff]  ;;  %477 = vst [vmem:[%s1746_s16 + $0x150] sm:$0xff] %v476_v42  ;;  %479 = vst [vmem:[%s1746_s16 + $0x158] sm:$0xff] %v478_v43  ;;  %v482_v45 = vld [vmem:[%s1741_s15 + $0x2d0] sm:$0xff] }
  0x2f   : > { %481 = vst [vmem:[%s1746_s16 + $0x160] sm:$0xff] %v480_v44  ;;  %v484_v46 = vld [vmem:[%s1741_s15 + $0x2e0] sm:$0xff]  ;;  %v486_v47 = vld [vmem:[%s1741_s15 + $0x2f0] sm:$0xff]  ;;  %483 = vst [vmem:[%s1746_s16 + $0x168] sm:$0xff] %v482_v45 }
  0x30   : > { %485 = vst [vmem:[%s1746_s16 + $0x170] sm:$0xff] %v484_v46  ;;  %487 = vst [vmem:[%s1746_s16 + $0x178] sm:$0xff] %v486_v47  ;;  %v488_v48 = vld [vmem:[%s1741_s15 + $0x300] sm:$0xff]  ;;  %v490_v49 = vld [vmem:[%s1741_s15 + $0x310] sm:$0xff] }
  0x31   : > { %v492_v50 = vld [vmem:[%s1741_s15 + $0x320] sm:$0xff]  ;;  %489 = vst [vmem:[%s1746_s16 + $0x180] sm:$0xff] %v488_v48  ;;  %491 = vst [vmem:[%s1746_s16 + $0x188] sm:$0xff] %v490_v49  ;;  %v494_v51 = vld [vmem:[%s1741_s15 + $0x330] sm:$0xff] }
  0x32   : > { %493 = vst [vmem:[%s1746_s16 + $0x190] sm:$0xff] %v492_v50  ;;  %v496_v52 = vld [vmem:[%s1741_s15 + $0x340] sm:$0xff]  ;;  %v498_v53 = vld [vmem:[%s1741_s15 + $0x350] sm:$0xff]  ;;  %495 = vst [vmem:[%s1746_s16 + $0x198] sm:$0xff] %v494_v51 }
  0x33   : > { %497 = vst [vmem:[%s1746_s16 + $0x1a0] sm:$0xff] %v496_v52  ;;  %499 = vst [vmem:[%s1746_s16 + $0x1a8] sm:$0xff] %v498_v53  ;;  %v500_v54 = vld [vmem:[%s1741_s15 + $0x360] sm:$0xff]  ;;  %v502_v55 = vld [vmem:[%s1741_s15 + $0x370] sm:$0xff] }
  0x34   : > { %v504_v56 = vld [vmem:[%s1741_s15 + $0x380] sm:$0xff]  ;;  %501 = vst [vmem:[%s1746_s16 + $0x1b0] sm:$0xff] %v500_v54  ;;  %503 = vst [vmem:[%s1746_s16 + $0x1b8] sm:$0xff] %v502_v55  ;;  %v506_v57 = vld [vmem:[%s1741_s15 + $0x390] sm:$0xff] }
  0x35   : > { %505 = vst [vmem:[%s1746_s16 + $0x1c0] sm:$0xff] %v504_v56  ;;  %v508_v58 = vld [vmem:[%s1741_s15 + $0x3a0] sm:$0xff]  ;;  %v510_v59 = vld [vmem:[%s1741_s15 + $0x3b0] sm:$0xff]  ;;  %507 = vst [vmem:[%s1746_s16 + $0x1c8] sm:$0xff] %v506_v57 }
  0x36   : > { %509 = vst [vmem:[%s1746_s16 + $0x1d0] sm:$0xff] %v508_v58  ;;  %511 = vst [vmem:[%s1746_s16 + $0x1d8] sm:$0xff] %v510_v59  ;;  %v512_v60 = vld [vmem:[%s1741_s15 + $0x3c0] sm:$0xff]  ;;  %v514_v61 = vld [vmem:[%s1741_s15 + $0x3d0] sm:$0xff] }
  0x37   : > { %v516_v62 = vld [vmem:[%s1741_s15 + $0x3e0] sm:$0xff]  ;;  %513 = vst [vmem:[%s1746_s16 + $0x1e0] sm:$0xff] %v512_v60  ;;  %515 = vst [vmem:[%s1746_s16 + $0x1e8] sm:$0xff] %v514_v61  ;;  %v518_v63 = vld [vmem:[%s1741_s15 + $0x3f0] sm:$0xff] }
  0x38   : > { %517 = vst [vmem:[%s1746_s16 + $0x1f0] sm:$0xff] %v516_v62  ;;  %519 = vst [vmem:[%s1746_s16 + $0x1f8] sm:$0xff] %v518_v63 }
  0x39 PF: > { %p1354_p7 = scmp.ge.s32.totalorder %s1648_s24, 1  ;;  %p553_p8 = scmp.lt.s32.totalorder %s1648_s24, 19 }
  0x3b   : > { %p554_p9 = pnand %p1354_p7, %p553_p8 }
  0x3c   : > { %s560_s17 = sand.u32 (!%p554_p9), 1, %s1624_s18   ;;  %s1356_s27 = sshll.u32 (!%p554_p9), %s1632_s20, 2 }
  0x3d   : > { %557 = sbr.rel (%p554_p9) target bundleno = 378 (0x17a), region = 74  ;;  %s1355_s28 = sshll.u32 (!%p554_p9), %s560_s17, 9 }
  0x3e   : > { %p620_p10 = scmp.lt.s32.totalorder (!%p554_p9), %s1356_s27, 35  ;;  %s1358_s29 = sshll.u32 (!%p554_p9), %s1636_s21, 1 }
  0x3f   : > { %p630_p11 = scmp.lt.s32.totalorder (!%p554_p9), %s1358_s29, 3  ;;  %s1904_s8 = scalar_lea.vmem (!%p554_p9), [#allocation3], %s1355_s28 }
  0x40   : > { %p1364_p12 = scmp.ne.s32.totalorder (!%p554_p9), %s1632_s20, 0 }
  0x44   : > { %s2028_s27 = smov (!%p620_p10, %s1356_s27), 35  ;;  %s2030_s29 = smov (!%p630_p11, %s1358_s29), 3 }
  0x45   : > { %s1357_s30 = sshll.u32 %s2028_s27, 2  ;;  %s632_s18 = scalar_lea.vmem %s2011_s2, %s2030_s29  ;;  %v1650_v0 = vmov (!%p1364_p12), 0.0  }
  0x46   : > { %s1881_s9 = scalar_lea.vmem %s2009_s0, %s1357_s30  ;;  %s637_s21 = scalar_lea.vmem %s2012_s3, %s2030_s29  ;;  %663 = vst [vmem:[#allocation2] sm:$0xff] (!%p1364_p12), %v1650_v0  ;;  %664 = vst [vmem:[#allocation2 + $0x8] sm:$0xff] (!%p1364_p12), %v1650_v0 }
  0x47   : > { %s1361_s14 = sshll.u32 %s2030_s29, 3  ;;  %662 = sbr.rel (%p1364_p12) target bundleno = 78 (0x4e), region = 82 }
  0x48   : > { %s1897_s17 = scalar_lea.vmem %s2013_s4, %s1361_s14  ;;  %s1902_s7 = scalar_lea.vmem %s2014_s5, %s1361_s14 }
  0x4e PF: > { %v1494_v1 = vld [vmem:[%s1904_s8 + $0x4] ss:$8 sps:$4 sm:$0xff]   ;;  %v1498_v3 = vld [vmem:[%s1904_s8] ss:$8 sps:$4 sm:$0xff]   ;;  %v1500_v5 = vld [vmem:[%s1904_s8 + $0x14] ss:$8 sps:$4 sm:$0xff]  }
  0x4f   : > { %v1496_v2 = vld [vmem:[%s1904_s8 + $0x104] ss:$8 sps:$4 sm:$0xff]   ;;  %1067 = vmatprep.subr.bf16.mxu0 %v1494_v1  ;;  %v1499_v4 = vld [vmem:[%s1904_s8 + $0x100] ss:$8 sps:$4 sm:$0xff]   ;;  %v1502_v6 = vld [vmem:[%s1904_s8 + $0x114] ss:$8 sps:$4 sm:$0xff]  }
  0x50   : > { %1108 = vmatprep.subr.bf16.mxu1 %v1496_v2  ;;  %1068 = vmatpush1.bf16.msra.mxu0 %v1498_v3  ;;  %v1504_v7 = vld [vmem:[%s1904_s8 + $0x10] ss:$8 sps:$4 sm:$0xff]   ;;  %v1506_v9 = vld [vmem:[%s1904_s8 + $0x24] ss:$8 sps:$4 sm:$0xff]   ;;  %v1510_v11 = vld [vmem:[%s1904_s8 + $0x20] ss:$8 sps:$4 sm:$0xff]  }
  0x51   : > { %1109 = vmatpush1.bf16.msra.mxu1 %v1499_v4  ;;  %1069 = vmatprep.subr.bf16.mxu0 %v1500_v5  ;;  %v1505_v8 = vld [vmem:[%s1904_s8 + $0x110] ss:$8 sps:$4 sm:$0xff]   ;;  %v1508_v10 = vld [vmem:[%s1904_s8 + $0x124] ss:$8 sps:$4 sm:$0xff]   ;;  %v1511_v12 = vld [vmem:[%s1904_s8 + $0x120] ss:$8 sps:$4 sm:$0xff]  }
  0x52   : > { %1110 = vmatprep.subr.bf16.mxu1 %v1502_v6  ;;  %v1512_v13 = vld [vmem:[%s1904_s8 + $0x34] ss:$8 sps:$4 sm:$0xff]   ;;  %v1516_v15 = vld [vmem:[%s1904_s8 + $0x30] ss:$8 sps:$4 sm:$0xff]   ;;  %v1518_v17 = vld [vmem:[%s1904_s8 + $0x44] ss:$8 sps:$4 sm:$0xff]  }
  0x53   : > { %v1514_v14 = vld [vmem:[%s1904_s8 + $0x134] ss:$8 sps:$4 sm:$0xff]   ;;  %v1517_v16 = vld [vmem:[%s1904_s8 + $0x130] ss:$8 sps:$4 sm:$0xff]   ;;  %v1520_v18 = vld [vmem:[%s1904_s8 + $0x144] ss:$8 sps:$4 sm:$0xff]  }
  0x54   : > { %1070 = vmatpush1.bf16.msra.mxu0 %v1504_v7  ;;  %v1522_v19 = vld [vmem:[%s1904_s8 + $0x40] ss:$8 sps:$4 sm:$0xff]   ;;  %v1524_v21 = vld [vmem:[%s1904_s8 + $0x54] ss:$8 sps:$4 sm:$0xff]   ;;  %v1528_v23 = vld [vmem:[%s1904_s8 + $0x50] ss:$8 sps:$4 sm:$0xff]  }
  0x55   : > { %1111 = vmatpush1.bf16.msra.mxu1 %v1505_v8  ;;  %1071 = vmatprep.subr.bf16.mxu0 %v1506_v9  ;;  %v1523_v20 = vld [vmem:[%s1904_s8 + $0x140] ss:$8 sps:$4 sm:$0xff]   ;;  %v1526_v22 = vld [vmem:[%s1904_s8 + $0x154] ss:$8 sps:$4 sm:$0xff]   ;;  %v1529_v24 = vld [vmem:[%s1904_s8 + $0x150] ss:$8 sps:$4 sm:$0xff]  }
  0x56   : > { %1112 = vmatprep.subr.bf16.mxu1 %v1508_v10  ;;  %v1530_v25 = vld [vmem:[%s1904_s8 + $0x64] ss:$8 sps:$4 sm:$0xff]   ;;  %v1534_v27 = vld [vmem:[%s1904_s8 + $0x60] ss:$8 sps:$4 sm:$0xff]   ;;  %v1536_v29 = vld [vmem:[%s1904_s8 + $0x74] ss:$8 sps:$4 sm:$0xff]  }
  0x57   : > { %v1532_v26 = vld [vmem:[%s1904_s8 + $0x164] ss:$8 sps:$4 sm:$0xff]   ;;  %v1535_v28 = vld [vmem:[%s1904_s8 + $0x160] ss:$8 sps:$4 sm:$0xff]   ;;  %v1538_v30 = vld [vmem:[%s1904_s8 + $0x174] ss:$8 sps:$4 sm:$0xff]  }
  0x58   : > { %1072 = vmatpush1.bf16.msra.mxu0 %v1510_v11  ;;  %v1540_v31 = vld [vmem:[%s1904_s8 + $0x70] ss:$8 sps:$4 sm:$0xff]   ;;  %v1542_v33 = vld [vmem:[%s1904_s8 + $0x84] ss:$8 sps:$4 sm:$0xff]   ;;  %v1546_v35 = vld [vmem:[%s1904_s8 + $0x80] ss:$8 sps:$4 sm:$0xff]  }
  0x59   : > { %1113 = vmatpush1.bf16.msra.mxu1 %v1511_v12  ;;  %1073 = vmatprep.subr.bf16.mxu0 %v1512_v13  ;;  %v1541_v32 = vld [vmem:[%s1904_s8 + $0x170] ss:$8 sps:$4 sm:$0xff]   ;;  %v1544_v34 = vld [vmem:[%s1904_s8 + $0x184] ss:$8 sps:$4 sm:$0xff]   ;;  %v1547_v36 = vld [vmem:[%s1904_s8 + $0x180] ss:$8 sps:$4 sm:$0xff]  }
  0x5a   : > { %1114 = vmatprep.subr.bf16.mxu1 %v1514_v14  ;;  %v1548_v37 = vld [vmem:[%s1904_s8 + $0x94] ss:$8 sps:$4 sm:$0xff]   ;;  %v1552_v39 = vld [vmem:[%s1904_s8 + $0x90] ss:$8 sps:$4 sm:$0xff]   ;;  %v1554_v41 = vld [vmem:[%s1904_s8 + $0xa4] ss:$8 sps:$4 sm:$0xff]  }
  0x5b   : > { %v1550_v38 = vld [vmem:[%s1904_s8 + $0x194] ss:$8 sps:$4 sm:$0xff]   ;;  %v1553_v40 = vld [vmem:[%s1904_s8 + $0x190] ss:$8 sps:$4 sm:$0xff]   ;;  %v1556_v42 = vld [vmem:[%s1904_s8 + $0x1a4] ss:$8 sps:$4 sm:$0xff]  }
  0x5c   : > { %1074 = vmatpush1.bf16.msra.mxu0 %v1516_v15  ;;  %v1558_v43 = vld [vmem:[%s1904_s8 + $0xa0] ss:$8 sps:$4 sm:$0xff]   ;;  %v1560_v45 = vld [vmem:[%s1904_s8 + $0xb4] ss:$8 sps:$4 sm:$0xff]   ;;  %v1564_v50 = vld [vmem:[%s1904_s8 + $0xb0] ss:$8 sps:$4 sm:$0xff]  }
  0x5d   : > { %1115 = vmatpush1.bf16.msra.mxu1 %v1517_v16  ;;  %1075 = vmatprep.subr.bf16.mxu0 %v1518_v17  ;;  %v1559_v44 = vld [vmem:[%s1904_s8 + $0x1a0] ss:$8 sps:$4 sm:$0xff]   ;;  %v1562_v46 = vld [vmem:[%s1904_s8 + $0x1b4] ss:$8 sps:$4 sm:$0xff]   ;;  %v1565_v51 = vld [vmem:[%s1904_s8 + $0x1b0] ss:$8 sps:$4 sm:$0xff]  }
  0x5e   : > { %1116 = vmatprep.subr.bf16.mxu1 %v1520_v18  ;;  %v667_v47 = vld [vmem:[%s1881_s9] sm:$0xff]  ;;  %v668_v49 = vld [vmem:[%s1881_s9 + $0x8] sm:$0xff]  ;;  %v1566_v53 = vld [vmem:[%s1904_s8 + $0xc4] ss:$8 sps:$4 sm:$0xff]   ;;  %p1433_p13 = scmp.ne.s32.totalorder %s1632_s20, 8 }
  0x5f   : > { %v1366_v48 = vcombine.high %v667_v47, %v667_v47  ;;  %v1368_v52 = vcombine.high %v668_v49, %v668_v49  ;;  %v1568_v54 = vld [vmem:[%s1904_s8 + $0x1c4] ss:$8 sps:$4 sm:$0xff]   ;;  %v1570_v55 = vld [vmem:[%s1904_s8 + $0xc0] ss:$8 sps:$4 sm:$0xff]   ;;  %v1572_v57 = vld [vmem:[%s1904_s8 + $0xd4] ss:$8 sps:$4 sm:$0xff]   ;;  %v1365_v5 = vcombine.low %v667_v47, %v667_v47  ;;  %v1367_v6 = vcombine.low %v668_v49, %v668_v49 }
  0x60   : > { %1076 = vmatpush1.bf16.msra.mxu0 %v1522_v19  ;;  %v1571_v56 = vld [vmem:[%s1904_s8 + $0x1c0] ss:$8 sps:$4 sm:$0xff]   ;;  %v1574_v58 = vld [vmem:[%s1904_s8 + $0x1d4] ss:$8 sps:$4 sm:$0xff]   ;;  %v1576_v59 = vld [vmem:[%s1904_s8 + $0xd0] ss:$8 sps:$4 sm:$0xff]  }
  0x61   : > { %1117 = vmatpush1.bf16.msra.mxu1 %v1523_v20  ;;  %1077 = vmatprep.subr.bf16.mxu0 %v1524_v21  ;;  %v1577_v60 = vld [vmem:[%s1904_s8 + $0x1d0] ss:$8 sps:$4 sm:$0xff]   ;;  %v1578_v61 = vld [vmem:[%s1904_s8 + $0xe4] ss:$8 sps:$4 sm:$0xff]   ;;  %v1582_v63 = vld [vmem:[%s1904_s8 + $0xe0] ss:$8 sps:$4 sm:$0xff]   ;;  %v1161_v21 = vlaneseq (!%p1433_p13) }
  0x62   : > { %1118 = vmatprep.subr.bf16.mxu1 %v1526_v22  ;;  %1099 = vmatprep.mubr.bf16.mxu0 %v1366_v48  ;;  %v1580_v62 = vld [vmem:[%s1904_s8 + $0x1e4] ss:$8 sps:$4 sm:$0xff]   ;;  %v1583_v0 = vld [vmem:[%s1904_s8 + $0x1e0] ss:$8 sps:$4 sm:$0xff]   ;;  %v1584_v1 = vld [vmem:[%s1904_s8 + $0xf4] ss:$8 sps:$4 sm:$0xff]  }
  0x63   : > { %1140 = vmatprep.mubr.bf16.mxu1 %v1368_v52  ;;  %v1586_v2 = vld [vmem:[%s1904_s8 + $0x1f4] ss:$8 sps:$4 sm:$0xff]   ;;  %v1588_v3 = vld [vmem:[%s1904_s8 + $0xf0] ss:$8 sps:$4 sm:$0xff]   ;;  %v1162_v22 = vshrl.u32 (!%p1433_p13), %v1161_v21, 7 }
  0x64   : > { %1078 = vmatpush1.bf16.msra.mxu0 %v1528_v23  ;;  %v1589_v4 = vld [vmem:[%s1904_s8 + $0x1f0] ss:$8 sps:$4 sm:$0xff]  }
  0x65   : > { %1119 = vmatpush1.bf16.msra.mxu1 %v1529_v24  ;;  %1079 = vmatprep.subr.bf16.mxu0 %v1530_v25  ;;  %v665_v8 = vld [vmem:[#allocation2] sm:$0xff]  ;;  %v666_v12 = vld [vmem:[#allocation2 + $0x8] sm:$0xff]  ;;  %v1163_v25 = vsub.s32 (!%p1433_p13), 0, %v1162_v22 }
  0x66   : > { %1120 = vmatprep.subr.bf16.mxu1 %v1532_v26  ;;  %v1159_v23 = vld [vmem:[%s632_s18] sm:$0x3] (!%p1433_p13)  ;;  %v1167_v26 = vsub.s32 (!%p1433_p13), 1, %v1162_v22 }
  0x67   : > { %v1173_v24 = vld [vmem:[%s637_s21] sm:$0x3] (!%p1433_p13) }
  0x68   : > { %1080 = vmatpush1.bf16.msra.mxu0 %v1534_v27 }
  0x69   : > { %1121 = vmatpush1.bf16.msra.mxu1 %v1535_v28  ;;  %1081 = vmatprep.subr.bf16.mxu0 %v1536_v29  ;;  %v1164_v29 = vrot.slane (!%p1433_p13), %v1159_v23, %v1163_v25 }
  0x6a   : > { %1122 = vmatprep.subr.bf16.mxu1 %v1538_v30  ;;  %v1178_v30 = vrot.slane (!%p1433_p13), %v1173_v24, %v1163_v25 }
  0x6c   : > { %1082 = vmatpush1.bf16.msra.mxu0 %v1540_v31  ;;  %v1168_v31 = vrot.slane (!%p1433_p13), %v1159_v23, %v1167_v26 }
  0x6d   : > { %1123 = vmatpush1.bf16.msra.mxu1 %v1541_v32  ;;  %1083 = vmatprep.subr.bf16.mxu0 %v1542_v33  ;;  %v1182_v32 = vrot.slane (!%p1433_p13), %v1173_v24, %v1167_v26 }
  0x6e   : > { %1124 = vmatprep.subr.bf16.mxu1 %v1544_v34 }
  0x70   : > { %1084 = vmatpush1.bf16.msra.mxu0 %v1546_v35  ;;  %v1187_v35 = vld [vmem:[%s1897_s17] sm:$0xff] (!%p1433_p13) }
  0x71   : > { %1125 = vmatpush1.bf16.msra.mxu1 %v1547_v36  ;;  %1085 = vmatprep.subr.bf16.mxu0 %v1548_v37  ;;  %v1188_v36 = vld [vmem:[%s1897_s17 + $0x8] sm:$0xff] (!%p1433_p13) }
  0x72   : > { %1126 = vmatprep.subr.bf16.mxu1 %v1550_v38 }
  0x74   : > { %1086 = vmatpush1.bf16.msra.mxu0 %v1552_v39 }
  0x75   : > { %1127 = vmatpush1.bf16.msra.mxu1 %v1553_v40  ;;  %1087 = vmatprep.subr.bf16.mxu0 %v1554_v41 }
  0x76   : > { %1128 = vmatprep.subr.bf16.mxu1 %v1556_v42 }
  0x78   : > { %1088 = vmatpush1.bf16.msra.mxu0 %v1558_v43 }
  0x79   : > { %1129 = vmatpush1.bf16.msra.mxu1 %v1559_v44  ;;  %1089 = vmatprep.subr.bf16.mxu0 %v1560_v45 }
  0x7a   : > { %1130 = vmatprep.subr.bf16.mxu1 %v1562_v46 }
  0x7c   : > { %1090 = vmatpush1.bf16.msra.mxu0 %v1564_v50 }
  0x7d   : > { %1131 = vmatpush1.bf16.msra.mxu1 %v1565_v51  ;;  %1091 = vmatprep.subr.bf16.mxu0 %v1566_v53 }
  0x7e   : > { %1132 = vmatprep.subr.bf16.mxu1 %v1568_v54 }
  0x80   : > { %1092 = vmatpush1.bf16.msra.mxu0 %v1570_v55 }
  0x81   : > { %1133 = vmatpush1.bf16.msra.mxu1 %v1571_v56  ;;  %1093 = vmatprep.subr.bf16.mxu0 %v1572_v57 }
  0x82   : > { %1134 = vmatprep.subr.bf16.mxu1 %v1574_v58 }
  0x84   : > { %1094 = vmatpush1.bf16.msra.mxu0 %v1576_v59 }
  0x85   : > { %1135 = vmatpush1.bf16.msra.mxu1 %v1577_v60  ;;  %1095 = vmatprep.subr.bf16.mxu0 %v1578_v61 }
  0x86   : > { %1136 = vmatprep.subr.bf16.mxu1 %v1580_v62 }
  0x88   : > { %1096 = vmatpush1.bf16.msra.mxu0 %v1582_v63 }
  0x89   : > { %1137 = vmatpush1.bf16.msra.mxu1 %v1583_v0  ;;  %1097 = vmatprep.subr.bf16.mxu0 %v1584_v1 }
  0x8a   : > { %1138 = vmatprep.subr.bf16.mxu1 %v1586_v2 }
  0x8c   : > { %1098 = vmatpush1.bf16.msra.mxu0 %v1588_v3 }
  0x8d   : > { %1139 = vmatpush1.bf16.msra.mxu1 %v1589_v4 }
  0x8f   : > { %1100 = vmatmul.mubr.bf16.vlgmr.msra.gmra.mrb[0].mxu0 %v1365_v5 }
  0x90   : > { %1141 = vmatmul.mubr.bf16.vlgmr.msra.gmra.mrb[0].mxu1 %v1367_v6 }
 0x162   : > { %v1101_v7 = vpop.f32.mrb[0].mxu0 }
 0x163   : > { %v1142_v9 = vpop.f32.mrb[0].mxu1  ;;  %v1103_v11 = vpop.f32.mrb[1].mxu0  ;;  %1156 = sbr.rel (%p1433_p13) target bundleno = 378 (0x17a), region = 86 }
 0x164   : > { %v1143_v10 = vadd.f32 %v1142_v9, %v1101_v7  ;;  %v1144_v13 = vpop.f32.mrb[1].mxu1  ;;  %v1105_v15 = vpop.f32.mrb[2].mxu0 }
 0x165   : > { %v1145_v14 = vadd.f32 %v1144_v13, %v1103_v11  ;;  %v1146_v16 = vpop.f32.mrb[2].mxu1  ;;  %v1106_v18 = vpop.f32.mrb[3].mxu0 }
 0x166   : > { %v1149_v17 = vadd.f32 %v1143_v10, %v665_v8  ;;  %v1147_v19 = vpop.f32.mrb[3].mxu1 }
 0x167   : > { %v1150_v20 = vadd.f32 %v1145_v14, %v666_v12 }
 0x168   : > { %1151 = vst [vmem:[#allocation2] sm:$0xff] %v1149_v17 }
 0x169   : > { %1152 = vst [vmem:[#allocation2 + $0x8] sm:$0xff] %v1150_v20 }
 0x16f   : > { %v1157_v27 = vld [vmem:[#allocation2] sm:$0xff] }
 0x170   : > { %v1158_v28 = vld [vmem:[#allocation2 + $0x8] sm:$0xff]  ;;  %v1171_v33 = vmul.f32 %v1164_v29, %v1157_v27 }
 0x171   : > { %v1172_v34 = vmul.f32 %v1168_v31, %v1158_v28 }
 0x172   : > { %v1185_v37 = vadd.f32 %v1178_v30, %v1171_v33 }
 0x173   : > { %v1186_v38 = vadd.f32 %v1182_v32, %v1172_v34 }
 0x174   : > { %v1189_v39 = vadd.f32 %v1187_v35, %v1185_v37 }
 0x175   : > { %v1190_v40 = vadd.f32 %v1188_v36, %v1186_v38 }
 0x176   : > { %v1191_v41 = vmax.f32 %v1189_v39, 0.0 }
 0x177   : > { %v1192_v42 = vmax.f32 %v1190_v40, 0.0 }
 0x178   : > { %1193 = vst [vmem:[%s1902_s7] sm:$0xff] %v1191_v41 }
 0x179   : > { %1194 = vst [vmem:[%s1902_s7 + $0x8] sm:$0xff] %v1192_v42 }
 0x17a PF: > { %s15_s24 = sadd.s32 1, %s1648_s24   ;;  %s2015_s18 = smov %s1628_s19 }
 0x17b   : > { %p12_p0 = scmp.ge.s32.totalorder %s15_s24, 20   ;;  %s2016_s19 = smov %s1732_s6 }
 0x17c   : > { %s2017_s20 = smov %s1640_s22  ;;  %s2018_s21 = smov %s1644_s23 }
 0x17d   : > { %s2019_s22 = smov %s2022_s25  ;;  %s2020_s23 = smov %s2026_s26 }
 0x17e   :  { %14 = sbr.rel (!%p12_p0) target bundleno = 4 (0x4), region = 133 }

// kernel: resnet_forward.27
= control target key start
LH: loop header
LB: loop body
LE: loop exit
PB: predicated region body
PF: predicated region fallthrough
CT: control target
= control target key end

     0   :  { %v446_v51 = vmov 1966171168   ;;  %v96_v53 = vlaneseq  ;;  %s678_s0 = inlined_call_operand.vmem [shape: f32[2,1,512], index: 0, kind: input, shape index: {}]   ;;  %s679_s1 = inlined_call_operand.vmem [shape: f32[512,10], index: 1, kind: input, shape index: {}]   ;;  %s680_s2 = inlined_call_operand.vmem [shape: f32[1,10], index: 2, kind: input, shape index: {}]   ;;  %s681_s3 = inlined_call_operand.hbm [shape: f32[2,10], index: 3, kind: output, shape index: {}]  }
   0x1   :  { %v35_v0 = vld [vmem:[%s679_s1 + $0x80] sm:$0xff]  ;;  %v36_v1 = vld [vmem:[%s679_s1 + $0x88] sm:$0xff]  ;;  %v37_v11 = vld [vmem:[%s679_s1 + $0x90] sm:$0xff]  ;;  %v94_v52 = vunpack.c.l.s4 %v446_v51 }
   0x2   :  { %v19_v2 = vld [vmem:[%s679_s1] sm:$0xff]  ;;  %v352_v3 = vpack.c.bf16 %v36_v1, %v35_v0  ;;  %v20_v4 = vld [vmem:[%s679_s1 + $0x8] sm:$0xff]  ;;  %v38_v13 = vld [vmem:[%s679_s1 + $0x98] sm:$0xff] }
   0x3   :  { %v67_v5 = vld [vmem:[%s679_s1 + $0x180] sm:$0xff]  ;;  %v68_v6 = vld [vmem:[%s679_s1 + $0x188] sm:$0xff]  ;;  %v354_v7 = vpack.c.bf16 %v20_v4, %v19_v2  ;;  %v21_v14 = vld [vmem:[%s679_s1 + $0x10] sm:$0xff]  ;;  %v356_v16 = vpack.c.bf16 %v38_v13, %v37_v11  ;;  %v95_v2 = vunpack.c.0.s8 %v94_v52 }
   0x4   :  { %v384_v8 = vpack.c.bf16 %v68_v6, %v67_v5  ;;  %v51_v9 = vld [vmem:[%s679_s1 + $0x100] sm:$0xff]  ;;  %v52_v10 = vld [vmem:[%s679_s1 + $0x108] sm:$0xff]  ;;  %353 = vmatprep.subr.bf16.mxu0 %v352_v3  ;;  %v22_v15 = vld [vmem:[%s679_s1 + $0x18] sm:$0xff]  ;;  %v97_v3 = vshrl.u32 %v96_v53, 7 }
   0x5   :  { %v386_v12 = vpack.c.bf16 %v52_v10, %v51_v9  ;;  %355 = vmatpush3.bf16.msra.mxu0 %v354_v7  ;;  %v358_v17 = vpack.c.bf16 %v22_v15, %v21_v14  ;;  %v69_v18 = vld [vmem:[%s679_s1 + $0x190] sm:$0xff]  ;;  %v70_v19 = vld [vmem:[%s679_s1 + $0x198] sm:$0xff]  ;;  %v39_v23 = vld [vmem:[%s679_s1 + $0xa0] sm:$0xff] }
   0x6   :  { %385 = vmatprep.subr.bf16.mxu1 %v384_v8  ;;  %v53_v20 = vld [vmem:[%s679_s1 + $0x110] sm:$0xff]  ;;  %v388_v21 = vpack.c.bf16 %v70_v19, %v69_v18  ;;  %v54_v22 = vld [vmem:[%s679_s1 + $0x118] sm:$0xff]  ;;  %v40_v24 = vld [vmem:[%s679_s1 + $0xa8] sm:$0xff]  ;;  %357 = vmatprep.subr.bf16.mxu0 %v356_v16 }
   0x7   :  { %387 = vmatpush3.bf16.msra.mxu1 %v386_v12  ;;  %v390_v25 = vpack.c.bf16 %v54_v22, %v53_v20  ;;  %v360_v26 = vpack.c.bf16 %v40_v24, %v39_v23  ;;  %v23_v27 = vld [vmem:[%s679_s1 + $0x20] sm:$0xff]  ;;  %v24_v28 = vld [vmem:[%s679_s1 + $0x28] sm:$0xff]  ;;  %v41_v35 = vld [vmem:[%s679_s1 + $0xb0] sm:$0xff]  ;;  %v98_v20 = vsub.s32 %v95_v2, %v97_v3 }
   0x8   :  { %v71_v29 = vld [vmem:[%s679_s1 + $0x1a0] sm:$0xff]  ;;  %389 = vmatprep.subr.bf16.mxu1 %v388_v21  ;;  %v72_v30 = vld [vmem:[%s679_s1 + $0x1a8] sm:$0xff]  ;;  %v362_v33 = vpack.c.bf16 %v24_v28, %v23_v27  ;;  %v42_v36 = vld [vmem:[%s679_s1 + $0xb8] sm:$0xff] }
   0x9   :  { %v55_v31 = vld [vmem:[%s679_s1 + $0x120] sm:$0xff]  ;;  %v56_v32 = vld [vmem:[%s679_s1 + $0x128] sm:$0xff]  ;;  %359 = vmatpush3.bf16.msra.mxu0 %v358_v17  ;;  %v392_v34 = vpack.c.bf16 %v72_v30, %v71_v29  ;;  %v25_v37 = vld [vmem:[%s679_s1 + $0x30] sm:$0xff]  ;;  %v364_v39 = vpack.c.bf16 %v42_v36, %v41_v35 }
   0xa   :  { %361 = vmatprep.subr.bf16.mxu0 %v360_v26  ;;  %v394_v38 = vpack.c.bf16 %v56_v32, %v55_v31  ;;  %v26_v40 = vld [vmem:[%s679_s1 + $0x38] sm:$0xff]  ;;  %v73_v41 = vld [vmem:[%s679_s1 + $0x1b0] sm:$0xff]  ;;  %v43_v46 = vld [vmem:[%s679_s1 + $0xc0] sm:$0xff] }
   0xb   :  { %391 = vmatpush3.bf16.msra.mxu1 %v390_v25  ;;  %v74_v42 = vld [vmem:[%s679_s1 + $0x1b8] sm:$0xff]  ;;  %v57_v44 = vld [vmem:[%s679_s1 + $0x130] sm:$0xff]  ;;  %v44_v47 = vld [vmem:[%s679_s1 + $0xc8] sm:$0xff]  ;;  %v366_v48 = vpack.c.bf16 %v26_v40, %v25_v37 }
   0xc   :  { %393 = vmatprep.subr.bf16.mxu1 %v392_v34  ;;  %v396_v43 = vpack.c.bf16 %v74_v42, %v73_v41  ;;  %v58_v45 = vld [vmem:[%s679_s1 + $0x138] sm:$0xff]  ;;  %v75_v49 = vld [vmem:[%s679_s1 + $0x1c0] sm:$0xff]  ;;  %v76_v50 = vld [vmem:[%s679_s1 + $0x1c8] sm:$0xff]  ;;  %v368_v55 = vpack.c.bf16 %v44_v47, %v43_v46 }
   0xd   :  { %363 = vmatpush3.bf16.msra.mxu0 %v362_v33  ;;  %v398_v54 = vpack.c.bf16 %v58_v45, %v57_v44  ;;  %v27_v56 = vld [vmem:[%s679_s1 + $0x40] sm:$0xff]  ;;  %v28_v57 = vld [vmem:[%s679_s1 + $0x48] sm:$0xff]  ;;  %v400_v59 = vpack.c.bf16 %v76_v50, %v75_v49  ;;  %v45_v61 = vld [vmem:[%s679_s1 + $0xd0] sm:$0xff] }
   0xe   :  { %365 = vmatprep.subr.bf16.mxu0 %v364_v39  ;;  %v59_v58 = vld [vmem:[%s679_s1 + $0x140] sm:$0xff]  ;;  %v60_v60 = vld [vmem:[%s679_s1 + $0x148] sm:$0xff]  ;;  %v46_v62 = vld [vmem:[%s679_s1 + $0xd8] sm:$0xff]  ;;  %v370_v1 = vpack.c.bf16 %v28_v57, %v27_v56 }
   0xf   :  { %395 = vmatpush3.bf16.msra.mxu1 %v394_v38  ;;  %v77_v63 = vld [vmem:[%s679_s1 + $0x1d0] sm:$0xff]  ;;  %v78_v0 = vld [vmem:[%s679_s1 + $0x1d8] sm:$0xff]  ;;  %v402_v4 = vpack.c.bf16 %v60_v60, %v59_v58  ;;  %v372_v5 = vpack.c.bf16 %v46_v62, %v45_v61  ;;  %v47_v11 = vld [vmem:[%s679_s1 + $0xe0] sm:$0xff] }
  0x10   :  { %397 = vmatprep.subr.bf16.mxu1 %v396_v43  ;;  %v29_v6 = vld [vmem:[%s679_s1 + $0x50] sm:$0xff]  ;;  %v30_v7 = vld [vmem:[%s679_s1 + $0x58] sm:$0xff]  ;;  %v404_v9 = vpack.c.bf16 %v78_v0, %v77_v63  ;;  %v48_v12 = vld [vmem:[%s679_s1 + $0xe8] sm:$0xff] }
  0x11   :  { %367 = vmatpush3.bf16.msra.mxu0 %v366_v48  ;;  %v61_v8 = vld [vmem:[%s679_s1 + $0x150] sm:$0xff]  ;;  %v62_v10 = vld [vmem:[%s679_s1 + $0x158] sm:$0xff]  ;;  %v31_v13 = vld [vmem:[%s679_s1 + $0x60] sm:$0xff]  ;;  %v374_v16 = vpack.c.bf16 %v30_v7, %v29_v6  ;;  %v376_v22 = vpack.c.bf16 %v48_v12, %v47_v11 }
  0x12   :  { %369 = vmatprep.subr.bf16.mxu0 %v368_v55  ;;  %v79_v14 = vld [vmem:[%s679_s1 + $0x1e0] sm:$0xff]  ;;  %v80_v15 = vld [vmem:[%s679_s1 + $0x1e8] sm:$0xff]  ;;  %v406_v21 = vpack.c.bf16 %v62_v10, %v61_v8  ;;  %v49_v23 = vld [vmem:[%s679_s1 + $0xf0] sm:$0xff] }
  0x13   :  { %399 = vmatpush3.bf16.msra.mxu1 %v398_v54  ;;  %v32_v17 = vld [vmem:[%s679_s1 + $0x68] sm:$0xff]  ;;  %v63_v18 = vld [vmem:[%s679_s1 + $0x160] sm:$0xff]  ;;  %v408_v24 = vpack.c.bf16 %v80_v15, %v79_v14  ;;  %v50_v25 = vld [vmem:[%s679_s1 + $0xf8] sm:$0xff] }
  0x14   :  { %401 = vmatprep.subr.bf16.mxu1 %v400_v59  ;;  %v64_v19 = vld [vmem:[%s679_s1 + $0x168] sm:$0xff]  ;;  %v421_v26 = vld.sshfl [vmem:[%s678_s0] sm:$0xff pattern:$0x75316420] }
  0x15   :  { %371 = vmatpush3.bf16.msra.mxu0 %v370_v1 }
  0x16   :  { %373 = vmatprep.subr.bf16.mxu0 %v372_v5 }
  0x17   :  { %403 = vmatpush3.bf16.msra.mxu1 %v402_v4 }
  0x18   :  { %405 = vmatprep.subr.bf16.mxu1 %v404_v9 }
  0x19   :  { %8 = vsyncpa [#allocation3], 0  ;;  %v81_v27 = vld [vmem:[%s679_s1 + $0x1f0] sm:$0xff]  ;;  %v82_v28 = vld [vmem:[%s679_s1 + $0x1f8] sm:$0xff]  ;;  %375 = vmatpush3.bf16.msra.mxu0 %v374_v16  ;;  %v378_v29 = vpack.c.bf16 %v32_v17, %v31_v13  ;;  %v410_v30 = vpack.c.bf16 %v64_v19, %v63_v18  ;;  %v380_v31 = vpack.c.bf16 %v50_v25, %v49_v23  ;;  %v100_v37 = vcombine.high %v421_v26, %v421_v26  ;;  %s447_s7 = smov [#allocation2]  }
  0x1a   :  { %377 = vmatprep.subr.bf16.mxu0 %v376_v22  ;;  %v33_v32 = vld [vmem:[%s679_s1 + $0x70] sm:$0xff]  ;;  %v34_v33 = vld [vmem:[%s679_s1 + $0x78] sm:$0xff]  ;;  %v412_v34 = vpack.c.bf16 %v82_v28, %v81_v27  ;;  %v107_v40 = vrot.slane %v421_v26, %v98_v20  ;;  %v281_v45 = vld [vmem:[%s680_s2] ss:$0 sm:$0xff]  ;;  %s273_s8 = sshll.u32 %s447_s7, 4  ;;  %vm265_vm0 = vcmask 74752   ;;  %s274_s8 = int_to_ptr.vmem [resolvable:$true] %s273_s8 }
  0x1b   :  { %407 = vmatpush3.bf16.msra.mxu1 %v406_v21  ;;  %v65_v35 = vld [vmem:[%s679_s1 + $0x170] sm:$0xff]  ;;  %v66_v36 = vld [vmem:[%s679_s1 + $0x178] sm:$0xff]  ;;  %v382_v38 = vpack.c.bf16 %v34_v33, %v33_v32  ;;  %v114_v39 = vrot.slane %v100_v37, %v98_v20  ;;  %s422_s9 = scalar_lea.vmem %s274_s8, 32  ;;  %p427_p1 = scmp.lt.s32.totalorder %s274_s8, %s274_s8 }
  0x1c   :  { %409 = vmatprep.subr.bf16.mxu1 %v408_v24  ;;  %v414_v41 = vpack.c.bf16 %v66_v36, %v65_v35  ;;  %v115_v43 = vcombine.high %v107_v40, %v107_v40  ;;  %p423_p0 = scmp.ne.s32.totalorder %s274_s8, %s422_s9  ;;  %p428_p2 = scmp.lt.s32.totalorder %s422_s9, %s422_s9 }
  0x1d   :  { %379 = vmatpush3.bf16.msra.mxu0 %v378_v29  ;;  %185 = vmatprep.mubr.f32.mxu0 %v114_v39  ;;  %v116_v42 = vcombine.high %v114_v39, %v114_v39 }
  0x1e   :  { %381 = vmatprep.subr.bf16.mxu0 %v380_v31  ;;  %p429_p3 = por %p428_p2, %p427_p1 }
  0x1f   :  { %411 = vmatpush3.bf16.msra.mxu1 %v410_v30  ;;  %255 = vmatprep.mubr.f32.mxu1 %v116_v42 }
  0x20   :  { %413 = vmatprep.subr.bf16.mxu1 %v412_v34  ;;  %p430_p4 = pnand %p429_p3, %p423_p0 }
  0x21   :  { %383 = vmatpush3.bf16.msra.mxu0 %v382_v38 }
  0x23   :  { %415 = vmatpush3.bf16.msra.mxu1 %v414_v41 }
  0x24   :  { %186 = vmatmul.mubr.f32.vlgmr.msra.gmra.mrb[0].mxu0 %v107_v40 }
  0x26   :  { %256 = vmatmul.mubr.f32.vlgmr.msra.gmra.mrb[0].mxu1 %v115_v43 }
  0xf7   :  { %v314_v44 = vpop.f32.mrb[0].mxu0 }
  0xf8   :  { %v315_v46 = vpop.f32.mrb[1].mxu0 }
  0xf9   :  { %v349_v47 = vpop.f32.mrb[0].mxu1  ;;  %v316_v48 = vadd.f32 %v315_v46, %v314_v44 }
  0xfa   :  { %v350_v49 = vpop.f32.mrb[1].mxu1 }
  0xfb   :  { %v351_v50 = vadd.f32 %v350_v49, %v349_v47  ;;  %v188_v51 = vadd.f32 %v316_v48, %v281_v45 }
  0xfd   :  { %v258_v52 = vadd.f32 %v351_v50, %v188_v51 }
  0xff   :  { %v261_v53 = vmul.f32 0.5, %v258_v52 }
 0x101   :  { %419 = vtanh.f32 %v261_v53 }
 0x10b   :  { %v420_v54 = vpop.eup %419 }
 0x10c   :  { %v263_v55 = vadd.f32 1.0, %v420_v54 }
 0x10e   :  { %v264_v56 = vmul.f32 0.5, %v263_v55 }
 0x110   :  { %266 = vst.msk [vmem:[#allocation2] sm:$0x3] %vm265_vm0, %v264_v56 }
 0x111   :  { %433 = shalt.err (!%p430_p4)
}
 0x112   :  { %s434_s11 = scalar_lea.hbm %s681_s3, 32 }
 0x113   :  { %p435_p5 = scmp.ne.s32.totalorder %s681_s3, %s434_s11  ;;  %p438_p6 = scmp.lt.u32.totalorder %s434_s11, %s681_s3 }
 0x115   :  { %p440_p7 = pnand %p438_p6, %p435_p5 }
 0x117   :  { %443 = shalt.err (!%p440_p7)
}
 0x118   :  { %276 = dma.vmem_to_hbm [thread:$0]  %s274_s8, 32, %s681_s3, [#allocation3]  }
 0x119   :  { %444 = dma.done.wait [#allocation3], 32  }
 0x11a   :  { %445 = vsyncadd [#allocation3], 4294967264 }
 0x11b   :  { %280 = vsyncpa [#allocation3], 1 }

</bundles_post_ra>
